<compile_context>
chip_gen: v7x
topology: tpu7x:2x2x1
jax: 0.10.0
libtpu: 0.0.40
codegen_flags: <defaults>
</compile_context>

<pallas_src>
import jax
import jax.numpy as jnp
from jax.experimental import pallas as pl
from jax.experimental.pallas import tpu as pltpu

# (Cin, Cout, kernel_size) for each conv in the Sequential.
_LAYER_DEFS = (
    (64, 64, 3),
    (64, 128, 3),
    (128, 256, 3),
    (256, 256, 3),   # declared Conv2d(128, 256, 3) in the reference module
    (256, 256, 3),   # declared Conv2d(128, 256, 3) in the reference module
    (256, 1, 1),
)
# PReLU placement in the Sequential: after conv #1, conv #2 and conv #4 (0-based).
_PRELU_FLAGS = (False, True, True, False, True, False)


def _spatial_dims(H, W):
    """dims[l] = spatial extent of layer l's input; dims[-1] = final output."""
    dims = [(H, W)]
    h, w = H, W
    for (_, _, k) in _LAYER_DEFS:
        h, w = h - (k - 1), w - (k - 1)
        dims.append((h, w))
    return dims


def _make_fused_kernel(H, W):
    dims = _spatial_dims(H, W)
    W0 = W  # constant flat row stride for every activation buffer

    def kernel(*refs):
        x_ref = refs[0]              # (1, H*W, 64) bf16   flat NHWC input
        wb = refs[1:13]              # w1,b1, ..., w6,b6
        alphas_ref = refs[13]        # SMEM (3,) f32 PReLU slopes
        o_ref = refs[14]             # (1, 1, Hf*W) f32    lane-dense output
        act = refs[15:]              # 5 VMEM bf16 activation scratch buffers

        # ---- five 3x3 conv layers: one MXU matmul per tap, M = all valid
        #      flat output rows; bias/PReLU applied once per layer. ----
        prelu_idx = 0
        read = lambda off, m: x_ref[0, pl.ds(off, m), :]
        for li in range(5):
            h, w = dims[li]
            m = (h - 3) * W0 + (w - 2)          # covers every valid output row
            w_ref, b_ref = wb[2 * li], wb[2 * li + 1]
            acc = None
            for dy in range(3):
                for dx in range(3):
                    part = jnp.dot(read(dy * W0 + dx, m), w_ref[dy * 3 + dx],
                                   preferred_element_type=jnp.float32)
                    acc = part if acc is None else acc + part
            acc = acc + b_ref[...]              # (1, Cout) broadcast, hoisted
            if _PRELU_FLAGS[li]:
                a = alphas_ref[prelu_idx]       # scalar from SMEM, hoisted
                prelu_idx += 1
                acc = jnp.where(acc >= 0.0, acc, a * acc)
            dst = act[li]
            dst[pl.ds(0, m), :] = acc.astype(dst.dtype)
            read = (lambda d: (lambda off, mm: d[pl.ds(off, mm), :]))(dst)

        # ---- final 1x1 conv (256 -> 1) + abs, fused as a lane-dense
        #      channel-reduction epilogue: result is (1, Hf*W), spatial on lanes. ----
        hf = dims[5][0]
        m_out = hf * W0
        m5 = (dims[4][0] - 3) * W0 + (dims[4][1] - 2)   # rows written by layer 5
        a5_ref = act[4]
        # zero the few unwritten tail rows so every lane of the output is defined
        a5_ref[pl.ds(m5, m_out - m5), :] = jnp.zeros(
            (m_out - m5, a5_ref.shape[1]), a5_ref.dtype)
        w6_ref, b6_ref = wb[10], wb[11]
        a5 = a5_ref[pl.ds(0, m_out), :]                              # (m_out, 256)
        r = jnp.dot(w6_ref[...], a5.T, preferred_element_type=jnp.float32)  # (1, m_out)
        o_ref[0] = jnp.abs(r + b6_ref[...])

    return kernel


def discriminator_forward(x_nchw, params):
    """x_nchw: (N, 64, H, W) f32; params: list of (w_hwio, b, alpha)."""
    N, C, H, W = x_nchw.shape
    dims = _spatial_dims(H, W)
    hf, wf = dims[-1]
    m_out = hf * W

    # NCHW -> flat (N, H*W, C): channels on lanes, spatial flattened (stride W).
    x = jnp.transpose(x_nchw, (0, 2, 3, 1)).reshape(N, H * W, C).astype(jnp.bfloat16)

    args = [x]
    in_specs = [pl.BlockSpec((1, H * W, C), lambda n: (n, 0, 0))]
    flops = 0
    bytes_accessed = x.size * 2
    for li, ((wgt, b, _a), (cin, cout, k)) in enumerate(zip(params, _LAYER_DEFS)):
        if k == 3:
            wk = wgt.reshape(9, cin, cout).astype(jnp.bfloat16)     # (tap, Cin, Cout)
            in_specs.append(pl.BlockSpec((9, cin, cout), lambda n: (0, 0, 0)))
        else:                                                       # final 1x1 conv
            wk = wgt.reshape(1, cin).astype(jnp.bfloat16)           # lane-dense (1, Cin)
            in_specs.append(pl.BlockSpec((1, cin), lambda n: (0, 0)))
        bk = b.reshape(1, cout).astype(jnp.float32)
        in_specs.append(pl.BlockSpec((1, cout), lambda n: (0, 0)))
        args += [wk, bk]
        h, w = dims[li]
        m = (h - 3) * W + (w - 2) if k == 3 else m_out
        flops += 2 * m * (k * k * cin) * cout * N
        bytes_accessed += wk.size * 2 + bk.size * 4

    alphas = jnp.stack(
        [a[0] for (_, _, a), f in zip(params, _PRELU_FLAGS) if f]).astype(jnp.float32)
    args.append(alphas)
    in_specs.append(pl.BlockSpec(memory_space=pltpu.MemorySpace.SMEM))

    scratch_shapes = [pltpu.VMEM((H * W, cout), jnp.bfloat16)
                      for (_, cout, _k) in _LAYER_DEFS[:-1]]

    out = pl.pallas_call(
        _make_fused_kernel(H, W),
        out_shape=jax.ShapeDtypeStruct((N, 1, m_out), jnp.float32),
        grid=(N,),
        in_specs=in_specs,
        out_specs=pl.BlockSpec((1, 1, m_out), lambda n: (n, 0, 0)),
        scratch_shapes=scratch_shapes,
        compiler_params=pltpu.CompilerParams(
            dimension_semantics=("parallel",)),
        cost_estimate=pl.CostEstimate(
            flops=int(flops), transcendentals=0,
            bytes_accessed=int(bytes_accessed + N * m_out * 4)),
    )(*args)

    # flat index = y * W + x  ->  crop the valid (hf, wf) window, return NCHW.
    y = out[:, 0, :].reshape(N, hf, W)[:, :, :wf]
    return y[:, None, :, :]


def init_params(key):
    """Matches the module init: weight ~ N(0, 0.01), bias = 0, PReLU a = 0.25."""
    params = []
    keys = jax.random.split(key, len(_LAYER_DEFS))
    for k, (cin, cout, ksz) in zip(keys, _LAYER_DEFS):
        w_oihw = 0.01 * jax.random.normal(k, (cout, cin, ksz, ksz), jnp.float32)
        w = jnp.transpose(w_oihw, (2, 3, 1, 0))      # OIHW -> HWIO (kh, kw, Cin, Cout)
        b = jnp.zeros((cout,), jnp.float32)
        alpha = jnp.full((1,), 0.25, jnp.float32)    # nn.PReLU() default
        params.append((w, b, alpha))
    return params


def _reference_forward(x_nchw, params):
    """Pure-JAX reference (lax conv) at matching precision (bf16 in, f32 accumulate)."""
    x = x_nchw
    for (w, b, a), prelu in zip(params, _PRELU_FLAGS):
        y = jax.lax.conv_general_dilated(
            x.astype(jnp.bfloat16), w.astype(jnp.bfloat16), (1, 1), "VALID",
            dimension_numbers=("NCHW", "HWIO", "NCHW"),
            preferred_element_type=jnp.float32)
        y = y + b.reshape(1, -1, 1, 1)
        if prelu:
            y = jnp.where(y >= 0.0, y, a[0] * y)
        x = y
    return jnp.abs(x)


if __name__ == "__main__":
    key = jax.random.PRNGKey(0)
    kx, kp = jax.random.split(key)
    # Small input consistent with the module: batch=2, 64 channels, 16x16 spatial (NCHW).
    x = jax.random.normal(kx, (2, 64, 16, 16), jnp.float32)
    params = init_params(kp)

    fwd = jax.jit(discriminator_forward)
    out = fwd(x, params)
    jax.block_until_ready(out)

    ref = _reference_forward(x, params)
    assert out.shape == ref.shape == (2, 1, 6, 6), (out.shape, ref.shape)
    max_err = float(jnp.max(jnp.abs(out - ref)))
    assert bool(jnp.allclose(out, ref, rtol=5e-3, atol=1e-7)), (
        "max abs diff = %g" % max_err)
    print("KERNEL_OK")
</pallas_src>

<mosaic_0001>
module attributes {stable_mosaic.version = 11 : i64} {
  func.func @kernel(%arg0: i32, %arg1: memref<1x256x64xbf16, #tpu.memory_space<vmem>>, %arg2: memref<9x64x64xbf16, #tpu.memory_space<vmem>>, %arg3: memref<1x64xf32, #tpu.memory_space<vmem>>, %arg4: memref<9x64x128xbf16, #tpu.memory_space<vmem>>, %arg5: memref<1x128xf32, #tpu.memory_space<vmem>>, %arg6: memref<9x128x256xbf16, #tpu.memory_space<vmem>>, %arg7: memref<1x256xf32, #tpu.memory_space<vmem>>, %arg8: memref<9x256x256xbf16, #tpu.memory_space<vmem>>, %arg9: memref<1x256xf32, #tpu.memory_space<vmem>>, %arg10: memref<9x256x256xbf16, #tpu.memory_space<vmem>>, %arg11: memref<1x256xf32, #tpu.memory_space<vmem>>, %arg12: memref<1x256xbf16, #tpu.memory_space<vmem>>, %arg13: memref<1x1xf32, #tpu.memory_space<vmem>>, %arg14: memref<3xf32, #tpu.memory_space<smem>>, %arg15: memref<1x1x96xf32, #tpu.memory_space<vmem>>, %arg16: memref<256x64xbf16, #tpu.memory_space<vmem>>, %arg17: memref<256x128xbf16, #tpu.memory_space<vmem>>, %arg18: memref<256x256xbf16, #tpu.memory_space<vmem>>, %arg19: memref<256x256xbf16, #tpu.memory_space<vmem>>, %arg20: memref<256x256xbf16, #tpu.memory_space<vmem>>) attributes {dimension_semantics = [#tpu.dimension_semantics<parallel>], iteration_bounds = array<i64: 2>, scalar_prefetch = 0 : i64, scratch_operands = 5 : i64, tpu.core_type = #tpu.core_type<tc>, window_params = [{transform_indices = @transform_0, window_bounds = array<i64: 1, 256, 64>}, {pipeline_mode = #tpu.pipeline_mode<synchronous>, transform_indices = @transform_1, window_bounds = array<i64: 9, 64, 64>}, {pipeline_mode = #tpu.pipeline_mode<synchronous>, transform_indices = @transform_2, window_bounds = array<i64: 1, 64>}, {pipeline_mode = #tpu.pipeline_mode<synchronous>, transform_indices = @transform_3, window_bounds = array<i64: 9, 64, 128>}, {pipeline_mode = #tpu.pipeline_mode<synchronous>, transform_indices = @transform_4, window_bounds = array<i64: 1, 128>}, {pipeline_mode = #tpu.pipeline_mode<synchronous>, transform_indices = @transform_5, window_bounds = array<i64: 9, 128, 256>}, {pipeline_mode = #tpu.pipeline_mode<synchronous>, transform_indices = @transform_6, window_bounds = array<i64: 1, 256>}, {pipeline_mode = #tpu.pipeline_mode<synchronous>, transform_indices = @transform_7, window_bounds = array<i64: 9, 256, 256>}, {pipeline_mode = #tpu.pipeline_mode<synchronous>, transform_indices = @transform_8, window_bounds = array<i64: 1, 256>}, {pipeline_mode = #tpu.pipeline_mode<synchronous>, transform_indices = @transform_9, window_bounds = array<i64: 9, 256, 256>}, {pipeline_mode = #tpu.pipeline_mode<synchronous>, transform_indices = @transform_10, window_bounds = array<i64: 1, 256>}, {pipeline_mode = #tpu.pipeline_mode<synchronous>, transform_indices = @transform_11, window_bounds = array<i64: 1, 256>}, {pipeline_mode = #tpu.pipeline_mode<synchronous>, transform_indices = @transform_12, window_bounds = array<i64: 1, 1>}, {transform_indices = @transform_13, window_bounds = array<i64: 3>}, {transform_indices = @transform_14, window_bounds = array<i64: 1, 1, 96>}]} {
    %c0 = arith.constant 0 : index
    %c0_0 = arith.constant 0 : index
    %c0_1 = arith.constant 0 : index
    %0 = vector.load %arg1[%c0, %c0_0, %c0_1] : memref<1x256x64xbf16, #tpu.memory_space<vmem>>, vector<1x222x64xbf16>
    %1 = vector.shape_cast %0 : vector<1x222x64xbf16> to vector<222x64xbf16>
    %c0_2 = arith.constant 0 : index
    %c0_3 = arith.constant 0 : index
    %c0_4 = arith.constant 0 : index
    %2 = vector.load %arg2[%c0_2, %c0_3, %c0_4] : memref<9x64x64xbf16, #tpu.memory_space<vmem>>, vector<1x64x64xbf16>
    %3 = vector.shape_cast %2 : vector<1x64x64xbf16> to vector<64x64xbf16>
    %cst = arith.constant dense<0.000000e+00> : vector<222x64xf32>
    %4 = tpu.matmul %1, %3, %cst {dimension_numbers = #tpu.dot_dimension_numbers<[1], [0], [0], [1], [0, 0, 1, 1], [], []>} : vector<222x64xbf16>, vector<64x64xbf16>, vector<222x64xf32> -> vector<222x64xf32>
    %c0_5 = arith.constant 0 : index
    %c1 = arith.constant 1 : index
    %c0_6 = arith.constant 0 : index
    %5 = vector.load %arg1[%c0_5, %c1, %c0_6] : memref<1x256x64xbf16, #tpu.memory_space<vmem>>, vector<1x222x64xbf16>
    %6 = vector.shape_cast %5 : vector<1x222x64xbf16> to vector<222x64xbf16>
    %c1_7 = arith.constant 1 : index
    %c0_8 = arith.constant 0 : index
    %c0_9 = arith.constant 0 : index
    %7 = vector.load %arg2[%c1_7, %c0_8, %c0_9] : memref<9x64x64xbf16, #tpu.memory_space<vmem>>, vector<1x64x64xbf16>
    %8 = vector.shape_cast %7 : vector<1x64x64xbf16> to vector<64x64xbf16>
    %cst_10 = arith.constant dense<0.000000e+00> : vector<222x64xf32>
    %9 = tpu.matmul %6, %8, %cst_10 {dimension_numbers = #tpu.dot_dimension_numbers<[1], [0], [0], [1], [0, 0, 1, 1], [], []>} : vector<222x64xbf16>, vector<64x64xbf16>, vector<222x64xf32> -> vector<222x64xf32>
    %10 = arith.addf %4, %9 : vector<222x64xf32>
    %c0_11 = arith.constant 0 : index
    %c2 = arith.constant 2 : index
    %c0_12 = arith.constant 0 : index
    %11 = vector.load %arg1[%c0_11, %c2, %c0_12] : memref<1x256x64xbf16, #tpu.memory_space<vmem>>, vector<1x222x64xbf16>
    %12 = vector.shape_cast %11 : vector<1x222x64xbf16> to vector<222x64xbf16>
    %c2_13 = arith.constant 2 : index
    %c0_14 = arith.constant 0 : index
    %c0_15 = arith.constant 0 : index
    %13 = vector.load %arg2[%c2_13, %c0_14, %c0_15] : memref<9x64x64xbf16, #tpu.memory_space<vmem>>, vector<1x64x64xbf16>
    %14 = vector.shape_cast %13 : vector<1x64x64xbf16> to vector<64x64xbf16>
    %cst_16 = arith.constant dense<0.000000e+00> : vector<222x64xf32>
    %15 = tpu.matmul %12, %14, %cst_16 {dimension_numbers = #tpu.dot_dimension_numbers<[1], [0], [0], [1], [0, 0, 1, 1], [], []>} : vector<222x64xbf16>, vector<64x64xbf16>, vector<222x64xf32> -> vector<222x64xf32>
    %16 = arith.addf %10, %15 : vector<222x64xf32>
    %c0_17 = arith.constant 0 : index
    %c16 = arith.constant 16 : index
    %c0_18 = arith.constant 0 : index
    %17 = vector.load %arg1[%c0_17, %c16, %c0_18] : memref<1x256x64xbf16, #tpu.memory_space<vmem>>, vector<1x222x64xbf16>
    %18 = vector.shape_cast %17 : vector<1x222x64xbf16> to vector<222x64xbf16>
    %c3 = arith.constant 3 : index
    %c0_19 = arith.constant 0 : index
    %c0_20 = arith.constant 0 : index
    %19 = vector.load %arg2[%c3, %c0_19, %c0_20] : memref<9x64x64xbf16, #tpu.memory_space<vmem>>, vector<1x64x64xbf16>
    %20 = vector.shape_cast %19 : vector<1x64x64xbf16> to vector<64x64xbf16>
    %cst_21 = arith.constant dense<0.000000e+00> : vector<222x64xf32>
    %21 = tpu.matmul %18, %20, %cst_21 {dimension_numbers = #tpu.dot_dimension_numbers<[1], [0], [0], [1], [0, 0, 1, 1], [], []>} : vector<222x64xbf16>, vector<64x64xbf16>, vector<222x64xf32> -> vector<222x64xf32>
    %22 = arith.addf %16, %21 : vector<222x64xf32>
    %c0_22 = arith.constant 0 : index
    %c17 = arith.constant 17 : index
    %c0_23 = arith.constant 0 : index
    %23 = vector.load %arg1[%c0_22, %c17, %c0_23] : memref<1x256x64xbf16, #tpu.memory_space<vmem>>, vector<1x222x64xbf16>
    %24 = vector.shape_cast %23 : vector<1x222x64xbf16> to vector<222x64xbf16>
    %c4 = arith.constant 4 : index
    %c0_24 = arith.constant 0 : index
    %c0_25 = arith.constant 0 : index
    %25 = vector.load %arg2[%c4, %c0_24, %c0_25] : memref<9x64x64xbf16, #tpu.memory_space<vmem>>, vector<1x64x64xbf16>
    %26 = vector.shape_cast %25 : vector<1x64x64xbf16> to vector<64x64xbf16>
    %cst_26 = arith.constant dense<0.000000e+00> : vector<222x64xf32>
    %27 = tpu.matmul %24, %26, %cst_26 {dimension_numbers = #tpu.dot_dimension_numbers<[1], [0], [0], [1], [0, 0, 1, 1], [], []>} : vector<222x64xbf16>, vector<64x64xbf16>, vector<222x64xf32> -> vector<222x64xf32>
    %28 = arith.addf %22, %27 : vector<222x64xf32>
    %c0_27 = arith.constant 0 : index
    %c18 = arith.constant 18 : index
    %c0_28 = arith.constant 0 : index
    %29 = vector.load %arg1[%c0_27, %c18, %c0_28] : memref<1x256x64xbf16, #tpu.memory_space<vmem>>, vector<1x222x64xbf16>
    %30 = vector.shape_cast %29 : vector<1x222x64xbf16> to vector<222x64xbf16>
    %c5 = arith.constant 5 : index
    %c0_29 = arith.constant 0 : index
    %c0_30 = arith.constant 0 : index
    %31 = vector.load %arg2[%c5, %c0_29, %c0_30] : memref<9x64x64xbf16, #tpu.memory_space<vmem>>, vector<1x64x64xbf16>
    %32 = vector.shape_cast %31 : vector<1x64x64xbf16> to vector<64x64xbf16>
    %cst_31 = arith.constant dense<0.000000e+00> : vector<222x64xf32>
    %33 = tpu.matmul %30, %32, %cst_31 {dimension_numbers = #tpu.dot_dimension_numbers<[1], [0], [0], [1], [0, 0, 1, 1], [], []>} : vector<222x64xbf16>, vector<64x64xbf16>, vector<222x64xf32> -> vector<222x64xf32>
    %34 = arith.addf %28, %33 : vector<222x64xf32>
    %c0_32 = arith.constant 0 : index
    %c32 = arith.constant 32 : index
    %c0_33 = arith.constant 0 : index
    %35 = vector.load %arg1[%c0_32, %c32, %c0_33] : memref<1x256x64xbf16, #tpu.memory_space<vmem>>, vector<1x222x64xbf16>
    %36 = vector.shape_cast %35 : vector<1x222x64xbf16> to vector<222x64xbf16>
    %c6 = arith.constant 6 : index
    %c0_34 = arith.constant 0 : index
    %c0_35 = arith.constant 0 : index
    %37 = vector.load %arg2[%c6, %c0_34, %c0_35] : memref<9x64x64xbf16, #tpu.memory_space<vmem>>, vector<1x64x64xbf16>
    %38 = vector.shape_cast %37 : vector<1x64x64xbf16> to vector<64x64xbf16>
    %cst_36 = arith.constant dense<0.000000e+00> : vector<222x64xf32>
    %39 = tpu.matmul %36, %38, %cst_36 {dimension_numbers = #tpu.dot_dimension_numbers<[1], [0], [0], [1], [0, 0, 1, 1], [], []>} : vector<222x64xbf16>, vector<64x64xbf16>, vector<222x64xf32> -> vector<222x64xf32>
    %40 = arith.addf %34, %39 : vector<222x64xf32>
    %c0_37 = arith.constant 0 : index
    %c33 = arith.constant 33 : index
    %c0_38 = arith.constant 0 : index
    %41 = vector.load %arg1[%c0_37, %c33, %c0_38] : memref<1x256x64xbf16, #tpu.memory_space<vmem>>, vector<1x222x64xbf16>
    %42 = vector.shape_cast %41 : vector<1x222x64xbf16> to vector<222x64xbf16>
    %c7 = arith.constant 7 : index
    %c0_39 = arith.constant 0 : index
    %c0_40 = arith.constant 0 : index
    %43 = vector.load %arg2[%c7, %c0_39, %c0_40] : memref<9x64x64xbf16, #tpu.memory_space<vmem>>, vector<1x64x64xbf16>
    %44 = vector.shape_cast %43 : vector<1x64x64xbf16> to vector<64x64xbf16>
    %cst_41 = arith.constant dense<0.000000e+00> : vector<222x64xf32>
    %45 = tpu.matmul %42, %44, %cst_41 {dimension_numbers = #tpu.dot_dimension_numbers<[1], [0], [0], [1], [0, 0, 1, 1], [], []>} : vector<222x64xbf16>, vector<64x64xbf16>, vector<222x64xf32> -> vector<222x64xf32>
    %46 = arith.addf %40, %45 : vector<222x64xf32>
    %c0_42 = arith.constant 0 : index
    %c34 = arith.constant 34 : index
    %c0_43 = arith.constant 0 : index
    %47 = vector.load %arg1[%c0_42, %c34, %c0_43] : memref<1x256x64xbf16, #tpu.memory_space<vmem>>, vector<1x222x64xbf16>
    %48 = vector.shape_cast %47 : vector<1x222x64xbf16> to vector<222x64xbf16>
    %c8 = arith.constant 8 : index
    %c0_44 = arith.constant 0 : index
    %c0_45 = arith.constant 0 : index
    %49 = vector.load %arg2[%c8, %c0_44, %c0_45] : memref<9x64x64xbf16, #tpu.memory_space<vmem>>, vector<1x64x64xbf16>
    %50 = vector.shape_cast %49 : vector<1x64x64xbf16> to vector<64x64xbf16>
    %cst_46 = arith.constant dense<0.000000e+00> : vector<222x64xf32>
    %51 = tpu.matmul %48, %50, %cst_46 {dimension_numbers = #tpu.dot_dimension_numbers<[1], [0], [0], [1], [0, 0, 1, 1], [], []>} : vector<222x64xbf16>, vector<64x64xbf16>, vector<222x64xf32> -> vector<222x64xf32>
    %52 = arith.addf %46, %51 : vector<222x64xf32>
    %c0_47 = arith.constant 0 : index
    %c0_48 = arith.constant 0 : index
    %53 = vector.load %arg3[%c0_47, %c0_48] : memref<1x64xf32, #tpu.memory_space<vmem>>, vector<1x64xf32>
    %54 = vector.broadcast %53 : vector<1x64xf32> to vector<222x64xf32>
    %55 = arith.addf %52, %54 : vector<222x64xf32>
    %56 = arith.truncf %55 : vector<222x64xf32> to vector<222x64xbf16>
    %c0_49 = arith.constant 0 : index
    %c0_50 = arith.constant 0 : index
    %57 = vector.load %arg16[%c0_49, %c0_50] : memref<256x64xbf16, #tpu.memory_space<vmem>>, vector<222x64xbf16>
    tpu.vector_store %arg16[%c0_49, %c0_50], %56 {strides = array<i32>} : memref<256x64xbf16, #tpu.memory_space<vmem>>, vector<222x64xbf16>,
    %c0_51 = arith.constant 0 : index
    %c0_52 = arith.constant 0 : index
    %58 = vector.load %arg16[%c0_51, %c0_52] : memref<256x64xbf16, #tpu.memory_space<vmem>>, vector<188x64xbf16>
    %c0_53 = arith.constant 0 : index
    %c0_54 = arith.constant 0 : index
    %c0_55 = arith.constant 0 : index
    %59 = vector.load %arg4[%c0_53, %c0_54, %c0_55] : memref<9x64x128xbf16, #tpu.memory_space<vmem>>, vector<1x64x128xbf16>
    %60 = vector.shape_cast %59 : vector<1x64x128xbf16> to vector<64x128xbf16>
    %cst_56 = arith.constant dense<0.000000e+00> : vector<188x128xf32>
    %61 = tpu.matmul %58, %60, %cst_56 {dimension_numbers = #tpu.dot_dimension_numbers<[1], [0], [0], [1], [0, 0, 1, 1], [], []>} : vector<188x64xbf16>, vector<64x128xbf16>, vector<188x128xf32> -> vector<188x128xf32>
    %c1_57 = arith.constant 1 : index
    %c0_58 = arith.constant 0 : index
    %62 = vector.load %arg16[%c1_57, %c0_58] : memref<256x64xbf16, #tpu.memory_space<vmem>>, vector<188x64xbf16>
    %c1_59 = arith.constant 1 : index
    %c0_60 = arith.constant 0 : index
    %c0_61 = arith.constant 0 : index
    %63 = vector.load %arg4[%c1_59, %c0_60, %c0_61] : memref<9x64x128xbf16, #tpu.memory_space<vmem>>, vector<1x64x128xbf16>
    %64 = vector.shape_cast %63 : vector<1x64x128xbf16> to vector<64x128xbf16>
    %cst_62 = arith.constant dense<0.000000e+00> : vector<188x128xf32>
    %65 = tpu.matmul %62, %64, %cst_62 {dimension_numbers = #tpu.dot_dimension_numbers<[1], [0], [0], [1], [0, 0, 1, 1], [], []>} : vector<188x64xbf16>, vector<64x128xbf16>, vector<188x128xf32> -> vector<188x128xf32>
    %66 = arith.addf %61, %65 : vector<188x128xf32>
    %c2_63 = arith.constant 2 : index
    %c0_64 = arith.constant 0 : index
    %67 = vector.load %arg16[%c2_63, %c0_64] : memref<256x64xbf16, #tpu.memory_space<vmem>>, vector<188x64xbf16>
    %c2_65 = arith.constant 2 : index
    %c0_66 = arith.constant 0 : index
    %c0_67 = arith.constant 0 : index
    %68 = vector.load %arg4[%c2_65, %c0_66, %c0_67] : memref<9x64x128xbf16, #tpu.memory_space<vmem>>, vector<1x64x128xbf16>
    %69 = vector.shape_cast %68 : vector<1x64x128xbf16> to vector<64x128xbf16>
    %cst_68 = arith.constant dense<0.000000e+00> : vector<188x128xf32>
    %70 = tpu.matmul %67, %69, %cst_68 {dimension_numbers = #tpu.dot_dimension_numbers<[1], [0], [0], [1], [0, 0, 1, 1], [], []>} : vector<188x64xbf16>, vector<64x128xbf16>, vector<188x128xf32> -> vector<188x128xf32>
    %71 = arith.addf %66, %70 : vector<188x128xf32>
    %c16_69 = arith.constant 16 : index
    %c0_70 = arith.constant 0 : index
    %72 = vector.load %arg16[%c16_69, %c0_70] : memref<256x64xbf16, #tpu.memory_space<vmem>>, vector<188x64xbf16>
    %c3_71 = arith.constant 3 : index
    %c0_72 = arith.constant 0 : index
    %c0_73 = arith.constant 0 : index
    %73 = vector.load %arg4[%c3_71, %c0_72, %c0_73] : memref<9x64x128xbf16, #tpu.memory_space<vmem>>, vector<1x64x128xbf16>
    %74 = vector.shape_cast %73 : vector<1x64x128xbf16> to vector<64x128xbf16>
    %cst_74 = arith.constant dense<0.000000e+00> : vector<188x128xf32>
    %75 = tpu.matmul %72, %74, %cst_74 {dimension_numbers = #tpu.dot_dimension_numbers<[1], [0], [0], [1], [0, 0, 1, 1], [], []>} : vector<188x64xbf16>, vector<64x128xbf16>, vector<188x128xf32> -> vector<188x128xf32>
    %76 = arith.addf %71, %75 : vector<188x128xf32>
    %c17_75 = arith.constant 17 : index
    %c0_76 = arith.constant 0 : index
    %77 = vector.load %arg16[%c17_75, %c0_76] : memref<256x64xbf16, #tpu.memory_space<vmem>>, vector<188x64xbf16>
    %c4_77 = arith.constant 4 : index
    %c0_78 = arith.constant 0 : index
    %c0_79 = arith.constant 0 : index
    %78 = vector.load %arg4[%c4_77, %c0_78, %c0_79] : memref<9x64x128xbf16, #tpu.memory_space<vmem>>, vector<1x64x128xbf16>
    %79 = vector.shape_cast %78 : vector<1x64x128xbf16> to vector<64x128xbf16>
    %cst_80 = arith.constant dense<0.000000e+00> : vector<188x128xf32>
    %80 = tpu.matmul %77, %79, %cst_80 {dimension_numbers = #tpu.dot_dimension_numbers<[1], [0], [0], [1], [0, 0, 1, 1], [], []>} : vector<188x64xbf16>, vector<64x128xbf16>, vector<188x128xf32> -> vector<188x128xf32>
    %81 = arith.addf %76, %80 : vector<188x128xf32>
    %c18_81 = arith.constant 18 : index
    %c0_82 = arith.constant 0 : index
    %82 = vector.load %arg16[%c18_81, %c0_82] : memref<256x64xbf16, #tpu.memory_space<vmem>>, vector<188x64xbf16>
    %c5_83 = arith.constant 5 : index
    %c0_84 = arith.constant 0 : index
    %c0_85 = arith.constant 0 : index
    %83 = vector.load %arg4[%c5_83, %c0_84, %c0_85] : memref<9x64x128xbf16, #tpu.memory_space<vmem>>, vector<1x64x128xbf16>
    %84 = vector.shape_cast %83 : vector<1x64x128xbf16> to vector<64x128xbf16>
    %cst_86 = arith.constant dense<0.000000e+00> : vector<188x128xf32>
    %85 = tpu.matmul %82, %84, %cst_86 {dimension_numbers = #tpu.dot_dimension_numbers<[1], [0], [0], [1], [0, 0, 1, 1], [], []>} : vector<188x64xbf16>, vector<64x128xbf16>, vector<188x128xf32> -> vector<188x128xf32>
    %86 = arith.addf %81, %85 : vector<188x128xf32>
    %c32_87 = arith.constant 32 : index
    %c0_88 = arith.constant 0 : index
    %87 = vector.load %arg16[%c32_87, %c0_88] : memref<256x64xbf16, #tpu.memory_space<vmem>>, vector<188x64xbf16>
    %c6_89 = arith.constant 6 : index
    %c0_90 = arith.constant 0 : index
    %c0_91 = arith.constant 0 : index
    %88 = vector.load %arg4[%c6_89, %c0_90, %c0_91] : memref<9x64x128xbf16, #tpu.memory_space<vmem>>, vector<1x64x128xbf16>
    %89 = vector.shape_cast %88 : vector<1x64x128xbf16> to vector<64x128xbf16>
    %cst_92 = arith.constant dense<0.000000e+00> : vector<188x128xf32>
    %90 = tpu.matmul %87, %89, %cst_92 {dimension_numbers = #tpu.dot_dimension_numbers<[1], [0], [0], [1], [0, 0, 1, 1], [], []>} : vector<188x64xbf16>, vector<64x128xbf16>, vector<188x128xf32> -> vector<188x128xf32>
    %91 = arith.addf %86, %90 : vector<188x128xf32>
    %c33_93 = arith.constant 33 : index
    %c0_94 = arith.constant 0 : index
    %92 = vector.load %arg16[%c33_93, %c0_94] : memref<256x64xbf16, #tpu.memory_space<vmem>>, vector<188x64xbf16>
    %c7_95 = arith.constant 7 : index
    %c0_96 = arith.constant 0 : index
    %c0_97 = arith.constant 0 : index
    %93 = vector.load %arg4[%c7_95, %c0_96, %c0_97] : memref<9x64x128xbf16, #tpu.memory_space<vmem>>, vector<1x64x128xbf16>
    %94 = vector.shape_cast %93 : vector<1x64x128xbf16> to vector<64x128xbf16>
    %cst_98 = arith.constant dense<0.000000e+00> : vector<188x128xf32>
    %95 = tpu.matmul %92, %94, %cst_98 {dimension_numbers = #tpu.dot_dimension_numbers<[1], [0], [0], [1], [0, 0, 1, 1], [], []>} : vector<188x64xbf16>, vector<64x128xbf16>, vector<188x128xf32> -> vector<188x128xf32>
    %96 = arith.addf %91, %95 : vector<188x128xf32>
    %c34_99 = arith.constant 34 : index
    %c0_100 = arith.constant 0 : index
    %97 = vector.load %arg16[%c34_99, %c0_100] : memref<256x64xbf16, #tpu.memory_space<vmem>>, vector<188x64xbf16>
    %c8_101 = arith.constant 8 : index
    %c0_102 = arith.constant 0 : index
    %c0_103 = arith.constant 0 : index
    %98 = vector.load %arg4[%c8_101, %c0_102, %c0_103] : memref<9x64x128xbf16, #tpu.memory_space<vmem>>, vector<1x64x128xbf16>
    %99 = vector.shape_cast %98 : vector<1x64x128xbf16> to vector<64x128xbf16>
    %cst_104 = arith.constant dense<0.000000e+00> : vector<188x128xf32>
    %100 = tpu.matmul %97, %99, %cst_104 {dimension_numbers = #tpu.dot_dimension_numbers<[1], [0], [0], [1], [0, 0, 1, 1], [], []>} : vector<188x64xbf16>, vector<64x128xbf16>, vector<188x128xf32> -> vector<188x128xf32>
    %101 = arith.addf %96, %100 : vector<188x128xf32>
    %c0_105 = arith.constant 0 : index
    %c0_106 = arith.constant 0 : index
    %102 = vector.load %arg5[%c0_105, %c0_106] : memref<1x128xf32, #tpu.memory_space<vmem>>, vector<1x128xf32>
    %103 = vector.broadcast %102 : vector<1x128xf32> to vector<188x128xf32>
    %104 = arith.addf %101, %103 : vector<188x128xf32>
    %c0_107 = arith.constant 0 : index
    %105 = memref.load %arg14[%c0_107] : memref<3xf32, #tpu.memory_space<smem>>
    %cst_108 = arith.constant 0.000000e+00 : f32
    %106 = vector.broadcast %cst_108 : f32 to vector<188x128xf32>
    %107 = arith.cmpf oge, %104, %106 : vector<188x128xf32>
    %108 = vector.broadcast %105 : f32 to vector<188x128xf32>
    %109 = arith.mulf %108, %104 : vector<188x128xf32>
    %110 = arith.select %107, %104, %109 : vector<188x128xi1>, vector<188x128xf32>
    %111 = arith.truncf %110 : vector<188x128xf32> to vector<188x128xbf16>
    %c0_109 = arith.constant 0 : index
    %c0_110 = arith.constant 0 : index
    %112 = vector.load %arg17[%c0_109, %c0_110] : memref<256x128xbf16, #tpu.memory_space<vmem>>, vector<188x128xbf16>
    tpu.vector_store %arg17[%c0_109, %c0_110], %111 {strides = array<i32>} : memref<256x128xbf16, #tpu.memory_space<vmem>>, vector<188x128xbf16>,
    %c0_111 = arith.constant 0 : index
    %c0_112 = arith.constant 0 : index
    %113 = vector.load %arg17[%c0_111, %c0_112] : memref<256x128xbf16, #tpu.memory_space<vmem>>, vector<154x128xbf16>
    %c0_113 = arith.constant 0 : index
    %c0_114 = arith.constant 0 : index
    %c0_115 = arith.constant 0 : index
    %114 = vector.load %arg6[%c0_113, %c0_114, %c0_115] : memref<9x128x256xbf16, #tpu.memory_space<vmem>>, vector<1x128x256xbf16>
    %115 = vector.shape_cast %114 : vector<1x128x256xbf16> to vector<128x256xbf16>
    %cst_116 = arith.constant dense<0.000000e+00> : vector<154x256xf32>
    %116 = tpu.matmul %113, %115, %cst_116 {dimension_numbers = #tpu.dot_dimension_numbers<[1], [0], [0], [1], [0, 0, 1, 1], [], []>} : vector<154x128xbf16>, vector<128x256xbf16>, vector<154x256xf32> -> vector<154x256xf32>
    %c1_117 = arith.constant 1 : index
    %c0_118 = arith.constant 0 : index
    %117 = vector.load %arg17[%c1_117, %c0_118] : memref<256x128xbf16, #tpu.memory_space<vmem>>, vector<154x128xbf16>
    %c1_119 = arith.constant 1 : index
    %c0_120 = arith.constant 0 : index
    %c0_121 = arith.constant 0 : index
    %118 = vector.load %arg6[%c1_119, %c0_120, %c0_121] : memref<9x128x256xbf16, #tpu.memory_space<vmem>>, vector<1x128x256xbf16>
    %119 = vector.shape_cast %118 : vector<1x128x256xbf16> to vector<128x256xbf16>
    %cst_122 = arith.constant dense<0.000000e+00> : vector<154x256xf32>
    %120 = tpu.matmul %117, %119, %cst_122 {dimension_numbers = #tpu.dot_dimension_numbers<[1], [0], [0], [1], [0, 0, 1, 1], [], []>} : vector<154x128xbf16>, vector<128x256xbf16>, vector<154x256xf32> -> vector<154x256xf32>
    %121 = arith.addf %116, %120 : vector<154x256xf32>
    %c2_123 = arith.constant 2 : index
    %c0_124 = arith.constant 0 : index
    %122 = vector.load %arg17[%c2_123, %c0_124] : memref<256x128xbf16, #tpu.memory_space<vmem>>, vector<154x128xbf16>
    %c2_125 = arith.constant 2 : index
    %c0_126 = arith.constant 0 : index
    %c0_127 = arith.constant 0 : index
    %123 = vector.load %arg6[%c2_125, %c0_126, %c0_127] : memref<9x128x256xbf16, #tpu.memory_space<vmem>>, vector<1x128x256xbf16>
    %124 = vector.shape_cast %123 : vector<1x128x256xbf16> to vector<128x256xbf16>
    %cst_128 = arith.constant dense<0.000000e+00> : vector<154x256xf32>
    %125 = tpu.matmul %122, %124, %cst_128 {dimension_numbers = #tpu.dot_dimension_numbers<[1], [0], [0], [1], [0, 0, 1, 1], [], []>} : vector<154x128xbf16>, vector<128x256xbf16>, vector<154x256xf32> -> vector<154x256xf32>
    %126 = arith.addf %121, %125 : vector<154x256xf32>
    %c16_129 = arith.constant 16 : index
    %c0_130 = arith.constant 0 : index
    %127 = vector.load %arg17[%c16_129, %c0_130] : memref<256x128xbf16, #tpu.memory_space<vmem>>, vector<154x128xbf16>
    %c3_131 = arith.constant 3 : index
    %c0_132 = arith.constant 0 : index
    %c0_133 = arith.constant 0 : index
    %128 = vector.load %arg6[%c3_131, %c0_132, %c0_133] : memref<9x128x256xbf16, #tpu.memory_space<vmem>>, vector<1x128x256xbf16>
    %129 = vector.shape_cast %128 : vector<1x128x256xbf16> to vector<128x256xbf16>
    %cst_134 = arith.constant dense<0.000000e+00> : vector<154x256xf32>
    %130 = tpu.matmul %127, %129, %cst_134 {dimension_numbers = #tpu.dot_dimension_numbers<[1], [0], [0], [1], [0, 0, 1, 1], [], []>} : vector<154x128xbf16>, vector<128x256xbf16>, vector<154x256xf32> -> vector<154x256xf32>
    %131 = arith.addf %126, %130 : vector<154x256xf32>
    %c17_135 = arith.constant 17 : index
    %c0_136 = arith.constant 0 : index
    %132 = vector.load %arg17[%c17_135, %c0_136] : memref<256x128xbf16, #tpu.memory_space<vmem>>, vector<154x128xbf16>
    %c4_137 = arith.constant 4 : index
    %c0_138 = arith.constant 0 : index
    %c0_139 = arith.constant 0 : index
    %133 = vector.load %arg6[%c4_137, %c0_138, %c0_139] : memref<9x128x256xbf16, #tpu.memory_space<vmem>>, vector<1x128x256xbf16>
    %134 = vector.shape_cast %133 : vector<1x128x256xbf16> to vector<128x256xbf16>
    %cst_140 = arith.constant dense<0.000000e+00> : vector<154x256xf32>
    %135 = tpu.matmul %132, %134, %cst_140 {dimension_numbers = #tpu.dot_dimension_numbers<[1], [0], [0], [1], [0, 0, 1, 1], [], []>} : vector<154x128xbf16>, vector<128x256xbf16>, vector<154x256xf32> -> vector<154x256xf32>
    %136 = arith.addf %131, %135 : vector<154x256xf32>
    %c18_141 = arith.constant 18 : index
    %c0_142 = arith.constant 0 : index
    %137 = vector.load %arg17[%c18_141, %c0_142] : memref<256x128xbf16, #tpu.memory_space<vmem>>, vector<154x128xbf16>
    %c5_143 = arith.constant 5 : index
    %c0_144 = arith.constant 0 : index
    %c0_145 = arith.constant 0 : index
    %138 = vector.load %arg6[%c5_143, %c0_144, %c0_145] : memref<9x128x256xbf16, #tpu.memory_space<vmem>>, vector<1x128x256xbf16>
    %139 = vector.shape_cast %138 : vector<1x128x256xbf16> to vector<128x256xbf16>
    %cst_146 = arith.constant dense<0.000000e+00> : vector<154x256xf32>
    %140 = tpu.matmul %137, %139, %cst_146 {dimension_numbers = #tpu.dot_dimension_numbers<[1], [0], [0], [1], [0, 0, 1, 1], [], []>} : vector<154x128xbf16>, vector<128x256xbf16>, vector<154x256xf32> -> vector<154x256xf32>
    %141 = arith.addf %136, %140 : vector<154x256xf32>
    %c32_147 = arith.constant 32 : index
    %c0_148 = arith.constant 0 : index
    %142 = vector.load %arg17[%c32_147, %c0_148] : memref<256x128xbf16, #tpu.memory_space<vmem>>, vector<154x128xbf16>
    %c6_149 = arith.constant 6 : index
    %c0_150 = arith.constant 0 : index
    %c0_151 = arith.constant 0 : index
    %143 = vector.load %arg6[%c6_149, %c0_150, %c0_151] : memref<9x128x256xbf16, #tpu.memory_space<vmem>>, vector<1x128x256xbf16>
    %144 = vector.shape_cast %143 : vector<1x128x256xbf16> to vector<128x256xbf16>
    %cst_152 = arith.constant dense<0.000000e+00> : vector<154x256xf32>
    %145 = tpu.matmul %142, %144, %cst_152 {dimension_numbers = #tpu.dot_dimension_numbers<[1], [0], [0], [1], [0, 0, 1, 1], [], []>} : vector<154x128xbf16>, vector<128x256xbf16>, vector<154x256xf32> -> vector<154x256xf32>
    %146 = arith.addf %141, %145 : vector<154x256xf32>
    %c33_153 = arith.constant 33 : index
    %c0_154 = arith.constant 0 : index
    %147 = vector.load %arg17[%c33_153, %c0_154] : memref<256x128xbf16, #tpu.memory_space<vmem>>, vector<154x128xbf16>
    %c7_155 = arith.constant 7 : index
    %c0_156 = arith.constant 0 : index
    %c0_157 = arith.constant 0 : index
    %148 = vector.load %arg6[%c7_155, %c0_156, %c0_157] : memref<9x128x256xbf16, #tpu.memory_space<vmem>>, vector<1x128x256xbf16>
    %149 = vector.shape_cast %148 : vector<1x128x256xbf16> to vector<128x256xbf16>
    %cst_158 = arith.constant dense<0.000000e+00> : vector<154x256xf32>
    %150 = tpu.matmul %147, %149, %cst_158 {dimension_numbers = #tpu.dot_dimension_numbers<[1], [0], [0], [1], [0, 0, 1, 1], [], []>} : vector<154x128xbf16>, vector<128x256xbf16>, vector<154x256xf32> -> vector<154x256xf32>
    %151 = arith.addf %146, %150 : vector<154x256xf32>
    %c34_159 = arith.constant 34 : index
    %c0_160 = arith.constant 0 : index
    %152 = vector.load %arg17[%c34_159, %c0_160] : memref<256x128xbf16, #tpu.memory_space<vmem>>, vector<154x128xbf16>
    %c8_161 = arith.constant 8 : index
    %c0_162 = arith.constant 0 : index
    %c0_163 = arith.constant 0 : index
    %153 = vector.load %arg6[%c8_161, %c0_162, %c0_163] : memref<9x128x256xbf16, #tpu.memory_space<vmem>>, vector<1x128x256xbf16>
    %154 = vector.shape_cast %153 : vector<1x128x256xbf16> to vector<128x256xbf16>
    %cst_164 = arith.constant dense<0.000000e+00> : vector<154x256xf32>
    %155 = tpu.matmul %152, %154, %cst_164 {dimension_numbers = #tpu.dot_dimension_numbers<[1], [0], [0], [1], [0, 0, 1, 1], [], []>} : vector<154x128xbf16>, vector<128x256xbf16>, vector<154x256xf32> -> vector<154x256xf32>
    %156 = arith.addf %151, %155 : vector<154x256xf32>
    %c0_165 = arith.constant 0 : index
    %c0_166 = arith.constant 0 : index
    %157 = vector.load %arg7[%c0_165, %c0_166] : memref<1x256xf32, #tpu.memory_space<vmem>>, vector<1x256xf32>
    %158 = vector.broadcast %157 : vector<1x256xf32> to vector<154x256xf32>
    %159 = arith.addf %156, %158 : vector<154x256xf32>
    %c1_167 = arith.constant 1 : index
    %160 = memref.load %arg14[%c1_167] : memref<3xf32, #tpu.memory_space<smem>>
    %cst_168 = arith.constant 0.000000e+00 : f32
    %161 = vector.broadcast %cst_168 : f32 to vector<154x256xf32>
    %162 = arith.cmpf oge, %159, %161 : vector<154x256xf32>
    %163 = vector.broadcast %160 : f32 to vector<154x256xf32>
    %164 = arith.mulf %163, %159 : vector<154x256xf32>
    %165 = arith.select %162, %159, %164 : vector<154x256xi1>, vector<154x256xf32>
    %166 = arith.truncf %165 : vector<154x256xf32> to vector<154x256xbf16>
    %c0_169 = arith.constant 0 : index
    %c0_170 = arith.constant 0 : index
    %167 = vector.load %arg18[%c0_169, %c0_170] : memref<256x256xbf16, #tpu.memory_space<vmem>>, vector<154x256xbf16>
    tpu.vector_store %arg18[%c0_169, %c0_170], %166 {strides = array<i32>} : memref<256x256xbf16, #tpu.memory_space<vmem>>, vector<154x256xbf16>,
    %c0_171 = arith.constant 0 : index
    %c0_172 = arith.constant 0 : index
    %168 = vector.load %arg18[%c0_171, %c0_172] : memref<256x256xbf16, #tpu.memory_space<vmem>>, vector<120x256xbf16>
    %c0_173 = arith.constant 0 : index
    %c0_174 = arith.constant 0 : index
    %c0_175 = arith.constant 0 : index
    %169 = vector.load %arg8[%c0_173, %c0_174, %c0_175] : memref<9x256x256xbf16, #tpu.memory_space<vmem>>, vector<1x256x256xbf16>
    %170 = vector.shape_cast %169 : vector<1x256x256xbf16> to vector<256x256xbf16>
    %cst_176 = arith.constant dense<0.000000e+00> : vector<120x256xf32>
    %171 = tpu.matmul %168, %170, %cst_176 {dimension_numbers = #tpu.dot_dimension_numbers<[1], [0], [0], [1], [0, 0, 1, 1], [], []>} : vector<120x256xbf16>, vector<256x256xbf16>, vector<120x256xf32> -> vector<120x256xf32>
    %c1_177 = arith.constant 1 : index
    %c0_178 = arith.constant 0 : index
    %172 = vector.load %arg18[%c1_177, %c0_178] : memref<256x256xbf16, #tpu.memory_space<vmem>>, vector<120x256xbf16>
    %c1_179 = arith.constant 1 : index
    %c0_180 = arith.constant 0 : index
    %c0_181 = arith.constant 0 : index
    %173 = vector.load %arg8[%c1_179, %c0_180, %c0_181] : memref<9x256x256xbf16, #tpu.memory_space<vmem>>, vector<1x256x256xbf16>
    %174 = vector.shape_cast %173 : vector<1x256x256xbf16> to vector<256x256xbf16>
    %cst_182 = arith.constant dense<0.000000e+00> : vector<120x256xf32>
    %175 = tpu.matmul %172, %174, %cst_182 {dimension_numbers = #tpu.dot_dimension_numbers<[1], [0], [0], [1], [0, 0, 1, 1], [], []>} : vector<120x256xbf16>, vector<256x256xbf16>, vector<120x256xf32> -> vector<120x256xf32>
    %176 = arith.addf %171, %175 : vector<120x256xf32>
    %c2_183 = arith.constant 2 : index
    %c0_184 = arith.constant 0 : index
    %177 = vector.load %arg18[%c2_183, %c0_184] : memref<256x256xbf16, #tpu.memory_space<vmem>>, vector<120x256xbf16>
    %c2_185 = arith.constant 2 : index
    %c0_186 = arith.constant 0 : index
    %c0_187 = arith.constant 0 : index
    %178 = vector.load %arg8[%c2_185, %c0_186, %c0_187] : memref<9x256x256xbf16, #tpu.memory_space<vmem>>, vector<1x256x256xbf16>
    %179 = vector.shape_cast %178 : vector<1x256x256xbf16> to vector<256x256xbf16>
    %cst_188 = arith.constant dense<0.000000e+00> : vector<120x256xf32>
    %180 = tpu.matmul %177, %179, %cst_188 {dimension_numbers = #tpu.dot_dimension_numbers<[1], [0], [0], [1], [0, 0, 1, 1], [], []>} : vector<120x256xbf16>, vector<256x256xbf16>, vector<120x256xf32> -> vector<120x256xf32>
    %181 = arith.addf %176, %180 : vector<120x256xf32>
    %c16_189 = arith.constant 16 : index
    %c0_190 = arith.constant 0 : index
    %182 = vector.load %arg18[%c16_189, %c0_190] : memref<256x256xbf16, #tpu.memory_space<vmem>>, vector<120x256xbf16>
    %c3_191 = arith.constant 3 : index
    %c0_192 = arith.constant 0 : index
    %c0_193 = arith.constant 0 : index
    %183 = vector.load %arg8[%c3_191, %c0_192, %c0_193] : memref<9x256x256xbf16, #tpu.memory_space<vmem>>, vector<1x256x256xbf16>
    %184 = vector.shape_cast %183 : vector<1x256x256xbf16> to vector<256x256xbf16>
    %cst_194 = arith.constant dense<0.000000e+00> : vector<120x256xf32>
    %185 = tpu.matmul %182, %184, %cst_194 {dimension_numbers = #tpu.dot_dimension_numbers<[1], [0], [0], [1], [0, 0, 1, 1], [], []>} : vector<120x256xbf16>, vector<256x256xbf16>, vector<120x256xf32> -> vector<120x256xf32>
    %186 = arith.addf %181, %185 : vector<120x256xf32>
    %c17_195 = arith.constant 17 : index
    %c0_196 = arith.constant 0 : index
    %187 = vector.load %arg18[%c17_195, %c0_196] : memref<256x256xbf16, #tpu.memory_space<vmem>>, vector<120x256xbf16>
    %c4_197 = arith.constant 4 : index
    %c0_198 = arith.constant 0 : index
    %c0_199 = arith.constant 0 : index
    %188 = vector.load %arg8[%c4_197, %c0_198, %c0_199] : memref<9x256x256xbf16, #tpu.memory_space<vmem>>, vector<1x256x256xbf16>
    %189 = vector.shape_cast %188 : vector<1x256x256xbf16> to vector<256x256xbf16>
    %cst_200 = arith.constant dense<0.000000e+00> : vector<120x256xf32>
    %190 = tpu.matmul %187, %189, %cst_200 {dimension_numbers = #tpu.dot_dimension_numbers<[1], [0], [0], [1], [0, 0, 1, 1], [], []>} : vector<120x256xbf16>, vector<256x256xbf16>, vector<120x256xf32> -> vector<120x256xf32>
    %191 = arith.addf %186, %190 : vector<120x256xf32>
    %c18_201 = arith.constant 18 : index
    %c0_202 = arith.constant 0 : index
    %192 = vector.load %arg18[%c18_201, %c0_202] : memref<256x256xbf16, #tpu.memory_space<vmem>>, vector<120x256xbf16>
    %c5_203 = arith.constant 5 : index
    %c0_204 = arith.constant 0 : index
    %c0_205 = arith.constant 0 : index
    %193 = vector.load %arg8[%c5_203, %c0_204, %c0_205] : memref<9x256x256xbf16, #tpu.memory_space<vmem>>, vector<1x256x256xbf16>
    %194 = vector.shape_cast %193 : vector<1x256x256xbf16> to vector<256x256xbf16>
    %cst_206 = arith.constant dense<0.000000e+00> : vector<120x256xf32>
    %195 = tpu.matmul %192, %194, %cst_206 {dimension_numbers = #tpu.dot_dimension_numbers<[1], [0], [0], [1], [0, 0, 1, 1], [], []>} : vector<120x256xbf16>, vector<256x256xbf16>, vector<120x256xf32> -> vector<120x256xf32>
    %196 = arith.addf %191, %195 : vector<120x256xf32>
    %c32_207 = arith.constant 32 : index
    %c0_208 = arith.constant 0 : index
    %197 = vector.load %arg18[%c32_207, %c0_208] : memref<256x256xbf16, #tpu.memory_space<vmem>>, vector<120x256xbf16>
    %c6_209 = arith.constant 6 : index
    %c0_210 = arith.constant 0 : index
    %c0_211 = arith.constant 0 : index
    %198 = vector.load %arg8[%c6_209, %c0_210, %c0_211] : memref<9x256x256xbf16, #tpu.memory_space<vmem>>, vector<1x256x256xbf16>
    %199 = vector.shape_cast %198 : vector<1x256x256xbf16> to vector<256x256xbf16>
    %cst_212 = arith.constant dense<0.000000e+00> : vector<120x256xf32>
    %200 = tpu.matmul %197, %199, %cst_212 {dimension_numbers = #tpu.dot_dimension_numbers<[1], [0], [0], [1], [0, 0, 1, 1], [], []>} : vector<120x256xbf16>, vector<256x256xbf16>, vector<120x256xf32> -> vector<120x256xf32>
    %201 = arith.addf %196, %200 : vector<120x256xf32>
    %c33_213 = arith.constant 33 : index
    %c0_214 = arith.constant 0 : index
    %202 = vector.load %arg18[%c33_213, %c0_214] : memref<256x256xbf16, #tpu.memory_space<vmem>>, vector<120x256xbf16>
    %c7_215 = arith.constant 7 : index
    %c0_216 = arith.constant 0 : index
    %c0_217 = arith.constant 0 : index
    %203 = vector.load %arg8[%c7_215, %c0_216, %c0_217] : memref<9x256x256xbf16, #tpu.memory_space<vmem>>, vector<1x256x256xbf16>
    %204 = vector.shape_cast %203 : vector<1x256x256xbf16> to vector<256x256xbf16>
    %cst_218 = arith.constant dense<0.000000e+00> : vector<120x256xf32>
    %205 = tpu.matmul %202, %204, %cst_218 {dimension_numbers = #tpu.dot_dimension_numbers<[1], [0], [0], [1], [0, 0, 1, 1], [], []>} : vector<120x256xbf16>, vector<256x256xbf16>, vector<120x256xf32> -> vector<120x256xf32>
    %206 = arith.addf %201, %205 : vector<120x256xf32>
    %c34_219 = arith.constant 34 : index
    %c0_220 = arith.constant 0 : index
    %207 = vector.load %arg18[%c34_219, %c0_220] : memref<256x256xbf16, #tpu.memory_space<vmem>>, vector<120x256xbf16>
    %c8_221 = arith.constant 8 : index
    %c0_222 = arith.constant 0 : index
    %c0_223 = arith.constant 0 : index
    %208 = vector.load %arg8[%c8_221, %c0_222, %c0_223] : memref<9x256x256xbf16, #tpu.memory_space<vmem>>, vector<1x256x256xbf16>
    %209 = vector.shape_cast %208 : vector<1x256x256xbf16> to vector<256x256xbf16>
    %cst_224 = arith.constant dense<0.000000e+00> : vector<120x256xf32>
    %210 = tpu.matmul %207, %209, %cst_224 {dimension_numbers = #tpu.dot_dimension_numbers<[1], [0], [0], [1], [0, 0, 1, 1], [], []>} : vector<120x256xbf16>, vector<256x256xbf16>, vector<120x256xf32> -> vector<120x256xf32>
    %211 = arith.addf %206, %210 : vector<120x256xf32>
    %c0_225 = arith.constant 0 : index
    %c0_226 = arith.constant 0 : index
    %212 = vector.load %arg9[%c0_225, %c0_226] : memref<1x256xf32, #tpu.memory_space<vmem>>, vector<1x256xf32>
    %213 = vector.broadcast %212 : vector<1x256xf32> to vector<120x256xf32>
    %214 = arith.addf %211, %213 : vector<120x256xf32>
    %215 = arith.truncf %214 : vector<120x256xf32> to vector<120x256xbf16>
    %c0_227 = arith.constant 0 : index
    %c0_228 = arith.constant 0 : index
    %216 = vector.load %arg19[%c0_227, %c0_228] : memref<256x256xbf16, #tpu.memory_space<vmem>>, vector<120x256xbf16>
    tpu.vector_store %arg19[%c0_227, %c0_228], %215 {strides = array<i32>} : memref<256x256xbf16, #tpu.memory_space<vmem>>, vector<120x256xbf16>,
    %c0_229 = arith.constant 0 : index
    %c0_230 = arith.constant 0 : index
    %217 = vector.load %arg19[%c0_229, %c0_230] : memref<256x256xbf16, #tpu.memory_space<vmem>>, vector<86x256xbf16>
    %c0_231 = arith.constant 0 : index
    %c0_232 = arith.constant 0 : index
    %c0_233 = arith.constant 0 : index
    %218 = vector.load %arg10[%c0_231, %c0_232, %c0_233] : memref<9x256x256xbf16, #tpu.memory_space<vmem>>, vector<1x256x256xbf16>
    %219 = vector.shape_cast %218 : vector<1x256x256xbf16> to vector<256x256xbf16>
    %cst_234 = arith.constant dense<0.000000e+00> : vector<86x256xf32>
    %220 = tpu.matmul %217, %219, %cst_234 {dimension_numbers = #tpu.dot_dimension_numbers<[1], [0], [0], [1], [0, 0, 1, 1], [], []>} : vector<86x256xbf16>, vector<256x256xbf16>, vector<86x256xf32> -> vector<86x256xf32>
    %c1_235 = arith.constant 1 : index
    %c0_236 = arith.constant 0 : index
    %221 = vector.load %arg19[%c1_235, %c0_236] : memref<256x256xbf16, #tpu.memory_space<vmem>>, vector<86x256xbf16>
    %c1_237 = arith.constant 1 : index
    %c0_238 = arith.constant 0 : index
    %c0_239 = arith.constant 0 : index
    %222 = vector.load %arg10[%c1_237, %c0_238, %c0_239] : memref<9x256x256xbf16, #tpu.memory_space<vmem>>, vector<1x256x256xbf16>
    %223 = vector.shape_cast %222 : vector<1x256x256xbf16> to vector<256x256xbf16>
    %cst_240 = arith.constant dense<0.000000e+00> : vector<86x256xf32>
    %224 = tpu.matmul %221, %223, %cst_240 {dimension_numbers = #tpu.dot_dimension_numbers<[1], [0], [0], [1], [0, 0, 1, 1], [], []>} : vector<86x256xbf16>, vector<256x256xbf16>, vector<86x256xf32> -> vector<86x256xf32>
    %225 = arith.addf %220, %224 : vector<86x256xf32>
    %c2_241 = arith.constant 2 : index
    %c0_242 = arith.constant 0 : index
    %226 = vector.load %arg19[%c2_241, %c0_242] : memref<256x256xbf16, #tpu.memory_space<vmem>>, vector<86x256xbf16>
    %c2_243 = arith.constant 2 : index
    %c0_244 = arith.constant 0 : index
    %c0_245 = arith.constant 0 : index
    %227 = vector.load %arg10[%c2_243, %c0_244, %c0_245] : memref<9x256x256xbf16, #tpu.memory_space<vmem>>, vector<1x256x256xbf16>
    %228 = vector.shape_cast %227 : vector<1x256x256xbf16> to vector<256x256xbf16>
    %cst_246 = arith.constant dense<0.000000e+00> : vector<86x256xf32>
    %229 = tpu.matmul %226, %228, %cst_246 {dimension_numbers = #tpu.dot_dimension_numbers<[1], [0], [0], [1], [0, 0, 1, 1], [], []>} : vector<86x256xbf16>, vector<256x256xbf16>, vector<86x256xf32> -> vector<86x256xf32>
    %230 = arith.addf %225, %229 : vector<86x256xf32>
    %c16_247 = arith.constant 16 : index
    %c0_248 = arith.constant 0 : index
    %231 = vector.load %arg19[%c16_247, %c0_248] : memref<256x256xbf16, #tpu.memory_space<vmem>>, vector<86x256xbf16>
    %c3_249 = arith.constant 3 : index
    %c0_250 = arith.constant 0 : index
    %c0_251 = arith.constant 0 : index
    %232 = vector.load %arg10[%c3_249, %c0_250, %c0_251] : memref<9x256x256xbf16, #tpu.memory_space<vmem>>, vector<1x256x256xbf16>
    %233 = vector.shape_cast %232 : vector<1x256x256xbf16> to vector<256x256xbf16>
    %cst_252 = arith.constant dense<0.000000e+00> : vector<86x256xf32>
    %234 = tpu.matmul %231, %233, %cst_252 {dimension_numbers = #tpu.dot_dimension_numbers<[1], [0], [0], [1], [0, 0, 1, 1], [], []>} : vector<86x256xbf16>, vector<256x256xbf16>, vector<86x256xf32> -> vector<86x256xf32>
    %235 = arith.addf %230, %234 : vector<86x256xf32>
    %c17_253 = arith.constant 17 : index
    %c0_254 = arith.constant 0 : index
    %236 = vector.load %arg19[%c17_253, %c0_254] : memref<256x256xbf16, #tpu.memory_space<vmem>>, vector<86x256xbf16>
    %c4_255 = arith.constant 4 : index
    %c0_256 = arith.constant 0 : index
    %c0_257 = arith.constant 0 : index
    %237 = vector.load %arg10[%c4_255, %c0_256, %c0_257] : memref<9x256x256xbf16, #tpu.memory_space<vmem>>, vector<1x256x256xbf16>
    %238 = vector.shape_cast %237 : vector<1x256x256xbf16> to vector<256x256xbf16>
    %cst_258 = arith.constant dense<0.000000e+00> : vector<86x256xf32>
    %239 = tpu.matmul %236, %238, %cst_258 {dimension_numbers = #tpu.dot_dimension_numbers<[1], [0], [0], [1], [0, 0, 1, 1], [], []>} : vector<86x256xbf16>, vector<256x256xbf16>, vector<86x256xf32> -> vector<86x256xf32>
    %240 = arith.addf %235, %239 : vector<86x256xf32>
    %c18_259 = arith.constant 18 : index
    %c0_260 = arith.constant 0 : index
    %241 = vector.load %arg19[%c18_259, %c0_260] : memref<256x256xbf16, #tpu.memory_space<vmem>>, vector<86x256xbf16>
    %c5_261 = arith.constant 5 : index
    %c0_262 = arith.constant 0 : index
    %c0_263 = arith.constant 0 : index
    %242 = vector.load %arg10[%c5_261, %c0_262, %c0_263] : memref<9x256x256xbf16, #tpu.memory_space<vmem>>, vector<1x256x256xbf16>
    %243 = vector.shape_cast %242 : vector<1x256x256xbf16> to vector<256x256xbf16>
    %cst_264 = arith.constant dense<0.000000e+00> : vector<86x256xf32>
    %244 = tpu.matmul %241, %243, %cst_264 {dimension_numbers = #tpu.dot_dimension_numbers<[1], [0], [0], [1], [0, 0, 1, 1], [], []>} : vector<86x256xbf16>, vector<256x256xbf16>, vector<86x256xf32> -> vector<86x256xf32>
    %245 = arith.addf %240, %244 : vector<86x256xf32>
    %c32_265 = arith.constant 32 : index
    %c0_266 = arith.constant 0 : index
    %246 = vector.load %arg19[%c32_265, %c0_266] : memref<256x256xbf16, #tpu.memory_space<vmem>>, vector<86x256xbf16>
    %c6_267 = arith.constant 6 : index
    %c0_268 = arith.constant 0 : index
    %c0_269 = arith.constant 0 : index
    %247 = vector.load %arg10[%c6_267, %c0_268, %c0_269] : memref<9x256x256xbf16, #tpu.memory_space<vmem>>, vector<1x256x256xbf16>
    %248 = vector.shape_cast %247 : vector<1x256x256xbf16> to vector<256x256xbf16>
    %cst_270 = arith.constant dense<0.000000e+00> : vector<86x256xf32>
    %249 = tpu.matmul %246, %248, %cst_270 {dimension_numbers = #tpu.dot_dimension_numbers<[1], [0], [0], [1], [0, 0, 1, 1], [], []>} : vector<86x256xbf16>, vector<256x256xbf16>, vector<86x256xf32> -> vector<86x256xf32>
    %250 = arith.addf %245, %249 : vector<86x256xf32>
    %c33_271 = arith.constant 33 : index
    %c0_272 = arith.constant 0 : index
    %251 = vector.load %arg19[%c33_271, %c0_272] : memref<256x256xbf16, #tpu.memory_space<vmem>>, vector<86x256xbf16>
    %c7_273 = arith.constant 7 : index
    %c0_274 = arith.constant 0 : index
    %c0_275 = arith.constant 0 : index
    %252 = vector.load %arg10[%c7_273, %c0_274, %c0_275] : memref<9x256x256xbf16, #tpu.memory_space<vmem>>, vector<1x256x256xbf16>
    %253 = vector.shape_cast %252 : vector<1x256x256xbf16> to vector<256x256xbf16>
    %cst_276 = arith.constant dense<0.000000e+00> : vector<86x256xf32>
    %254 = tpu.matmul %251, %253, %cst_276 {dimension_numbers = #tpu.dot_dimension_numbers<[1], [0], [0], [1], [0, 0, 1, 1], [], []>} : vector<86x256xbf16>, vector<256x256xbf16>, vector<86x256xf32> -> vector<86x256xf32>
    %255 = arith.addf %250, %254 : vector<86x256xf32>
    %c34_277 = arith.constant 34 : index
    %c0_278 = arith.constant 0 : index
    %256 = vector.load %arg19[%c34_277, %c0_278] : memref<256x256xbf16, #tpu.memory_space<vmem>>, vector<86x256xbf16>
    %c8_279 = arith.constant 8 : index
    %c0_280 = arith.constant 0 : index
    %c0_281 = arith.constant 0 : index
    %257 = vector.load %arg10[%c8_279, %c0_280, %c0_281] : memref<9x256x256xbf16, #tpu.memory_space<vmem>>, vector<1x256x256xbf16>
    %258 = vector.shape_cast %257 : vector<1x256x256xbf16> to vector<256x256xbf16>
    %cst_282 = arith.constant dense<0.000000e+00> : vector<86x256xf32>
    %259 = tpu.matmul %256, %258, %cst_282 {dimension_numbers = #tpu.dot_dimension_numbers<[1], [0], [0], [1], [0, 0, 1, 1], [], []>} : vector<86x256xbf16>, vector<256x256xbf16>, vector<86x256xf32> -> vector<86x256xf32>
    %260 = arith.addf %255, %259 : vector<86x256xf32>
    %c0_283 = arith.constant 0 : index
    %c0_284 = arith.constant 0 : index
    %261 = vector.load %arg11[%c0_283, %c0_284] : memref<1x256xf32, #tpu.memory_space<vmem>>, vector<1x256xf32>
    %262 = vector.broadcast %261 : vector<1x256xf32> to vector<86x256xf32>
    %263 = arith.addf %260, %262 : vector<86x256xf32>
    %c2_285 = arith.constant 2 : index
    %264 = memref.load %arg14[%c2_285] : memref<3xf32, #tpu.memory_space<smem>>
    %cst_286 = arith.constant 0.000000e+00 : f32
    %265 = vector.broadcast %cst_286 : f32 to vector<86x256xf32>
    %266 = arith.cmpf oge, %263, %265 : vector<86x256xf32>
    %267 = vector.broadcast %264 : f32 to vector<86x256xf32>
    %268 = arith.mulf %267, %263 : vector<86x256xf32>
    %269 = arith.select %266, %263, %268 : vector<86x256xi1>, vector<86x256xf32>
    %270 = arith.truncf %269 : vector<86x256xf32> to vector<86x256xbf16>
    %c0_287 = arith.constant 0 : index
    %c0_288 = arith.constant 0 : index
    %271 = vector.load %arg20[%c0_287, %c0_288] : memref<256x256xbf16, #tpu.memory_space<vmem>>, vector<86x256xbf16>
    tpu.vector_store %arg20[%c0_287, %c0_288], %270 {strides = array<i32>} : memref<256x256xbf16, #tpu.memory_space<vmem>>, vector<86x256xbf16>,
    %cst_289 = arith.constant 0.000000e+00 : bf16
    %272 = vector.broadcast %cst_289 : bf16 to vector<10x256xbf16>
    %c86 = arith.constant 86 : index
    %c0_290 = arith.constant 0 : index
    %273 = vector.load %arg20[%c86, %c0_290] : memref<256x256xbf16, #tpu.memory_space<vmem>>, vector<10x256xbf16>
    tpu.vector_store %arg20[%c86, %c0_290], %272 {strides = array<i32>} : memref<256x256xbf16, #tpu.memory_space<vmem>>, vector<10x256xbf16>,
    %c0_291 = arith.constant 0 : index
    %c0_292 = arith.constant 0 : index
    %274 = vector.load %arg20[%c0_291, %c0_292] : memref<256x256xbf16, #tpu.memory_space<vmem>>, vector<96x256xbf16>
    %c0_293 = arith.constant 0 : index
    %c0_294 = arith.constant 0 : index
    %275 = vector.load %arg12[%c0_293, %c0_294] : memref<1x256xbf16, #tpu.memory_space<vmem>>, vector<1x256xbf16>
    %276 = tpu.transpose %274, [1, 0] : vector<96x256xbf16> -> vector<256x96xbf16>
    %cst_295 = arith.constant dense<0.000000e+00> : vector<1x96xf32>
    %277 = tpu.matmul %275, %276, %cst_295 {dimension_numbers = #tpu.dot_dimension_numbers<[1], [0], [0], [1], [0, 0, 1, 1], [], []>} : vector<1x256xbf16>, vector<256x96xbf16>, vector<1x96xf32> -> vector<1x96xf32>
    %c0_296 = arith.constant 0 : index
    %c0_297 = arith.constant 0 : index
    %278 = vector.load %arg13[%c0_296, %c0_297] : memref<1x1xf32, #tpu.memory_space<vmem>>, vector<1x1xf32>
    %279 = vector.broadcast %278 : vector<1x1xf32> to vector<1x96xf32>
    %280 = arith.addf %277, %279 : vector<1x96xf32>
    %281 = math.absf %280 : vector<1x96xf32>
    %c0_298 = arith.constant 0 : index
    %c0_299 = arith.constant 0 : index
    %c0_300 = arith.constant 0 : index
    %282 = vector.load %arg15[%c0_298, %c0_299, %c0_300] : memref<1x1x96xf32, #tpu.memory_space<vmem>>, vector<1x1x96xf32>
    %283 = vector.shape_cast %282 : vector<1x1x96xf32> to vector<1x96xf32>
    %284 = vector.shape_cast %281 : vector<1x96xf32> to vector<1x1x96xf32>
    tpu.vector_store %arg15[%c0_298, %c0_299, %c0_300], %284 {strides = array<i32>} : memref<1x1x96xf32, #tpu.memory_space<vmem>>, vector<1x1x96xf32>,
    return
  }
  func.func @transform_0(%arg0: i32) -> (i32, i32, i32) {
    %c0_i32 = arith.constant 0 : i32
    %c0_i32_0 = arith.constant 0 : i32
    %c0_i32_1 = arith.constant 0 : i32
    return %arg0, %c0_i32, %c0_i32_0 : i32, i32, i32
  }
  func.func @transform_1(%arg0: i32) -> (i32, i32, i32) {
    %c0_i32 = arith.constant 0 : i32
    %c0_i32_0 = arith.constant 0 : i32
    %c0_i32_1 = arith.constant 0 : i32
    %c0_i32_2 = arith.constant 0 : i32
    return %c0_i32, %c0_i32_0, %c0_i32_1 : i32, i32, i32
  }
  func.func @transform_2(%arg0: i32) -> (i32, i32) {
    %c0_i32 = arith.constant 0 : i32
    %c0_i32_0 = arith.constant 0 : i32
    %c0_i32_1 = arith.constant 0 : i32
    return %c0_i32, %c0_i32_0 : i32, i32
  }
  func.func @transform_3(%arg0: i32) -> (i32, i32, i32) {
    %c0_i32 = arith.constant 0 : i32
    %c0_i32_0 = arith.constant 0 : i32
    %c0_i32_1 = arith.constant 0 : i32
    %c0_i32_2 = arith.constant 0 : i32
    return %c0_i32, %c0_i32_0, %c0_i32_1 : i32, i32, i32
  }
  func.func @transform_4(%arg0: i32) -> (i32, i32) {
    %c0_i32 = arith.constant 0 : i32
    %c0_i32_0 = arith.constant 0 : i32
    %c0_i32_1 = arith.constant 0 : i32
    return %c0_i32, %c0_i32_0 : i32, i32
  }
  func.func @transform_5(%arg0: i32) -> (i32, i32, i32) {
    %c0_i32 = arith.constant 0 : i32
    %c0_i32_0 = arith.constant 0 : i32
    %c0_i32_1 = arith.constant 0 : i32
    %c0_i32_2 = arith.constant 0 : i32
    return %c0_i32, %c0_i32_0, %c0_i32_1 : i32, i32, i32
  }
  func.func @transform_6(%arg0: i32) -> (i32, i32) {
    %c0_i32 = arith.constant 0 : i32
    %c0_i32_0 = arith.constant 0 : i32
    %c0_i32_1 = arith.constant 0 : i32
    return %c0_i32, %c0_i32_0 : i32, i32
  }
  func.func @transform_7(%arg0: i32) -> (i32, i32, i32) {
    %c0_i32 = arith.constant 0 : i32
    %c0_i32_0 = arith.constant 0 : i32
    %c0_i32_1 = arith.constant 0 : i32
    %c0_i32_2 = arith.constant 0 : i32
    return %c0_i32, %c0_i32_0, %c0_i32_1 : i32, i32, i32
  }
  func.func @transform_8(%arg0: i32) -> (i32, i32) {
    %c0_i32 = arith.constant 0 : i32
    %c0_i32_0 = arith.constant 0 : i32
    %c0_i32_1 = arith.constant 0 : i32
    return %c0_i32, %c0_i32_0 : i32, i32
  }
  func.func @transform_9(%arg0: i32) -> (i32, i32, i32) {
    %c0_i32 = arith.constant 0 : i32
    %c0_i32_0 = arith.constant 0 : i32
    %c0_i32_1 = arith.constant 0 : i32
    %c0_i32_2 = arith.constant 0 : i32
    return %c0_i32, %c0_i32_0, %c0_i32_1 : i32, i32, i32
  }
  func.func @transform_10(%arg0: i32) -> (i32, i32) {
    %c0_i32 = arith.constant 0 : i32
    %c0_i32_0 = arith.constant 0 : i32
    %c0_i32_1 = arith.constant 0 : i32
    return %c0_i32, %c0_i32_0 : i32, i32
  }
  func.func @transform_11(%arg0: i32) -> (i32, i32) {
    %c0_i32 = arith.constant 0 : i32
    %c0_i32_0 = arith.constant 0 : i32
    %c0_i32_1 = arith.constant 0 : i32
    return %c0_i32, %c0_i32_0 : i32, i32
  }
  func.func @transform_12(%arg0: i32) -> (i32, i32) {
    %c0_i32 = arith.constant 0 : i32
    %c0_i32_0 = arith.constant 0 : i32
    %c0_i32_1 = arith.constant 0 : i32
    return %c0_i32, %c0_i32_0 : i32, i32
  }
  func.func @transform_13(%arg0: i32) -> i32 {
    %c0_i32 = arith.constant 0 : i32
    %c0_i32_0 = arith.constant 0 : i32
    return %c0_i32 : i32
  }
  func.func @transform_14(%arg0: i32) -> (i32, i32, i32) {
    %c0_i32 = arith.constant 0 : i32
    %c0_i32_0 = arith.constant 0 : i32
    %c0_i32_1 = arith.constant 0 : i32
    return %arg0, %c0_i32, %c0_i32_0 : i32, i32, i32
  }
}

</mosaic_0001>

<bundles_post_ra>
// kernel: squeeze.1
= control target key start
LH: loop header
LB: loop body
LE: loop exit
PB: predicated region body
PF: predicated region fallthrough
CT: control target
= control target key end

     0   :  { %s50_s8 = smov 80   ;;  %vm7_vm0 = vcmask 130048   ;;  %s51_s11 = smov 96   ;;  %s91_s0 = inlined_call_operand.vmem [shape: f32[2,96], index: 0, kind: input, shape index: {}]   ;;  %s92_s1 = inlined_call_operand.vmem [shape: f32[2,6,16], index: 1, kind: output, shape index: {}]  }
   0x1   :  { %v4_v0 = vld [vmem:[%s91_s0] sm:$0x3]  ;;  %s49_s0 = smov 112   ;;  %s52_s12 = smov 64  }
   0x2   :  { %5 = vst [vmem:[#allocation0] sm:$0x3] %v4_v0  ;;  %s53_s13 = smov 48  }
   0x9   :  { %v9_v1 = vld [vmem:[#allocation0] sm:$0x3]  }
   0xa   :  { %v21_v2 = vld [vmem:[#allocation0] sm:$0x3]   ;;  %10 = vrot.lane.b32.xlu0 %v9_v1, %s49_s0 }
   0xb   :  { %22 = vrot.lane.b32.xlu1 %v21_v2, %s50_s8  ;;  %v6_v3 = vld [vmem:[#allocation0] sm:$0x3]  }
   0xc   :  { %v15_v4 = vld [vmem:[#allocation0] sm:$0x3]   ;;  %8 = vst.msk [vmem:[%s92_s1] ss:$8 sm:$0x3] %vm7_vm0, %v6_v3  }
   0xd   :  { %v27_v5 = vld [vmem:[#allocation0] sm:$0x3]  }
   0xe   :  { %16 = vrot.lane.b32.xlu0 %v15_v4, %s51_s11  ;;  %v33_v6 = vld [vmem:[#allocation0] sm:$0x3]  }
   0xf   :  { %28 = vrot.lane.b32.xlu1 %v27_v5, %s52_s12 }
  0x12   :  { %34 = vrot.lane.b32.xlu0 %v33_v6, %s53_s13 }
  0x7c   :  { %v11_v7 = vpop.permute.xlu0 %10  }
  0x7d   :  { %v23_v8 = vpop.permute.xlu1 %22   ;;  %39 = vst.msk [vmem:[%s92_s1 + $0x1] ss:$8 sm:$0x3] %vm7_vm0, %v11_v7  }
  0x7e   :  { %41 = vst.msk [vmem:[%s92_s1 + $0x3] ss:$8 sm:$0x3] %vm7_vm0, %v23_v8  }
  0x80   :  { %v17_v9 = vpop.permute.xlu0 %16  }
  0x81   :  { %v29_v10 = vpop.permute.xlu1 %28   ;;  %40 = vst.msk [vmem:[%s92_s1 + $0x2] ss:$8 sm:$0x3] %vm7_vm0, %v17_v9  }
  0x82   :  { %42 = vst.msk [vmem:[%s92_s1 + $0x4] ss:$8 sm:$0x3] %vm7_vm0, %v29_v10  }
  0x84   :  { %v35_v11 = vpop.permute.xlu0 %34  }
  0x85   :  { %43 = vst.msk [vmem:[%s92_s1 + $0x5] ss:$8 sm:$0x3] %vm7_vm0, %v35_v11  }

// kernel: discriminator_forward.1
= control target key start
LH: loop header
LB: loop body
LE: loop exit
PB: predicated region body
PF: predicated region fallthrough
CT: control target
= control target key end

     0   :  { %s26138_s0 = inlined_call_operand.vmem [shape: bf16[2,256,64], index: 0, kind: input, shape index: {}]   ;;  %s26139_s1 = inlined_call_operand.vmem [shape: bf16[9,64,64], index: 1, kind: input, shape index: {}]   ;;  %s26140_s2 = inlined_call_operand.vmem [shape: f32[1,64], index: 2, kind: input, shape index: {}]   ;;  %s26141_s3 = inlined_call_operand.vmem [shape: bf16[9,64,128], index: 3, kind: input, shape index: {}]   ;;  %s26142_s4 = inlined_call_operand.vmem [shape: f32[1,128], index: 4, kind: input, shape index: {}]   ;;  %s26143_s5 = inlined_call_operand.vmem [shape: bf16[9,128,256], index: 5, kind: input, shape index: {}]   ;;  %s26144_s6 = inlined_call_operand.vmem [shape: f32[1,256], index: 6, kind: input, shape index: {}]   ;;  %s26145_s7 = inlined_call_operand.vmem [shape: bf16[9,256,256], index: 7, kind: input, shape index: {}]   ;;  %s26146_s8 = inlined_call_operand.vmem [shape: f32[1,256], index: 8, kind: input, shape index: {}]   ;;  %s26147_s9 = inlined_call_operand.vmem [shape: bf16[9,256,256], index: 9, kind: input, shape index: {}]   ;;  %s26148_s10 = inlined_call_operand.vmem [shape: f32[1,256], index: 10, kind: input, shape index: {}]   ;;  %s26149_s11 = inlined_call_operand.vmem [shape: bf16[1,256], index: 11, kind: input, shape index: {}]   ;;  %s26150_s12 = inlined_call_operand.<no memory space> [shape: f32[1,1], index: 12, kind: input, shape index: {}]   ;;  %s26151_s13 = inlined_call_operand.vmem [shape: f32[3], index: 13, kind: input, shape index: {}]   ;;  %s26152_s14 = inlined_call_operand.vmem [shape: f32[2,1,96], index: 14, kind: output, shape index: {}]  }
   0x1   :  { %v19_v0 = vstv %s26150_s12 }
   0x2   :  { %20 = vst [vmem:[#allocation7] sm:$0x1] %v19_v0 }
   0x3   :  { %21 = vsyncpa [#allocation9], 0  ;;  %s21292_s15 = smov 0  }
   0x4 LB: > { %s16058_s16 = sadd.s32 4294967295, %s21209_s15   ;;  %p16060_p0 = scmp.ge.s32.totalorder %s21209_s15, 1  ;;  %s21209_s15 = sphi %s21292_s15, %s27_s15  }
   0x5   : > { %p357_p1 = scmp.lt.s32.totalorder %s21209_s15, 3  ;;  %s406_s19 = sshll.u32 %s26151_s13, 4  ;;  %s407_s19 = int_to_ptr.vmem [resolvable:$true] %s406_s19 }
   0x6   : > { %p19963_p3 = scmp.eq.s32.totalorder %s16058_s16, 0  ;;  %s21184_s20 = scalar_lea.vmem %s407_s19, 16 }
   0x7   : > { %p21303_p2 = pnand %p16060_p0, %p357_p1  ;;  %p21185_p6 = scmp.ne.s32.totalorder %s407_s19, %s21184_s20 }
   0x8   : > { %p21192_p10 = scmp.lt.s32.totalorder %s407_s19, %s407_s19  ;;  %p21193_p11 = scmp.lt.s32.totalorder %s21184_s20, %s21184_s20 }
   0x9   : > { %p19959_p4 = pneg %p21303_p2 }
   0xa   : > { %p21194_p12 = por %p21193_p11, %p21192_p10 }
   0xb   : > { %p19960_p5 = pnand %p19963_p3, %p19959_p4 }
   0xd   : > { %p21186_p7 = pneg %p19960_p5 }
   0xf   : > { %p21187_p8 = pnand %p21186_p7, %p21185_p6 }
  0x11   : > { %p21188_p9 = pneg %p21187_p8 }
  0x13   : > { %p21195_p13 = pnand %p21194_p12, %p21188_p9 }
  0x15   : > { %21198 = shalt.err (!%p21195_p13)
}
  0x16   : > { %s21211_s21 = smov [#allocation8]   ;;  %427 = sbr.rel (%p21303_p2) target bundleno = 3714 (0xe82), region = 76 }
  0x17   : > { %19962 = dma.vmem_to_smem (!%p19960_p5), %s407_s19, 16, %s21211_s21, [#allocation9]  }
  0x1d   : > { %21204 = dma.done.wait (%p19963_p3), [#allocation9], 16  }
  0x1e   : > { %21206 = vsyncadd (%p19963_p3), [#allocation9], 4294967280 }
  0x1f   : > { %433 = sfence }
  0x20   : > { %v19977_v1 = vld [vmem:[%s26139_s1 + $0x20] sm:$0xff]   ;;  %p472_p0 = scmp.lt.s32.totalorder %s16058_s16, 1  ;;  %v19978_v2 = vld [vmem:[%s26139_s1 + $0x28] sm:$0xff]   ;;  %v19979_v3 = vld [vmem:[%s26139_s1 + $0x30] sm:$0xff]   ;;  %vm597_vm0 = vsmask.f32 7424 }
  0x21   : > { %18223 = vmatprep.subr.bf16.mxu0 %v19977_v1  ;;  %v19980_v4 = vld [vmem:[%s26139_s1 + $0x38] sm:$0xff]   ;;  %v19984_v21 = vld [vmem:[%s26139_s1] sm:$0xff]   ;;  %vm733_vm1 = vcmask 523264   ;;  %v19987_v32 = vld [vmem:[%s26139_s1 + $0x8] sm:$0xff]   ;;  %vm1135_vm2 = vcmask 1046528   ;;  %vm3414_vm3 = vcmask 522240  }
  0x22   : > { %s26155_s16 = smov (!%p472_p0, %s16058_s16), 1  ;;  %18224 = vmatpush3.bf16.msra.mxu0 %v19977_v1  ;;  %v19992_v42 = vld [vmem:[%s26139_s1 + $0x10] sm:$0xff]   ;;  %v19997_v50 = vld [vmem:[%s26139_s1 + $0x18] sm:$0xff]   ;;  %v19999_v59 = vld [vmem:[%s26139_s1 + $0x40] sm:$0xff]   ;;  %s5795_s29 = sld [smem:[#allocation8]] }
  0x23   : > { %18225 = vmatprep.subr.bf16.mxu0 %v19978_v2  ;;  %s17916_s28 = sshll.u32 %s26155_s16, 7  ;;  %s17912_s21 = sld [smem:[#allocation8 + $0x2]] }
  0x24   : > { %s21329_s17 = scalar_lea.vmem %s26138_s0, %s17916_s28  ;;  %s16823_s28 = sld [smem:[#allocation8 + $0x1]] }
  0x25   : > { %v481_v5 = vld [vmem:[%s21329_s17] sm:$0xf]  ;;  %v21336_v6 = vld [vmem:[%s21329_s17 + $0x4] sm:$0xf]  ;;  %v21342_v8 = vld [vmem:[%s21329_s17 + $0x8] sm:$0xff]   ;;  %s479_s26 = scalar_lea.vmem %s26152_s14, %s26155_s16 }
  0x26   : > { %18226 = vmatpush3.bf16.msra.mxu0 %v19978_v2  ;;  %v21339_v7 = vcombine.low %v481_v5, %v21336_v6  ;;  %v21345_v9 = vld [vmem:[%s21329_s17 + $0x10] sm:$0xff]   ;;  %v606_v12 = vshll.u32 %v21342_v8, 16  ;;  %v610_v13 = vshrl.u32 %v21342_v8, 16  ;;  %v21353_v15 = vld [vmem:[%s21329_s17 + $0x18] sm:$0xff]   ;;  %v21357_v17 = vld [vmem:[%s21329_s17 + $0x20] sm:$0xff]  }
  0x27   : > { %18227 = vmatprep.subr.bf16.mxu0 %v19979_v3  ;;  %v614_v14 = vshll.u32 %v21345_v9, 16  ;;  %v618_v16 = vshrl.u32 %v21345_v9, 16  ;;  %v622_v22 = vshll.u32 %v21353_v15, 16  ;;  %v21364_v23 = vld [vmem:[%s21329_s17 + $0x28] sm:$0xff]   ;;  %v630_v28 = vshll.u32 %v21357_v17, 16  ;;  %v21378_v36 = vld [vmem:[%s21329_s17 + $0x30] sm:$0xff]  }
  0x28   : > { %v599_v10 = vshrl.u32 %v21339_v7, 16  ;;  %v601_v11 = vshll.u32 %v21339_v7, 16  ;;  %v608_v19 = vrot.slane %v606_v12, 1  ;;  %v626_v31 = vshrl.u32 %v21353_v15, 16  ;;  %v21383_v39 = vld [vmem:[%s21329_s17 + $0x38] sm:$0xff]   ;;  %v21390_v44 = vld [vmem:[%s21329_s17 + $0x40] sm:$0xff]  }
  0x29   : > { %v616_v20 = vrot.slane %v614_v14, 1  ;;  %v624_v27 = vrot.slane %v622_v22, 1  ;;  %v634_v34 = vshrl.u32 %v21357_v17, 16  ;;  %v638_v35 = vshll.u32 %v21364_v23, 16  ;;  %v21401_v52 = vld [vmem:[%s21329_s17 + $0x48] sm:$0xff]   ;;  %v21404_v53 = vld [vmem:[%s21329_s17 + $0x50] sm:$0xff]  }
  0x2a   : > { %18228 = vmatpush3.bf16.msra.mxu0 %v19979_v3  ;;  %v603_v18 = vrot.slane %v601_v11, 1  ;;  %v612_v25 = vor.u32 %v610_v13, %v608_v19  ;;  %v632_v37 = vrot.slane %v630_v28, 1  ;;  %v646_v43 = vshll.u32 %v21378_v36, 16  ;;  %v21409_v55 = vld [vmem:[%s21329_s17 + $0x58] sm:$0xff]  }
  0x2b   : > { %18229 = vmatprep.subr.bf16.mxu0 %v19980_v4  ;;  %v620_v26 = vor.u32 %v618_v16, %v616_v20  ;;  %v628_v38 = vor.u32 %v626_v31, %v624_v27  ;;  %v640_v41 = vrot.slane %v638_v35, 1  ;;  %v642_v46 = vshrl.u32 %v21364_v23, 16  ;;  %v21430_v16 = vld [vmem:[%s21329_s17 + $0x68] sm:$0xf] }
  0x2c   : > { %v604_v24 = vor.u32 %v603_v18, %v599_v10  ;;  %v617_v30 = vsel %vm597_vm0, %v612_v25, %v616_v20  ;;  %v636_v40 = vor.u32 %v634_v34, %v632_v37  ;;  %v650_v47 = vshrl.u32 %v21378_v36, 16  ;;  %v21425_v10 = vld [vmem:[%s21329_s17 + $0x60] sm:$0xff]  }
  0x2d   : > { %v625_v33 = vsel %vm597_vm0, %v620_v26, %v624_v27  ;;  %v633_v45 = vsel %vm597_vm0, %v628_v38, %v632_v37  ;;  %v654_v49 = vshll.u32 %v21383_v39, 16  ;;  %v648_v51 = vrot.slane %v646_v43, 1  ;;  %v20001_v43 = vld [vmem:[%s26139_s1 + $0x50] sm:$0xff]  }
  0x2e   : > { %18230 = vmatpush3.bf16.msra.mxu0 %v19980_v4  ;;  %v609_v29 = vsel %vm597_vm0, %v604_v24, %v608_v19  ;;  %v641_v48 = vsel %vm597_vm0, %v636_v40, %v640_v41  ;;  %v662_v54 = vshll.u32 %v21390_v44, 16  ;;  %v644_v56 = vor.u32 %v642_v46, %v640_v41  ;;  %v517_v19 = vld [vmem:[%s21329_s17 + $0x6c] sm:$0xf]  ;;  %v1122_v46 = vld [vmem:[%s21329_s17] sm:$0xe] }
  0x2f   : > { %18231 = vmatprep.mubr.msk.bf16.mxu0 %vm733_vm1, %v609_v29  ;;  %18259 = vmatprep.subr.bf16.mxu0 %v19984_v21  ;;  %v652_v57 = vor.u32 %v650_v47, %v648_v51  ;;  %v656_v58 = vrot.slane %v654_v49, 1  ;;  %v670_v60 = vshll.u32 %v21401_v52, 16  ;;  %v678_v61 = vshll.u32 %v21404_v53, 16 }
  0x30   : > { %v658_v62 = vshrl.u32 %v21383_v39, 16  ;;  %v666_v63 = vshrl.u32 %v21390_v44, 16  ;;  %v686_v0 = vshll.u32 %v21409_v55, 16  ;;  %v649_v1 = vsel %vm597_vm0, %v644_v56, %v648_v51 }
  0x31   : > { %18232 = vmatmul.mubr.msk.bf16.vlgmr.msra.gmra.mrb[0].mxu0 %vm733_vm1, %v617_v30  ;;  %v664_v2 = vrot.slane %v662_v54, 1  ;;  %v674_v3 = vshrl.u32 %v21401_v52, 16  ;;  %v657_v4 = vsel %vm597_vm0, %v652_v57, %v656_v58  ;;  %v682_v5 = vshrl.u32 %v21404_v53, 16  ;;  %v20006_v57 = vld [vmem:[%s26139_s1 + $0x68] sm:$0xff]  }
  0x32   : > { %18260 = vmatpush3.bf16.msra.mxu0 %v19984_v21  ;;  %18235 = vmatprep.mubr.msk.bf16.mxu0 %vm733_vm1, %v625_v33  ;;  %v672_v11 = vrot.slane %v670_v60, 1  ;;  %v680_v12 = vrot.slane %v678_v61, 1  ;;  %v688_v13 = vrot.slane %v686_v0, 1  ;;  %v690_v14 = vshrl.u32 %v21409_v55, 16  ;;  %v20008_v60 = vld [vmem:[%s26139_s1 + $0x78] sm:$0xff]  }
  0x33   : > { %18261 = vmatprep.subr.bf16.mxu0 %v19987_v32  ;;  %v660_v18 = vor.u32 %v658_v62, %v656_v58  ;;  %v668_v20 = vor.u32 %v666_v63, %v664_v2  ;;  %v694_v21 = vshll.u32 %v21425_v10, 16  ;;  %v21436_v22 = vcombine.low %v21430_v16, %v517_v19  ;;  %v20011_v63 = vld [vmem:[%s26139_s1 + $0x80] sm:$0xff]   ;;  %v20014_v19 = vld [vmem:[%s26139_s1 + $0x88] sm:$0xff]  }
  0x34   : > { %v698_v26 = vshrl.u32 %v21425_v10, 16  ;;  %v676_v28 = vor.u32 %v674_v3, %v672_v11  ;;  %v684_v29 = vor.u32 %v682_v5, %v680_v12  ;;  %v692_v33 = vor.u32 %v690_v14, %v688_v13  ;;  %v21549_v14 = vld [vmem:[%s21329_s17 + $0xc] sm:$0xf] }
  0x35   : > { %v665_v24 = vsel %vm597_vm0, %v660_v18, %v664_v2  ;;  %v673_v25 = vsel %vm597_vm0, %v668_v20, %v672_v11  ;;  %v702_v27 = vshll.u32 %v21436_v22, 16  ;;  %v706_v40 = vshrl.u32 %v21436_v22, 16  ;;  %v21559_v18 = vld [vmem:[%s21329_s17 + $0x18] sm:$0xff]   ;;  %v20019_v20 = vld [vmem:[%s26139_s1 + $0x90] sm:$0xff]  }
  0x36   : > { %18262 = vmatpush3.bf16.msra.mxu0 %v19987_v32  ;;  %v681_v30 = vsel %vm597_vm0, %v676_v28, %v680_v12  ;;  %v689_v31 = vsel %vm597_vm0, %v684_v29, %v688_v13  ;;  %v696_v32 = vrot.slane %v694_v21, 1  ;;  %v16134_v47 = vcombine.low %v1122_v46, %v21336_v6  ;;  %v21572_v21 = vld [vmem:[%s21329_s17 + $0x20] sm:$0xff]   ;;  %v21601_v29 = vld [vmem:[%s21329_s17 + $0x48] sm:$0xff]  }
  0x37   : > { %18263 = vmatprep.subr.bf16.mxu0 %v19992_v42  ;;  %v704_v34 = vrot.slane %v702_v27, 1  ;;  %v1139_v6 = vrot.slane %v21345_v9, 1  ;;  %v1141_v56 = vrot.slane %v21353_v15, 1  ;;  %v1151_v2 = vrot.slane %v21390_v44, 1  ;;  %v21591_v27 = vld [vmem:[%s21329_s17 + $0x38] sm:$0xff]   ;;  %v21598_v28 = vld [vmem:[%s21329_s17 + $0x40] sm:$0xff]  }
  0x38   : > { %v700_v35 = vor.u32 %v698_v26, %v696_v32  ;;  %v697_v37 = vsel %vm597_vm0, %v692_v33, %v696_v32  ;;  %v1136_v49 = vrot.slane %v16134_v47, 1  ;;  %v1153_v3 = vrot.slane %v21401_v52, 1  ;;  %v21588_v26 = vld [vmem:[%s21329_s17 + $0x30] sm:$0xff]   ;;  %v21618_v32 = vld [vmem:[%s21329_s17 + $0x60] sm:$0xff]  }
  0x39   : > { %18236 = vmatmul.mubr.msk.bf16.gmra.mrb[4].mxu0 %vm733_vm1, %v633_v45  ;;  %v708_v41 = vor.u32 %v706_v40, %v704_v34  ;;  %v20005_v45 = vld [vmem:[%s26139_s1 + $0x60] sm:$0xff]   ;;  %v1157_v5 = vrot.slane %v21409_v55, 1  ;;  %v1161_v12 = vrot.slane %v21436_v22, 1  ;;  %v21575_v22 = vld [vmem:[%s21329_s17 + $0x28] sm:$0xff]   ;;  %v21629_v40 = vld [vmem:[%s21329_s17 + $0x70] sm:$0xf] }
  0x3a   : > { %18239 = vmatprep.mubr.msk.bf16.mxu0 %vm733_vm1, %v641_v48  ;;  %18264 = vmatpush3.bf16.msra.mxu0 %v19992_v42  ;;  %v705_v38 = vsel %vm597_vm0, %v700_v35, %v704_v34  ;;  %v20000_v42 = vld [vmem:[%s26139_s1 + $0x48] sm:$0xff]  }
  0x3b   : > { %18265 = vmatprep.subr.bf16.mxu0 %v19997_v50  ;;  %v508_v48 = vld [vmem:[%s21329_s17 + $0x6c] sm:$0x7] }
  0x3c   : > { %v16107_v51 = vcombine.low %v21430_v16, %v508_v48  ;;  %v21621_v34 = vld [vmem:[%s21329_s17 + $0x68] sm:$0xff]   ;;  %v1778_v48 = vshrl.u32 %v21559_v18, 16 }
  0x3e   : > { %18266 = vmatpush3.bf16.msra.mxu0 %v19997_v50  ;;  %v1137_v50 = vrot.slane %v21342_v8, 1 }
  0x3f   : > { %18295 = vmatprep.subr.bf16.mxu0 %v19999_v59 }
  0x40   : > { %v1138_v54 = vsel %vm1135_vm2, %v1136_v49, %v1137_v50  ;;  %v1140_v58 = vsel %vm1135_vm2, %v1137_v50, %v1139_v6  ;;  %v1781_v49 = vshll.u32 %v21572_v21, 16 }
  0x41   : > { %18240 = vmatmul.mubr.msk.bf16.gmra.mrb[8].mxu0 %vm733_vm1, %v649_v1 }
  0x42   : > { %18243 = vmatprep.mubr.msk.bf16.mxu0 %vm733_vm1, %v657_v4  ;;  %v1155_v4 = vrot.slane %v21404_v53, 1 }
  0x44   : > { %v1156_v11 = vsel %vm1135_vm2, %v1153_v3, %v1155_v4 }
  0x49   : > { %18244 = vmatmul.mubr.msk.bf16.gmra.mrb[12].mxu0 %vm733_vm1, %v665_v24  ;;  %v20024_v24 = vld [vmem:[%s26139_s1 + $0x98] sm:$0xff]  }
  0x4a   : > { %18247 = vmatprep.mubr.msk.bf16.mxu0 %vm733_vm1, %v673_v25  ;;  %v20028_v25 = vld [vmem:[%s26139_s1 + $0xa0] sm:$0xff]  }
  0x51   : > { %18248 = vmatmul.mubr.msk.bf16.gmra.mrb[16].mxu0 %vm733_vm1, %v681_v30  ;;  %v21608_v30 = vld [vmem:[%s21329_s17 + $0x50] sm:$0xff]  }
  0x52   : > { %18251 = vmatprep.mubr.msk.bf16.mxu0 %vm733_vm1, %v689_v31  ;;  %v21611_v31 = vld [vmem:[%s21329_s17 + $0x58] sm:$0xff]  }
  0x59   : > { %18252 = vmatmul.mubr.msk.bf16.gmra.mrb[20].mxu0 %vm733_vm1, %v697_v37 }
  0x5a   : > { %18255 = vmatprep.mubr.msk.bf16.mxu0 %vm733_vm1, %v705_v38 }
  0x61   : > { %18256 = vmatmul.mubr.msk.bf16.gmra.mrb[24].mxu0 %vm733_vm1, %v708_v41  ;;  %v1429_v41 = vld [vmem:[%s21329_s17 + $0x74] sm:$0x7] }
  0x62   : > { %18267 = vmatprep.mubr.msk.bf16.mxu0 %vm733_vm1, %v21339_v7  ;;  %v20002_v7 = vld [vmem:[%s26139_s1 + $0x58] sm:$0xff]  }
  0x69   : > { %18268 = vmatmul.mubr.msk.bf16.vlgmr.msra.gmra.mrb[0].mxu0 %vm733_vm1, %v21342_v8  ;;  %v1142_v8 = vsel %vm1135_vm2, %v1139_v6, %v1141_v56  ;;  %v1783_v6 = vrot.slane %v1781_v49, 1 }
  0x6a   : > { %18296 = vmatpush3.bf16.msra.mxu0 %v19999_v59  ;;  %18271 = vmatprep.mubr.msk.bf16.mxu0 %vm733_vm1, %v21345_v9  ;;  %v20007_v59 = vld [vmem:[%s26139_s1 + $0x70] sm:$0xff]   ;;  %v1143_v9 = vrot.slane %v21357_v17, 1 }
  0x6b   : > { %18297 = vmatprep.subr.bf16.mxu0 %v20000_v42 }
  0x6c   : > { %v1144_v61 = vsel %vm1135_vm2, %v1141_v56, %v1143_v9  ;;  %v1788_v56 = vshll.u32 %v21575_v22, 16 }
  0x6e   : > { %18298 = vmatpush3.bf16.msra.mxu0 %v20000_v42 }
  0x6f   : > { %18299 = vmatprep.subr.bf16.mxu0 %v20001_v43 }
  0x71   : > { %18272 = vmatmul.mubr.msk.bf16.gmra.mrb[4].mxu0 %vm733_vm1, %v21353_v15  ;;  %v1145_v15 = vrot.slane %v21364_v23, 1 }
  0x72   : > { %18275 = vmatprep.mubr.msk.bf16.mxu0 %vm733_vm1, %v21357_v17  ;;  %18300 = vmatpush3.bf16.msra.mxu0 %v20001_v43  ;;  %v1147_v17 = vrot.slane %v21378_v36, 1 }
  0x73   : > { %18301 = vmatprep.subr.bf16.mxu0 %v20002_v7  ;;  %v1146_v62 = vsel %vm1135_vm2, %v1143_v9, %v1145_v15  ;;  %v1792_v9 = vshrl.u32 %v21575_v22, 16 }
  0x74   : > { %v1148_v0 = vsel %vm1135_vm2, %v1145_v15, %v1147_v17  ;;  %v1795_v15 = vshll.u32 %v21588_v26, 16 }
  0x76   : > { %18302 = vmatpush3.bf16.msra.mxu0 %v20002_v7  ;;  %v16174_v7 = vcombine.low %v21629_v40, %v1429_v41  ;;  %v1827_v41 = vshrl.u32 %v21608_v30, 16 }
  0x77   : > { %18331 = vmatprep.subr.bf16.mxu0 %v20005_v45 }
  0x79   : > { %18276 = vmatmul.mubr.msk.bf16.gmra.mrb[8].mxu0 %vm733_vm1, %v21364_v23  ;;  %v1149_v23 = vrot.slane %v21383_v39, 1 }
  0x7a   : > { %18279 = vmatprep.mubr.msk.bf16.mxu0 %vm733_vm1, %v21378_v36 }
  0x7b   : > { %v1150_v1 = vsel %vm1135_vm2, %v1147_v17, %v1149_v23  ;;  %v1152_v36 = vsel %vm1135_vm2, %v1149_v23, %v1151_v2  ;;  %v1797_v17 = vrot.slane %v1795_v15, 1  ;;  %v1802_v23 = vshll.u32 %v21591_v27, 16 }
  0x81   : > { %18280 = vmatmul.mubr.msk.bf16.gmra.mrb[12].mxu0 %vm733_vm1, %v21383_v39  ;;  %v1154_v39 = vsel %vm1135_vm2, %v1151_v2, %v1153_v3  ;;  %v1799_v2 = vshrl.u32 %v21588_v26, 16 }
  0x82   : > { %18283 = vmatprep.mubr.msk.bf16.mxu0 %vm733_vm1, %v21390_v44  ;;  %v1158_v44 = vsel %vm1135_vm2, %v1155_v4, %v1157_v5  ;;  %v1804_v4 = vrot.slane %v1802_v23, 1 }
  0x89   : > { %18284 = vmatmul.mubr.msk.bf16.gmra.mrb[16].mxu0 %vm733_vm1, %v21401_v52  ;;  %v1159_v52 = vrot.slane %v21425_v10, 1 }
  0x8a   : > { %18287 = vmatprep.mubr.msk.bf16.mxu0 %vm733_vm1, %v21404_v53 }
  0x8b   : > { %v1160_v13 = vsel %vm1135_vm2, %v1157_v5, %v1159_v52  ;;  %v1162_v53 = vsel %vm1135_vm2, %v1159_v52, %v1161_v12  ;;  %v1801_v5 = vor.u32 %v1799_v2, %v1797_v17  ;;  %v20034_v2 = vld [vmem:[%s26139_s1 + $0xc8] sm:$0xff]  }
  0x91   : > { %18288 = vmatmul.mubr.msk.bf16.gmra.mrb[20].mxu0 %vm733_vm1, %v21409_v55  ;;  %v1402_v55 = vld [vmem:[%s21329_s17 + $0x8] sm:$0xf] }
  0x92   : > { %18291 = vmatprep.mubr.msk.bf16.mxu0 %vm733_vm1, %v21425_v10  ;;  %v16161_v16 = vcombine.low %v1402_v55, %v21549_v14  ;;  %v21556_v10 = vld [vmem:[%s21329_s17 + $0x10] sm:$0xff]  }
  0x93   : > { %v1767_v38 = vshll.u32 %v21556_v10, 16  ;;  %v1771_v46 = vshrl.u32 %v21556_v10, 16 }
  0x94   : > { %v1763_v33 = vshll.u32 %v16161_v16, 16  ;;  %v1761_v35 = vshrl.u32 %v16161_v16, 16 }
  0x95   : > { %v1769_v43 = vrot.slane %v1767_v38, 1 }
  0x96   : > { %v1765_v37 = vrot.slane %v1763_v33, 1 }
  0x98   : > { %v1766_v42 = vor.u32 %v1765_v37, %v1761_v35  ;;  %v1830_v35 = vshll.u32 %v21611_v31, 16  ;;  %v1748_v37 = vld [vmem:[%s21329_s17 + $0x74] sm:$0xf] }
  0x99   : > { %18292 = vmatmul.mubr.msk.bf16.gmra.mrb[24].mxu0 %vm733_vm1, %v16107_v51  ;;  %v1773_v51 = vor.u32 %v1771_v46, %v1769_v43 }
  0x9a   : > { %18303 = vmatprep.mubr.msk.bf16.mxu0 %vm733_vm1, %v1138_v54  ;;  %v1770_v47 = vsel %vm597_vm0, %v1766_v42, %v1769_v43  ;;  %v1834_v43 = vshrl.u32 %v21611_v31, 16 }
  0xa1   : > { %18304 = vmatmul.mubr.msk.bf16.vlgmr.msra.gmra.mrb[0].mxu0 %vm733_vm1, %v1140_v58 }
  0xa2   : > { %18332 = vmatpush3.bf16.msra.mxu0 %v20005_v45  ;;  %18307 = vmatprep.mubr.msk.bf16.mxu0 %vm733_vm1, %v1142_v8  ;;  %v1774_v45 = vshll.u32 %v21559_v18, 16  ;;  %v1785_v8 = vshrl.u32 %v21572_v21, 16 }
  0xa3   : > { %18333 = vmatprep.subr.bf16.mxu0 %v20006_v57 }
  0xa4   : > { %v1776_v50 = vrot.slane %v1774_v45, 1  ;;  %v1832_v45 = vrot.slane %v1830_v35, 1  ;;  %v20042_v35 = vld [vmem:[%s26139_s1 + $0xe8] sm:$0xff]  }
  0xa6   : > { %18334 = vmatpush3.bf16.msra.mxu0 %v20006_v57  ;;  %v1780_v54 = vor.u32 %v1778_v48, %v1776_v50  ;;  %v20029_v57 = vld [vmem:[%s26139_s1 + $0xa8] sm:$0xff]   ;;  %v1777_v58 = vsel %vm597_vm0, %v1773_v51, %v1776_v50  ;;  %v1836_v48 = vor.u32 %v1834_v43, %v1832_v45  ;;  %v1844_v50 = vshll.u32 %v21621_v34, 16  ;;  %v20056_v43 = vld [vmem:[%s26139_s1 + $0x100] sm:$0xff]  }
  0xa7   : > { %18335 = vmatprep.subr.bf16.mxu0 %v20007_v59 }
  0xa9   : > { %18308 = vmatmul.mubr.msk.bf16.gmra.mrb[4].mxu0 %vm733_vm1, %v1144_v61  ;;  %v1787_v61 = vor.u32 %v1785_v8, %v1783_v6  ;;  %v2098_v8 = vld [vmem:[%s21329_s17 + $0x8] sm:$0xe] }
  0xaa   : > { %18311 = vmatprep.mubr.msk.bf16.mxu0 %vm733_vm1, %v1146_v62  ;;  %18336 = vmatpush3.bf16.msra.mxu0 %v20007_v59  ;;  %v1784_v59 = vsel %vm597_vm0, %v1780_v54, %v1783_v6  ;;  %v20030_v62 = vld [vmem:[%s26139_s1 + $0xb0] sm:$0xff]   ;;  %v1841_v54 = vshrl.u32 %v21618_v32, 16 }
  0xab   : > { %18337 = vmatprep.subr.bf16.mxu0 %v20008_v60 }
  0xae   : > { %18338 = vmatpush3.bf16.msra.mxu0 %v20008_v60  ;;  %v1790_v60 = vrot.slane %v1788_v56, 1  ;;  %v1848_v56 = vshrl.u32 %v21621_v34, 16 }
  0xaf   : > { %18367 = vmatprep.subr.bf16.mxu0 %v20011_v63 }
  0xb1   : > { %18312 = vmatmul.mubr.msk.bf16.gmra.mrb[8].mxu0 %vm733_vm1, %v1148_v0  ;;  %v20031_v0 = vld [vmem:[%s26139_s1 + $0xb8] sm:$0xff]  }
  0xb2   : > { %18315 = vmatprep.mubr.msk.bf16.mxu0 %vm733_vm1, %v1150_v1  ;;  %v1791_v1 = vsel %vm597_vm0, %v1787_v61, %v1790_v60  ;;  %v16228_v61 = vcombine.low %v2098_v8, %v21549_v14  ;;  %v2116_v14 = vrot.slane %v21572_v21, 1 }
  0xb9   : > { %18316 = vmatmul.mubr.msk.bf16.gmra.mrb[12].mxu0 %vm733_vm1, %v1152_v36  ;;  %v1806_v36 = vshrl.u32 %v21591_v27, 16 }
  0xba   : > { %18319 = vmatprep.mubr.msk.bf16.mxu0 %vm733_vm1, %v1154_v39  ;;  %v1809_v39 = vshll.u32 %v21598_v28, 16 }
  0xbc   : > { %v1811_v52 = vrot.slane %v1809_v39, 1  ;;  %v20036_v39 = vld [vmem:[%s26139_s1 + $0xd8] sm:$0xff]  }
  0xc1   : > { %18320 = vmatmul.mubr.msk.bf16.gmra.mrb[16].mxu0 %vm733_vm1, %v1156_v11  ;;  %v21668_v11 = vld [vmem:[%s26139_s1 + $0xc0] sm:$0xff]  }
  0xc2   : > { %18323 = vmatprep.mubr.msk.bf16.mxu0 %vm733_vm1, %v1158_v44  ;;  %v1808_v44 = vor.u32 %v1806_v36, %v1804_v4 }
  0xc4   : > { %v1812_v55 = vsel %vm597_vm0, %v1808_v44, %v1811_v52 }
  0xc9   : > { %18324 = vmatmul.mubr.msk.bf16.gmra.mrb[20].mxu0 %vm733_vm1, %v1160_v13  ;;  %v1805_v13 = vsel %vm597_vm0, %v1801_v5, %v1804_v4 }
  0xca   : > { %18327 = vmatprep.mubr.msk.bf16.mxu0 %vm733_vm1, %v1162_v53  ;;  %v1813_v53 = vshrl.u32 %v21598_v28, 16 }
  0xd1   : > { %18328 = vmatmul.mubr.msk.bf16.gmra.mrb[24].mxu0 %vm733_vm1, %v1161_v12  ;;  %v1816_v12 = vshll.u32 %v21601_v29, 16 }
  0xd2   : > { %18339 = vmatprep.mubr.msk.bf16.mxu0 %vm733_vm1, %v16161_v16  ;;  %v1820_v16 = vshrl.u32 %v21601_v29, 16 }
  0xd9   : > { %18340 = vmatmul.mubr.msk.bf16.vlgmr.msra.gmra.mrb[0].mxu0 %vm733_vm1, %v21556_v10 }
  0xda   : > { %18368 = vmatpush3.bf16.msra.mxu0 %v20011_v63  ;;  %18343 = vmatprep.mubr.msk.bf16.mxu0 %vm733_vm1, %v21559_v18  ;;  %v1794_v63 = vor.u32 %v1792_v9, %v1790_v60 }
  0xdb   : > { %18369 = vmatprep.subr.bf16.mxu0 %v20014_v19 }
  0xdc   : > { %v1798_v3 = vsel %vm597_vm0, %v1794_v63, %v1797_v17  ;;  %v2111_v63 = vrot.slane %v16228_v61, 1  ;;  %v2112_v17 = vrot.slane %v21556_v10, 1  ;;  %v20035_v10 = vld [vmem:[%s26139_s1 + $0xd0] sm:$0xff]  }
  0xde   : > { %18370 = vmatpush3.bf16.msra.mxu0 %v20014_v19  ;;  %v1823_v19 = vshll.u32 %v21608_v30, 16 }
  0xdf   : > { %18371 = vmatprep.subr.bf16.mxu0 %v20019_v20 }
  0xe0   : > { %v1825_v33 = vrot.slane %v1823_v19, 1 }
  0xe1   : > { %18344 = vmatmul.mubr.msk.bf16.gmra.mrb[4].mxu0 %vm733_vm1, %v21572_v21  ;;  %v2120_v21 = vrot.slane %v21588_v26, 1 }
  0xe2   : > { %18347 = vmatprep.mubr.msk.bf16.mxu0 %vm733_vm1, %v21575_v22  ;;  %18372 = vmatpush3.bf16.msra.mxu0 %v20019_v20  ;;  %v1818_v20 = vrot.slane %v1816_v12, 1  ;;  %v1829_v46 = vor.u32 %v1827_v41, %v1825_v33  ;;  %v2126_v12 = vrot.slane %v21601_v29, 1  ;;  %v21786_v41 = vld [vmem:[%s21329_s17 + $0x30] sm:$0xff]  }
  0xe3   : > { %18373 = vmatprep.subr.bf16.mxu0 %v20024_v24 }
  0xe4   : > { %v1833_v51 = vsel %vm597_vm0, %v1829_v46, %v1832_v45  ;;  %v21802_v45 = vld [vmem:[%s21329_s17 + $0x40] sm:$0xff]   ;;  %v21809_v46 = vld [vmem:[%s21329_s17 + $0x48] sm:$0xff]  }
  0xe6   : > { %18374 = vmatpush3.bf16.msra.mxu0 %v20024_v24  ;;  %v1815_v24 = vor.u32 %v1813_v53, %v1811_v52  ;;  %v2130_v53 = vrot.slane %v21611_v31, 1 }
  0xe7   : > { %18403 = vmatprep.subr.bf16.mxu0 %v20028_v25 }
  0xe8   : > { %v1819_v38 = vsel %vm597_vm0, %v1815_v24, %v1818_v20  ;;  %v21760_v24 = vld [vmem:[%s21329_s17 + $0x14] sm:$0xf] }
  0xe9   : > { %18348 = vmatmul.mubr.msk.bf16.gmra.mrb[8].mxu0 %vm733_vm1, %v21588_v26  ;;  %v2124_v26 = vrot.slane %v21598_v28, 1 }
  0xea   : > { %18351 = vmatprep.mubr.msk.bf16.mxu0 %vm733_vm1, %v21591_v27 }
  0xf1   : > { %18352 = vmatmul.mubr.msk.bf16.gmra.mrb[12].mxu0 %vm733_vm1, %v21598_v28 }
  0xf2   : > { %18355 = vmatprep.mubr.msk.bf16.mxu0 %vm733_vm1, %v21601_v29 }
  0xf9   : > { %18356 = vmatmul.mubr.msk.bf16.gmra.mrb[16].mxu0 %vm733_vm1, %v21608_v30 }
  0xfa   : > { %18359 = vmatprep.mubr.msk.bf16.mxu0 %vm733_vm1, %v21611_v31 }
 0x101   : > { %18360 = vmatmul.mubr.msk.bf16.gmra.mrb[20].mxu0 %vm733_vm1, %v21618_v32 }
 0x102   : > { %18363 = vmatprep.mubr.msk.bf16.mxu0 %vm733_vm1, %v21621_v34 }
 0x109   : > { %18364 = vmatmul.mubr.msk.bf16.gmra.mrb[24].mxu0 %vm733_vm1, %v16174_v7  ;;  %v1837_v7 = vshll.u32 %v21618_v32, 16 }
 0x10a   : > { %18375 = vmatprep.mubr.msk.bf16.mxu0 %vm733_vm1, %v1770_v47  ;;  %v21689_v47 = vcombine.low %v21629_v40, %v1748_v37  ;;  %v20047_v37 = vld [vmem:[%s26139_s1 + $0xf0] sm:$0xff]  }
 0x10b   : > { %v1839_v49 = vrot.slane %v1837_v7, 1  ;;  %v21799_v7 = vld [vmem:[%s21329_s17 + $0x38] sm:$0xff]  }
 0x10c   : > { %v2136_v19 = vrot.slane %v21689_v47, 1 }
 0x10d   : > { %v1840_v6 = vsel %vm597_vm0, %v1836_v48, %v1839_v49  ;;  %v1843_v40 = vor.u32 %v1841_v54, %v1839_v49  ;;  %v21819_v48 = vld [vmem:[%s21329_s17 + $0x58] sm:$0xff]   ;;  %v21822_v49 = vld [vmem:[%s21329_s17 + $0x60] sm:$0xff]   ;;  %v21832_v54 = vld [vmem:[%s21329_s17 + $0x70] sm:$0xff]  }
 0x111   : > { %18376 = vmatmul.mubr.msk.bf16.vlgmr.msra.gmra.mrb[0].mxu0 %vm733_vm1, %v1777_v58  ;;  %v1846_v58 = vrot.slane %v1844_v50, 1 }
 0x112   : > { %18404 = vmatpush3.bf16.msra.mxu0 %v20028_v25  ;;  %18379 = vmatprep.mubr.msk.bf16.mxu0 %vm733_vm1, %v1784_v59  ;;  %v1822_v25 = vor.u32 %v1820_v16, %v1818_v20 }
 0x113   : > { %18405 = vmatprep.subr.bf16.mxu0 %v20029_v57  ;;  %v1850_v59 = vor.u32 %v1848_v56, %v1846_v58  ;;  %v1847_v15 = vsel %vm597_vm0, %v1843_v40, %v1846_v58  ;;  %v21840_v58 = vld [vmem:[%s21329_s17 + $0x78] sm:$0xf]  ;;  %v2404_v40 = vld [vmem:[%s21329_s17 + $0x7c] sm:$0x7] }
 0x114   : > { %v1826_v42 = vsel %vm597_vm0, %v1822_v25, %v1825_v33  ;;  %v21770_v33 = vld [vmem:[%s21329_s17 + $0x20] sm:$0xff]  }
 0x116   : > { %18406 = vmatpush3.bf16.msra.mxu0 %v20029_v57  ;;  %v1852_v57 = vshll.u32 %v21689_v47, 16 }
 0x117   : > { %18407 = vmatprep.subr.bf16.mxu0 %v20030_v62 }
 0x118   : > { %v1854_v9 = vrot.slane %v1852_v57, 1 }
 0x119   : > { %18380 = vmatmul.mubr.msk.bf16.gmra.mrb[4].mxu0 %vm733_vm1, %v1791_v1  ;;  %v2114_v1 = vrot.slane %v21559_v18, 1  ;;  %v2118_v18 = vrot.slane %v21575_v22, 1  ;;  %v2122_v22 = vrot.slane %v21591_v27, 1  ;;  %v2127_v27 = vsel %vm1135_vm2, %v2124_v26, %v2126_v12 }
 0x11a   : > { %18383 = vmatprep.mubr.msk.bf16.mxu0 %vm733_vm1, %v1798_v3  ;;  %18408 = vmatpush3.bf16.msra.mxu0 %v20030_v62  ;;  %v1855_v60 = vsel %vm597_vm0, %v1850_v59, %v1854_v9  ;;  %v1856_v62 = vshrl.u32 %v21689_v47, 16  ;;  %v21812_v47 = vld [vmem:[%s21329_s17 + $0x50] sm:$0xff]  }
 0x11b   : > { %18409 = vmatprep.subr.bf16.mxu0 %v20031_v0  ;;  %v2115_v3 = vsel %vm1135_vm2, %v2112_v17, %v2114_v1  ;;  %v2117_v36 = vsel %vm1135_vm2, %v2114_v1, %v2116_v14  ;;  %v2119_v4 = vsel %vm1135_vm2, %v2116_v14, %v2118_v18  ;;  %v2121_v5 = vsel %vm1135_vm2, %v2118_v18, %v2120_v21 }
 0x11c   : > { %v1858_v23 = vor.u32 %v1856_v62, %v1854_v9  ;;  %v2123_v44 = vsel %vm1135_vm2, %v2120_v21, %v2122_v22  ;;  %v2125_v52 = vsel %vm1135_vm2, %v2122_v22, %v2124_v26  ;;  %v16268_v9 = vcombine.low %v21840_v58, %v2404_v40  ;;  %v20058_v22 = vld [vmem:[%s26139_s1 + $0x110] sm:$0xff]  }
 0x11d   : > { %v2753_v62 = vshrl.u32 %v21770_v33, 16  ;;  %v2763_v14 = vshll.u32 %v21786_v41, 16  ;;  %v2767_v18 = vshrl.u32 %v21786_v41, 16  ;;  %v2770_v21 = vshll.u32 %v21799_v7, 16 }
 0x11e   : > { %18410 = vmatpush3.bf16.msra.mxu0 %v20031_v0  ;;  %v2113_v0 = vsel %vm1135_vm2, %v2111_v63, %v2112_v17  ;;  %v2777_v26 = vshll.u32 %v21802_v45, 16  ;;  %v2809_v40 = vshrl.u32 %v21822_v49, 16 }
 0x11f   : > { %18439 = vmatprep.subr.bf16.mxu0 %v21668_v11 }
 0x121   : > { %18384 = vmatmul.mubr.msk.bf16.gmra.mrb[8].mxu0 %vm733_vm1, %v1805_v13  ;;  %v2128_v13 = vrot.slane %v21608_v30, 1  ;;  %v2134_v30 = vrot.slane %v21621_v34, 1  ;;  %v21767_v34 = vld [vmem:[%s21329_s17 + $0x18] sm:$0xff]  }
 0x122   : > { %18387 = vmatprep.mubr.msk.bf16.mxu0 %vm733_vm1, %v1812_v55  ;;  %v2132_v55 = vrot.slane %v21618_v32, 1  ;;  %v2377_v32 = vld [vmem:[%s21329_s17 + $0x10] sm:$0xf]  ;;  %v2742_v57 = vshll.u32 %v21767_v34, 16 }
 0x123   : > { %v2129_v28 = vsel %vm1135_vm2, %v2126_v12, %v2128_v13  ;;  %v2131_v16 = vsel %vm1135_vm2, %v2128_v13, %v2130_v53  ;;  %v2137_v31 = vsel %vm1135_vm2, %v2134_v30, %v2136_v19  ;;  %v16255_v25 = vcombine.low %v2377_v32, %v21760_v24 }
 0x124   : > { %v2133_v29 = vsel %vm1135_vm2, %v2130_v53, %v2132_v55  ;;  %v2135_v20 = vsel %vm1135_vm2, %v2132_v55, %v2134_v30  ;;  %v2744_v59 = vrot.slane %v2742_v57, 1  ;;  %v2781_v13 = vshrl.u32 %v21802_v45, 16 }
 0x125   : > { %v2738_v50 = vshll.u32 %v16255_v25, 16  ;;  %v2779_v53 = vrot.slane %v2777_v26, 1  ;;  %v2791_v30 = vshll.u32 %v21812_v47, 16  ;;  %v2795_v32 = vshrl.u32 %v21812_v47, 16 }
 0x127   : > { %v2740_v56 = vrot.slane %v2738_v50, 1  ;;  %v2805_v50 = vshll.u32 %v21822_v49, 16 }
 0x129   : > { %18388 = vmatmul.mubr.msk.bf16.gmra.mrb[12].mxu0 %vm733_vm1, %v1819_v38  ;;  %v21783_v38 = vld [vmem:[%s21329_s17 + $0x28] sm:$0xff]  }
 0x12a   : > { %18391 = vmatprep.mubr.msk.bf16.mxu0 %vm733_vm1, %v1826_v42  ;;  %v20052_v42 = vld [vmem:[%s26139_s1 + $0xf8] sm:$0xff]   ;;  %v2756_v63 = vshll.u32 %v21783_v38, 16 }
 0x12c   : > { %v2758_v1 = vrot.slane %v2756_v63, 1  ;;  %v2819_v63 = vshll.u32 %v21832_v54, 16 }
 0x131   : > { %18392 = vmatmul.mubr.msk.bf16.gmra.mrb[16].mxu0 %vm733_vm1, %v1833_v51  ;;  %v21829_v51 = vld [vmem:[%s21329_s17 + $0x68] sm:$0xff]  }
 0x132   : > { %18395 = vmatprep.mubr.msk.bf16.mxu0 %vm733_vm1, %v1840_v6  ;;  %v2736_v6 = vshrl.u32 %v16255_v25, 16 }
 0x134   : > { %v2741_v8 = vor.u32 %v2740_v56, %v2736_v6  ;;  %v2802_v56 = vshrl.u32 %v21819_v48, 16 }
 0x136   : > { %v2745_v61 = vsel %vm597_vm0, %v2741_v8, %v2744_v59  ;;  %v2812_v8 = vshll.u32 %v21829_v51, 16 }
 0x139   : > { %18396 = vmatmul.mubr.msk.bf16.gmra.mrb[20].mxu0 %vm733_vm1, %v1847_v15  ;;  %v2749_v15 = vshll.u32 %v21770_v33, 16 }
 0x13a   : > { %18399 = vmatprep.mubr.msk.bf16.mxu0 %vm733_vm1, %v1855_v60  ;;  %v2746_v60 = vshrl.u32 %v21767_v34, 16 }
 0x13b   : > { %v2751_v17 = vrot.slane %v2749_v15, 1 }
 0x141   : > { %18400 = vmatmul.mubr.msk.bf16.gmra.mrb[24].mxu0 %vm733_vm1, %v1858_v23  ;;  %v2748_v23 = vor.u32 %v2746_v60, %v2744_v59  ;;  %v2723_v59 = vld [vmem:[%s21329_s17 + $0x7c] sm:$0xf] }
 0x142   : > { %18411 = vmatprep.mubr.msk.bf16.mxu0 %vm733_vm1, %v2113_v0  ;;  %v2755_v0 = vor.u32 %v2753_v62, %v2751_v17  ;;  %v21894_v60 = vcombine.low %v21840_v58, %v2723_v59  ;;  %v2814_v62 = vrot.slane %v2812_v8, 1 }
 0x149   : > { %18412 = vmatmul.mubr.msk.bf16.vlgmr.msra.gmra.mrb[0].mxu0 %vm733_vm1, %v2115_v3  ;;  %v2760_v3 = vshrl.u32 %v21783_v38, 16 }
 0x14a   : > { %18440 = vmatpush3.bf16.msra.mxu0 %v21668_v11  ;;  %18415 = vmatprep.mubr.msk.bf16.mxu0 %vm733_vm1, %v2117_v36  ;;  %v20039_v11 = vld [vmem:[%s26139_s1 + $0xe0] sm:$0xff]   ;;  %v2759_v36 = vsel %vm597_vm0, %v2755_v0, %v2758_v1 }
 0x14b   : > { %18441 = vmatprep.subr.bf16.mxu0 %v20034_v2 }
 0x14e   : > { %18442 = vmatpush3.bf16.msra.mxu0 %v20034_v2  ;;  %v2752_v2 = vsel %vm597_vm0, %v2748_v23, %v2751_v17  ;;  %v2816_v23 = vshrl.u32 %v21829_v51, 16 }
 0x14f   : > { %18443 = vmatprep.subr.bf16.mxu0 %v20035_v10 }
 0x150   : > { %v2818_v58 = vor.u32 %v2816_v23, %v2814_v62 }
 0x151   : > { %18416 = vmatmul.mubr.msk.bf16.gmra.mrb[4].mxu0 %vm733_vm1, %v2119_v4  ;;  %v2762_v4 = vor.u32 %v2760_v3, %v2758_v1  ;;  %v2823_v1 = vshrl.u32 %v21832_v54, 16 }
 0x152   : > { %18419 = vmatprep.mubr.msk.bf16.mxu0 %vm733_vm1, %v2121_v5  ;;  %18444 = vmatpush3.bf16.msra.mxu0 %v20035_v10  ;;  %v20057_v10 = vld [vmem:[%s26139_s1 + $0x108] sm:$0xff]  }
 0x153   : > { %18445 = vmatprep.subr.bf16.mxu0 %v20036_v39 }
 0x156   : > { %18446 = vmatpush3.bf16.msra.mxu0 %v20036_v39  ;;  %v2765_v39 = vrot.slane %v2763_v14, 1  ;;  %v2827_v14 = vshll.u32 %v21894_v60, 16 }
 0x157   : > { %18475 = vmatprep.subr.bf16.mxu0 %v20039_v11 }
 0x158   : > { %v2769_v5 = vor.u32 %v2767_v18, %v2765_v39 }
 0x159   : > { %18420 = vmatmul.mubr.msk.bf16.gmra.mrb[8].mxu0 %vm733_vm1, %v2123_v44  ;;  %v2766_v44 = vsel %vm597_vm0, %v2762_v4, %v2765_v39  ;;  %v2831_v4 = vshrl.u32 %v21894_v60, 16 }
 0x15a   : > { %18423 = vmatprep.mubr.msk.bf16.mxu0 %vm733_vm1, %v2125_v52  ;;  %v2774_v52 = vshrl.u32 %v21799_v7, 16 }
 0x161   : > { %18424 = vmatmul.mubr.msk.bf16.gmra.mrb[12].mxu0 %vm733_vm1, %v2127_v27  ;;  %v2784_v27 = vshll.u32 %v21809_v46, 16 }
 0x162   : > { %18427 = vmatprep.mubr.msk.bf16.mxu0 %vm733_vm1, %v2129_v28  ;;  %v20059_v28 = vld [vmem:[%s26139_s1 + $0x118] sm:$0xff]  }
 0x169   : > { %18428 = vmatmul.mubr.msk.bf16.gmra.mrb[16].mxu0 %vm733_vm1, %v2131_v16  ;;  %v2783_v16 = vor.u32 %v2781_v13, %v2779_v53  ;;  %v3095_v13 = vrot.slane %v21799_v7, 1 }
 0x16a   : > { %18431 = vmatprep.mubr.msk.bf16.mxu0 %vm733_vm1, %v2133_v29  ;;  %v2786_v29 = vrot.slane %v2784_v27, 1 }
 0x171   : > { %18432 = vmatmul.mubr.msk.bf16.gmra.mrb[20].mxu0 %vm733_vm1, %v2135_v20  ;;  %v2788_v20 = vshrl.u32 %v21809_v46, 16 }
 0x172   : > { %18435 = vmatprep.mubr.msk.bf16.mxu0 %vm733_vm1, %v2137_v31  ;;  %v2787_v31 = vsel %vm597_vm0, %v2783_v16, %v2786_v29 }
 0x179   : > { %18436 = vmatmul.mubr.msk.bf16.gmra.mrb[24].mxu0 %vm733_vm1, %v2136_v19 }
 0x17a   : > { %18447 = vmatprep.mubr.msk.bf16.mxu0 %vm733_vm1, %v16255_v25  ;;  %v2798_v25 = vshll.u32 %v21819_v48, 16 }
 0x181   : > { %18448 = vmatmul.mubr.msk.bf16.vlgmr.msra.gmra.mrb[0].mxu0 %vm733_vm1, %v21767_v34 }
 0x182   : > { %18476 = vmatpush3.bf16.msra.mxu0 %v20039_v11  ;;  %18451 = vmatprep.mubr.msk.bf16.mxu0 %vm733_vm1, %v21770_v33  ;;  %v2772_v11 = vrot.slane %v2770_v21, 1 }
 0x183   : > { %18477 = vmatprep.subr.bf16.mxu0 %v20042_v35 }
 0x184   : > { %v2773_v12 = vsel %vm597_vm0, %v2769_v5, %v2772_v11  ;;  %v2776_v55 = vor.u32 %v2774_v52, %v2772_v11  ;;  %v3087_v11 = vrot.slane %v21767_v34, 1  ;;  %v3093_v34 = vrot.slane %v21786_v41, 1 }
 0x186   : > { %18478 = vmatpush3.bf16.msra.mxu0 %v20042_v35  ;;  %v2780_v19 = vsel %vm597_vm0, %v2776_v55, %v2779_v53  ;;  %v2793_v35 = vrot.slane %v2791_v30, 1 }
 0x187   : > { %18479 = vmatprep.subr.bf16.mxu0 %v20047_v37 }
 0x189   : > { %18452 = vmatmul.mubr.msk.bf16.gmra.mrb[4].mxu0 %vm733_vm1, %v21783_v38 }
 0x18a   : > { %18455 = vmatprep.mubr.msk.bf16.mxu0 %vm733_vm1, %v21786_v41  ;;  %18480 = vmatpush3.bf16.msra.mxu0 %v20047_v37  ;;  %v2790_v37 = vor.u32 %v2788_v20, %v2786_v29  ;;  %v3101_v41 = vrot.slane %v21812_v47, 1 }
 0x18b   : > { %18481 = vmatprep.subr.bf16.mxu0 %v20052_v42 }
 0x18c   : > { %v2794_v6 = vsel %vm597_vm0, %v2790_v37, %v2793_v35  ;;  %v21973_v37 = vld [vmem:[%s26140_s2] ss:$0 sm:$0xff] }
 0x18e   : > { %18482 = vmatpush3.bf16.msra.mxu0 %v20052_v42  ;;  %v2797_v42 = vor.u32 %v2795_v32, %v2793_v35  ;;  %v20064_v32 = vld [vmem:[%s26141_s3 + $0x38] sm:$0xff]  }
 0x18f   : > { %18511 = vmatprep.subr.bf16.mxu0 %v20056_v43 }
 0x191   : > { %18456 = vmatmul.mubr.msk.bf16.gmra.mrb[8].mxu0 %vm733_vm1, %v21799_v7  ;;  %v3103_v7 = vrot.slane %v21819_v48, 1 }
 0x192   : > { %18459 = vmatprep.mubr.msk.bf16.mxu0 %vm733_vm1, %v21802_v45 }
 0x193   : > { %v3104_v29 = vsel %vm1135_vm2, %v3101_v41, %v3103_v7 }
 0x199   : > { %18460 = vmatmul.mubr.msk.bf16.gmra.mrb[12].mxu0 %vm733_vm1, %v21809_v46 }
 0x19a   : > { %18463 = vmatprep.mubr.msk.bf16.mxu0 %vm733_vm1, %v21812_v47  ;;  %v3109_v47 = vrot.slane %v21832_v54, 1 }
 0x1a1   : > { %18464 = vmatmul.mubr.msk.bf16.gmra.mrb[16].mxu0 %vm733_vm1, %v21819_v48  ;;  %v3111_v48 = vrot.slane %v21894_v60, 1 }
 0x1a2   : > { %18467 = vmatprep.mubr.msk.bf16.mxu0 %vm733_vm1, %v21822_v49 }
 0x1a9   : > { %18468 = vmatmul.mubr.msk.bf16.gmra.mrb[20].mxu0 %vm733_vm1, %v21829_v51 }
 0x1aa   : > { %18471 = vmatprep.mubr.msk.bf16.mxu0 %vm733_vm1, %v21832_v54  ;;  %v20063_v54 = vld [vmem:[%s26141_s3 + $0x30] sm:$0xff]  }
 0x1b1   : > { %18472 = vmatmul.mubr.msk.bf16.gmra.mrb[24].mxu0 %vm733_vm1, %v16268_v9  ;;  %v2807_v9 = vrot.slane %v2805_v50, 1 }
 0x1b2   : > { %18483 = vmatprep.mubr.msk.bf16.mxu0 %vm733_vm1, %v2745_v61 }
 0x1b3   : > { %v2811_v61 = vor.u32 %v2809_v40, %v2807_v9 }
 0x1b5   : > { %v2815_v0 = vsel %vm597_vm0, %v2811_v61, %v2814_v62 }
 0x1b9   : > { %18484 = vmatmul.mubr.msk.bf16.vlgmr.msra.gmra.mrb[0].mxu0 %vm733_vm1, %v2752_v2  ;;  %v2821_v2 = vrot.slane %v2819_v63, 1 }
 0x1ba   : > { %18512 = vmatpush3.bf16.msra.mxu0 %v20056_v43  ;;  %18487 = vmatprep.mubr.msk.bf16.mxu0 %vm733_vm1, %v2759_v36  ;;  %v2800_v43 = vrot.slane %v2798_v25, 1  ;;  %v2829_v36 = vrot.slane %v2827_v14, 1  ;;  %v21967_v25 = vld [vmem:[%s26141_s3] sm:$0xff]  }
 0x1bb   : > { %18513 = vmatprep.subr.bf16.mxu0 %v20057_v10  ;;  %v2825_v3 = vor.u32 %v2823_v1, %v2821_v2  ;;  %v2822_v18 = vsel %vm597_vm0, %v2818_v58, %v2821_v2 }
 0x1bc   : > { %v2801_v57 = vsel %vm597_vm0, %v2797_v42, %v2800_v43  ;;  %v2804_v15 = vor.u32 %v2802_v56, %v2800_v43 }
 0x1bd   : > { %v2830_v21 = vsel %vm597_vm0, %v2825_v3, %v2829_v36 }
 0x1be   : > { %18514 = vmatpush3.bf16.msra.mxu0 %v20057_v10  ;;  %v2808_v17 = vsel %vm597_vm0, %v2804_v15, %v2807_v9  ;;  %v3073_v10 = vld [vmem:[%s21329_s17 + $0x10] sm:$0xe] }
 0x1bf   : > { %18515 = vmatprep.subr.bf16.mxu0 %v20058_v22  ;;  %v16322_v39 = vcombine.low %v3073_v10, %v21760_v24  ;;  %v3091_v24 = vrot.slane %v21783_v38, 1  ;;  %v3099_v38 = vrot.slane %v21809_v46, 1  ;;  %v3107_v46 = vrot.slane %v21829_v51, 1  ;;  %v20062_v51 = vld [vmem:[%s26141_s3 + $0x28] sm:$0xff]  }
 0x1c1   : > { %18488 = vmatmul.mubr.msk.bf16.gmra.mrb[4].mxu0 %vm733_vm1, %v2766_v44  ;;  %v3086_v5 = vrot.slane %v16322_v39, 1  ;;  %v3089_v44 = vrot.slane %v21770_v33, 1  ;;  %v3094_v27 = vsel %vm1135_vm2, %v3091_v24, %v3093_v34  ;;  %v3097_v33 = vrot.slane %v21802_v45, 1 }
 0x1c2   : > { %18491 = vmatprep.mubr.msk.bf16.mxu0 %vm733_vm1, %v2773_v12  ;;  %18516 = vmatpush3.bf16.msra.mxu0 %v20058_v22  ;;  %v2833_v22 = vor.u32 %v2831_v4, %v2829_v36  ;;  %v3102_v16 = vsel %vm1135_vm2, %v3099_v38, %v3101_v41  ;;  %v3105_v45 = vrot.slane %v21822_v49, 1  ;;  %v3110_v20 = vsel %vm1135_vm2, %v3107_v46, %v3109_v47  ;;  %v20061_v49 = vld [vmem:[%s26141_s3 + $0x20] sm:$0xff]  }
 0x1c3   : > { %18517 = vmatprep.subr.bf16.mxu0 %v20059_v28  ;;  %v3088_v26 = vsel %vm1135_vm2, %v3086_v5, %v3087_v11  ;;  %v3090_v52 = vsel %vm1135_vm2, %v3087_v11, %v3089_v44  ;;  %v3092_v12 = vsel %vm1135_vm2, %v3089_v44, %v3091_v24  ;;  %v3098_v53 = vsel %vm1135_vm2, %v3095_v13, %v3097_v33 }
 0x1c4   : > { %v3100_v55 = vsel %vm1135_vm2, %v3097_v33, %v3099_v38  ;;  %v3106_v30 = vsel %vm1135_vm2, %v3103_v7, %v3105_v45  ;;  %18547 = vmatprep.subr.bf16.mxu1 %v20061_v49 }
 0x1c5   : > { %18548 = vmatpush3.bf16.msra.mxu1 %v20061_v49 }
 0x1c6   : > { %18518 = vmatpush3.bf16.msra.mxu0 %v20059_v28  ;;  %v3096_v28 = vsel %vm1135_vm2, %v3093_v34, %v3095_v13  ;;  %18549 = vmatprep.subr.bf16.mxu1 %v20062_v51 }
 0x1c9   : > { %18492 = vmatmul.mubr.msk.bf16.gmra.mrb[8].mxu0 %vm733_vm1, %v2780_v19  ;;  %v3108_v19 = vsel %vm1135_vm2, %v3105_v45, %v3107_v46  ;;  %18550 = vmatpush3.bf16.msra.mxu1 %v20062_v51 }
 0x1ca   : > { %18495 = vmatprep.mubr.msk.bf16.mxu0 %vm733_vm1, %v2787_v31  ;;  %v3112_v31 = vsel %vm1135_vm2, %v3109_v47, %v3111_v48  ;;  %18551 = vmatprep.subr.bf16.mxu1 %v20063_v54 }
 0x1cd   : > { %18552 = vmatpush3.bf16.msra.mxu1 %v20063_v54 }
 0x1ce   : > { %18553 = vmatprep.subr.bf16.mxu1 %v20064_v32 }
 0x1d1   : > { %18496 = vmatmul.mubr.msk.bf16.gmra.mrb[12].mxu0 %vm733_vm1, %v2794_v6  ;;  %18554 = vmatpush3.bf16.msra.mxu1 %v20064_v32 }
 0x1d2   : > { %18499 = vmatprep.mubr.msk.bf16.mxu0 %vm733_vm1, %v2801_v57  ;;  %18579 = vmatprep.subr.bf16.mxu1 %v21967_v25 }
 0x1d9   : > { %18500 = vmatmul.mubr.msk.bf16.gmra.mrb[16].mxu0 %vm733_vm1, %v2808_v17 }
 0x1da   : > { %18503 = vmatprep.mubr.msk.bf16.mxu0 %vm733_vm1, %v2815_v0 }
 0x1e1   : > { %18504 = vmatmul.mubr.msk.bf16.gmra.mrb[20].mxu0 %vm733_vm1, %v2822_v18 }
 0x1e2   : > { %18507 = vmatprep.mubr.msk.bf16.mxu0 %vm733_vm1, %v2830_v21 }
 0x1e9   : > { %18508 = vmatmul.mubr.msk.bf16.gmra.mrb[24].mxu0 %vm733_vm1, %v2833_v22 }
 0x1ea   : > { %18519 = vmatprep.mubr.msk.bf16.mxu0 %vm733_vm1, %v3088_v26 }
 0x1f1   : > { %18520 = vmatmul.mubr.msk.bf16.vlgmr.msra.gmra.mrb[0].mxu0 %vm733_vm1, %v3090_v52 }
 0x1f2   : > { %18523 = vmatprep.mubr.msk.bf16.mxu0 %vm733_vm1, %v3092_v12 }
 0x1f9   : > { %18524 = vmatmul.mubr.msk.bf16.gmra.mrb[4].mxu0 %vm733_vm1, %v3094_v27 }
 0x1fa   : > { %18527 = vmatprep.mubr.msk.bf16.mxu0 %vm733_vm1, %v3096_v28 }
 0x201   : > { %18528 = vmatmul.mubr.msk.bf16.gmra.mrb[8].mxu0 %vm733_vm1, %v3098_v53 }
 0x202   : > { %18531 = vmatprep.mubr.msk.bf16.mxu0 %vm733_vm1, %v3100_v55 }
 0x209   : > { %18532 = vmatmul.mubr.msk.bf16.gmra.mrb[12].mxu0 %vm733_vm1, %v3102_v16 }
 0x20a   : > { %18535 = vmatprep.mubr.msk.bf16.mxu0 %vm733_vm1, %v3104_v29 }
 0x211   : > { %18536 = vmatmul.mubr.msk.bf16.gmra.mrb[16].mxu0 %vm733_vm1, %v3106_v30 }
 0x212   : > { %18539 = vmatprep.mubr.msk.bf16.mxu0 %vm733_vm1, %v3108_v19 }
 0x219   : > { %18540 = vmatmul.mubr.msk.bf16.gmra.mrb[20].mxu0 %vm733_vm1, %v3110_v20 }
 0x21a   : > { %18543 = vmatprep.mubr.msk.bf16.mxu0 %vm733_vm1, %v3112_v31 }
 0x221   : > { %18544 = vmatmul.mubr.msk.bf16.gmra.mrb[24].mxu0 %vm733_vm1, %v3111_v48  ;;  %v20066_v48 = vld [vmem:[%s26141_s3 + $0x8] sm:$0xff]  }
 0x2c4   : > { %v18521_v35 = vpop.f32.mrb[0].mxu0 }
 0x2c5   : > { %v3213_v42 = vpop.f32.mrb[1].mxu0  ;;  %v3361_v50 = vadd.f32 %v18521_v35, %v21973_v37 }
 0x2c6   : > { %v18522_v43 = vpop.f32.mrb[2].mxu0  ;;  %v3359_v57 = vadd.f32 %v21973_v37, %v3213_v42 }
 0x2c7   : > { %v3362_v6 = vadd.f32 %v18522_v43, %v21973_v37  ;;  %v3216_v56 = vpop.f32.mrb[3].mxu0 }
 0x2c8   : > { %v3360_v40 = vadd.f32 %v21973_v37, %v3216_v56 }
 0x2c9   : > { %v3388_v8 = vpack.c.bf16 %v3362_v6, %v3361_v50  ;;  %v20067_v50 = vld [vmem:[%s26141_s3 + $0x10] sm:$0xff]  }
 0x2ca   : > { %v3387_v59 = vpack.c.bf16 %v3360_v40, %v3359_v57 }
 0x2cb   : > { %3402 = vst.msk [vmem:[#allocation2 + $0x8] sm:$0xff] %vm733_vm1, %v3388_v8 }
 0x2cc   : > { %3401 = vst.msk [vmem:[#allocation2] sm:$0xff] %vm733_vm1, %v3387_v59  ;;  %v18525_v9 = vpop.f32.mrb[4].mxu0 }
 0x2cd   : > { %v3229_v15 = vpop.f32.mrb[5].mxu0  ;;  %v3365_v61 = vadd.f32 %v18525_v9, %v21973_v37 }
 0x2ce   : > { %v18526_v60 = vpop.f32.mrb[6].mxu0  ;;  %v3363_v17 = vadd.f32 %v21973_v37, %v3229_v15 }
 0x2cf   : > { %v3366_v62 = vadd.f32 %v18526_v60, %v21973_v37  ;;  %v3232_v63 = vpop.f32.mrb[7].mxu0 }
 0x2d0   : > { %v3364_v23 = vadd.f32 %v21973_v37, %v3232_v63  ;;  %v20068_v63 = vld [vmem:[%s26141_s3 + $0x18] sm:$0xff]  }
 0x2d1   : > { %v3390_v0 = vpack.c.bf16 %v3366_v62, %v3365_v61 }
 0x2d2   : > { %v3389_v1 = vpack.c.bf16 %v3364_v23, %v3363_v17  ;;  %v21985_v14 = vld [vmem:[#allocation2 + $0x8] sm:$0xff] }
 0x2d3   : > { %3404 = vst.msk [vmem:[#allocation2 + $0x18] sm:$0xff] %vm733_vm1, %v3390_v0  ;;  %v21988_v2 = vld [vmem:[#allocation2] sm:$0xff]  ;;  %v3454_v58 = vshll.u32 %v21985_v14, 16  ;;  %v3458_v21 = vshrl.u32 %v21985_v14, 16 }
 0x2d4   : > { %3403 = vst.msk [vmem:[#allocation2 + $0x10] sm:$0xff] %vm733_vm1, %v3389_v1  ;;  %v18529_v3 = vpop.f32.mrb[8].mxu0  ;;  %v3449_v36 = vshll.u32 %v21988_v2, 16  ;;  %v3447_v4 = vshrl.u32 %v21988_v2, 16 }
 0x2d5   : > { %v3245_v10 = vpop.f32.mrb[9].mxu0  ;;  %v3456_v18 = vrot.slane %v3454_v58, 1  ;;  %v3369_v11 = vadd.f32 %v18529_v3, %v21973_v37 }
 0x2d6   : > { %v18530_v39 = vpop.f32.mrb[10].mxu0  ;;  %v3451_v5 = vrot.slane %v3449_v36, 1  ;;  %v3367_v24 = vadd.f32 %v21973_v37, %v3245_v10 }
 0x2d7   : > { %v3370_v22 = vadd.f32 %v18530_v39, %v21973_v37  ;;  %v3248_v26 = vpop.f32.mrb[11].mxu0  ;;  %v4415_v44 = vor.u32 %v3458_v21, %v3456_v18  ;;  %v22067_v39 = vld [vmem:[%s26141_s3 + $0x40] sm:$0xff]  }
 0x2d8   : > { %v3368_v52 = vadd.f32 %v21973_v37, %v3248_v26  ;;  %v3452_v12 = vor.u32 %v3451_v5, %v3447_v4 }
 0x2d9   : > { %v3392_v34 = vpack.c.bf16 %v3370_v22, %v3369_v11 }
 0x2da   : > { %v3391_v13 = vpack.c.bf16 %v3368_v52, %v3367_v24  ;;  %v3457_v27 = vsel %vm597_vm0, %v3452_v12, %v3456_v18  ;;  %v22000_v28 = vld [vmem:[#allocation2 + $0x18] sm:$0xff] }
 0x2db   : > { %3406 = vst.msk [vmem:[#allocation2 + $0x28] sm:$0xff] %vm733_vm1, %v3392_v34  ;;  %18555 = vmatprep.mubr.msk.bf16.mxu1 %vm733_vm1, %v3457_v27  ;;  %v22004_v33 = vld [vmem:[#allocation2 + $0x10] sm:$0xff]  ;;  %v3470_v38 = vshll.u32 %v22000_v28, 16  ;;  %v3474_v6 = vshrl.u32 %v22000_v28, 16 }
 0x2dc   : > { %3405 = vst.msk [vmem:[#allocation2 + $0x20] sm:$0xff] %vm733_vm1, %v3391_v13  ;;  %v18533_v53 = vpop.f32.mrb[12].mxu0  ;;  %v3462_v55 = vshll.u32 %v22004_v33, 16  ;;  %v3466_v29 = vshrl.u32 %v22004_v33, 16 }
 0x2dd   : > { %v3261_v41 = vpop.f32.mrb[13].mxu0  ;;  %v3373_v45 = vadd.f32 %v18533_v53, %v21973_v37  ;;  %v3472_v47 = vrot.slane %v3470_v38, 1 }
 0x2de   : > { %v18534_v7 = vpop.f32.mrb[14].mxu0  ;;  %v3464_v16 = vrot.slane %v3462_v55, 1  ;;  %v3371_v46 = vadd.f32 %v21973_v37, %v3261_v41 }
 0x2df   : > { %v3374_v30 = vadd.f32 %v18534_v7, %v21973_v37  ;;  %v3264_v19 = vpop.f32.mrb[15].mxu0  ;;  %v3476_v8 = vor.u32 %v3474_v6, %v3472_v47 }
 0x2e0   : > { %v3372_v20 = vadd.f32 %v21973_v37, %v3264_v19  ;;  %v22018_v31 = vsel %vm597_vm0, %v4415_v44, %v3464_v16  ;;  %v3468_v49 = vor.u32 %v3466_v29, %v3464_v16 }
 0x2e1   : > { %v3394_v51 = vpack.c.bf16 %v3374_v30, %v3373_v45  ;;  %18556 = vmatmul.mubr.msk.bf16.vlgmr.msra.gmra.mrb[0].mxu1 %vm733_vm1, %v22018_v31 }
 0x2e2   : > { %v3393_v54 = vpack.c.bf16 %v3372_v20, %v3371_v46  ;;  %18580 = vmatpush3.bf16.msra.mxu1 %v21967_v25  ;;  %v22024_v32 = vsel %vm597_vm0, %v3468_v49, %v3472_v47  ;;  %v22026_v35 = vld [vmem:[#allocation2 + $0x28] sm:$0xff] }
 0x2e3   : > { %3408 = vst.msk [vmem:[#allocation2 + $0x38] sm:$0xff] %vm733_vm1, %v3394_v51  ;;  %18559 = vmatprep.mubr.msk.bf16.mxu1 %vm733_vm1, %v22024_v32  ;;  %v22031_v42 = vld [vmem:[#allocation2 + $0x20] sm:$0xff]  ;;  %v3486_v43 = vshll.u32 %v22026_v35, 16  ;;  %18581 = vmatprep.subr.bf16.mxu1 %v20066_v48  ;;  %v3490_v5 = vshrl.u32 %v22026_v35, 16 }
 0x2e4   : > { %3407 = vst.msk [vmem:[#allocation2 + $0x30] sm:$0xff] %vm733_vm1, %v3393_v54  ;;  %v18537_v25 = vpop.f32.mrb[16].mxu0  ;;  %v3478_v56 = vshll.u32 %v22031_v42, 16  ;;  %v3482_v9 = vshrl.u32 %v22031_v42, 16 }
 0x2e5   : > { %v3277_v57 = vpop.f32.mrb[17].mxu0  ;;  %v3377_v15 = vadd.f32 %v18537_v25, %v21973_v37  ;;  %v3488_v62 = vrot.slane %v3486_v43, 1 }
 0x2e6   : > { %v18538_v40 = vpop.f32.mrb[18].mxu0  ;;  %v3480_v59 = vrot.slane %v3478_v56, 1  ;;  %18582 = vmatpush3.bf16.msra.mxu1 %v20066_v48  ;;  %v3375_v17 = vadd.f32 %v21973_v37, %v3277_v57 }
 0x2e7   : > { %v3378_v60 = vadd.f32 %v18538_v40, %v21973_v37  ;;  %v3280_v61 = vpop.f32.mrb[19].mxu0  ;;  %18583 = vmatprep.subr.bf16.mxu1 %v20067_v50  ;;  %v3492_v44 = vor.u32 %v3490_v5, %v3488_v62 }
 0x2e8   : > { %v3376_v23 = vadd.f32 %v21973_v37, %v3280_v61  ;;  %v22049_v0 = vsel %vm597_vm0, %v3476_v8, %v3480_v59  ;;  %v3484_v1 = vor.u32 %v3482_v9, %v3480_v59 }
 0x2e9   : > { %v3396_v58 = vpack.c.bf16 %v3378_v60, %v3377_v15  ;;  %18560 = vmatmul.mubr.msk.bf16.gmra.mrb[4].mxu1 %vm733_vm1, %v22049_v0 }
 0x2ea   : > { %v3395_v3 = vpack.c.bf16 %v3376_v23, %v3375_v17  ;;  %v22054_v36 = vsel %vm597_vm0, %v3484_v1, %v3488_v62  ;;  %v22056_v10 = vld [vmem:[#allocation2 + $0x38] sm:$0xff]  ;;  %18584 = vmatpush3.bf16.msra.mxu1 %v20067_v50 }
 0x2eb   : > { %3410 = vst.msk [vmem:[#allocation2 + $0x48] sm:$0xff] %vm733_vm1, %v3396_v58  ;;  %18563 = vmatprep.mubr.msk.bf16.mxu1 %vm733_vm1, %v22054_v36  ;;  %v22061_v18 = vld [vmem:[#allocation2 + $0x30] sm:$0xff]  ;;  %v3502_v21 = vshll.u32 %v22056_v10, 16  ;;  %18585 = vmatprep.subr.bf16.mxu1 %v20068_v63  ;;  %v3506_v47 = vshrl.u32 %v22056_v10, 16 }
 0x2ec   : > { %3409 = vst.msk [vmem:[#allocation2 + $0x40] sm:$0xff] %vm733_vm1, %v3395_v3  ;;  %v18541_v4 = vpop.f32.mrb[20].mxu0  ;;  %v3494_v11 = vshll.u32 %v22061_v18, 16  ;;  %v3498_v52 = vshrl.u32 %v22061_v18, 16 }
 0x2ed   : > { %v3293_v22 = vpop.f32.mrb[21].mxu0  ;;  %v3381_v12 = vadd.f32 %v18541_v4, %v21973_v37  ;;  %v3504_v27 = vrot.slane %v3502_v21, 1 }
 0x2ee   : > { %v18542_v26 = vpop.f32.mrb[22].mxu0  ;;  %v3496_v24 = vrot.slane %v3494_v11, 1  ;;  %18586 = vmatpush3.bf16.msra.mxu1 %v20068_v63  ;;  %v3379_v38 = vadd.f32 %v21973_v37, %v3293_v22 }
 0x2ef   : > { %v3382_v34 = vadd.f32 %v18542_v26, %v21973_v37  ;;  %v3296_v13 = vpop.f32.mrb[23].mxu0  ;;  %18611 = vmatprep.subr.bf16.mxu1 %v22067_v39  ;;  %v3508_v51 = vor.u32 %v3506_v47, %v3504_v27  ;;  %v20070_v26 = vld [vmem:[%s26141_s3 + $0x48] sm:$0xff]   ;;  %v20076_v47 = vld [vmem:[%s26141_s3 + $0x78] sm:$0xff]  }
 0x2f0   : > { %v3380_v53 = vadd.f32 %v21973_v37, %v3296_v13  ;;  %v22079_v55 = vsel %vm597_vm0, %v3492_v44, %v3496_v24  ;;  %v3500_v41 = vor.u32 %v3498_v52, %v3496_v24  ;;  %v20071_v44 = vld [vmem:[%s26141_s3 + $0x50] sm:$0xff]   ;;  %v3908_v24 = vld [vmem:[#allocation2] sm:$0xfe] }
 0x2f1   : > { %v3398_v7 = vpack.c.bf16 %v3382_v34, %v3381_v12  ;;  %18564 = vmatmul.mubr.msk.bf16.gmra.mrb[8].mxu1 %vm733_vm1, %v22079_v55  ;;  %v3930_v52 = vrot.slane %v3908_v24, 1  ;;  %v3931_v12 = vrot.slane %v21985_v14, 1 }
 0x2f2   : > { %v3397_v16 = vpack.c.bf16 %v3380_v53, %v3379_v38  ;;  %v22084_v29 = vsel %vm597_vm0, %v3500_v41, %v3504_v27  ;;  %v22086_v45 = vld [vmem:[#allocation2 + $0x48] sm:$0xff]  ;;  %v22173_v27 = vrot.slane %v22004_v33, 1  ;;  %v22176_v38 = vrot.slane %v22000_v28, 1 }
 0x2f3   : > { %3412 = vst.msk [vmem:[#allocation2 + $0x58] sm:$0xff] %vm733_vm1, %v3398_v7  ;;  %18567 = vmatprep.mubr.msk.bf16.mxu1 %vm733_vm1, %v22084_v29  ;;  %v22091_v46 = vld [vmem:[#allocation2 + $0x40] sm:$0xff]  ;;  %v3518_v30 = vshll.u32 %v22086_v45, 16  ;;  %v3932_v13 = vsel %vm1135_vm2, %v3930_v52, %v3931_v12  ;;  %v20074_v53 = vld [vmem:[%s26141_s3 + $0x68] sm:$0xff]  }
 0x2f4   : > { %3411 = vst.msk [vmem:[#allocation2 + $0x50] sm:$0xff] %vm733_vm1, %v3397_v16  ;;  %v18545_v19 = vpop.f32.mrb[24].mxu0  ;;  %v3510_v48 = vshll.u32 %v22091_v46, 16  ;;  %v3514_v43 = vshrl.u32 %v22091_v46, 16  ;;  %v3934_v41 = vsel %vm1135_vm2, %v3931_v12, %v22173_v27  ;;  %v22187_v7 = vsel %vm1135_vm2, %v22173_v27, %v22176_v38  ;;  %v20075_v16 = vld [vmem:[%s26141_s3 + $0x70] sm:$0xff]  }
 0x2f5   : > { %v3309_v20 = vpop.f32.mrb[25].mxu0  ;;  %v3385_v50 = vadd.f32 %v18545_v19, %v21973_v37  ;;  %v3520_v56 = vrot.slane %v3518_v30, 1  ;;  %v3937_v30 = vrot.slane %v22031_v42, 1  ;;  %v3939_v19 = vrot.slane %v22026_v35, 1  ;;  %v4707_v12 = vld [vmem:[#allocation2 + $0x8] sm:$0xfe] }
 0x2f6   : > { %v18546_v49 = vpop.f32.mrb[26].mxu0  ;;  %v3512_v54 = vrot.slane %v3510_v48, 1  ;;  %v3383_v57 = vadd.f32 %v21973_v37, %v3309_v20 }
 0x2f7   : > { %v3386_v25 = vadd.f32 %v18546_v49, %v21973_v37  ;;  %v3312_v6 = vpop.f32.mrb[27].mxu0  ;;  %v22201_v48 = vsel %vm1135_vm2, %v22176_v38, %v3937_v30  ;;  %v22206_v20 = vsel %vm1135_vm2, %v3937_v30, %v3939_v19  ;;  %v20077_v49 = vld [vmem:[%s26141_s3 + $0x80] sm:$0xff]  }
 0x2f8   : > { %v3384_v40 = vadd.f32 %v21973_v37, %v3312_v6  ;;  %v22103_v8 = vsel %vm597_vm0, %v3508_v51, %v3512_v54  ;;  %v3516_v59 = vor.u32 %v3514_v43, %v3512_v54  ;;  %v3522_v37 = vshrl.u32 %v22086_v45, 16 }
 0x2f9   : > { %v3400_v9 = vpack.c.bf16 %v3386_v25, %v3385_v50  ;;  %18568 = vmatmul.mubr.msk.bf16.gmra.mrb[12].mxu1 %vm733_vm1, %v22103_v8  ;;  %v3941_v51 = vrot.slane %v22061_v18, 1  ;;  %v3943_v54 = vrot.slane %v22056_v10, 1  ;;  %v3945_v25 = vrot.slane %v22091_v46, 1 }
 0x2fa   : > { %v3399_v15 = vpack.c.bf16 %v3384_v40, %v3383_v57  ;;  %v22108_v60 = vsel %vm597_vm0, %v3516_v59, %v3520_v56  ;;  %v22110_v61 = vld [vmem:[#allocation2 + $0x58] sm:$0x7f]  ;;  %v3524_v23 = vor.u32 %v3522_v37, %v3520_v56  ;;  %v3947_v6 = vrot.slane %v22086_v45, 1  ;;  %v20079_v37 = vld [vmem:[%s26141_s3 + $0x90] sm:$0xff]  }
 0x2fb   : > { %3415 = vst.msk [vmem:[#allocation2 + $0x68] sm:$0x7f] %vm3414_vm3, %v3400_v9  ;;  %18571 = vmatprep.mubr.msk.bf16.mxu1 %vm733_vm1, %v22108_v60  ;;  %v22114_v62 = vld [vmem:[#allocation2 + $0x50] sm:$0xff]  ;;  %v3534_v17 = vshll.u32 %v22110_v61, 16  ;;  %v3538_v11 = vshrl.u32 %v22110_v61, 16  ;;  %v22216_v43 = vsel %vm1135_vm2, %v3939_v19, %v3941_v51  ;;  %v22221_v50 = vsel %vm1135_vm2, %v3941_v51, %v3943_v54  ;;  %v20090_v51 = vld [vmem:[%s26141_s3 + $0xe8] sm:$0xff]  }
 0x2fc   : > { %3413 = vst.msk [vmem:[#allocation2 + $0x60] sm:$0xff] %vm733_vm1, %v3399_v15  ;;  %v3526_v63 = vshll.u32 %v22114_v62, 16  ;;  %v3530_v58 = vshrl.u32 %v22114_v62, 16  ;;  %v3427_v34 = vld [vmem:[#allocation2 + $0x58] sm:$0x3f]  ;;  %v22228_v56 = vsel %vm1135_vm2, %v3943_v54, %v3945_v25  ;;  %v22233_v57 = vsel %vm1135_vm2, %v3945_v25, %v3947_v6  ;;  %v20091_v54 = vld [vmem:[%s26141_s3 + $0xf0] sm:$0xff]  }
 0x2fd   : > { %v3536_v4 = vrot.slane %v3534_v17, 1  ;;  %v22238_v40 = vrot.slane %v22114_v62, 1  ;;  %v3951_v59 = vrot.slane %v22110_v61, 1  ;;  %v20078_v61 = vld [vmem:[%s26141_s3 + $0x88] sm:$0xff]   ;;  %v22283_v17 = vld [vmem:[#allocation2 + $0x58] sm:$0xff] }
 0x2fe   : > { %v3528_v1 = vrot.slane %v3526_v63, 1  ;;  %v20081_v63 = vld [vmem:[%s26141_s3 + $0xa0] sm:$0xff]   ;;  %v22364_v30 = vrot.slane %v22283_v17, 1 }
 0x2ff   : > { %v3540_v22 = vor.u32 %v3538_v11, %v3536_v4  ;;  %v22243_v9 = vsel %vm1135_vm2, %v3947_v6, %v22238_v40  ;;  %v3952_v15 = vsel %vm1135_vm2, %v22238_v40, %v3951_v59  ;;  %v4479_v11 = vshll.u32 %v22283_v17, 16  ;;  %v5506_v6 = vld [vmem:[#allocation2 + $0x10] sm:$0xfe] }
 0x300   : > { %v22122_v3 = vsel %vm597_vm0, %v3524_v23, %v3528_v1  ;;  %v22124_v21 = vor.u32 %v3530_v58, %v3528_v1  ;;  %v20082_v1 = vld [vmem:[%s26141_s3 + $0xa8] sm:$0xff]   ;;  %v20083_v58 = vld [vmem:[%s26141_s3 + $0xb0] sm:$0xff]  }
 0x301   : > { %18572 = vmatmul.mubr.msk.bf16.gmra.mrb[16].mxu1 %vm733_vm1, %v22122_v3 }
 0x302   : > { %v3537_v5 = vsel %vm597_vm0, %v22124_v21, %v3536_v4  ;;  %v20085_v4 = vld [vmem:[%s26141_s3 + $0xc0] sm:$0xff]  }
 0x303   : > { %18575 = vmatprep.mubr.msk.bf16.mxu1 %vm733_vm1, %v3537_v5  ;;  %v4177_v23 = vld [vmem:[#allocation2 + $0x60] sm:$0x3f] }
 0x304   : > { %v4400_v5 = vld [vmem:[#allocation2 + $0x60] sm:$0x7f] }
 0x305   : > { %v4750_v19 = vrot.slane %v4400_v5, 1 }
 0x309   : > { %18576 = vmatmul.mubr.msk.bf16.gmra.mrb[20].mxu1 %vm733_vm1, %v3540_v22  ;;  %v4487_v22 = vshll.u32 %v4400_v5, 16 }
 0x30a   : > { %18587 = vmatprep.mubr.msk.bf16.mxu1 %vm733_vm1, %v21988_v2  ;;  %v20072_v2 = vld [vmem:[%s26141_s3 + $0x58] sm:$0xff]  }
 0x311   : > { %18588 = vmatmul.mubr.msk.bf16.vlgmr.msra.gmra.mrb[0].mxu1 %vm733_vm1, %v21985_v14 }
 0x312   : > { %18591 = vmatprep.mubr.msk.bf16.mxu1 %vm733_vm1, %v22004_v33  ;;  %18612 = vmatpush3.bf16.msra.mxu1 %v22067_v39  ;;  %v20073_v39 = vld [vmem:[%s26141_s3 + $0x60] sm:$0xff]  }
 0x313   : > { %18613 = vmatprep.subr.bf16.mxu1 %v20070_v26 }
 0x316   : > { %18614 = vmatpush3.bf16.msra.mxu1 %v20070_v26  ;;  %v4481_v26 = vrot.slane %v4479_v11, 1  ;;  %v21212_v11 = vmov 0  }
 0x317   : > { %18615 = vmatprep.subr.bf16.mxu1 %v20071_v44  ;;  %15906 = vst [vmem:[#allocation6 + $0x50] sm:$0xf8] %v21212_v11  ;;  %15907 = vst [vmem:[#allocation6 + $0x58] sm:$0xf8] %v21212_v11  ;;  %19976 = vset.pattern.permute.xlu0 %v21212_v11 }
 0x318   : > { %v22324_v24 = vsel %vm597_vm0, %v22124_v21, %v4481_v26  ;;  %v20086_v21 = vld [vmem:[%s26141_s3 + $0xc8] sm:$0xff]  }
 0x319   : > { %18592 = vmatmul.mubr.msk.bf16.gmra.mrb[4].mxu1 %vm733_vm1, %v22000_v28 }
 0x31a   : > { %18595 = vmatprep.mubr.msk.bf16.mxu1 %vm733_vm1, %v22031_v42  ;;  %18616 = vmatpush3.bf16.msra.mxu1 %v20071_v44  ;;  %v4483_v44 = vshrl.u32 %v22283_v17, 16 }
 0x31b   : > { %18617 = vmatprep.subr.bf16.mxu1 %v20072_v2 }
 0x31e   : > { %18618 = vmatpush3.bf16.msra.mxu1 %v20072_v2  ;;  %v4489_v2 = vrot.slane %v4487_v22, 1  ;;  %v20123_v22 = vld [vmem:[%s26143_s5 + $0x4] ss:$8 sps:$4 sm:$0xff]  }
 0x31f   : > { %18643 = vmatprep.subr.bf16.mxu1 %v20073_v39 }
 0x321   : > { %18596 = vmatmul.mubr.msk.bf16.gmra.mrb[8].mxu1 %vm733_vm1, %v22026_v35 }
 0x322   : > { %18599 = vmatprep.mubr.msk.bf16.mxu1 %vm733_vm1, %v22061_v18 }
 0x329   : > { %18600 = vmatmul.mubr.msk.bf16.gmra.mrb[12].mxu1 %vm733_vm1, %v22056_v10 }
 0x32a   : > { %18603 = vmatprep.mubr.msk.bf16.mxu1 %vm733_vm1, %v22091_v46 }
 0x331   : > { %18604 = vmatmul.mubr.msk.bf16.gmra.mrb[16].mxu1 %vm733_vm1, %v22086_v45 }
 0x332   : > { %18607 = vmatprep.mubr.msk.bf16.mxu1 %vm733_vm1, %v22114_v62 }
 0x339   : > { %18608 = vmatmul.mubr.msk.bf16.gmra.mrb[20].mxu1 %vm733_vm1, %v3427_v34  ;;  %v4491_v34 = vshrl.u32 %v4400_v5, 16  ;;  %v20118_v5 = vld [vmem:[%s26143_s5 + $0xf0] ss:$8 sps:$4 sm:$0xff]  }
 0x33a   : > { %18619 = vmatprep.mubr.msk.bf16.mxu1 %vm733_vm1, %v3932_v13 }
 0x33b   : > { %v4493_v13 = vor.u32 %v4491_v34, %v4489_v2 }
 0x341   : > { %18620 = vmatmul.mubr.msk.bf16.vlgmr.msra.gmra.mrb[0].mxu1 %vm733_vm1, %v3934_v41 }
 0x342   : > { %18623 = vmatprep.mubr.msk.bf16.mxu1 %vm733_vm1, %v22187_v7  ;;  %18644 = vmatpush3.bf16.msra.mxu1 %v20073_v39  ;;  %v22320_v39 = vor.u32 %v4483_v44, %v4481_v26  ;;  %v22533_v26 = vld [vmem:[%s26142_s4] ss:$0 sm:$0xff] }
 0x343   : > { %18645 = vmatprep.subr.bf16.mxu1 %v20074_v53 }
 0x344   : > { %v4490_v52 = vsel %vm597_vm0, %v22320_v39, %v4489_v2  ;;  %v22535_v2 = vstv %s5795_s29 }
 0x346   : > { %18646 = vmatpush3.bf16.msra.mxu1 %v20074_v53  ;;  %v4729_v53 = vrot.slane %v4707_v12, 1 }
 0x347   : > { %18647 = vmatprep.subr.bf16.mxu1 %v20075_v16 }
 0x348   : > { %v4731_v41 = vsel %vm1135_vm2, %v4729_v53, %v22173_v27  ;;  %v20088_v27 = vld [vmem:[%s26141_s3 + $0xd8] sm:$0xff]  }
 0x349   : > { %18624 = vmatmul.mubr.msk.bf16.gmra.mrb[4].mxu1 %vm733_vm1, %v22201_v48 }
 0x34a   : > { %18627 = vmatprep.mubr.msk.bf16.mxu1 %vm733_vm1, %v22206_v20  ;;  %18648 = vmatpush3.bf16.msra.mxu1 %v20075_v16  ;;  %v20087_v16 = vld [vmem:[%s26141_s3 + $0xd0] sm:$0xff]  }
 0x34b   : > { %18649 = vmatprep.subr.bf16.mxu1 %v20076_v47 }
 0x34e   : > { %18650 = vmatpush3.bf16.msra.mxu1 %v20076_v47  ;;  %v22369_v47 = vsel %vm1135_vm2, %v22238_v40, %v22364_v30  ;;  %v5528_v40 = vrot.slane %v5506_v6, 1 }
 0x34f   : > { %18675 = vmatprep.subr.bf16.mxu1 %v20077_v49 }
 0x351   : > { %18628 = vmatmul.mubr.msk.bf16.gmra.mrb[8].mxu1 %vm733_vm1, %v22216_v43 }
 0x352   : > { %18631 = vmatprep.mubr.msk.bf16.mxu1 %vm733_vm1, %v22221_v50 }
 0x359   : > { %18632 = vmatmul.mubr.msk.bf16.gmra.mrb[12].mxu1 %vm733_vm1, %v22228_v56 }
 0x35a   : > { %18635 = vmatprep.mubr.msk.bf16.mxu1 %vm733_vm1, %v22233_v57 }
 0x361   : > { %18636 = vmatmul.mubr.msk.bf16.gmra.mrb[16].mxu1 %vm733_vm1, %v22243_v9 }
 0x362   : > { %18639 = vmatprep.mubr.msk.bf16.mxu1 %vm733_vm1, %v3952_v15  ;;  %v5530_v15 = vsel %vm1135_vm2, %v5528_v40, %v22176_v38  ;;  %v20100_v38 = vld [vmem:[%s26143_s5 + $0x90] ss:$8 sps:$4 sm:$0xff]  }
 0x369   : > { %18640 = vmatmul.mubr.msk.bf16.gmra.mrb[20].mxu1 %vm733_vm1, %v3951_v59 }
 0x36a   : > { %18651 = vmatprep.mubr.msk.bf16.mxu1 %vm733_vm1, %v21985_v14  ;;  %v20080_v14 = vld [vmem:[%s26141_s3 + $0x98] sm:$0xff]  }
 0x371   : > { %18652 = vmatmul.mubr.msk.bf16.vlgmr.msra.gmra.mrb[0].mxu1 %vm733_vm1, %v22004_v33 }
 0x372   : > { %18655 = vmatprep.mubr.msk.bf16.mxu1 %vm733_vm1, %v22000_v28  ;;  %18676 = vmatpush3.bf16.msra.mxu1 %v20077_v49  ;;  %v4751_v49 = vsel %vm1135_vm2, %v22364_v30, %v4750_v19 }
 0x373   : > { %18677 = vmatprep.subr.bf16.mxu1 %v20078_v61 }
 0x376   : > { %18678 = vmatpush3.bf16.msra.mxu1 %v20078_v61  ;;  %v20097_v61 = vld [vmem:[%s26143_s5 + $0x80] ss:$8 sps:$4 sm:$0xff]  }
 0x377   : > { %18679 = vmatprep.subr.bf16.mxu1 %v20079_v37 }
 0x379   : > { %18656 = vmatmul.mubr.msk.bf16.gmra.mrb[4].mxu1 %vm733_vm1, %v22031_v42 }
 0x37a   : > { %18659 = vmatprep.mubr.msk.bf16.mxu1 %vm733_vm1, %v22026_v35  ;;  %18680 = vmatpush3.bf16.msra.mxu1 %v20079_v37  ;;  %v20102_v37 = vld [vmem:[%s26143_s5 + $0x94] ss:$8 sps:$4 sm:$0xff]  }
 0x37b   : > { %18681 = vmatprep.subr.bf16.mxu1 %v20080_v14 }
 0x37e   : > { %18682 = vmatpush3.bf16.msra.mxu1 %v20080_v14  ;;  %v20105_v14 = vld [vmem:[%s26143_s5 + $0xa4] ss:$8 sps:$4 sm:$0xff]  }
 0x37f   : > { %18707 = vmatprep.subr.bf16.mxu1 %v20081_v63 }
 0x381   : > { %18660 = vmatmul.mubr.msk.bf16.gmra.mrb[8].mxu1 %vm733_vm1, %v22061_v18 }
 0x382   : > { %18663 = vmatprep.mubr.msk.bf16.mxu1 %vm733_vm1, %v22056_v10 }
 0x389   : > { %18664 = vmatmul.mubr.msk.bf16.gmra.mrb[12].mxu1 %vm733_vm1, %v22091_v46 }
 0x38a   : > { %18667 = vmatprep.mubr.msk.bf16.mxu1 %vm733_vm1, %v22086_v45 }
 0x391   : > { %18668 = vmatmul.mubr.msk.bf16.gmra.mrb[16].mxu1 %vm733_vm1, %v22114_v62 }
 0x392   : > { %18671 = vmatprep.mubr.msk.bf16.mxu1 %vm733_vm1, %v22283_v17 }
 0x399   : > { %18672 = vmatmul.mubr.msk.bf16.gmra.mrb[20].mxu1 %vm733_vm1, %v4177_v23 }
 0x39a   : > { %18683 = vmatprep.mubr.msk.bf16.mxu1 %vm733_vm1, %v22018_v31  ;;  %v20084_v31 = vld [vmem:[%s26141_s3 + $0xb8] sm:$0xff]  }
 0x3a1   : > { %18684 = vmatmul.mubr.msk.bf16.vlgmr.msra.gmra.mrb[0].mxu1 %vm733_vm1, %v22024_v32 }
 0x3a2   : > { %18687 = vmatprep.mubr.msk.bf16.mxu1 %vm733_vm1, %v22049_v0  ;;  %18708 = vmatpush3.bf16.msra.mxu1 %v20081_v63  ;;  %v20103_v63 = vld [vmem:[%s26143_s5 + $0xa0] ss:$8 sps:$4 sm:$0xff]  }
 0x3a3   : > { %18709 = vmatprep.subr.bf16.mxu1 %v20082_v1 }
 0x3a6   : > { %18710 = vmatpush3.bf16.msra.mxu1 %v20082_v1  ;;  %v20112_v1 = vld [vmem:[%s26143_s5 + $0xd0] ss:$8 sps:$4 sm:$0xff]  }
 0x3a7   : > { %18711 = vmatprep.subr.bf16.mxu1 %v20083_v58 }
 0x3a9   : > { %18688 = vmatmul.mubr.msk.bf16.gmra.mrb[4].mxu1 %vm733_vm1, %v22054_v36 }
 0x3aa   : > { %18691 = vmatprep.mubr.msk.bf16.mxu1 %vm733_vm1, %v22079_v55  ;;  %18712 = vmatpush3.bf16.msra.mxu1 %v20083_v58  ;;  %v20117_v58 = vld [vmem:[%s26143_s5 + $0xe4] ss:$8 sps:$4 sm:$0xff]  }
 0x3ab   : > { %18713 = vmatprep.subr.bf16.mxu1 %v20084_v31 }
 0x3ae   : > { %18714 = vmatpush3.bf16.msra.mxu1 %v20084_v31  ;;  %v20115_v31 = vld [vmem:[%s26143_s5 + $0xe0] ss:$8 sps:$4 sm:$0xff]  }
 0x3af   : > { %18739 = vmatprep.subr.bf16.mxu1 %v20085_v4 }
 0x3b1   : > { %18692 = vmatmul.mubr.msk.bf16.gmra.mrb[8].mxu1 %vm733_vm1, %v22084_v29 }
 0x3b2   : > { %18695 = vmatprep.mubr.msk.bf16.mxu1 %vm733_vm1, %v22103_v8 }
 0x3b9   : > { %18696 = vmatmul.mubr.msk.bf16.gmra.mrb[12].mxu1 %vm733_vm1, %v22108_v60 }
 0x3ba   : > { %18699 = vmatprep.mubr.msk.bf16.mxu1 %vm733_vm1, %v22122_v3 }
 0x3c1   : > { %18700 = vmatmul.mubr.msk.bf16.gmra.mrb[16].mxu1 %vm733_vm1, %v22324_v24 }
 0x3c2   : > { %18703 = vmatprep.mubr.msk.bf16.mxu1 %vm733_vm1, %v4490_v52 }
 0x3c9   : > { %18704 = vmatmul.mubr.msk.bf16.gmra.mrb[20].mxu1 %vm733_vm1, %v4493_v13 }
 0x3ca   : > { %18715 = vmatprep.mubr.msk.bf16.mxu1 %vm733_vm1, %v4731_v41 }
 0x3d1   : > { %18716 = vmatmul.mubr.msk.bf16.vlgmr.msra.gmra.mrb[0].mxu1 %vm733_vm1, %v22187_v7  ;;  %v20089_v7 = vld [vmem:[%s26141_s3 + $0xe0] sm:$0xff]  }
 0x3d2   : > { %18719 = vmatprep.mubr.msk.bf16.mxu1 %vm733_vm1, %v22201_v48  ;;  %18740 = vmatpush3.bf16.msra.mxu1 %v20085_v4  ;;  %v20120_v4 = vld [vmem:[%s26143_s5 + $0xf4] ss:$8 sps:$4 sm:$0xff]  }
 0x3d3   : > { %18741 = vmatprep.subr.bf16.mxu1 %v20086_v21 }
 0x3d6   : > { %18742 = vmatpush3.bf16.msra.mxu1 %v20086_v21 }
 0x3d7   : > { %18743 = vmatprep.subr.bf16.mxu1 %v20087_v16 }
 0x3d9   : > { %18720 = vmatmul.mubr.msk.bf16.gmra.mrb[4].mxu1 %vm733_vm1, %v22206_v20 }
 0x3da   : > { %18723 = vmatprep.mubr.msk.bf16.mxu1 %vm733_vm1, %v22216_v43  ;;  %18744 = vmatpush3.bf16.msra.mxu1 %v20087_v16 }
 0x3db   : > { %18745 = vmatprep.subr.bf16.mxu1 %v20088_v27 }
 0x3de   : > { %18746 = vmatpush3.bf16.msra.mxu1 %v20088_v27 }
 0x3df   : > { %18771 = vmatprep.subr.bf16.mxu1 %v20089_v7 }
 0x3e1   : > { %18724 = vmatmul.mubr.msk.bf16.gmra.mrb[8].mxu1 %vm733_vm1, %v22221_v50 }
 0x3e2   : > { %18727 = vmatprep.mubr.msk.bf16.mxu1 %vm733_vm1, %v22228_v56 }
 0x3e9   : > { %18728 = vmatmul.mubr.msk.bf16.gmra.mrb[12].mxu1 %vm733_vm1, %v22233_v57 }
 0x3ea   : > { %18731 = vmatprep.mubr.msk.bf16.mxu1 %vm733_vm1, %v22243_v9 }
 0x3f1   : > { %18732 = vmatmul.mubr.msk.bf16.gmra.mrb[16].mxu1 %vm733_vm1, %v22369_v47 }
 0x3f2   : > { %18735 = vmatprep.mubr.msk.bf16.mxu1 %vm733_vm1, %v4751_v49 }
 0x3f9   : > { %18736 = vmatmul.mubr.msk.bf16.gmra.mrb[20].mxu1 %vm733_vm1, %v4750_v19 }
 0x3fa   : > { %18747 = vmatprep.mubr.msk.bf16.mxu1 %vm733_vm1, %v22004_v33  ;;  %v20092_v33 = vld [vmem:[%s26141_s3 + $0xf8] sm:$0xff]  }
 0x401   : > { %18748 = vmatmul.mubr.msk.bf16.vlgmr.msra.gmra.mrb[0].mxu1 %vm733_vm1, %v22000_v28  ;;  %v20093_v28 = vld [vmem:[%s26141_s3 + $0x100] sm:$0xff]  }
 0x402   : > { %18751 = vmatprep.mubr.msk.bf16.mxu1 %vm733_vm1, %v22031_v42  ;;  %18772 = vmatpush3.bf16.msra.mxu1 %v20089_v7  ;;  %v4976_v42 = vld [vmem:[#allocation2 + $0x68] sm:$0x3f] }
 0x403   : > { %18773 = vmatprep.subr.bf16.mxu1 %v20090_v51 }
 0x406   : > { %18774 = vmatpush3.bf16.msra.mxu1 %v20090_v51 }
 0x407   : > { %18775 = vmatprep.subr.bf16.mxu1 %v20091_v54 }
 0x409   : > { %18752 = vmatmul.mubr.msk.bf16.gmra.mrb[4].mxu1 %vm733_vm1, %v22026_v35  ;;  %v22409_v35 = vld [vmem:[#allocation2 + $0x60] sm:$0xff] }
 0x40a   : > { %18755 = vmatprep.mubr.msk.bf16.mxu1 %vm733_vm1, %v22061_v18  ;;  %18776 = vmatpush3.bf16.msra.mxu1 %v20091_v54  ;;  %v20095_v18 = vld [vmem:[%s26141_s3 + $0x110] sm:$0xff]  }
 0x40b   : > { %18777 = vmatprep.subr.bf16.mxu1 %v20092_v33 }
 0x40e   : > { %18778 = vmatpush3.bf16.msra.mxu1 %v20092_v33 }
 0x40f   : > { %18803 = vmatprep.subr.bf16.mxu1 %v20093_v28 }
 0x411   : > { %18756 = vmatmul.mubr.msk.bf16.gmra.mrb[8].mxu1 %vm733_vm1, %v22056_v10  ;;  %v20094_v10 = vld [vmem:[%s26141_s3 + $0x108] sm:$0xff]  }
 0x412   : > { %18759 = vmatprep.mubr.msk.bf16.mxu1 %vm733_vm1, %v22091_v46 }
 0x419   : > { %18760 = vmatmul.mubr.msk.bf16.gmra.mrb[12].mxu1 %vm733_vm1, %v22086_v45  ;;  %v5282_v45 = vshrl.u32 %v22409_v35, 16 }
 0x41a   : > { %18763 = vmatprep.mubr.msk.bf16.mxu1 %vm733_vm1, %v22114_v62 }
 0x421   : > { %18764 = vmatmul.mubr.msk.bf16.gmra.mrb[16].mxu1 %vm733_vm1, %v22283_v17 }
 0x422   : > { %18767 = vmatprep.mubr.msk.bf16.mxu1 %vm733_vm1, %v22409_v35 }
 0x429   : > { %18768 = vmatmul.mubr.msk.bf16.gmra.mrb[20].mxu1 %vm733_vm1, %v4976_v42 }
 0x42a   : > { %18779 = vmatprep.mubr.msk.bf16.mxu1 %vm733_vm1, %v22024_v32  ;;  %v20096_v32 = vld [vmem:[%s26141_s3 + $0x118] sm:$0xff]  }
 0x431   : > { %18780 = vmatmul.mubr.msk.bf16.vlgmr.msra.gmra.mrb[0].mxu1 %vm733_vm1, %v22049_v0  ;;  %v20099_v0 = vld [vmem:[%s26143_s5 + $0x84] ss:$8 sps:$4 sm:$0xff]  }
 0x432   : > { %18783 = vmatprep.mubr.msk.bf16.mxu1 %vm733_vm1, %v22054_v36  ;;  %18804 = vmatpush3.bf16.msra.mxu1 %v20093_v28  ;;  %v5278_v36 = vshll.u32 %v22409_v35, 16 }
 0x433   : > { %18805 = vmatprep.subr.bf16.mxu1 %v20094_v10 }
 0x436   : > { %18806 = vmatpush3.bf16.msra.mxu1 %v20094_v10 }
 0x437   : > { %18807 = vmatprep.subr.bf16.mxu1 %v20095_v18 }
 0x439   : > { %18784 = vmatmul.mubr.msk.bf16.gmra.mrb[4].mxu1 %vm733_vm1, %v22079_v55  ;;  %v5199_v55 = vld [vmem:[#allocation2 + $0x68] sm:$0x7f] }
 0x43a   : > { %18787 = vmatprep.mubr.msk.bf16.mxu1 %vm733_vm1, %v22084_v29  ;;  %18808 = vmatpush3.bf16.msra.mxu1 %v20095_v18  ;;  %v5280_v29 = vrot.slane %v5278_v36, 1  ;;  %v5286_v46 = vshll.u32 %v5199_v55, 16 }
 0x43b   : > { %18809 = vmatprep.subr.bf16.mxu1 %v20096_v32 }
 0x43c   : > { %v5284_v62 = vor.u32 %v5282_v45, %v5280_v29  ;;  %v5288_v25 = vrot.slane %v5286_v46, 1 }
 0x43e   : > { %18810 = vmatpush3.bf16.msra.mxu1 %v20096_v32 }
 0x43f   : > { %6106 = vmatprep.subr.bf16.mxu1 %v20099_v0 }
 0x441   : > { %18788 = vmatmul.mubr.msk.bf16.gmra.mrb[8].mxu1 %vm733_vm1, %v22103_v8  ;;  %v5281_v8 = vsel %vm597_vm0, %v22320_v39, %v5280_v29 }
 0x442   : > { %18791 = vmatprep.mubr.msk.bf16.mxu1 %vm733_vm1, %v22108_v60  ;;  %v5289_v60 = vsel %vm597_vm0, %v5284_v62, %v5288_v25 }
 0x449   : > { %18792 = vmatmul.mubr.msk.bf16.gmra.mrb[12].mxu1 %vm733_vm1, %v22122_v3  ;;  %v5290_v3 = vshrl.u32 %v5199_v55, 16 }
 0x44a   : > { %18795 = vmatprep.mubr.msk.bf16.mxu1 %vm733_vm1, %v22324_v24 }
 0x44b   : > { %v5292_v59 = vor.u32 %v5290_v3, %v5288_v25 }
 0x451   : > { %18796 = vmatmul.mubr.msk.bf16.gmra.mrb[16].mxu1 %vm733_vm1, %v5281_v8 }
 0x452   : > { %18799 = vmatprep.mubr.msk.bf16.mxu1 %vm733_vm1, %v5289_v60 }
 0x459   : > { %18800 = vmatmul.mubr.msk.bf16.gmra.mrb[20].mxu1 %vm733_vm1, %v5292_v59 }
 0x45a   : > { %18811 = vmatprep.mubr.msk.bf16.mxu1 %vm733_vm1, %v5530_v15 }
 0x461   : > { %18812 = vmatmul.mubr.msk.bf16.vlgmr.msra.gmra.mrb[0].mxu1 %vm733_vm1, %v22201_v48  ;;  %v20108_v48 = vld [vmem:[%s26143_s5 + $0xb4] ss:$8 sps:$4 sm:$0xff]  }
 0x462   : > { %18815 = vmatprep.mubr.msk.bf16.mxu1 %vm733_vm1, %v22206_v20  ;;  %6107 = vmatpush1.bf16.msra.mxu1 %v20097_v61  ;;  %v20106_v20 = vld [vmem:[%s26143_s5 + $0xb0] ss:$8 sps:$4 sm:$0xff]  }
 0x463   : > { %6108 = vmatprep.subr.bf16.mxu1 %v20102_v37 }
 0x466   : > { %6109 = vmatpush1.bf16.msra.mxu1 %v20100_v38 }
 0x467   : > { %6110 = vmatprep.subr.bf16.mxu1 %v20105_v14  ;;  %v20121_v14 = vld [vmem:[%s26143_s5] ss:$8 sps:$4 sm:$0xff]  }
 0x469   : > { %18816 = vmatmul.mubr.msk.bf16.gmra.mrb[4].mxu1 %vm733_vm1, %v22216_v43  ;;  %v5547_v43 = vrot.slane %v22409_v35, 1 }
 0x46a   : > { %18819 = vmatprep.mubr.msk.bf16.mxu1 %vm733_vm1, %v22221_v50  ;;  %6111 = vmatpush1.bf16.msra.mxu1 %v20103_v63  ;;  %v5549_v50 = vrot.slane %v5199_v55, 1 }
 0x46b   : > { %6112 = vmatprep.subr.bf16.mxu1 %v20108_v48  ;;  %v5548_v17 = vsel %vm1135_vm2, %v22364_v30, %v5547_v43 }
 0x46c   : > { %v5550_v23 = vsel %vm1135_vm2, %v5547_v43, %v5549_v50  ;;  %v20126_v43 = vld [vmem:[%s26143_s5 + $0x14] ss:$8 sps:$4 sm:$0xff]  }
 0x46e   : > { %6113 = vmatpush1.bf16.msra.mxu1 %v20106_v20 }
 0x471   : > { %18820 = vmatmul.mubr.msk.bf16.gmra.mrb[8].mxu1 %vm733_vm1, %v22228_v56  ;;  %v20111_v56 = vld [vmem:[%s26143_s5 + $0xc4] ss:$8 sps:$4 sm:$0xff]  }
 0x472   : > { %18823 = vmatprep.mubr.msk.bf16.mxu1 %vm733_vm1, %v22233_v57  ;;  %v20109_v57 = vld [vmem:[%s26143_s5 + $0xc0] ss:$8 sps:$4 sm:$0xff]   ;;  %6114 = vmatprep.subr.bf16.mxu1 %v20111_v56 }
 0x473   : > { %6115 = vmatpush1.bf16.msra.mxu1 %v20109_v57 }
 0x479   : > { %18824 = vmatmul.mubr.msk.bf16.gmra.mrb[12].mxu1 %vm733_vm1, %v22243_v9  ;;  %v20114_v9 = vld [vmem:[%s26143_s5 + $0xd4] ss:$8 sps:$4 sm:$0xff]  }
 0x47a   : > { %18827 = vmatprep.mubr.msk.bf16.mxu1 %vm733_vm1, %v22369_v47  ;;  %6116 = vmatprep.subr.bf16.mxu1 %v20114_v9 }
 0x47b   : > { %6117 = vmatpush1.bf16.msra.mxu1 %v20112_v1 }
 0x47c   : > { %6118 = vmatprep.subr.bf16.mxu1 %v20117_v58 }
 0x47f   : > { %6119 = vmatpush1.bf16.msra.mxu1 %v20115_v31 }
 0x480   : > { %6120 = vmatprep.subr.bf16.mxu1 %v20120_v4  ;;  %v20124_v4 = vld [vmem:[%s26143_s5 + $0x10] ss:$8 sps:$4 sm:$0xff]  }
 0x481   : > { %18828 = vmatmul.mubr.msk.bf16.gmra.mrb[16].mxu1 %vm733_vm1, %v5548_v17 }
 0x482   : > { %18831 = vmatprep.mubr.msk.bf16.mxu1 %vm733_vm1, %v5550_v23 }
 0x483   : > { %6121 = vmatpush1.bf16.msra.mxu1 %v20118_v5 }
 0x484   : > { %6319 = vmatprep.subr.bf16.mxu1 %v20123_v22  ;;  %v20129_v22 = vld [vmem:[%s26143_s5 + $0x24] ss:$8 sps:$4 sm:$0xff]  }
 0x489   : > { %18832 = vmatmul.mubr.msk.bf16.gmra.mrb[20].mxu1 %vm733_vm1, %v5549_v50 }
 0x48a   : > { %6138 = vmatprep.mubr.bf16.mxu1 %v21212_v11 }
 0x534   : > { %v18813_v44 = vpop.f32.mrb[0].mxu1 }
 0x535   : > { %v5773_v39 = vadd.f32 %v18813_v44, %v22533_v26  ;;  %v5645_v24 = vpop.f32.mrb[1].mxu1 }
 0x536   : > { %v5771_v52 = vadd.f32 %v22533_v26, %v5645_v24  ;;  %v18814_v12 = vpop.f32.mrb[2].mxu1 }
 0x537   : > { %v5823_v34 = vmul.f32 %v22535_v2, %v5773_v39  ;;  %v5774_v13 = vadd.f32 %v18814_v12, %v22533_v26  ;;  %v5648_v53 = vpop.f32.mrb[3].mxu1  ;;  %vm5798_vm4 = vcmp.ge.f32.partialorder %v5773_v39, 0.0 }
 0x538   : > { %v5821_v41 = vmul.f32 %v22535_v2, %v5771_v52  ;;  %v5772_v21 = vadd.f32 %v22533_v26, %v5648_v53  ;;  %vm5796_vm5 = vcmp.ge.f32.partialorder %v5771_v52, 0.0 }
 0x539   : > { %vm5799_vm6 = vcmp.ge.f32.partialorder %v5774_v13, 0.0  ;;  %v5824_v16 = vmul.f32 %v22535_v2, %v5774_v13  ;;  %v5847_v7 = vsel %vm5798_vm4, %v5773_v39, %v5823_v34 }
 0x53a   : > { %vm5797_vm7 = vcmp.ge.f32.partialorder %v5772_v21, 0.0  ;;  %v5822_v27 = vmul.f32 %v22535_v2, %v5772_v21  ;;  %v5845_v19 = vsel %vm5796_vm5, %v5771_v52, %v5821_v41  ;;  %v20127_v41 = vld [vmem:[%s26143_s5 + $0x20] ss:$8 sps:$4 sm:$0xff]  }
 0x53b   : > { %v5848_v30 = vsel %vm5799_vm6, %v5774_v13, %v5824_v16 }
 0x53c   : > { %v22545_v47 = vpack.c.bf16 %v5848_v30, %v5847_v7  ;;  %v5846_v49 = vsel %vm5797_vm7, %v5772_v21, %v5822_v27  ;;  %v18817_v51 = vpop.f32.mrb[4].mxu1  ;;  %v20132_v7 = vld [vmem:[%s26143_s5 + $0x34] ss:$8 sps:$4 sm:$0xff]  }
 0x53d   : > { %v22547_v54 = vpack.c.bf16 %v5846_v49, %v5845_v19  ;;  %v5777_v33 = vadd.f32 %v18817_v51, %v22533_v26  ;;  %v5661_v28 = vpop.f32.mrb[5].mxu1 }
 0x53e   : > { %5882 = vst [vmem:[#allocation3 + $0x8] sm:$0xff] %v22545_v47  ;;  %v5775_v35 = vadd.f32 %v22533_v26, %v5661_v28  ;;  %v18818_v42 = vpop.f32.mrb[6].mxu1  ;;  %v5945_v10 = vshll.u32 %v22545_v47, 16  ;;  %v5949_v36 = vshrl.u32 %v22545_v47, 16 }
 0x53f   : > { %5881 = vst [vmem:[#allocation3] sm:$0xff] %v22547_v54  ;;  %v5827_v18 = vmul.f32 %v22535_v2, %v5777_v33  ;;  %v5778_v32 = vadd.f32 %v18818_v42, %v22533_v26  ;;  %v5664_v0 = vpop.f32.mrb[7].mxu1  ;;  %vm5802_vm8 = vcmp.ge.f32.partialorder %v5777_v33, 0.0  ;;  %v5940_v45 = vshll.u32 %v22547_v54, 16 }
 0x540   : > { %v5825_v55 = vmul.f32 %v22535_v2, %v5775_v35  ;;  %v5776_v29 = vadd.f32 %v22533_v26, %v5664_v0  ;;  %vm5800_vm9 = vcmp.ge.f32.partialorder %v5775_v35, 0.0  ;;  %v5947_v62 = vrot.slane %v5945_v10, 1 }
 0x541   : > { %vm5803_vm10 = vcmp.ge.f32.partialorder %v5778_v32, 0.0  ;;  %v5828_v46 = vmul.f32 %v22535_v2, %v5778_v32  ;;  %v5938_v8 = vshrl.u32 %v22547_v54, 16  ;;  %v5942_v60 = vrot.slane %v5940_v45, 1 }
 0x542   : > { %vm5801_vm11 = vcmp.ge.f32.partialorder %v5776_v29, 0.0  ;;  %v5826_v25 = vmul.f32 %v22535_v2, %v5776_v29  ;;  %v5851_v6 = vsel %vm5802_vm8, %v5777_v33, %v5827_v18  ;;  %v7066_v40 = vor.u32 %v5949_v36, %v5947_v62  ;;  %v20135_v36 = vld [vmem:[%s26143_s5 + $0x44] ss:$8 sps:$4 sm:$0xff]  }
 0x543   : > { %v5852_v3 = vsel %vm5803_vm10, %v5778_v32, %v5828_v46  ;;  %v5849_v59 = vsel %vm5800_vm9, %v5775_v35, %v5825_v55  ;;  %v5943_v38 = vor.u32 %v5942_v60, %v5938_v8  ;;  %v20130_v32 = vld [vmem:[%s26143_s5 + $0x30] ss:$8 sps:$4 sm:$0xff]  }
 0x544   : > { %v22563_v15 = vpack.c.bf16 %v5852_v3, %v5851_v6  ;;  %v5850_v61 = vsel %vm5801_vm11, %v5776_v29, %v5826_v25  ;;  %v18821_v37 = vpop.f32.mrb[8].mxu1  ;;  %v20133_v3 = vld [vmem:[%s26143_s5 + $0x40] ss:$8 sps:$4 sm:$0xff]  }
 0x545   : > { %v22568_v63 = vpack.c.bf16 %v5850_v61, %v5849_v59  ;;  %v5781_v48 = vadd.f32 %v18821_v37, %v22533_v26  ;;  %v5677_v20 = vpop.f32.mrb[9].mxu1  ;;  %v5948_v23 = vsel %vm597_vm0, %v5943_v38, %v5947_v62  ;;  %v20138_v37 = vld [vmem:[%s26143_s5 + $0x54] ss:$8 sps:$4 sm:$0xff]  }
 0x546   : > { %5884 = vst [vmem:[#allocation3 + $0x18] sm:$0xff] %v22563_v15  ;;  %v5779_v50 = vadd.f32 %v22533_v26, %v5677_v20  ;;  %v18822_v17 = vpop.f32.mrb[10].mxu1  ;;  %6139 = vmatmul.mubr.bf16.vlgmr.msra.gmra.mrb[24].mxu1 %v5948_v23  ;;  %v5961_v35 = vshll.u32 %v22563_v15, 16 }
 0x547   : > { %5883 = vst [vmem:[#allocation3 + $0x10] sm:$0xff] %v22568_v63  ;;  %v5831_v56 = vmul.f32 %v22535_v2, %v5781_v48  ;;  %v5782_v57 = vadd.f32 %v18822_v17, %v22533_v26  ;;  %v5680_v9 = vpop.f32.mrb[11].mxu1  ;;  %v5953_v1 = vshll.u32 %v22568_v63, 16  ;;  %vm5806_vm12 = vcmp.ge.f32.partialorder %v5781_v48, 0.0  ;;  %6320 = vmatpush1.bf16.msra.mxu1 %v20121_v14  ;;  %6148 = vmatprep.mubr.bf16.mxu1 %v21212_v11 }
 0x548   : > { %v5829_v58 = vmul.f32 %v22535_v2, %v5779_v50  ;;  %v5780_v31 = vadd.f32 %v22533_v26, %v5680_v9  ;;  %vm5804_vm13 = vcmp.ge.f32.partialorder %v5779_v50, 0.0  ;;  %6321 = vmatprep.subr.bf16.mxu1 %v20126_v43  ;;  %v5957_v18 = vshrl.u32 %v22568_v63, 16 }
 0x549   : > { %vm5807_vm14 = vcmp.ge.f32.partialorder %v5782_v57, 0.0  ;;  %v5832_v5 = vmul.f32 %v22535_v2, %v5782_v57  ;;  %v5955_v39 = vrot.slane %v5953_v1, 1  ;;  %v5855_v24 = vsel %vm5806_vm12, %v5781_v48, %v5831_v56  ;;  %v20141_v1 = vld [vmem:[%s26143_s5 + $0x64] ss:$8 sps:$4 sm:$0xff]  }
 0x54a   : > { %vm5805_vm15 = vcmp.ge.f32.partialorder %v5780_v31, 0.0  ;;  %v5830_v44 = vmul.f32 %v22535_v2, %v5780_v31  ;;  %v5853_v12 = vsel %vm5804_vm13, %v5779_v50, %v5829_v58  ;;  %v5963_v6 = vrot.slane %v5961_v35, 1 }
 0x54b   : > { %v5856_v52 = vsel %vm5807_vm14, %v5782_v57, %v5832_v5  ;;  %6322 = vmatpush1.bf16.msra.mxu1 %v20124_v4  ;;  %v22606_v49 = vsel %vm597_vm0, %v7066_v40, %v5955_v39  ;;  %v5959_v29 = vor.u32 %v5957_v18, %v5955_v39  ;;  %v20136_v57 = vld [vmem:[%s26143_s5 + $0x50] ss:$8 sps:$4 sm:$0xff]  }
 0x54c   : > { %v22592_v34 = vpack.c.bf16 %v5856_v52, %v5855_v24  ;;  %v5854_v13 = vsel %vm5805_vm15, %v5780_v31, %v5830_v44  ;;  %v18825_v53 = vpop.f32.mrb[12].mxu1  ;;  %6323 = vmatprep.subr.bf16.mxu1 %v20129_v22  ;;  %v5965_v31 = vshrl.u32 %v22563_v15, 16 }
 0x54d   : > { %v22597_v21 = vpack.c.bf16 %v5854_v13, %v5853_v12  ;;  %v5785_v16 = vadd.f32 %v18825_v53, %v22533_v26  ;;  %v5693_v27 = vpop.f32.mrb[13].mxu1  ;;  %v22639_v48 = vsel %vm597_vm0, %v5959_v29, %v5963_v6  ;;  %v20139_v13 = vld [vmem:[%s26143_s5 + $0x60] ss:$8 sps:$4 sm:$0xff]  }
 0x54e   : > { %5886 = vst [vmem:[#allocation3 + $0x28] sm:$0xff] %v22592_v34  ;;  %v5783_v30 = vadd.f32 %v22533_v26, %v5693_v27  ;;  %v18826_v19 = vpop.f32.mrb[14].mxu1  ;;  %6149 = vmatmul.mubr.bf16.gmra.mrb[28].mxu1 %v22606_v49  ;;  %v5967_v12 = vor.u32 %v5965_v31, %v5963_v6  ;;  %v20144_v27 = vld [vmem:[%s26143_s5 + $0x74] ss:$8 sps:$4 sm:$0xff]   ;;  %v5977_v35 = vshll.u32 %v22592_v34, 16 }
 0x54f   : > { %5885 = vst [vmem:[#allocation3 + $0x20] sm:$0xff] %v22597_v21  ;;  %v5835_v51 = vmul.f32 %v22535_v2, %v5785_v16  ;;  %v5786_v33 = vadd.f32 %v18826_v19, %v22533_v26  ;;  %v5696_v28 = vpop.f32.mrb[15].mxu1  ;;  %vm5810_vm1 = vcmp.ge.f32.partialorder %v5785_v16, 0.0  ;;  %6158 = vmatprep.mubr.bf16.mxu1 %v21212_v11  ;;  %6324 = vmatpush1.bf16.msra.mxu1 %v20127_v41  ;;  %v5969_v20 = vshll.u32 %v22597_v21, 16 }
 0x550   : > { %v5833_v42 = vmul.f32 %v22535_v2, %v5783_v30  ;;  %v5784_v10 = vadd.f32 %v22533_v26, %v5696_v28  ;;  %vm5808_vm3 = vcmp.ge.f32.partialorder %v5783_v30, 0.0  ;;  %6325 = vmatprep.subr.bf16.mxu1 %v20132_v7  ;;  %v5973_v18 = vshrl.u32 %v22597_v21, 16 }
 0x551   : > { %vm5811_vm4 = vcmp.ge.f32.partialorder %v5786_v33, 0.0  ;;  %v5836_v0 = vmul.f32 %v22535_v2, %v5786_v33  ;;  %v5859_v45 = vsel %vm5810_vm1, %v5785_v16, %v5835_v51  ;;  %v5971_v4 = vrot.slane %v5969_v20, 1 }
 0x552   : > { %vm5809_vm5 = vcmp.ge.f32.partialorder %v5784_v10, 0.0  ;;  %v5834_v55 = vmul.f32 %v22535_v2, %v5784_v10  ;;  %v5857_v62 = vsel %vm5808_vm3, %v5783_v30, %v5833_v42 }
 0x553   : > { %v5860_v46 = vsel %vm5811_vm4, %v5786_v33, %v5836_v0  ;;  %6326 = vmatpush1.bf16.msra.mxu1 %v20130_v32  ;;  %v22672_v19 = vsel %vm597_vm0, %v5967_v12, %v5971_v4  ;;  %v20142_v32 = vld [vmem:[%s26143_s5 + $0x70] ss:$8 sps:$4 sm:$0xff]   ;;  %v20145_v12 = vld [vmem:[%s26143_s5 + $0x100] ss:$8 sps:$4 sm:$0xff]  }
 0x554   : > { %v22625_v25 = vpack.c.bf16 %v5860_v46, %v5859_v45  ;;  %v5858_v8 = vsel %vm5809_vm5, %v5784_v10, %v5834_v55  ;;  %v18829_v60 = vpop.f32.mrb[16].mxu1  ;;  %6327 = vmatprep.subr.bf16.mxu1 %v20135_v36  ;;  %v20147_v36 = vld [vmem:[%s26143_s5 + $0x104] ss:$8 sps:$4 sm:$0xff]   ;;  %v5975_v55 = vor.u32 %v5973_v18, %v5971_v4  ;;  %v5979_v46 = vrot.slane %v5977_v35, 1  ;;  %v20166_v18 = vld [vmem:[%s26143_s5 + $0x170] ss:$8 sps:$4 sm:$0xff]  }
 0x555   : > { %v22630_v40 = vpack.c.bf16 %v5858_v8, %v5857_v62  ;;  %v5789_v59 = vadd.f32 %v18829_v60, %v22533_v26  ;;  %v5709_v61 = vpop.f32.mrb[17].mxu1  ;;  %v20165_v35 = vld [vmem:[%s26143_s5 + $0x164] ss:$8 sps:$4 sm:$0xff]  }
 0x556   : > { %5888 = vst [vmem:[#allocation3 + $0x38] sm:$0xff] %v22625_v25  ;;  %v5787_v38 = vadd.f32 %v22533_v26, %v5709_v61  ;;  %v18830_v14 = vpop.f32.mrb[18].mxu1  ;;  %6159 = vmatmul.mubr.bf16.gmra.mrb[32].mxu1 %v22639_v48  ;;  %v5993_v20 = vshll.u32 %v22625_v25, 16 }
 0x557   : > { %5887 = vst [vmem:[#allocation3 + $0x30] sm:$0xff] %v22630_v40  ;;  %v5839_v43 = vmul.f32 %v22535_v2, %v5789_v59  ;;  %v5790_v50 = vadd.f32 %v18830_v14, %v22533_v26  ;;  %v5712_v17 = vpop.f32.mrb[19].mxu1  ;;  %vm5814_vm6 = vcmp.ge.f32.partialorder %v5789_v59, 0.0  ;;  %6168 = vmatprep.mubr.bf16.mxu1 %v21212_v11  ;;  %6328 = vmatpush1.bf16.msra.mxu1 %v20133_v3  ;;  %v5989_v14 = vshrl.u32 %v22630_v40, 16 }
 0x558   : > { %v5837_v23 = vmul.f32 %v22535_v2, %v5787_v38  ;;  %v5788_v56 = vadd.f32 %v22533_v26, %v5712_v17  ;;  %vm5812_vm7 = vcmp.ge.f32.partialorder %v5787_v38, 0.0  ;;  %6329 = vmatprep.subr.bf16.mxu1 %v20138_v37  ;;  %v22692_v3 = vsel %vm597_vm0, %v5975_v55, %v5979_v46 }
 0x559   : > { %vm5815_vm8 = vcmp.ge.f32.partialorder %v5790_v50, 0.0  ;;  %v5840_v9 = vmul.f32 %v22535_v2, %v5790_v50  ;;  %v5863_v5 = vsel %vm5814_vm6, %v5789_v59, %v5839_v43  ;;  %v5985_v59 = vshll.u32 %v22630_v40, 16 }
 0x55a   : > { %vm5813_vm9 = vcmp.ge.f32.partialorder %v5788_v56, 0.0  ;;  %v5838_v58 = vmul.f32 %v22535_v2, %v5788_v56  ;;  %v5861_v44 = vsel %vm5812_vm7, %v5787_v38, %v5837_v23  ;;  %v6481_v55 = vrot.slane %v22545_v47, 1 }
 0x55b   : > { %v5864_v22 = vsel %vm5815_vm8, %v5790_v50, %v5840_v9  ;;  %6330 = vmatpush1.bf16.msra.mxu1 %v20136_v57  ;;  %v5987_v61 = vrot.slane %v5985_v59, 1  ;;  %v5995_v50 = vrot.slane %v5993_v20, 1  ;;  %v20180_v59 = vld [vmem:[%s26143_s5 + $0x1b4] ss:$8 sps:$4 sm:$0xff]   ;;  %v20181_v20 = vld [vmem:[%s26143_s5 + $0x1c0] ss:$8 sps:$4 sm:$0xff]  }
 0x55c   : > { %v22658_v39 = vpack.c.bf16 %v5864_v22, %v5863_v5  ;;  %v5862_v24 = vsel %vm5813_vm9, %v5788_v56, %v5838_v58  ;;  %v18833_v52 = vpop.f32.mrb[20].mxu1  ;;  %6331 = vmatprep.subr.bf16.mxu1 %v20141_v1  ;;  %v5997_v56 = vshrl.u32 %v22625_v25, 16 }
 0x55d   : > { %v22663_v53 = vpack.c.bf16 %v5862_v24, %v5861_v44  ;;  %v5793_v41 = vadd.f32 %v18833_v52, %v22533_v26  ;;  %v5725_v16 = vpop.f32.mrb[21].mxu1  ;;  %v5991_v43 = vor.u32 %v5989_v14, %v5987_v61  ;;  %v6485_v14 = vrot.slane %v22563_v15, 1 }
 0x55e   : > { %5890 = vst [vmem:[#allocation3 + $0x48] sm:$0xff] %v22658_v39  ;;  %v5791_v7 = vadd.f32 %v22533_v26, %v5725_v16  ;;  %v18834_v30 = vpop.f32.mrb[22].mxu1  ;;  %6169 = vmatmul.mubr.bf16.gmra.mrb[36].mxu1 %v22672_v19  ;;  %v5999_v1 = vor.u32 %v5997_v56, %v5995_v50  ;;  %v20153_v16 = vld [vmem:[%s26143_s5 + $0x124] ss:$8 sps:$4 sm:$0xff]  }
 0x55f   : > { %5889 = vst [vmem:[#allocation3 + $0x40] sm:$0xff] %v22663_v53  ;;  %v5843_v51 = vmul.f32 %v22535_v2, %v5793_v41  ;;  %v5794_v33 = vadd.f32 %v18834_v30, %v22533_v26  ;;  %v5728_v28 = vpop.f32.mrb[23].mxu1  ;;  %vm5818_vm10 = vcmp.ge.f32.partialorder %v5793_v41, 0.0  ;;  %6178 = vmatprep.mubr.bf16.mxu1 %v21212_v11  ;;  %6332 = vmatpush1.bf16.msra.mxu1 %v20139_v13  ;;  %v6001_v23 = vshll.u32 %v22663_v53, 16  ;;  %v20150_v13 = vld [vmem:[%s26143_s5 + $0x114] ss:$8 sps:$4 sm:$0xff]  }
 0x560   : > { %v5841_v42 = vmul.f32 %v22535_v2, %v5791_v7  ;;  %v5792_v10 = vadd.f32 %v22533_v26, %v5728_v28  ;;  %vm5816_vm11 = vcmp.ge.f32.partialorder %v5791_v7, 0.0  ;;  %6333 = vmatprep.subr.bf16.mxu1 %v20144_v27  ;;  %v22706_v17 = vsel %vm597_vm0, %v5991_v43, %v5995_v50  ;;  %v20151_v27 = vld [vmem:[%s26143_s5 + $0x120] ss:$8 sps:$4 sm:$0xff]   ;;  %v20159_v30 = vld [vmem:[%s26143_s5 + $0x144] ss:$8 sps:$4 sm:$0xff]  }
 0x561   : > { %vm5819_vm12 = vcmp.ge.f32.partialorder %v5794_v33, 0.0  ;;  %v5844_v0 = vmul.f32 %v22535_v2, %v5794_v33  ;;  %v5867_v29 = vsel %vm5818_vm10, %v5793_v41, %v5843_v51  ;;  %v6003_v57 = vrot.slane %v6001_v23, 1  ;;  %v20148_v41 = vld [vmem:[%s26143_s5 + $0x110] ss:$8 sps:$4 sm:$0xff]   ;;  %v20157_v51 = vld [vmem:[%s26143_s5 + $0x140] ss:$8 sps:$4 sm:$0xff]  }
 0x562   : > { %vm5817_vm13 = vcmp.ge.f32.partialorder %v5792_v10, 0.0  ;;  %v5842_v26 = vmul.f32 %v22535_v2, %v5792_v10  ;;  %v5865_v62 = vsel %vm5816_vm11, %v5791_v7, %v5841_v42  ;;  %v5981_v2 = vshrl.u32 %v22592_v34, 16  ;;  %v20154_v7 = vld [vmem:[%s26143_s5 + $0x130] ss:$8 sps:$4 sm:$0xff]   ;;  %v20163_v42 = vld [vmem:[%s26143_s5 + $0x160] ss:$8 sps:$4 sm:$0xff]  }
 0x563   : > { %v5868_v45 = vsel %vm5819_vm12, %v5794_v33, %v5844_v0  ;;  %6334 = vmatpush1.bf16.msra.mxu1 %v20142_v32  ;;  %v22715_v58 = vsel %vm597_vm0, %v5999_v1, %v6003_v57  ;;  %v6005_v4 = vshrl.u32 %v22663_v53, 16  ;;  %v20162_v33 = vld [vmem:[%s26143_s5 + $0x154] ss:$8 sps:$4 sm:$0xff]   ;;  %v20160_v28 = vld [vmem:[%s26143_s5 + $0x150] ss:$8 sps:$4 sm:$0xff]  }
 0x564   : > { %v5880_v8 = vpack.c.bf16 %v5868_v45, %v5867_v29  ;;  %v5866_v60 = vsel %vm5817_vm13, %v5792_v10, %v5842_v26  ;;  %6589 = vmatprep.subr.bf16.mxu1 %v20147_v36  ;;  %v5983_v37 = vor.u32 %v5981_v2, %v5979_v46  ;;  %v20168_v10 = vld [vmem:[%s26143_s5 + $0x174] ss:$8 sps:$4 sm:$0xff]   ;;  %v20171_v32 = vld [vmem:[%s26143_s5 + $0x184] ss:$8 sps:$4 sm:$0xff]   ;;  %v20169_v29 = vld [vmem:[%s26143_s5 + $0x180] ss:$8 sps:$4 sm:$0xff]  }
 0x565   : > { %v5879_v6 = vpack.c.bf16 %v5866_v60, %v5865_v62  ;;  %v22712_v9 = vld [vmem:[#allocation3 + $0x48] sm:$0x3f]  ;;  %v22721_v22 = vor.u32 %v6005_v4, %v6003_v57  ;;  %v6452_v36 = vld [vmem:[#allocation3] sm:$0xfe]  ;;  %v20174_v45 = vld [vmem:[%s26143_s5 + $0x194] ss:$8 sps:$4 sm:$0xff]  }
 0x566   : > { %5892 = vst [vmem:[#allocation3 + $0x58] sm:$0x3f] %v5880_v8  ;;  %6179 = vmatmul.mubr.bf16.gmra.mrb[40].mxu1 %v22692_v3  ;;  %v22699_v38 = vsel %vm597_vm0, %v5983_v37, %v5987_v61  ;;  %v6009_v31 = vshll.u32 %v22712_v9, 16  ;;  %v6013_v24 = vshrl.u32 %v22712_v9, 16  ;;  %v5902_v0 = vld [vmem:[#allocation3 + $0x48] sm:$0x1f] }
 0x567   : > { %5891 = vst [vmem:[#allocation3 + $0x50] sm:$0xff] %v5879_v6  ;;  %6188 = vmatprep.mubr.bf16.mxu1 %v21212_v11  ;;  %v6480_v26 = vrot.slane %v6452_v36, 1  ;;  %v20172_v62 = vld [vmem:[%s26143_s5 + $0x190] ss:$8 sps:$4 sm:$0xff]   ;;  %v20177_v8 = vld [vmem:[%s26143_s5 + $0x1a4] ss:$8 sps:$4 sm:$0xff]  }
 0x568   : > { %v6011_v5 = vrot.slane %v6009_v31, 1  ;;  %v22811_v60 = vrot.slane %v22568_v63, 1  ;;  %v20175_v6 = vld [vmem:[%s26143_s5 + $0x1a0] ss:$8 sps:$4 sm:$0xff]   ;;  %v20178_v61 = vld [vmem:[%s26143_s5 + $0x1b0] ss:$8 sps:$4 sm:$0xff]  }
 0x569   : > { %v6482_v46 = vsel %vm1135_vm2, %v6480_v26, %v6481_v55  ;;  %v20183_v37 = vld [vmem:[%s26143_s5 + $0x1c4] ss:$8 sps:$4 sm:$0xff]   ;;  %v20186_v43 = vld [vmem:[%s26143_s5 + $0x1d4] ss:$8 sps:$4 sm:$0xff]   ;;  %v20184_v23 = vld [vmem:[%s26143_s5 + $0x1d0] ss:$8 sps:$4 sm:$0xff]  }
 0x56a   : > { %v6012_v44 = vsel %vm597_vm0, %v22721_v22, %v6011_v5  ;;  %v6015_v52 = vor.u32 %v6013_v24, %v6011_v5  ;;  %v6484_v2 = vsel %vm1135_vm2, %v6481_v55, %v22811_v60  ;;  %v22837_v50 = vsel %vm1135_vm2, %v22811_v60, %v6485_v14  ;;  %v20189_v56 = vld [vmem:[%s26143_s5 + $0x1e4] ss:$8 sps:$4 sm:$0xff]   ;;  %v20187_v1 = vld [vmem:[%s26143_s5 + $0x1e0] ss:$8 sps:$4 sm:$0xff]   ;;  %v20192_v31 = vld [vmem:[%s26143_s5 + $0x1f4] ss:$8 sps:$4 sm:$0xff]  }
 0x56b   : > { %v6487_v57 = vrot.slane %v22597_v21, 1  ;;  %v20190_v5 = vld [vmem:[%s26143_s5 + $0x1f0] ss:$8 sps:$4 sm:$0xff]   ;;  %v6489_v24 = vrot.slane %v22592_v34, 1  ;;  %v20211_v36 = vld [vmem:[%s26143_s5 + $0x260] ss:$8 sps:$4 sm:$0xff]  }
 0x56c   : > { %v20214_v26 = vld [vmem:[%s26143_s5 + $0x270] ss:$8 sps:$4 sm:$0xff]   ;;  %v20219_v55 = vld [vmem:[%s26143_s5 + $0x284] ss:$8 sps:$4 sm:$0xff]  }
 0x56d   : > { %v22855_v4 = vsel %vm1135_vm2, %v6485_v14, %v6487_v57 }
 0x56e   : > { %6189 = vmatmul.mubr.bf16.gmra.mrb[44].mxu1 %v22699_v38 }
 0x56f   : > { %6198 = vmatprep.mubr.bf16.mxu1 %v21212_v11 }
 0x576   : > { %6199 = vmatmul.mubr.bf16.gmra.mrb[48].mxu1 %v22706_v17 }
 0x577   : > { %6208 = vmatprep.mubr.bf16.mxu1 %v21212_v11 }
 0x57e   : > { %6209 = vmatmul.mubr.bf16.gmra.mrb[52].mxu1 %v22715_v58 }
 0x57f   : > { %6218 = vmatprep.mubr.bf16.mxu1 %v21212_v11 }
 0x586   : > { %6219 = vmatmul.mubr.bf16.gmra.mrb[56].mxu1 %v6012_v44  ;;  %v20195_v44 = vld [vmem:[%s26143_s5 + $0x204] ss:$8 sps:$4 sm:$0xff]  }
 0x587   : > { %6228 = vmatprep.mubr.bf16.mxu1 %v21212_v11 }
 0x58e   : > { %6229 = vmatmul.mubr.bf16.gmra.mrb[60].mxu1 %v6015_v52  ;;  %v22867_v52 = vsel %vm1135_vm2, %v6487_v57, %v6489_v24 }
 0x58f   : > { %6351 = vmatprep.mubr.bf16.mxu1 %v21212_v11 }
 0x596   : > { %6352 = vmatmul.mubr.bf16.vlgmr.msra.gmra.mrb[24].mxu1 %v22547_v54  ;;  %v20156_v54 = vld [vmem:[%s26143_s5 + $0x134] ss:$8 sps:$4 sm:$0xff]  }
 0x597   : > { %6590 = vmatpush1.bf16.msra.mxu1 %v20145_v12  ;;  %6361 = vmatprep.mubr.bf16.mxu1 %v21212_v11  ;;  %v6491_v12 = vrot.slane %v22630_v40, 1 }
 0x598   : > { %6591 = vmatprep.subr.bf16.mxu1 %v20150_v13 }
 0x599   : > { %v22873_v13 = vsel %vm1135_vm2, %v6489_v24, %v6491_v12  ;;  %v20244_v24 = vld [vmem:[%s26143_s5 + $0x310] ss:$8 sps:$4 sm:$0xff]  }
 0x59b   : > { %6592 = vmatpush1.bf16.msra.mxu1 %v20148_v41  ;;  %v6493_v41 = vrot.slane %v22625_v25, 1 }
 0x59c   : > { %6593 = vmatprep.subr.bf16.mxu1 %v20153_v16 }
 0x59d   : > { %v22879_v16 = vsel %vm1135_vm2, %v6491_v12, %v6493_v41  ;;  %v20249_v12 = vld [vmem:[%s26143_s5 + $0x324] ss:$8 sps:$4 sm:$0xff]  }
 0x59e   : > { %6362 = vmatmul.mubr.bf16.gmra.mrb[28].mxu1 %v22545_v47 }
 0x59f   : > { %6371 = vmatprep.mubr.bf16.mxu1 %v21212_v11  ;;  %6594 = vmatpush1.bf16.msra.mxu1 %v20151_v27  ;;  %v22884_v27 = vrot.slane %v22663_v53, 1 }
 0x5a0   : > { %6595 = vmatprep.subr.bf16.mxu1 %v20156_v54 }
 0x5a1   : > { %v22888_v54 = vsel %vm1135_vm2, %v6493_v41, %v22884_v27  ;;  %v20247_v41 = vld [vmem:[%s26143_s5 + $0x320] ss:$8 sps:$4 sm:$0xff]  }
 0x5a3   : > { %6596 = vmatpush1.bf16.msra.mxu1 %v20154_v7  ;;  %v6497_v7 = vrot.slane %v22712_v9, 1  ;;  %v20196_v9 = vld [vmem:[%s26143_s5 + $0x210] ss:$8 sps:$4 sm:$0xff]  }
 0x5a4   : > { %6597 = vmatprep.subr.bf16.mxu1 %v20159_v30 }
 0x5a5   : > { %v6498_v30 = vsel %vm1135_vm2, %v22884_v27, %v6497_v7 }
 0x5a6   : > { %6372 = vmatmul.mubr.bf16.gmra.mrb[32].mxu1 %v22568_v63 }
 0x5a7   : > { %6381 = vmatprep.mubr.bf16.mxu1 %v21212_v11  ;;  %6598 = vmatpush1.bf16.msra.mxu1 %v20157_v51  ;;  %v20193_v51 = vld [vmem:[%s26143_s5 + $0x200] ss:$8 sps:$4 sm:$0xff]  }
 0x5a8   : > { %6599 = vmatprep.subr.bf16.mxu1 %v20162_v33  ;;  %v20198_v33 = vld [vmem:[%s26143_s5 + $0x214] ss:$8 sps:$4 sm:$0xff]  }
 0x5ab   : > { %6600 = vmatpush1.bf16.msra.mxu1 %v20160_v28  ;;  %v20201_v28 = vld [vmem:[%s26143_s5 + $0x224] ss:$8 sps:$4 sm:$0xff]  }
 0x5ac   : > { %6601 = vmatprep.subr.bf16.mxu1 %v20165_v35  ;;  %v20199_v35 = vld [vmem:[%s26143_s5 + $0x220] ss:$8 sps:$4 sm:$0xff]  }
 0x5ae   : > { %6382 = vmatmul.mubr.bf16.gmra.mrb[36].mxu1 %v22563_v15 }
 0x5af   : > { %6391 = vmatprep.mubr.bf16.mxu1 %v21212_v11  ;;  %6602 = vmatpush1.bf16.msra.mxu1 %v20163_v42  ;;  %v20202_v42 = vld [vmem:[%s26143_s5 + $0x230] ss:$8 sps:$4 sm:$0xff]  }
 0x5b0   : > { %6603 = vmatprep.subr.bf16.mxu1 %v20168_v10  ;;  %v20207_v10 = vld [vmem:[%s26143_s5 + $0x244] ss:$8 sps:$4 sm:$0xff]  }
 0x5b3   : > { %6604 = vmatpush1.bf16.msra.mxu1 %v20166_v18  ;;  %v20205_v18 = vld [vmem:[%s26143_s5 + $0x240] ss:$8 sps:$4 sm:$0xff]  }
 0x5b4   : > { %6869 = vmatprep.subr.bf16.mxu1 %v20171_v32  ;;  %v20208_v32 = vld [vmem:[%s26143_s5 + $0x250] ss:$8 sps:$4 sm:$0xff]  }
 0x5b6   : > { %6392 = vmatmul.mubr.bf16.gmra.mrb[40].mxu1 %v22597_v21 }
 0x5b7   : > { %6401 = vmatprep.mubr.bf16.mxu1 %v21212_v11 }
 0x5be   : > { %6402 = vmatmul.mubr.bf16.gmra.mrb[44].mxu1 %v22592_v34 }
 0x5bf   : > { %6411 = vmatprep.mubr.bf16.mxu1 %v21212_v11 }
 0x5c6   : > { %6412 = vmatmul.mubr.bf16.gmra.mrb[48].mxu1 %v22630_v40 }
 0x5c7   : > { %6421 = vmatprep.mubr.bf16.mxu1 %v21212_v11 }
 0x5ce   : > { %6422 = vmatmul.mubr.bf16.gmra.mrb[52].mxu1 %v22625_v25 }
 0x5cf   : > { %6431 = vmatprep.mubr.bf16.mxu1 %v21212_v11 }
 0x5d6   : > { %6432 = vmatmul.mubr.bf16.gmra.mrb[56].mxu1 %v22663_v53 }
 0x5d7   : > { %6441 = vmatprep.mubr.bf16.mxu1 %v21212_v11 }
 0x5de   : > { %6442 = vmatmul.mubr.bf16.gmra.mrb[60].mxu1 %v5902_v0  ;;  %v20213_v0 = vld [vmem:[%s26143_s5 + $0x264] ss:$8 sps:$4 sm:$0xff]  }
 0x5df   : > { %6621 = vmatprep.mubr.bf16.mxu1 %v21212_v11 }
 0x5e6   : > { %6622 = vmatmul.mubr.bf16.vlgmr.msra.gmra.mrb[24].mxu1 %v6482_v46  ;;  %v20231_v46 = vld [vmem:[%s26143_s5 + $0x2c4] ss:$8 sps:$4 sm:$0xff]  }
 0x5e7   : > { %6870 = vmatpush1.bf16.msra.mxu1 %v20169_v29  ;;  %6631 = vmatprep.mubr.bf16.mxu1 %v21212_v11  ;;  %v20223_v29 = vld [vmem:[%s26143_s5 + $0x2a0] ss:$8 sps:$4 sm:$0xff]  }
 0x5e8   : > { %6871 = vmatprep.subr.bf16.mxu1 %v20174_v45  ;;  %v20226_v45 = vld [vmem:[%s26143_s5 + $0x2b0] ss:$8 sps:$4 sm:$0xff]  }
 0x5eb   : > { %6872 = vmatpush1.bf16.msra.mxu1 %v20172_v62  ;;  %v20229_v62 = vld [vmem:[%s26143_s5 + $0x2c0] ss:$8 sps:$4 sm:$0xff]  }
 0x5ec   : > { %6873 = vmatprep.subr.bf16.mxu1 %v20177_v8  ;;  %v20232_v8 = vld [vmem:[%s26143_s5 + $0x2d0] ss:$8 sps:$4 sm:$0xff]  }
 0x5ee   : > { %6632 = vmatmul.mubr.bf16.gmra.mrb[28].mxu1 %v6484_v2  ;;  %v20238_v2 = vld [vmem:[%s26143_s5 + $0x2f0] ss:$8 sps:$4 sm:$0xff]  }
 0x5ef   : > { %6641 = vmatprep.mubr.bf16.mxu1 %v21212_v11  ;;  %6874 = vmatpush1.bf16.msra.mxu1 %v20175_v6  ;;  %v20237_v6 = vld [vmem:[%s26143_s5 + $0x2e4] ss:$8 sps:$4 sm:$0xff]  }
 0x5f0   : > { %6875 = vmatprep.subr.bf16.mxu1 %v20180_v59  ;;  %v20235_v59 = vld [vmem:[%s26143_s5 + $0x2e0] ss:$8 sps:$4 sm:$0xff]  }
 0x5f3   : > { %6876 = vmatpush1.bf16.msra.mxu1 %v20178_v61  ;;  %v20243_v61 = vld [vmem:[%s26143_s5 + $0x304] ss:$8 sps:$4 sm:$0xff]  }
 0x5f4   : > { %6877 = vmatprep.subr.bf16.mxu1 %v20183_v37  ;;  %v23027_v37 = vld [vmem:[#allocation3 + $0x50] sm:$0x3f] }
 0x5f6   : > { %6642 = vmatmul.mubr.bf16.gmra.mrb[32].mxu1 %v22837_v50 }
 0x5f7   : > { %6651 = vmatprep.mubr.bf16.mxu1 %v21212_v11  ;;  %6878 = vmatpush1.bf16.msra.mxu1 %v20181_v20 }
 0x5f8   : > { %6879 = vmatprep.subr.bf16.mxu1 %v20186_v43 }
 0x5fb   : > { %6880 = vmatpush1.bf16.msra.mxu1 %v20184_v23 }
 0x5fc   : > { %6881 = vmatprep.subr.bf16.mxu1 %v20189_v56  ;;  %v7136_v56 = vshrl.u32 %v23027_v37, 16 }
 0x5fe   : > { %6652 = vmatmul.mubr.bf16.gmra.mrb[36].mxu1 %v22855_v4 }
 0x5ff   : > { %6661 = vmatprep.mubr.bf16.mxu1 %v21212_v11  ;;  %6882 = vmatpush1.bf16.msra.mxu1 %v20187_v1  ;;  %v7402_v1 = vld [vmem:[#allocation3 + $0x8] sm:$0xfe] }
 0x600   : > { %6883 = vmatprep.subr.bf16.mxu1 %v20192_v31  ;;  %v20241_v31 = vld [vmem:[%s26143_s5 + $0x300] ss:$8 sps:$4 sm:$0xff]  }
 0x603   : > { %6884 = vmatpush1.bf16.msra.mxu1 %v20190_v5  ;;  %v20246_v5 = vld [vmem:[%s26143_s5 + $0x314] ss:$8 sps:$4 sm:$0xff]  }
 0x604   : > { %7229 = vmatprep.subr.bf16.mxu1 %v20195_v44 }
 0x606   : > { %6662 = vmatmul.mubr.bf16.gmra.mrb[40].mxu1 %v22867_v52 }
 0x607   : > { %6671 = vmatprep.mubr.bf16.mxu1 %v21212_v11 }
 0x60e   : > { %6672 = vmatmul.mubr.bf16.gmra.mrb[44].mxu1 %v22873_v13 }
 0x60f   : > { %6681 = vmatprep.mubr.bf16.mxu1 %v21212_v11 }
 0x616   : > { %6682 = vmatmul.mubr.bf16.gmra.mrb[48].mxu1 %v22879_v16 }
 0x617   : > { %6691 = vmatprep.mubr.bf16.mxu1 %v21212_v11 }
 0x61e   : > { %6692 = vmatmul.mubr.bf16.gmra.mrb[52].mxu1 %v22888_v54 }
 0x61f   : > { %6701 = vmatprep.mubr.bf16.mxu1 %v21212_v11 }
 0x626   : > { %6702 = vmatmul.mubr.bf16.gmra.mrb[56].mxu1 %v6498_v30  ;;  %v20255_v30 = vld [vmem:[%s26143_s5 + $0x344] ss:$8 sps:$4 sm:$0xff]  }
 0x627   : > { %6711 = vmatprep.mubr.bf16.mxu1 %v21212_v11 }
 0x62e   : > { %6712 = vmatmul.mubr.bf16.gmra.mrb[60].mxu1 %v6497_v7  ;;  %v20250_v7 = vld [vmem:[%s26143_s5 + $0x330] ss:$8 sps:$4 sm:$0xff]  }
 0x62f   : > { %6901 = vmatprep.mubr.bf16.mxu1 %v21212_v11 }
 0x636   : > { %6902 = vmatmul.mubr.bf16.vlgmr.msra.gmra.mrb[24].mxu1 %v22545_v47  ;;  %v20204_v47 = vld [vmem:[%s26143_s5 + $0x234] ss:$8 sps:$4 sm:$0xff]  }
 0x637   : > { %7230 = vmatpush1.bf16.msra.mxu1 %v20193_v51  ;;  %6911 = vmatprep.mubr.bf16.mxu1 %v21212_v11  ;;  %v20253_v51 = vld [vmem:[%s26143_s5 + $0x340] ss:$8 sps:$4 sm:$0xff]  }
 0x638   : > { %7231 = vmatprep.subr.bf16.mxu1 %v20198_v33  ;;  %v20256_v33 = vld [vmem:[%s26143_s5 + $0x350] ss:$8 sps:$4 sm:$0xff]  }
 0x63b   : > { %7232 = vmatpush1.bf16.msra.mxu1 %v20196_v9  ;;  %v20261_v9 = vld [vmem:[%s26143_s5 + $0x364] ss:$8 sps:$4 sm:$0xff]  }
 0x63c   : > { %7233 = vmatprep.subr.bf16.mxu1 %v20201_v28  ;;  %v20259_v28 = vld [vmem:[%s26143_s5 + $0x360] ss:$8 sps:$4 sm:$0xff]  }
 0x63e   : > { %6912 = vmatmul.mubr.bf16.gmra.mrb[28].mxu1 %v22568_v63  ;;  %v20210_v63 = vld [vmem:[%s26143_s5 + $0x254] ss:$8 sps:$4 sm:$0xff]  }
 0x63f   : > { %6921 = vmatprep.mubr.bf16.mxu1 %v21212_v11  ;;  %7234 = vmatpush1.bf16.msra.mxu1 %v20199_v35  ;;  %v20262_v35 = vld [vmem:[%s26143_s5 + $0x370] ss:$8 sps:$4 sm:$0xff]  }
 0x640   : > { %7235 = vmatprep.subr.bf16.mxu1 %v20204_v47  ;;  %v20267_v47 = vld [vmem:[%s26143_s5 + $0x384] ss:$8 sps:$4 sm:$0xff]  }
 0x643   : > { %7236 = vmatpush1.bf16.msra.mxu1 %v20202_v42 }
 0x644   : > { %7237 = vmatprep.subr.bf16.mxu1 %v20207_v10 }
 0x646   : > { %6922 = vmatmul.mubr.bf16.gmra.mrb[32].mxu1 %v22563_v15  ;;  %v20216_v15 = vld [vmem:[%s26143_s5 + $0x274] ss:$8 sps:$4 sm:$0xff]  }
 0x647   : > { %6931 = vmatprep.mubr.bf16.mxu1 %v21212_v11  ;;  %7238 = vmatpush1.bf16.msra.mxu1 %v20205_v18  ;;  %v20273_v18 = vld [vmem:[%s26143_s5 + $0x3a4] ss:$8 sps:$4 sm:$0xff]  }
 0x648   : > { %7239 = vmatprep.subr.bf16.mxu1 %v20210_v63  ;;  %v20271_v63 = vld [vmem:[%s26143_s5 + $0x3a0] ss:$8 sps:$4 sm:$0xff]  }
 0x64b   : > { %7240 = vmatpush1.bf16.msra.mxu1 %v20208_v32  ;;  %v20276_v32 = vld [vmem:[%s26143_s5 + $0x3b4] ss:$8 sps:$4 sm:$0xff]  }
 0x64c   : > { %7241 = vmatprep.subr.bf16.mxu1 %v20213_v0  ;;  %v23131_v0 = vld [vmem:[#allocation3 + $0x18] sm:$0xff] }
 0x64e   : > { %6932 = vmatmul.mubr.bf16.gmra.mrb[36].mxu1 %v22597_v21  ;;  %v6771_v21 = vld [vmem:[#allocation3 + $0x50] sm:$0x1f] }
 0x64f   : > { %6941 = vmatprep.mubr.bf16.mxu1 %v21212_v11  ;;  %7242 = vmatpush1.bf16.msra.mxu1 %v20211_v36  ;;  %v20274_v36 = vld [vmem:[%s26143_s5 + $0x3b0] ss:$8 sps:$4 sm:$0xff]  }
 0x650   : > { %7243 = vmatprep.subr.bf16.mxu1 %v20216_v15  ;;  %v20279_v15 = vld [vmem:[%s26143_s5 + $0x3c4] ss:$8 sps:$4 sm:$0xff]  }
 0x653   : > { %7244 = vmatpush1.bf16.msra.mxu1 %v20214_v26  ;;  %v20277_v26 = vld [vmem:[%s26143_s5 + $0x3c0] ss:$8 sps:$4 sm:$0xff]  }
 0x654   : > { %7539 = vmatprep.subr.bf16.mxu1 %v20219_v55  ;;  %v20282_v55 = vld [vmem:[%s26143_s5 + $0x3d4] ss:$8 sps:$4 sm:$0xff]  }
 0x656   : > { %6942 = vmatmul.mubr.bf16.gmra.mrb[40].mxu1 %v22592_v34  ;;  %v20217_v34 = vld [vmem:[%s26143_s5 + $0x280] ss:$8 sps:$4 sm:$0xff]  }
 0x657   : > { %6951 = vmatprep.mubr.bf16.mxu1 %v21212_v11 }
 0x65e   : > { %6952 = vmatmul.mubr.bf16.gmra.mrb[44].mxu1 %v22630_v40  ;;  %v20220_v40 = vld [vmem:[%s26143_s5 + $0x290] ss:$8 sps:$4 sm:$0xff]  }
 0x65f   : > { %6961 = vmatprep.mubr.bf16.mxu1 %v21212_v11 }
 0x666   : > { %6962 = vmatmul.mubr.bf16.gmra.mrb[48].mxu1 %v22625_v25  ;;  %v20222_v25 = vld [vmem:[%s26143_s5 + $0x294] ss:$8 sps:$4 sm:$0xff]  }
 0x667   : > { %6971 = vmatprep.mubr.bf16.mxu1 %v21212_v11 }
 0x66e   : > { %6972 = vmatmul.mubr.bf16.gmra.mrb[52].mxu1 %v22663_v53  ;;  %v20225_v53 = vld [vmem:[%s26143_s5 + $0x2a4] ss:$8 sps:$4 sm:$0xff]  }
 0x66f   : > { %6981 = vmatprep.mubr.bf16.mxu1 %v21212_v11 }
 0x676   : > { %6982 = vmatmul.mubr.bf16.gmra.mrb[56].mxu1 %v22658_v39 }
 0x677   : > { %6991 = vmatprep.mubr.bf16.mxu1 %v21212_v11 }
 0x67e   : > { %6992 = vmatmul.mubr.bf16.gmra.mrb[60].mxu1 %v6771_v21  ;;  %v23147_v21 = vld [vmem:[#allocation3 + $0x20] sm:$0xff] }
 0x67f   : > { %7261 = vmatprep.mubr.bf16.mxu1 %v21212_v11 }
 0x686   : > { %7262 = vmatmul.mubr.bf16.vlgmr.msra.gmra.mrb[24].mxu1 %v22606_v49  ;;  %v20228_v49 = vld [vmem:[%s26143_s5 + $0x2b4] ss:$8 sps:$4 sm:$0xff]  }
 0x687   : > { %7540 = vmatpush1.bf16.msra.mxu1 %v20217_v34  ;;  %7271 = vmatprep.mubr.bf16.mxu1 %v21212_v11  ;;  %v20280_v34 = vld [vmem:[%s26143_s5 + $0x3d0] ss:$8 sps:$4 sm:$0xff]  }
 0x688   : > { %7541 = vmatprep.subr.bf16.mxu1 %v20222_v25  ;;  %v20285_v25 = vld [vmem:[%s26143_s5 + $0x3e4] ss:$8 sps:$4 sm:$0xff]  }
 0x68b   : > { %7542 = vmatpush1.bf16.msra.mxu1 %v20220_v40  ;;  %v20283_v40 = vld [vmem:[%s26143_s5 + $0x3e0] ss:$8 sps:$4 sm:$0xff]  }
 0x68c   : > { %7543 = vmatprep.subr.bf16.mxu1 %v20225_v53  ;;  %v20288_v53 = vld [vmem:[%s26143_s5 + $0x3f4] ss:$8 sps:$4 sm:$0xff]  }
 0x68e   : > { %7272 = vmatmul.mubr.bf16.gmra.mrb[28].mxu1 %v22639_v48  ;;  %v20234_v48 = vld [vmem:[%s26143_s5 + $0x2d4] ss:$8 sps:$4 sm:$0xff]  }
 0x68f   : > { %7281 = vmatprep.mubr.bf16.mxu1 %v21212_v11  ;;  %7544 = vmatpush1.bf16.msra.mxu1 %v20223_v29  ;;  %v23163_v29 = vld [vmem:[#allocation3 + $0x28] sm:$0xff] }
 0x690   : > { %7545 = vmatprep.subr.bf16.mxu1 %v20228_v49  ;;  %v20286_v49 = vld [vmem:[%s26143_s5 + $0x3f0] ss:$8 sps:$4 sm:$0xff]  }
 0x693   : > { %7546 = vmatpush1.bf16.msra.mxu1 %v20226_v45  ;;  %v20291_v45 = vld [vmem:[%s26143_s5 + $0x404] ss:$8 sps:$4 sm:$0xff]  }
 0x694   : > { %7547 = vmatprep.subr.bf16.mxu1 %v20231_v46  ;;  %v23173_v46 = vld [vmem:[#allocation3 + $0x30] sm:$0xff] }
 0x696   : > { %7282 = vmatmul.mubr.bf16.gmra.mrb[32].mxu1 %v22672_v19  ;;  %v20240_v19 = vld [vmem:[%s26143_s5 + $0x2f4] ss:$8 sps:$4 sm:$0xff]  }
 0x697   : > { %7291 = vmatprep.mubr.bf16.mxu1 %v21212_v11  ;;  %7548 = vmatpush1.bf16.msra.mxu1 %v20229_v62  ;;  %v23177_v62 = vld [vmem:[#allocation3 + $0x38] sm:$0xff] }
 0x698   : > { %7549 = vmatprep.subr.bf16.mxu1 %v20234_v48  ;;  %v23181_v48 = vld [vmem:[#allocation3 + $0x40] sm:$0xff] }
 0x69b   : > { %7550 = vmatpush1.bf16.msra.mxu1 %v20232_v8  ;;  %v23185_v8 = vld [vmem:[#allocation3 + $0x48] sm:$0xff] }
 0x69c   : > { %7551 = vmatprep.subr.bf16.mxu1 %v20237_v6  ;;  %v23189_v6 = vld [vmem:[#allocation3 + $0x50] sm:$0xff] }
 0x69e   : > { %7292 = vmatmul.mubr.bf16.gmra.mrb[36].mxu1 %v22692_v3  ;;  %v7124_v3 = vshll.u32 %v22658_v39, 16 }
 0x69f   : > { %7301 = vmatprep.mubr.bf16.mxu1 %v21212_v11  ;;  %7552 = vmatpush1.bf16.msra.mxu1 %v20235_v59 }
 0x6a0   : > { %7553 = vmatprep.subr.bf16.mxu1 %v20240_v19  ;;  %v7126_v14 = vrot.slane %v7124_v3, 1  ;;  %v8018_v3 = vshll.u32 %v23131_v0, 16 }
 0x6a2   : > { %v7127_v20 = vsel %vm597_vm0, %v22721_v22, %v7126_v14  ;;  %v7430_v22 = vrot.slane %v7402_v1, 1 }
 0x6a3   : > { %7554 = vmatpush1.bf16.msra.mxu1 %v20238_v2  ;;  %v7721_v2 = vld [vmem:[#allocation3 + $0x58] sm:$0x1f] }
 0x6a4   : > { %7819 = vmatprep.subr.bf16.mxu1 %v20243_v61  ;;  %v7432_v44 = vsel %vm1135_vm2, %v7430_v22, %v22811_v60  ;;  %v20252_v60 = vld [vmem:[%s26143_s5 + $0x334] ss:$8 sps:$4 sm:$0xff]   ;;  %v20295_v22 = vld [vmem:[%s26143_s5 + $0x420] ss:$8 sps:$4 sm:$0xff]  }
 0x6a6   : > { %7302 = vmatmul.mubr.bf16.gmra.mrb[40].mxu1 %v22699_v38  ;;  %v7132_v38 = vshll.u32 %v23027_v37, 16 }
 0x6a7   : > { %7311 = vmatprep.mubr.bf16.mxu1 %v21212_v11 }
 0x6a8   : > { %v7134_v43 = vrot.slane %v7132_v38, 1  ;;  %v20294_v38 = vld [vmem:[%s26143_s5 + $0x414] ss:$8 sps:$4 sm:$0xff]  }
 0x6aa   : > { %v7138_v57 = vor.u32 %v7136_v56, %v7134_v43  ;;  %v8022_v56 = vshrl.u32 %v23131_v0, 16 }
 0x6ae   : > { %7312 = vmatmul.mubr.bf16.gmra.mrb[44].mxu1 %v22706_v17  ;;  %v7128_v17 = vshrl.u32 %v22658_v39, 16 }
 0x6af   : > { %7321 = vmatprep.mubr.bf16.mxu1 %v21212_v11 }
 0x6b0   : > { %v7130_v23 = vor.u32 %v7128_v17, %v7126_v14  ;;  %v8020_v14 = vrot.slane %v8018_v3, 1  ;;  %v20342_v3 = vld [vmem:[%s26145_s7 + $0x354] ss:$8 sps:$4 sm:$0xff]  }
 0x6b2   : > { %v8024_v1 = vor.u32 %v8022_v56, %v8020_v14  ;;  %v20346_v56 = vld [vmem:[%s26145_s7 + $0x360] ss:$8 sps:$4 sm:$0xff]  }
 0x6b6   : > { %7322 = vmatmul.mubr.bf16.gmra.mrb[48].mxu1 %v22715_v58  ;;  %v7135_v58 = vsel %vm597_vm0, %v7130_v23, %v7134_v43  ;;  %v8026_v43 = vshll.u32 %v23147_v21, 16  ;;  %v20292_v23 = vld [vmem:[%s26143_s5 + $0x410] ss:$8 sps:$4 sm:$0xff]  }
 0x6b7   : > { %7331 = vmatprep.mubr.bf16.mxu1 %v21212_v11 }
 0x6be   : > { %7332 = vmatmul.mubr.bf16.gmra.mrb[52].mxu1 %v7127_v20  ;;  %v20289_v20 = vld [vmem:[%s26143_s5 + $0x400] ss:$8 sps:$4 sm:$0xff]  }
 0x6bf   : > { %7341 = vmatprep.mubr.bf16.mxu1 %v21212_v11 }
 0x6c6   : > { %7342 = vmatmul.mubr.bf16.gmra.mrb[56].mxu1 %v7135_v58  ;;  %v20297_v58 = vld [vmem:[%s26143_s5 + $0x424] ss:$8 sps:$4 sm:$0xff]  }
 0x6c7   : > { %7351 = vmatprep.mubr.bf16.mxu1 %v21212_v11 }
 0x6ce   : > { %7352 = vmatmul.mubr.bf16.gmra.mrb[60].mxu1 %v7138_v57  ;;  %v8028_v57 = vrot.slane %v8026_v43, 1 }
 0x6cf   : > { %7571 = vmatprep.mubr.bf16.mxu1 %v21212_v11 }
 0x6d6   : > { %7572 = vmatmul.mubr.bf16.vlgmr.msra.gmra.mrb[24].mxu1 %v7432_v44  ;;  %v8030_v44 = vshrl.u32 %v23147_v21, 16 }
 0x6d7   : > { %7820 = vmatpush1.bf16.msra.mxu1 %v20241_v31  ;;  %7581 = vmatprep.mubr.bf16.mxu1 %v21212_v11  ;;  %v20300_v31 = vld [vmem:[%s26143_s5 + $0x434] ss:$8 sps:$4 sm:$0xff]  }
 0x6d8   : > { %7821 = vmatprep.subr.bf16.mxu1 %v20246_v5  ;;  %v8029_v5 = vsel %vm597_vm0, %v8024_v1, %v8028_v57  ;;  %v8070_v1 = vshrl.u32 %v23185_v8, 16 }
 0x6db   : > { %7822 = vmatpush1.bf16.msra.mxu1 %v20244_v24  ;;  %v8034_v24 = vshll.u32 %v23163_v29, 16 }
 0x6dc   : > { %7823 = vmatprep.subr.bf16.mxu1 %v20249_v12  ;;  %v20298_v12 = vld [vmem:[%s26143_s5 + $0x430] ss:$8 sps:$4 sm:$0xff]  }
 0x6de   : > { %7582 = vmatmul.mubr.bf16.gmra.mrb[28].mxu1 %v22837_v50  ;;  %v20258_v50 = vld [vmem:[%s26143_s5 + $0x354] ss:$8 sps:$4 sm:$0xff]  }
 0x6df   : > { %7591 = vmatprep.mubr.bf16.mxu1 %v21212_v11  ;;  %7824 = vmatpush1.bf16.msra.mxu1 %v20247_v41  ;;  %v20303_v41 = vld [vmem:[%s26143_s5 + $0x444] ss:$8 sps:$4 sm:$0xff]  }
 0x6e0   : > { %7825 = vmatprep.subr.bf16.mxu1 %v20252_v60  ;;  %v8032_v60 = vor.u32 %v8030_v44, %v8028_v57  ;;  %v20354_v57 = vld [vmem:[%s26145_s7 + $0x374] ss:$8 sps:$4 sm:$0xff]  }
 0x6e3   : > { %7826 = vmatpush1.bf16.msra.mxu1 %v20250_v7  ;;  %v8036_v7 = vrot.slane %v8034_v24, 1  ;;  %v23324_v24 = vld [vmem:[#allocation3 + $0x58] sm:$0x3f] }
 0x6e4   : > { %7827 = vmatprep.subr.bf16.mxu1 %v20255_v30  ;;  %v20301_v30 = vld [vmem:[%s26143_s5 + $0x440] ss:$8 sps:$4 sm:$0xff]  }
 0x6e6   : > { %7592 = vmatmul.mubr.bf16.gmra.mrb[32].mxu1 %v22855_v4  ;;  %v20264_v4 = vld [vmem:[%s26143_s5 + $0x374] ss:$8 sps:$4 sm:$0xff]  }
 0x6e7   : > { %7601 = vmatprep.mubr.bf16.mxu1 %v21212_v11  ;;  %7828 = vmatpush1.bf16.msra.mxu1 %v20253_v51  ;;  %v20306_v51 = vld [vmem:[%s26143_s5 + $0x454] ss:$8 sps:$4 sm:$0xff]  }
 0x6e8   : > { %7829 = vmatprep.subr.bf16.mxu1 %v20258_v50  ;;  %v8037_v50 = vsel %vm597_vm0, %v8032_v60, %v8036_v7  ;;  %v8078_v60 = vshrl.u32 %v23189_v6, 16 }
 0x6eb   : > { %7830 = vmatpush1.bf16.msra.mxu1 %v20256_v33  ;;  %v8042_v33 = vshll.u32 %v23173_v46, 16 }
 0x6ec   : > { %7831 = vmatprep.subr.bf16.mxu1 %v20261_v9  ;;  %v20304_v9 = vld [vmem:[%s26143_s5 + $0x450] ss:$8 sps:$4 sm:$0xff]  }
 0x6ee   : > { %7602 = vmatmul.mubr.bf16.gmra.mrb[36].mxu1 %v22867_v52  ;;  %v7445_v52 = vrot.slane %v22658_v39, 1  ;;  %v20265_v39 = vld [vmem:[%s26143_s5 + $0x380] ss:$8 sps:$4 sm:$0xff]  }
 0x6ef   : > { %7611 = vmatprep.mubr.bf16.mxu1 %v21212_v11  ;;  %7832 = vmatpush1.bf16.msra.mxu1 %v20259_v28  ;;  %v20309_v28 = vld [vmem:[%s26143_s5 + $0x464] ss:$8 sps:$4 sm:$0xff]  }
 0x6f0   : > { %7833 = vmatprep.subr.bf16.mxu1 %v20264_v4  ;;  %v7446_v42 = vsel %vm1135_vm2, %v22884_v27, %v7445_v52  ;;  %v23115_v27 = vld [vmem:[#allocation3 + $0x10] sm:$0xff]  ;;  %v8038_v4 = vshrl.u32 %v23163_v29, 16 }
 0x6f1   : > { %v8013_v59 = vshll.u32 %v23115_v27, 16  ;;  %v8011_v61 = vshrl.u32 %v23115_v27, 16 }
 0x6f3   : > { %7834 = vmatpush1.bf16.msra.mxu1 %v20262_v35  ;;  %v8015_v19 = vrot.slane %v8013_v59, 1  ;;  %v8044_v35 = vrot.slane %v8042_v33, 1  ;;  %v20336_v59 = vld [vmem:[%s26145_s7 + $0x344] ss:$8 sps:$4 sm:$0xff]   ;;  %v8086_v33 = vshrl.u32 %v23324_v24, 16 }
 0x6f4   : > { %8179 = vmatprep.subr.bf16.mxu1 %v20267_v47  ;;  %v8040_v47 = vor.u32 %v8038_v4, %v8036_v7  ;;  %v8082_v7 = vshll.u32 %v23324_v24, 16  ;;  %v8381_v4 = vrot.slane %v23131_v0, 1 }
 0x6f6   : > { %7612 = vmatmul.mubr.bf16.gmra.mrb[40].mxu1 %v22873_v13  ;;  %v7447_v13 = vrot.slane %v23027_v37, 1  ;;  %v8016_v37 = vor.u32 %v8015_v19, %v8011_v61  ;;  %v20334_v61 = vld [vmem:[%s26145_s7 + $0x340] ss:$8 sps:$4 sm:$0xff]  }
 0x6f7   : > { %7621 = vmatprep.mubr.bf16.mxu1 %v21212_v11 }
 0x6f8   : > { %v7448_v10 = vsel %vm1135_vm2, %v7445_v52, %v7447_v13  ;;  %v8021_v17 = vsel %vm597_vm0, %v8016_v37, %v8020_v14  ;;  %v20307_v52 = vld [vmem:[%s26143_s5 + $0x460] ss:$8 sps:$4 sm:$0xff]   ;;  %v8062_v37 = vshrl.u32 %v23181_v48, 16  ;;  %v8066_v14 = vshll.u32 %v23185_v8, 16 }
 0x6fa   : > { %v8068_v43 = vrot.slane %v8066_v14, 1  ;;  %v20372_v14 = vld [vmem:[%s26145_s7 + $0x3a4] ss:$8 sps:$4 sm:$0xff]  }
 0x6fc   : > { %v8072_v44 = vor.u32 %v8070_v1, %v8068_v43  ;;  %v20385_v1 = vld [vmem:[%s26145_s7 + $0x1b0] ss:$8 sps:$4 sm:$0xff]  }
 0x6fe   : > { %7622 = vmatmul.mubr.bf16.gmra.mrb[44].mxu1 %v22879_v16  ;;  %v20270_v16 = vld [vmem:[%s26143_s5 + $0x394] ss:$8 sps:$4 sm:$0xff]  }
 0x6ff   : > { %7631 = vmatprep.mubr.bf16.mxu1 %v21212_v11 }
 0x706   : > { %7632 = vmatmul.mubr.bf16.gmra.mrb[48].mxu1 %v22888_v54  ;;  %v20268_v54 = vld [vmem:[%s26143_s5 + $0x390] ss:$8 sps:$4 sm:$0xff]  }
 0x707   : > { %7641 = vmatprep.mubr.bf16.mxu1 %v21212_v11 }
 0x70e   : > { %7642 = vmatmul.mubr.bf16.gmra.mrb[52].mxu1 %v7446_v42  ;;  %v20312_v42 = vld [vmem:[%s26143_s5 + $0x474] ss:$8 sps:$4 sm:$0xff]  }
 0x70f   : > { %7651 = vmatprep.mubr.bf16.mxu1 %v21212_v11 }
 0x716   : > { %7652 = vmatmul.mubr.bf16.gmra.mrb[56].mxu1 %v7448_v10  ;;  %v20313_v10 = vld [vmem:[%s26145_s7 + $0x300] ss:$8 sps:$4 sm:$0xff]  }
 0x717   : > { %7661 = vmatprep.mubr.bf16.mxu1 %v21212_v11 }
 0x71e   : > { %7662 = vmatmul.mubr.bf16.gmra.mrb[60].mxu1 %v7447_v13  ;;  %v8045_v13 = vsel %vm597_vm0, %v8040_v47, %v8044_v35  ;;  %v20319_v47 = vld [vmem:[%s26145_s7 + $0x100] ss:$8 sps:$4 sm:$0xff]  }
 0x71f   : > { %7851 = vmatprep.mubr.bf16.mxu1 %v21212_v11 }
 0x726   : > { %7852 = vmatmul.mubr.bf16.vlgmr.msra.gmra.mrb[24].mxu1 %v23115_v27  ;;  %v8050_v27 = vshll.u32 %v23177_v62, 16 }
 0x727   : > { %8180 = vmatpush1.bf16.msra.mxu1 %v20265_v39  ;;  %7861 = vmatprep.mubr.bf16.mxu1 %v21212_v11  ;;  %v20315_v39 = vld [vmem:[%s26145_s7 + $0x304] ss:$8 sps:$4 sm:$0xff]  }
 0x728   : > { %8181 = vmatprep.subr.bf16.mxu1 %v20270_v16  ;;  %v8046_v16 = vshrl.u32 %v23173_v46, 16  ;;  %10250 = vmatprep.subr.bf16.mxu0 %v20315_v39  ;;  %v20331_v39 = vld [vmem:[%s26145_s7 + $0x120] ss:$8 sps:$4 sm:$0xff]  }
 0x729   : > { %10251 = vmatpush1.bf16.msra.mxu0 %v20313_v10  ;;  %v8383_v10 = vrot.slane %v23147_v21, 1 }
 0x72b   : > { %8182 = vmatpush1.bf16.msra.mxu1 %v20268_v54  ;;  %v20310_v54 = vld [vmem:[%s26143_s5 + $0x470] ss:$8 sps:$4 sm:$0xff]  }
 0x72c   : > { %8183 = vmatprep.subr.bf16.mxu1 %v20273_v18  ;;  %v20318_v18 = vld [vmem:[%s26145_s7 + $0x314] ss:$8 sps:$4 sm:$0xff]  }
 0x72d   : > { %10252 = vmatprep.subr.bf16.mxu0 %v20318_v18  ;;  %v8385_v18 = vrot.slane %v23163_v29, 1 }
 0x72e   : > { %7862 = vmatmul.mubr.bf16.gmra.mrb[28].mxu1 %v23131_v0  ;;  %v20333_v0 = vld [vmem:[%s26145_s7 + $0x124] ss:$8 sps:$4 sm:$0xff]  }
 0x72f   : > { %7871 = vmatprep.mubr.bf16.mxu1 %v21212_v11  ;;  %8184 = vmatpush1.bf16.msra.mxu1 %v20271_v63  ;;  %v20321_v63 = vld [vmem:[%s26145_s7 + $0x104] ss:$8 sps:$4 sm:$0xff]  }
 0x730   : > { %8185 = vmatprep.subr.bf16.mxu1 %v20276_v32  ;;  %v8048_v32 = vor.u32 %v8046_v16, %v8044_v35  ;;  %v20339_v16 = vld [vmem:[%s26145_s7 + $0x134] ss:$8 sps:$4 sm:$0xff]  }
 0x733   : > { %8186 = vmatpush1.bf16.msra.mxu1 %v20274_v36  ;;  %v20316_v36 = vld [vmem:[%s26145_s7 + $0x310] ss:$8 sps:$4 sm:$0xff]  }
 0x734   : > { %8187 = vmatprep.subr.bf16.mxu1 %v20279_v15  ;;  %v20324_v15 = vld [vmem:[%s26145_s7 + $0x324] ss:$8 sps:$4 sm:$0xff]   ;;  %10253 = vmatpush1.bf16.msra.mxu0 %v20316_v36  ;;  %v8386_v36 = vsel %vm1135_vm2, %v8383_v10, %v8385_v18 }
 0x735   : > { %10254 = vmatprep.subr.bf16.mxu0 %v20324_v15  ;;  %v20357_v15 = vld [vmem:[%s26145_s7 + $0x164] ss:$8 sps:$4 sm:$0xff]  }
 0x736   : > { %7872 = vmatmul.mubr.bf16.gmra.mrb[32].mxu1 %v23147_v21  ;;  %v20337_v21 = vld [vmem:[%s26145_s7 + $0x130] ss:$8 sps:$4 sm:$0xff]  }
 0x737   : > { %7881 = vmatprep.mubr.bf16.mxu1 %v21212_v11  ;;  %8188 = vmatpush1.bf16.msra.mxu1 %v20277_v26  ;;  %v8052_v26 = vrot.slane %v8050_v27, 1  ;;  %v8384_v27 = vsel %vm1135_vm2, %v8381_v4, %v8383_v10 }
 0x738   : > { %8189 = vmatprep.subr.bf16.mxu1 %v20282_v55 }
 0x739   : > { %v8053_v55 = vsel %vm597_vm0, %v8048_v32, %v8052_v26  ;;  %v20351_v32 = vld [vmem:[%s26145_s7 + $0x154] ss:$8 sps:$4 sm:$0xff]  }
 0x73b   : > { %8190 = vmatpush1.bf16.msra.mxu1 %v20280_v34  ;;  %v8058_v34 = vshll.u32 %v23181_v48, 16 }
 0x73c   : > { %8191 = vmatprep.subr.bf16.mxu1 %v20285_v25  ;;  %v20322_v25 = vld [vmem:[%s26145_s7 + $0x320] ss:$8 sps:$4 sm:$0xff]  }
 0x73d   : > { %10255 = vmatpush1.bf16.msra.mxu0 %v20322_v25 }
 0x73e   : > { %7882 = vmatmul.mubr.bf16.gmra.mrb[36].mxu1 %v23163_v29  ;;  %v20349_v29 = vld [vmem:[%s26145_s7 + $0x150] ss:$8 sps:$4 sm:$0xff]  }
 0x73f   : > { %7891 = vmatprep.mubr.bf16.mxu1 %v21212_v11  ;;  %8192 = vmatpush1.bf16.msra.mxu1 %v20283_v40  ;;  %v20330_v40 = vld [vmem:[%s26145_s7 + $0x334] ss:$8 sps:$4 sm:$0xff]  }
 0x740   : > { %8193 = vmatprep.subr.bf16.mxu1 %v20288_v53  ;;  %v8054_v53 = vshrl.u32 %v23177_v62, 16  ;;  %10256 = vmatprep.subr.bf16.mxu0 %v20330_v40  ;;  %v8389_v40 = vrot.slane %v23177_v62, 1 }
 0x742   : > { %v8056_v19 = vor.u32 %v8054_v53, %v8052_v26  ;;  %v8387_v26 = vrot.slane %v23173_v46, 1 }
 0x743   : > { %8194 = vmatpush1.bf16.msra.mxu1 %v20286_v49  ;;  %v8060_v49 = vrot.slane %v8058_v34, 1  ;;  %v20363_v34 = vld [vmem:[%s26145_s7 + $0x174] ss:$8 sps:$4 sm:$0xff]  }
 0x744   : > { %8489 = vmatprep.subr.bf16.mxu1 %v20291_v45  ;;  %v20328_v45 = vld [vmem:[%s26145_s7 + $0x330] ss:$8 sps:$4 sm:$0xff]   ;;  %v8388_v25 = vsel %vm1135_vm2, %v8385_v18, %v8387_v26  ;;  %v8390_v53 = vsel %vm1135_vm2, %v8387_v26, %v8389_v40 }
 0x745   : > { %10257 = vmatpush1.bf16.msra.mxu0 %v20328_v45 }
 0x746   : > { %7892 = vmatmul.mubr.bf16.gmra.mrb[40].mxu1 %v23173_v46  ;;  %10258 = vmatprep.subr.bf16.mxu0 %v20336_v59  ;;  %v20361_v46 = vld [vmem:[%s26145_s7 + $0x170] ss:$8 sps:$4 sm:$0xff]   ;;  %v8393_v59 = vrot.slane %v23185_v8, 1 }
 0x747   : > { %7901 = vmatprep.mubr.bf16.mxu1 %v21212_v11 }
 0x749   : > { %10259 = vmatpush1.bf16.msra.mxu0 %v20334_v61 }
 0x74a   : > { %10260 = vmatprep.subr.bf16.mxu0 %v20342_v3  ;;  %v20367_v3 = vld [vmem:[%s26145_s7 + $0x180] ss:$8 sps:$4 sm:$0xff]  }
 0x74e   : > { %7902 = vmatmul.mubr.bf16.gmra.mrb[44].mxu1 %v23177_v62  ;;  %v8395_v62 = vrot.slane %v23189_v6, 1 }
 0x74f   : > { %7911 = vmatprep.mubr.bf16.mxu1 %v21212_v11 }
 0x756   : > { %7912 = vmatmul.mubr.bf16.gmra.mrb[48].mxu1 %v23181_v48 }
 0x757   : > { %7921 = vmatprep.mubr.bf16.mxu1 %v21212_v11 }
 0x75e   : > { %7922 = vmatmul.mubr.bf16.gmra.mrb[52].mxu1 %v23185_v8  ;;  %v20364_v8 = vld [vmem:[%s26145_s7 + $0x390] ss:$8 sps:$4 sm:$0xff]  }
 0x75f   : > { %7931 = vmatprep.mubr.bf16.mxu1 %v21212_v11 }
 0x766   : > { %7932 = vmatmul.mubr.bf16.gmra.mrb[56].mxu1 %v23189_v6 }
 0x767   : > { %7941 = vmatprep.mubr.bf16.mxu1 %v21212_v11 }
 0x76e   : > { %7942 = vmatmul.mubr.bf16.gmra.mrb[60].mxu1 %v7721_v2  ;;  %v8061_v2 = vsel %vm597_vm0, %v8056_v19, %v8060_v49 }
 0x76f   : > { %8211 = vmatprep.mubr.bf16.mxu1 %v21212_v11 }
 0x776   : > { %8212 = vmatmul.mubr.bf16.vlgmr.msra.gmra.mrb[24].mxu1 %v8021_v17  ;;  %v20348_v17 = vld [vmem:[%s26145_s7 + $0x364] ss:$8 sps:$4 sm:$0xff]  }
 0x777   : > { %8490 = vmatpush1.bf16.msra.mxu1 %v20289_v20  ;;  %8221 = vmatprep.mubr.bf16.mxu1 %v21212_v11  ;;  %v8064_v20 = vor.u32 %v8062_v37, %v8060_v49  ;;  %v8391_v49 = vrot.slane %v23181_v48, 1  ;;  %v8397_v48 = vrot.slane %v23324_v24, 1  ;;  %v20369_v37 = vld [vmem:[%s26145_s7 + $0x184] ss:$8 sps:$4 sm:$0xff]   ;;  %v20391_v24 = vld [vmem:[%s26145_s7 + $0x1c0] ss:$8 sps:$4 sm:$0xff]  }
 0x778   : > { %8491 = vmatprep.subr.bf16.mxu1 %v20294_v38  ;;  %v20340_v38 = vld [vmem:[%s26145_s7 + $0x350] ss:$8 sps:$4 sm:$0xff]  }
 0x779   : > { %10261 = vmatpush1.bf16.msra.mxu0 %v20340_v38  ;;  %v8392_v45 = vsel %vm1135_vm2, %v8389_v40, %v8391_v49  ;;  %v8394_v19 = vsel %vm1135_vm2, %v8391_v49, %v8393_v59  ;;  %v8398_v61 = vsel %vm1135_vm2, %v8395_v62, %v8397_v48  ;;  %v20375_v38 = vld [vmem:[%s26145_s7 + $0x194] ss:$8 sps:$4 sm:$0xff]  }
 0x77a   : > { %10262 = vmatprep.subr.bf16.mxu0 %v20348_v17  ;;  %v20378_v17 = vld [vmem:[%s26145_s7 + $0x3b4] ss:$8 sps:$4 sm:$0xff]  }
 0x77b   : > { %8492 = vmatpush1.bf16.msra.mxu1 %v20292_v23  ;;  %v8069_v23 = vsel %vm597_vm0, %v8064_v20, %v8068_v43  ;;  %v20373_v20 = vld [vmem:[%s26145_s7 + $0x190] ss:$8 sps:$4 sm:$0xff]  }
 0x77c   : > { %8493 = vmatprep.subr.bf16.mxu1 %v20297_v58  ;;  %v8074_v58 = vshll.u32 %v23189_v6, 16  ;;  %v20366_v6 = vld [vmem:[%s26145_s7 + $0x394] ss:$8 sps:$4 sm:$0xff]   ;;  %v20376_v43 = vld [vmem:[%s26145_s7 + $0x3b0] ss:$8 sps:$4 sm:$0xff]  }
 0x77d   : > { %10263 = vmatpush1.bf16.msra.mxu0 %v20346_v56  ;;  %v20382_v56 = vld [vmem:[%s26145_s7 + $0x3c0] ss:$8 sps:$4 sm:$0xff]  }
 0x77e   : > { %8222 = vmatmul.mubr.bf16.gmra.mrb[28].mxu1 %v8029_v5  ;;  %10264 = vmatprep.subr.bf16.mxu0 %v20354_v57  ;;  %v20360_v5 = vld [vmem:[%s26145_s7 + $0x384] ss:$8 sps:$4 sm:$0xff]  }
 0x77f   : > { %8231 = vmatprep.mubr.bf16.mxu1 %v21212_v11  ;;  %8494 = vmatpush1.bf16.msra.mxu1 %v20295_v22  ;;  %v8076_v22 = vrot.slane %v8074_v58, 1  ;;  %v20379_v58 = vld [vmem:[%s26145_s7 + $0x1a0] ss:$8 sps:$4 sm:$0xff]   ;;  %v20384_v57 = vld [vmem:[%s26145_s7 + $0x3c4] ss:$8 sps:$4 sm:$0xff]  }
 0x780   : > { %8495 = vmatprep.subr.bf16.mxu1 %v20300_v31  ;;  %v20352_v31 = vld [vmem:[%s26145_s7 + $0x370] ss:$8 sps:$4 sm:$0xff]  }
 0x781   : > { %10265 = vmatpush1.bf16.msra.mxu0 %v20352_v31  ;;  %v20390_v31 = vld [vmem:[%s26145_s7 + $0x3d4] ss:$8 sps:$4 sm:$0xff]  }
 0x782   : > { %10266 = vmatprep.subr.bf16.mxu0 %v20360_v5  ;;  %v20388_v5 = vld [vmem:[%s26145_s7 + $0x3d0] ss:$8 sps:$4 sm:$0xff]  }
 0x783   : > { %8496 = vmatpush1.bf16.msra.mxu1 %v20298_v12  ;;  %v8077_v12 = vsel %vm597_vm0, %v8072_v44, %v8076_v22  ;;  %v20393_v44 = vld [vmem:[%s26145_s7 + $0x1c4] ss:$8 sps:$4 sm:$0xff]  }
 0x784   : > { %8497 = vmatprep.subr.bf16.mxu1 %v20303_v41  ;;  %v20358_v41 = vld [vmem:[%s26145_s7 + $0x380] ss:$8 sps:$4 sm:$0xff]  }
 0x785   : > { %10267 = vmatpush1.bf16.msra.mxu0 %v20358_v41  ;;  %v20396_v41 = vld [vmem:[%s26145_s7 + $0x3e4] ss:$8 sps:$4 sm:$0xff]  }
 0x786   : > { %8232 = vmatmul.mubr.bf16.gmra.mrb[32].mxu1 %v8037_v50  ;;  %10268 = vmatprep.subr.bf16.mxu0 %v20366_v6 }
 0x787   : > { %8241 = vmatprep.mubr.bf16.mxu1 %v21212_v11  ;;  %8498 = vmatpush1.bf16.msra.mxu1 %v20301_v30  ;;  %v8080_v30 = vor.u32 %v8078_v60, %v8076_v22  ;;  %v20387_v22 = vld [vmem:[%s26145_s7 + $0x1b4] ss:$8 sps:$4 sm:$0xff]   ;;  %v20397_v60 = vld [vmem:[%s26145_s7 + $0x1d0] ss:$8 sps:$4 sm:$0xff]  }
 0x788   : > { %8499 = vmatprep.subr.bf16.mxu1 %v20306_v51  ;;  %v8084_v51 = vrot.slane %v8082_v7, 1  ;;  %v20399_v7 = vld [vmem:[%s26145_s7 + $0x1d4] ss:$8 sps:$4 sm:$0xff]  }
 0x789   : > { %10269 = vmatpush1.bf16.msra.mxu0 %v20364_v8 }
 0x78a   : > { %v8085_v50 = vsel %vm597_vm0, %v8080_v30, %v8084_v51  ;;  %10270 = vmatprep.subr.bf16.mxu0 %v20372_v14  ;;  %v20402_v30 = vld [vmem:[%s26145_s7 + $0x3f4] ss:$8 sps:$4 sm:$0xff]  }
 0x78b   : > { %8500 = vmatpush1.bf16.msra.mxu1 %v20304_v9  ;;  %v8088_v9 = vor.u32 %v8086_v33, %v8084_v51  ;;  %v20400_v51 = vld [vmem:[%s26145_s7 + $0x3f0] ss:$8 sps:$4 sm:$0xff]   ;;  %v20403_v33 = vld [vmem:[%s26145_s7 + $0x1e0] ss:$8 sps:$4 sm:$0xff]  }
 0x78c   : > { %8501 = vmatprep.subr.bf16.mxu1 %v20309_v28  ;;  %v8352_v28 = vld [vmem:[#allocation3 + $0x10] sm:$0xfe] }
 0x78d   : > { %v8380_v35 = vrot.slane %v8352_v28, 1  ;;  %v20409_v28 = vld [vmem:[%s26145_s7 + $0x1f0] ss:$8 sps:$4 sm:$0xff]  }
 0x78e   : > { %8242 = vmatmul.mubr.bf16.gmra.mrb[36].mxu1 %v8045_v13  ;;  %v20325_v13 = vld [vmem:[%s26145_s7 + $0x110] ss:$8 sps:$4 sm:$0xff]  }
 0x78f   : > { %8251 = vmatprep.mubr.bf16.mxu1 %v21212_v11  ;;  %8502 = vmatpush1.bf16.msra.mxu1 %v20307_v52  ;;  %v20327_v52 = vld [vmem:[%s26145_s7 + $0x114] ss:$8 sps:$4 sm:$0xff]  }
 0x790   : > { %8503 = vmatprep.subr.bf16.mxu1 %v20312_v42  ;;  %v8382_v42 = vsel %vm1135_vm2, %v8380_v35, %v8381_v4  ;;  %v20411_v4 = vld [vmem:[%s26145_s7 + $0x1f4] ss:$8 sps:$4 sm:$0xff]   ;;  %v20417_v35 = vld [vmem:[%s26145_s7 + $0x4] ss:$8 sps:$4 sm:$0xff]  }
 0x793   : > { %8504 = vmatpush1.bf16.msra.mxu1 %v20310_v54  ;;  %v20345_v54 = vld [vmem:[%s26145_s7 + $0x144] ss:$8 sps:$4 sm:$0xff]  }
 0x794   : > { %9261 = vmatprep.subr.bf16.mxu1 %v20321_v63  ;;  %v20343_v63 = vld [vmem:[%s26145_s7 + $0x140] ss:$8 sps:$4 sm:$0xff]  }
 0x796   : > { %8252 = vmatmul.mubr.bf16.gmra.mrb[40].mxu1 %v8053_v55  ;;  %v20355_v55 = vld [vmem:[%s26145_s7 + $0x160] ss:$8 sps:$4 sm:$0xff]  }
 0x797   : > { %8261 = vmatprep.mubr.bf16.mxu1 %v21212_v11 }
 0x79e   : > { %8262 = vmatmul.mubr.bf16.gmra.mrb[44].mxu1 %v8061_v2  ;;  %v8396_v2 = vsel %vm1135_vm2, %v8393_v59, %v8395_v62 }
 0x79f   : > { %8271 = vmatprep.mubr.bf16.mxu1 %v21212_v11 }
 0x7a6   : > { %8272 = vmatmul.mubr.bf16.gmra.mrb[48].mxu1 %v8069_v23  ;;  %v20381_v23 = vld [vmem:[%s26145_s7 + $0x1a4] ss:$8 sps:$4 sm:$0xff]  }
 0x7a7   : > { %8281 = vmatprep.mubr.bf16.mxu1 %v21212_v11 }
 0x7ae   : > { %8282 = vmatmul.mubr.bf16.gmra.mrb[52].mxu1 %v8077_v12  ;;  %v20394_v12 = vld [vmem:[%s26145_s7 + $0x3e0] ss:$8 sps:$4 sm:$0xff]  }
 0x7af   : > { %8291 = vmatprep.mubr.bf16.mxu1 %v21212_v11 }
 0x7b6   : > { %8292 = vmatmul.mubr.bf16.gmra.mrb[56].mxu1 %v8085_v50  ;;  %v20405_v50 = vld [vmem:[%s26145_s7 + $0x1e4] ss:$8 sps:$4 sm:$0xff]  }
 0x7b7   : > { %8301 = vmatprep.mubr.bf16.mxu1 %v21212_v11 }
 0x7be   : > { %8302 = vmatmul.mubr.bf16.gmra.mrb[60].mxu1 %v8088_v9  ;;  %v20408_v9 = vld [vmem:[%s26145_s7 + $0x404] ss:$8 sps:$4 sm:$0xff]  }
 0x7bf   : > { %8521 = vmatprep.mubr.bf16.mxu1 %v21212_v11 }
 0x7c6   : > { %8522 = vmatmul.mubr.bf16.vlgmr.msra.gmra.mrb[24].mxu1 %v8382_v42 }
 0x7c7   : > { %8531 = vmatprep.mubr.bf16.mxu1 %v21212_v11  ;;  %9262 = vmatpush1.bf16.msra.mxu1 %v20319_v47  ;;  %v8664_v47 = vlaneseq }
 0x7c8   : > { %9263 = vmatprep.subr.bf16.mxu1 %v20327_v52 }
 0x7c9   : > { %v23505_v52 = vshrl.u32 %v8664_v47, 7 }
 0x7cb   : > { %9264 = vmatpush1.bf16.msra.mxu1 %v20325_v13  ;;  %v23508_v42 = vsub.s32 0, %v23505_v52  ;;  %v8662_v13 = vld [vmem:[%s26144_s6] sm:$0x3] }
 0x7cc   : > { %9265 = vmatprep.subr.bf16.mxu1 %v20333_v0  ;;  %v23514_v0 = vsub.s32 1, %v23505_v52 }
 0x7cd   : > { %v23517_v10 = vrot.slane %v8662_v13, %v23508_v42 }
 0x7ce   : > { %8532 = vmatmul.mubr.bf16.gmra.mrb[28].mxu1 %v8384_v27  ;;  %v23522_v27 = vstv %s16823_s28 }
 0x7cf   : > { %8541 = vmatprep.mubr.bf16.mxu1 %v21212_v11  ;;  %9266 = vmatpush1.bf16.msra.mxu1 %v20331_v39  ;;  %v23520_v39 = vrot.slane %v8662_v13, %v23514_v0 }
 0x7d0   : > { %9267 = vmatprep.subr.bf16.mxu1 %v20339_v16 }
 0x7d3   : > { %9268 = vmatpush1.bf16.msra.mxu1 %v20337_v21 }
 0x7d4   : > { %9269 = vmatprep.subr.bf16.mxu1 %v20345_v54 }
 0x7d6   : > { %8542 = vmatmul.mubr.bf16.gmra.mrb[32].mxu1 %v8386_v36 }
 0x7d7   : > { %8551 = vmatprep.mubr.bf16.mxu1 %v21212_v11  ;;  %9270 = vmatpush1.bf16.msra.mxu1 %v20343_v63 }
 0x7d8   : > { %9271 = vmatprep.subr.bf16.mxu1 %v20351_v32 }
 0x7db   : > { %9272 = vmatpush1.bf16.msra.mxu1 %v20349_v29 }
 0x7dc   : > { %9273 = vmatprep.subr.bf16.mxu1 %v20357_v15 }
 0x7de   : > { %8552 = vmatmul.mubr.bf16.gmra.mrb[36].mxu1 %v8388_v25 }
 0x7df   : > { %8561 = vmatprep.mubr.bf16.mxu1 %v21212_v11  ;;  %9274 = vmatpush1.bf16.msra.mxu1 %v20355_v55 }
 0x7e0   : > { %9275 = vmatprep.subr.bf16.mxu1 %v20363_v34 }
 0x7e3   : > { %9276 = vmatpush1.bf16.msra.mxu1 %v20361_v46 }
 0x7e4   : > { %9277 = vmatprep.subr.bf16.mxu1 %v20369_v37 }
 0x7e6   : > { %8562 = vmatmul.mubr.bf16.gmra.mrb[40].mxu1 %v8390_v53 }
 0x7e7   : > { %8571 = vmatprep.mubr.bf16.mxu1 %v21212_v11  ;;  %9278 = vmatpush1.bf16.msra.mxu1 %v20367_v3 }
 0x7e8   : > { %9279 = vmatprep.subr.bf16.mxu1 %v20375_v38 }
 0x7eb   : > { %9280 = vmatpush1.bf16.msra.mxu1 %v20373_v20 }
 0x7ec   : > { %9281 = vmatprep.subr.bf16.mxu1 %v20381_v23 }
 0x7ee   : > { %8572 = vmatmul.mubr.bf16.gmra.mrb[44].mxu1 %v8392_v45 }
 0x7ef   : > { %8581 = vmatprep.mubr.bf16.mxu1 %v21212_v11  ;;  %9282 = vmatpush1.bf16.msra.mxu1 %v20379_v58 }
 0x7f0   : > { %9283 = vmatprep.subr.bf16.mxu1 %v20387_v22 }
 0x7f3   : > { %9284 = vmatpush1.bf16.msra.mxu1 %v20385_v1 }
 0x7f4   : > { %9285 = vmatprep.subr.bf16.mxu1 %v20393_v44 }
 0x7f6   : > { %8582 = vmatmul.mubr.bf16.gmra.mrb[48].mxu1 %v8394_v19 }
 0x7f7   : > { %8591 = vmatprep.mubr.bf16.mxu1 %v21212_v11  ;;  %9286 = vmatpush1.bf16.msra.mxu1 %v20391_v24 }
 0x7f8   : > { %9287 = vmatprep.subr.bf16.mxu1 %v20399_v7 }
 0x7fb   : > { %9288 = vmatpush1.bf16.msra.mxu1 %v20397_v60  ;;  %v20414_v60 = vld [vmem:[%s26145_s7 + $0x414] ss:$8 sps:$4 sm:$0xff]  }
 0x7fc   : > { %9289 = vmatprep.subr.bf16.mxu1 %v20405_v50 }
 0x7fe   : > { %8592 = vmatmul.mubr.bf16.gmra.mrb[52].mxu1 %v8396_v2 }
 0x7ff   : > { %8601 = vmatprep.mubr.bf16.mxu1 %v21212_v11  ;;  %9290 = vmatpush1.bf16.msra.mxu1 %v20403_v33 }
 0x800   : > { %9291 = vmatprep.subr.bf16.mxu1 %v20411_v4 }
 0x803   : > { %9292 = vmatpush1.bf16.msra.mxu1 %v20409_v28 }
 0x804   : > { %9532 = vmatprep.subr.bf16.mxu1 %v20417_v35 }
 0x806   : > { %8602 = vmatmul.mubr.bf16.gmra.mrb[56].mxu1 %v8398_v61 }
 0x807   : > { %8611 = vmatprep.mubr.bf16.mxu1 %v21212_v11  ;;  %v20370_v11 = vld [vmem:[%s26145_s7 + $0x3a0] ss:$8 sps:$4 sm:$0xff]  }
 0x808   : > { %10271 = vmatpush1.bf16.msra.mxu0 %v20370_v11 }
 0x809   : > { %10272 = vmatprep.subr.bf16.mxu0 %v20378_v17 }
 0x80c   : > { %10273 = vmatpush1.bf16.msra.mxu0 %v20376_v43 }
 0x80d   : > { %10274 = vmatprep.subr.bf16.mxu0 %v20384_v57 }
 0x80e   : > { %8612 = vmatmul.mubr.bf16.gmra.mrb[60].mxu1 %v8397_v48 }
 0x810   : > { %10275 = vmatpush1.bf16.msra.mxu0 %v20382_v56 }
 0x811   : > { %10276 = vmatprep.subr.bf16.mxu0 %v20390_v31 }
 0x814   : > { %10277 = vmatpush1.bf16.msra.mxu0 %v20388_v5  ;;  %v20406_v5 = vld [vmem:[%s26145_s7 + $0x400] ss:$8 sps:$4 sm:$0xff]  }
 0x815   : > { %10278 = vmatprep.subr.bf16.mxu0 %v20396_v41 }
 0x818   : > { %10279 = vmatpush1.bf16.msra.mxu0 %v20394_v12 }
 0x819   : > { %10280 = vmatprep.subr.bf16.mxu0 %v20402_v30 }
 0x81c   : > { %10281 = vmatpush1.bf16.msra.mxu0 %v20400_v51 }
 0x81d   : > { %10728 = vmatprep.subr.bf16.mxu0 %v20408_v9 }
 0x899   : > { %v8523_v16 = vpop.f32.mrb[24].mxu1 }
 0x89a   : > { %v8674_v21 = vadd.f32 %v23517_v10, %v8523_v16  ;;  %v8525_v54 = vpop.f32.mrb[25].mxu1  ;;  %v20412_v16 = vld [vmem:[%s26145_s7 + $0x410] ss:$8 sps:$4 sm:$0xff]  }
 0x89b   : > { %v8675_v18 = vadd.f32 %v23520_v39, %v8525_v54  ;;  %v8527_v63 = vpop.f32.mrb[26].mxu1 }
 0x89c   : > { %v8756_v32 = vmul.f32 %v23522_v27, %v8674_v21  ;;  %v8676_v36 = vadd.f32 %v23517_v10, %v8527_v63  ;;  %v8529_v29 = vpop.f32.mrb[27].mxu1  ;;  %vm8715_vm14 = vcmp.ge.f32.partialorder %v8674_v21, 0.0  ;;  %v20420_v63 = vld [vmem:[%s26145_s7 + $0x424] ss:$8 sps:$4 sm:$0xff]  }
 0x89d   : > { %v8757_v15 = vmul.f32 %v23522_v27, %v8675_v18  ;;  %v8677_v26 = vadd.f32 %v23520_v39, %v8529_v29  ;;  %vm8716_vm15 = vcmp.ge.f32.partialorder %v8675_v18, 0.0 }
 0x89e   : > { %vm8717_vm1 = vcmp.ge.f32.partialorder %v8676_v36, 0.0  ;;  %v8758_v55 = vmul.f32 %v23522_v27, %v8676_v36  ;;  %v8796_v25 = vsel %vm8715_vm14, %v8674_v21, %v8756_v32 }
 0x89f   : > { %vm8718_vm3 = vcmp.ge.f32.partialorder %v8677_v26, 0.0  ;;  %v8759_v34 = vmul.f32 %v23522_v27, %v8677_v26  ;;  %v8797_v40 = vsel %vm8716_vm15, %v8675_v18, %v8757_v15  ;;  %v20415_v15 = vld [vmem:[%s26145_s7] ss:$8 sps:$4 sm:$0xff]  }
 0x8a0   : > { %v8798_v46 = vsel %vm8717_vm1, %v8676_v36, %v8758_v55 }
 0x8a1   : > { %v23532_v53 = vpack.c.bf16 %v8798_v46, %v8796_v25  ;;  %v8799_v49 = vsel %vm8718_vm3, %v8677_v26, %v8759_v34  ;;  %v8533_v45 = vpop.f32.mrb[28].mxu1 }
 0x8a2   : > { %v23534_v59 = vpack.c.bf16 %v8799_v49, %v8797_v40  ;;  %v8678_v19 = vadd.f32 %v23517_v10, %v8533_v45  ;;  %v8535_v62 = vpop.f32.mrb[29].mxu1  ;;  %v20423_v40 = vld [vmem:[%s26145_s7 + $0x14] ss:$8 sps:$4 sm:$0xff]  }
 0x8a3   : > { %8856 = vst [vmem:[#allocation4] sm:$0xff] %v23532_v53  ;;  %v8679_v2 = vadd.f32 %v23520_v39, %v8535_v62  ;;  %v8537_v48 = vpop.f32.mrb[30].mxu1  ;;  %v8962_v43 = vshll.u32 %v23532_v53, 16  ;;  %v8960_v7 = vshrl.u32 %v23532_v53, 16 }
 0x8a4   : > { %8857 = vst [vmem:[#allocation4 + $0x8] sm:$0xff] %v23534_v59  ;;  %v8760_v61 = vmul.f32 %v23522_v27, %v8678_v19  ;;  %v8680_v8 = vadd.f32 %v23517_v10, %v8537_v48  ;;  %v8539_v6 = vpop.f32.mrb[31].mxu1  ;;  %vm8719_vm4 = vcmp.ge.f32.partialorder %v8678_v19, 0.0  ;;  %v8974_v20 = vshll.u32 %v23534_v59, 16 }
 0x8a5   : > { %v8761_v3 = vmul.f32 %v23522_v27, %v8679_v2  ;;  %v8681_v37 = vadd.f32 %v23520_v39, %v8539_v6  ;;  %vm8720_vm5 = vcmp.ge.f32.partialorder %v8679_v2, 0.0  ;;  %v8972_v33 = vshrl.u32 %v23534_v59, 16  ;;  %v20426_v6 = vld [vmem:[%s26145_s7 + $0x434] ss:$8 sps:$4 sm:$0xff]  }
 0x8a6   : > { %vm8721_vm6 = vcmp.ge.f32.partialorder %v8680_v8, 0.0  ;;  %v8762_v11 = vmul.f32 %v23522_v27, %v8680_v8  ;;  %v8800_v38 = vsel %vm8719_vm4, %v8678_v19, %v8760_v61  ;;  %v8976_v41 = vrot.slane %v8974_v20, 1 }
 0x8a7   : > { %vm8722_vm7 = vcmp.ge.f32.partialorder %v8681_v37, 0.0  ;;  %v8763_v14 = vmul.f32 %v23522_v27, %v8681_v37  ;;  %v8801_v23 = vsel %vm8720_vm5, %v8679_v2, %v8761_v3  ;;  %v8964_v9 = vrot.slane %v8962_v43, 1  ;;  %v20418_v2 = vld [vmem:[%s26145_s7 + $0x420] ss:$8 sps:$4 sm:$0xff]   ;;  %v20429_v43 = vld [vmem:[%s26145_s7 + $0x24] ss:$8 sps:$4 sm:$0xff]  }
 0x8a8   : > { %v8802_v17 = vsel %vm8721_vm6, %v8680_v8, %v8762_v11  ;;  %v8977_v18 = vor.u32 %v8976_v41, %v8972_v33 }
 0x8a9   : > { %v23548_v58 = vpack.c.bf16 %v8802_v17, %v8800_v38  ;;  %v8803_v56 = vsel %vm8722_vm7, %v8681_v37, %v8763_v14  ;;  %v8543_v57 = vpop.f32.mrb[32].mxu1  ;;  %v8965_v29 = vor.u32 %v8964_v9, %v8960_v7  ;;  %v20421_v14 = vld [vmem:[%s26145_s7 + $0x10] ss:$8 sps:$4 sm:$0xff]   ;;  %v20427_v9 = vld [vmem:[%s26145_s7 + $0x20] ss:$8 sps:$4 sm:$0xff]  }
 0x8aa   : > { %v23550_v1 = vpack.c.bf16 %v8803_v56, %v8801_v23  ;;  %v8682_v22 = vadd.f32 %v23517_v10, %v8543_v57  ;;  %v8545_v31 = vpop.f32.mrb[33].mxu1  ;;  %v20424_v57 = vld [vmem:[%s26145_s7 + $0x430] ss:$8 sps:$4 sm:$0xff]  }
 0x8ab   : > { %8858 = vst [vmem:[#allocation4 + $0x10] sm:$0xff] %v23548_v58  ;;  %v8683_v44 = vadd.f32 %v23520_v39, %v8545_v31  ;;  %v8547_v24 = vpop.f32.mrb[34].mxu1  ;;  %v10429_v12 = vshll.u32 %v23548_v58, 16  ;;  %v10427_v31 = vshrl.u32 %v23548_v58, 16 }
 0x8ac   : > { %8859 = vst [vmem:[#allocation4 + $0x18] sm:$0xff] %v23550_v1  ;;  %v8764_v30 = vmul.f32 %v23522_v27, %v8682_v22  ;;  %v8684_v51 = vadd.f32 %v23517_v10, %v8547_v24  ;;  %v8549_v50 = vpop.f32.mrb[35].mxu1  ;;  %10282 = vmatprep.mubr.bf16.mxu0 %v23550_v1  ;;  %vm8723_vm8 = vcmp.ge.f32.partialorder %v8682_v22, 0.0  ;;  %v10441_v35 = vshll.u32 %v23550_v1, 16 }
 0x8ad   : > { %v8765_v28 = vmul.f32 %v23522_v27, %v8683_v44  ;;  %v8685_v4 = vadd.f32 %v23520_v39, %v8549_v50  ;;  %10283 = vmatmul.mubr.bf16.vlgmr.msra.gmra.mrb[28].mxu0 %v23548_v58  ;;  %vm8724_vm9 = vcmp.ge.f32.partialorder %v8683_v44, 0.0  ;;  %v23573_v13 = vrot.slane %v10429_v12, 1 }
 0x8ae   : > { %vm8725_vm10 = vcmp.ge.f32.partialorder %v8684_v51, 0.0  ;;  %v8766_v47 = vmul.f32 %v23522_v27, %v8684_v51  ;;  %10729 = vmatpush1.bf16.msra.mxu0 %v20406_v5  ;;  %v10443_v54 = vrot.slane %v10441_v35, 1  ;;  %v8804_v32 = vsel %vm8723_vm8, %v8682_v22, %v8764_v30 }
 0x8af   : > { %vm8726_vm11 = vcmp.ge.f32.partialorder %v8685_v4, 0.0  ;;  %v8767_v21 = vmul.f32 %v23522_v27, %v8685_v4  ;;  %10730 = vmatprep.subr.bf16.mxu0 %v20414_v60  ;;  %v8805_v26 = vsel %vm8724_vm9, %v8683_v44, %v8765_v28  ;;  %v8970_v62 = vsel %vm597_vm0, %v8965_v29, %v23573_v13  ;;  %v20432_v44 = vld [vmem:[%s26145_s7 + $0x444] ss:$8 sps:$4 sm:$0xff]  }
 0x8b0   : > { %v8806_v36 = vsel %vm8725_vm10, %v8684_v51, %v8766_v47  ;;  %v8982_v46 = vsel %vm597_vm0, %v8977_v18, %v10443_v54  ;;  %v10439_v17 = vshrl.u32 %v23550_v1, 16  ;;  %v8985_v33 = vor.u32 %v23573_v13, %v10427_v31  ;;  %v20435_v13 = vld [vmem:[%s26145_s7 + $0x34] ss:$8 sps:$4 sm:$0xff]   ;;  %v20444_v31 = vld [vmem:[%s26145_s7 + $0x464] ss:$8 sps:$4 sm:$0xff]  }
 0x8b1   : > { %v23587_v55 = vpack.c.bf16 %v8806_v36, %v8804_v32  ;;  %v8807_v34 = vsel %vm8726_vm11, %v8685_v4, %v8767_v21  ;;  %v8553_v25 = vpop.f32.mrb[36].mxu1  ;;  %9293 = vmatprep.mubr.bf16.mxu1 %v8982_v46 }
 0x8b2   : > { %v23593_v49 = vpack.c.bf16 %v8807_v34, %v8805_v26  ;;  %v8686_v45 = vadd.f32 %v23517_v10, %v8553_v25  ;;  %v8555_v19 = vpop.f32.mrb[37].mxu1  ;;  %10731 = vmatpush1.bf16.msra.mxu0 %v20412_v16  ;;  %9294 = vmatmul.mubr.bf16.vlgmr.msra.gmra.mrb[64].mxu1 %v8970_v62  ;;  %v8993_v41 = vor.u32 %v10443_v54, %v10439_v17  ;;  %v20430_v16 = vld [vmem:[%s26145_s7 + $0x440] ss:$8 sps:$4 sm:$0xff]  }
 0x8b3   : > { %8860 = vst [vmem:[#allocation4 + $0x20] sm:$0xff] %v23587_v55  ;;  %v8687_v48 = vadd.f32 %v23520_v39, %v8555_v19  ;;  %v8557_v61 = vpop.f32.mrb[38].mxu1  ;;  %v10434_v8 = vshll.u32 %v23587_v55, 16  ;;  %10732 = vmatprep.subr.bf16.mxu0 %v20420_v63  ;;  %9533 = vmatpush1.bf16.msra.mxu1 %v20415_v15  ;;  %v20438_v63 = vld [vmem:[%s26145_s7 + $0x454] ss:$8 sps:$4 sm:$0xff]   ;;  %v10450_v34 = vshrl.u32 %v23587_v55, 16 }
 0x8b4   : > { %8861 = vst [vmem:[#allocation4 + $0x28] sm:$0xff] %v23593_v49  ;;  %v8768_v3 = vmul.f32 %v23522_v27, %v8686_v45  ;;  %v8688_v37 = vadd.f32 %v23517_v10, %v8557_v61  ;;  %v8559_v11 = vpop.f32.mrb[39].mxu1  ;;  %10292 = vmatprep.mubr.bf16.mxu0 %v23593_v49  ;;  %vm8727_vm12 = vcmp.ge.f32.partialorder %v8686_v45, 0.0  ;;  %9534 = vmatprep.subr.bf16.mxu1 %v20423_v40  ;;  %v8995_v56 = vshll.u32 %v23593_v49, 16  ;;  %v20433_v40 = vld [vmem:[%s26145_s7 + $0x30] ss:$8 sps:$4 sm:$0xff]  }
 0x8b5   : > { %v8769_v20 = vmul.f32 %v23522_v27, %v8687_v48  ;;  %v8689_v38 = vadd.f32 %v23520_v39, %v8559_v11  ;;  %10293 = vmatmul.mubr.bf16.gmra.mrb[32].mxu0 %v23587_v55  ;;  %vm8728_vm13 = vcmp.ge.f32.partialorder %v8687_v48, 0.0  ;;  %v10436_v5 = vrot.slane %v10434_v8, 1  ;;  %v20436_v8 = vld [vmem:[%s26145_s7 + $0x450] ss:$8 sps:$4 sm:$0xff]  }
 0x8b6   : > { %vm8729_vm14 = vcmp.ge.f32.partialorder %v8688_v37, 0.0  ;;  %v8770_v23 = vmul.f32 %v23522_v27, %v8688_v37  ;;  %10733 = vmatpush1.bf16.msra.mxu0 %v20418_v2  ;;  %v8808_v24 = vsel %vm8727_vm12, %v8686_v45, %v8768_v3  ;;  %v8997_v60 = vrot.slane %v8995_v56, 1  ;;  %v20441_v2 = vld [vmem:[%s26145_s7 + $0x44] ss:$8 sps:$4 sm:$0xff]  }
 0x8b7   : > { %vm8730_vm15 = vcmp.ge.f32.partialorder %v8689_v38, 0.0  ;;  %v8771_v22 = vmul.f32 %v23522_v27, %v8689_v38  ;;  %10734 = vmatprep.subr.bf16.mxu0 %v20426_v6  ;;  %9535 = vmatpush1.bf16.msra.mxu1 %v20421_v14  ;;  %v8809_v7 = vsel %vm8728_vm13, %v8687_v48, %v8769_v20  ;;  %v23655_v18 = vsel %vm597_vm0, %v8985_v33, %v10436_v5 }
 0x8b8   : > { %v8810_v12 = vsel %vm8729_vm14, %v8688_v37, %v8770_v23  ;;  %9536 = vmatprep.subr.bf16.mxu1 %v20429_v43  ;;  %v23643_v47 = vsel %vm597_vm0, %v8993_v41, %v8997_v60  ;;  %v10458_v26 = vshrl.u32 %v23593_v49, 16  ;;  %v9001_v11 = vor.u32 %v10450_v34, %v10436_v5  ;;  %v20439_v23 = vld [vmem:[%s26145_s7 + $0x40] ss:$8 sps:$4 sm:$0xff]   ;;  %v20447_v5 = vld [vmem:[%s26145_s7 + $0x54] ss:$8 sps:$4 sm:$0xff]  }
 0x8b9   : > { %v23633_v30 = vpack.c.bf16 %v8810_v12, %v8808_v24  ;;  %v8811_v51 = vsel %vm8730_vm15, %v8689_v38, %v8771_v22  ;;  %v8563_v50 = vpop.f32.mrb[40].mxu1  ;;  %9303 = vmatprep.mubr.bf16.mxu1 %v23643_v47  ;;  %v20442_v41 = vld [vmem:[%s26145_s7 + $0x460] ss:$8 sps:$4 sm:$0xff]  }
 0x8ba   : > { %v23639_v28 = vpack.c.bf16 %v8811_v51, %v8809_v7  ;;  %v8690_v4 = vadd.f32 %v23517_v10, %v8563_v50  ;;  %v8565_v35 = vpop.f32.mrb[41].mxu1  ;;  %10735 = vmatpush1.bf16.msra.mxu0 %v20424_v57  ;;  %9304 = vmatmul.mubr.bf16.gmra.mrb[68].mxu1 %v23655_v18  ;;  %v9009_v62 = vor.u32 %v10458_v26, %v8997_v60 }
 0x8bb   : > { %8862 = vst [vmem:[#allocation4 + $0x30] sm:$0xff] %v23633_v30  ;;  %v8691_v21 = vadd.f32 %v23520_v39, %v8565_v35  ;;  %v8567_v54 = vpop.f32.mrb[42].mxu1  ;;  %10736 = vmatprep.subr.bf16.mxu0 %v20432_v44  ;;  %v9003_v32 = vshll.u32 %v23633_v30, 16  ;;  %9537 = vmatpush1.bf16.msra.mxu1 %v20427_v9  ;;  %v10466_v9 = vshrl.u32 %v23633_v30, 16 }
 0x8bc   : > { %8863 = vst [vmem:[#allocation4 + $0x38] sm:$0xff] %v23639_v28  ;;  %v8772_v36 = vmul.f32 %v23522_v27, %v8690_v4  ;;  %v8692_v29 = vadd.f32 %v23517_v10, %v8567_v54  ;;  %v8569_v15 = vpop.f32.mrb[43].mxu1  ;;  %10302 = vmatprep.mubr.bf16.mxu0 %v23639_v28  ;;  %vm8731_vm1 = vcmp.ge.f32.partialorder %v8690_v4, 0.0  ;;  %v9011_v45 = vshll.u32 %v23639_v28, 16  ;;  %9538 = vmatprep.subr.bf16.mxu1 %v20435_v13  ;;  %v20445_v13 = vld [vmem:[%s26145_s7 + $0x50] ss:$8 sps:$4 sm:$0xff]  }
 0x8bd   : > { %v8773_v25 = vmul.f32 %v23522_v27, %v8691_v21  ;;  %v8693_v46 = vadd.f32 %v23520_v39, %v8569_v15  ;;  %10303 = vmatmul.mubr.bf16.gmra.mrb[36].mxu0 %v23633_v30  ;;  %vm8732_vm3 = vcmp.ge.f32.partialorder %v8691_v21, 0.0  ;;  %v9005_v6 = vrot.slane %v9003_v32, 1  ;;  %v20453_v32 = vld [vmem:[%s26145_s7 + $0x64] ss:$8 sps:$4 sm:$0xff]   ;;  %v20448_v15 = vld [vmem:[%s26145_s7 + $0x470] ss:$8 sps:$4 sm:$0xff]  }
 0x8be   : > { %vm8733_vm4 = vcmp.ge.f32.partialorder %v8692_v29, 0.0  ;;  %v8774_v19 = vmul.f32 %v23522_v27, %v8692_v29  ;;  %10737 = vmatpush1.bf16.msra.mxu0 %v20430_v16  ;;  %v9013_v61 = vrot.slane %v9011_v45, 1  ;;  %v8812_v3 = vsel %vm8731_vm1, %v8690_v4, %v8772_v36  ;;  %v20450_v4 = vld [vmem:[%s26145_s7 + $0x474] ss:$8 sps:$4 sm:$0xff]  }
 0x8bf   : > { %vm8734_vm5 = vcmp.ge.f32.partialorder %v8693_v46, 0.0  ;;  %v8775_v48 = vmul.f32 %v23522_v27, %v8693_v46  ;;  %10738 = vmatprep.subr.bf16.mxu0 %v20438_v63  ;;  %v8813_v14 = vsel %vm8732_vm3, %v8691_v21, %v8773_v25  ;;  %9539 = vmatpush1.bf16.msra.mxu1 %v20433_v40  ;;  %v23706_v12 = vsel %vm597_vm0, %v9001_v11, %v9005_v6 }
 0x8c0   : > { %v8814_v37 = vsel %vm8733_vm4, %v8692_v29, %v8774_v19  ;;  %v23688_v43 = vsel %vm597_vm0, %v9009_v62, %v9013_v61  ;;  %9540 = vmatprep.subr.bf16.mxu1 %v20441_v2  ;;  %v10474_v33 = vshrl.u32 %v23639_v28, 16 }
 0x8c1   : > { %v23685_v20 = vpack.c.bf16 %v8814_v37, %v8812_v3  ;;  %v8815_v38 = vsel %vm8734_vm5, %v8693_v46, %v8775_v48  ;;  %v8573_v17 = vpop.f32.mrb[44].mxu1  ;;  %9313 = vmatprep.mubr.bf16.mxu1 %v23688_v43  ;;  %v9017_v46 = vor.u32 %v10466_v9, %v9005_v6  ;;  %v20451_v48 = vld [vmem:[%s26145_s7 + $0x60] ss:$8 sps:$4 sm:$0xff]   ;;  %v20456_v6 = vld [vmem:[%s26145_s7 + $0x484] ss:$8 sps:$4 sm:$0xff]  }
 0x8c2   : > { %v23693_v56 = vpack.c.bf16 %v8815_v38, %v8813_v14  ;;  %v8694_v57 = vadd.f32 %v23517_v10, %v8573_v17  ;;  %v8575_v22 = vpop.f32.mrb[45].mxu1  ;;  %10739 = vmatpush1.bf16.msra.mxu0 %v20436_v8  ;;  %9314 = vmatmul.mubr.bf16.gmra.mrb[72].mxu1 %v23706_v12  ;;  %v9025_v63 = vor.u32 %v10474_v33, %v9013_v61  ;;  %v20459_v37 = vld [vmem:[%s26145_s7 + $0x74] ss:$8 sps:$4 sm:$0xff]   ;;  %v20454_v17 = vld [vmem:[%s26145_s7 + $0x480] ss:$8 sps:$4 sm:$0xff]  }
 0x8c3   : > { %8864 = vst [vmem:[#allocation4 + $0x40] sm:$0xff] %v23685_v20  ;;  %v8695_v44 = vadd.f32 %v23520_v39, %v8575_v22  ;;  %v8577_v24 = vpop.f32.mrb[46].mxu1  ;;  %v9019_v60 = vshll.u32 %v23685_v20, 16  ;;  %9541 = vmatpush1.bf16.msra.mxu1 %v20439_v23  ;;  %10740 = vmatprep.subr.bf16.mxu0 %v20444_v31  ;;  %v20465_v9 = vld [vmem:[%s26145_s7 + $0x84] ss:$8 sps:$4 sm:$0xff]  }
 0x8c4   : > { %8865 = vst [vmem:[#allocation4 + $0x48] sm:$0xff] %v23693_v56  ;;  %v8776_v7 = vmul.f32 %v23522_v27, %v8694_v57  ;;  %v8696_v51 = vadd.f32 %v23517_v10, %v8577_v24  ;;  %v8579_v50 = vpop.f32.mrb[47].mxu1  ;;  %10312 = vmatprep.mubr.bf16.mxu0 %v23693_v56  ;;  %vm8735_vm6 = vcmp.ge.f32.partialorder %v8694_v57, 0.0  ;;  %v9027_v21 = vshll.u32 %v23693_v56, 16  ;;  %9542 = vmatprep.subr.bf16.mxu1 %v20447_v5  ;;  %v20462_v24 = vld [vmem:[%s26145_s7 + $0x494] ss:$8 sps:$4 sm:$0xff]  }
 0x8c5   : > { %v8777_v35 = vmul.f32 %v23522_v27, %v8695_v44  ;;  %v8697_v16 = vadd.f32 %v23520_v39, %v8579_v50  ;;  %10313 = vmatmul.mubr.bf16.gmra.mrb[40].mxu0 %v23685_v20  ;;  %vm8736_vm7 = vcmp.ge.f32.partialorder %v8695_v44, 0.0  ;;  %v9021_v26 = vrot.slane %v9019_v60, 1 }
 0x8c6   : > { %vm8737_vm8 = vcmp.ge.f32.partialorder %v8696_v51, 0.0  ;;  %v8778_v54 = vmul.f32 %v23522_v27, %v8696_v51  ;;  %10741 = vmatpush1.bf16.msra.mxu0 %v20442_v41  ;;  %v9029_v29 = vrot.slane %v9027_v21, 1  ;;  %v8816_v34 = vsel %vm8735_vm6, %v8694_v57, %v8776_v7  ;;  %v20457_v7 = vld [vmem:[%s26145_s7 + $0x70] ss:$8 sps:$4 sm:$0xff]  }
 0x8c7   : > { %vm8738_vm9 = vcmp.ge.f32.partialorder %v8697_v16, 0.0  ;;  %v8779_v36 = vmul.f32 %v23522_v27, %v8697_v16  ;;  %10742 = vmatprep.subr.bf16.mxu0 %v20450_v4  ;;  %v8817_v40 = vsel %vm8736_vm7, %v8695_v44, %v8777_v35  ;;  %9543 = vmatpush1.bf16.msra.mxu1 %v20445_v13  ;;  %v23760_v38 = vsel %vm597_vm0, %v9017_v46, %v9021_v26 }
 0x8c8   : > { %v8818_v25 = vsel %vm8737_vm8, %v8696_v51, %v8778_v54  ;;  %v23742_v2 = vsel %vm597_vm0, %v9025_v63, %v9029_v29  ;;  %9544 = vmatprep.subr.bf16.mxu1 %v20453_v32  ;;  %v10490_v5 = vshrl.u32 %v23693_v56, 16  ;;  %v10482_v44 = vshrl.u32 %v23685_v20, 16 }
 0x8c9   : > { %v23739_v45 = vpack.c.bf16 %v8818_v25, %v8816_v34  ;;  %v8819_v19 = vsel %vm8738_vm9, %v8697_v16, %v8779_v36  ;;  %v8583_v62 = vpop.f32.mrb[48].mxu1  ;;  %9323 = vmatprep.mubr.bf16.mxu1 %v23742_v2  ;;  %v20460_v16 = vld [vmem:[%s26145_s7 + $0x490] ss:$8 sps:$4 sm:$0xff]   ;;  %v20463_v25 = vld [vmem:[%s26145_s7 + $0x80] ss:$8 sps:$4 sm:$0xff]  }
 0x8ca   : > { %v23747_v61 = vpack.c.bf16 %v8819_v19, %v8817_v40  ;;  %v8698_v8 = vadd.f32 %v23517_v10, %v8583_v62  ;;  %v8585_v3 = vpop.f32.mrb[49].mxu1  ;;  %10743 = vmatpush1.bf16.msra.mxu0 %v20448_v15  ;;  %9324 = vmatmul.mubr.bf16.gmra.mrb[76].mxu1 %v23760_v38  ;;  %v9041_v33 = vor.u32 %v10490_v5, %v9029_v29  ;;  %v20471_v62 = vld [vmem:[%s26145_s7 + $0x94] ss:$8 sps:$4 sm:$0xff]  }
 0x8cb   : > { %8866 = vst [vmem:[#allocation4 + $0x50] sm:$0xff] %v23739_v45  ;;  %v8699_v11 = vadd.f32 %v23520_v39, %v8585_v3  ;;  %v8587_v14 = vpop.f32.mrb[50].mxu1  ;;  %v9035_v23 = vshll.u32 %v23739_v45, 16  ;;  %9545 = vmatpush1.bf16.msra.mxu1 %v20451_v48  ;;  %10744 = vmatprep.subr.bf16.mxu0 %v20456_v6  ;;  %v9033_v63 = vor.u32 %v10482_v44, %v9021_v26  ;;  %v20468_v26 = vld [vmem:[%s26145_s7 + $0x4a4] ss:$8 sps:$4 sm:$0xff]  }
 0x8cc   : > { %8867 = vst [vmem:[#allocation4 + $0x58] sm:$0xff] %v23747_v61  ;;  %v8780_v57 = vmul.f32 %v23522_v27, %v8698_v8  ;;  %v8700_v22 = vadd.f32 %v23517_v10, %v8587_v14  ;;  %v8589_v31 = vpop.f32.mrb[51].mxu1  ;;  %10322 = vmatprep.mubr.bf16.mxu0 %v23747_v61  ;;  %vm8739_vm10 = vcmp.ge.f32.partialorder %v8698_v8, 0.0  ;;  %v9043_v51 = vshll.u32 %v23747_v61, 16  ;;  %9546 = vmatprep.subr.bf16.mxu1 %v20459_v37  ;;  %v20466_v6 = vld [vmem:[%s26145_s7 + $0x4a0] ss:$8 sps:$4 sm:$0xff]  }
 0x8cd   : > { %v8781_v41 = vmul.f32 %v23522_v27, %v8699_v11  ;;  %v8701_v60 = vadd.f32 %v23520_v39, %v8589_v31  ;;  %10323 = vmatmul.mubr.bf16.gmra.mrb[44].mxu0 %v23739_v45  ;;  %vm8740_vm11 = vcmp.ge.f32.partialorder %v8699_v11, 0.0  ;;  %v9037_v13 = vrot.slane %v9035_v23, 1  ;;  %v20469_v44 = vld [vmem:[%s26145_s7 + $0x90] ss:$8 sps:$4 sm:$0xff]  }
 0x8ce   : > { %vm8741_vm12 = vcmp.ge.f32.partialorder %v8700_v22, 0.0  ;;  %v8782_v50 = vmul.f32 %v23522_v27, %v8700_v22  ;;  %10745 = vmatpush1.bf16.msra.mxu0 %v20454_v17  ;;  %v9045_v35 = vrot.slane %v9043_v51, 1  ;;  %v8820_v21 = vsel %vm8739_vm10, %v8698_v8, %v8780_v57 }
 0x8cf   : > { %vm8742_vm13 = vcmp.ge.f32.partialorder %v8701_v60, 0.0  ;;  %v8783_v4 = vmul.f32 %v23522_v27, %v8701_v60  ;;  %10746 = vmatprep.subr.bf16.mxu0 %v20462_v24  ;;  %v8821_v32 = vsel %vm8740_vm11, %v8699_v11, %v8781_v41  ;;  %9547 = vmatpush1.bf16.msra.mxu1 %v20457_v7  ;;  %v23814_v3 = vsel %vm597_vm0, %v9033_v63, %v9037_v13  ;;  %v20477_v7 = vld [vmem:[%s26145_s7 + $0xa4] ss:$8 sps:$4 sm:$0xff]  }
 0x8d0   : > { %v8822_v54 = vsel %vm8741_vm12, %v8700_v22, %v8782_v50  ;;  %v23796_v34 = vsel %vm597_vm0, %v9041_v33, %v9045_v35  ;;  %9548 = vmatprep.subr.bf16.mxu1 %v20465_v9  ;;  %v10506_v23 = vshrl.u32 %v23747_v61, 16  ;;  %v10498_v57 = vshrl.u32 %v23739_v45, 16  ;;  %v20474_v22 = vld [vmem:[%s26145_s7 + $0x4b4] ss:$8 sps:$4 sm:$0xff]   ;;  %v20472_v33 = vld [vmem:[%s26145_s7 + $0x4b0] ss:$8 sps:$4 sm:$0xff]  }
 0x8d1   : > { %v23793_v36 = vpack.c.bf16 %v8822_v54, %v8820_v21  ;;  %v8823_v29 = vsel %vm8742_vm13, %v8701_v60, %v8783_v4  ;;  %v8593_v15 = vpop.f32.mrb[52].mxu1  ;;  %9333 = vmatprep.mubr.bf16.mxu1 %v23796_v34 }
 0x8d2   : > { %v23801_v46 = vpack.c.bf16 %v8823_v29, %v8821_v32  ;;  %v8702_v40 = vadd.f32 %v23517_v10, %v8593_v15  ;;  %v8595_v19 = vpop.f32.mrb[53].mxu1  ;;  %10747 = vmatpush1.bf16.msra.mxu0 %v20460_v16  ;;  %9334 = vmatmul.mubr.bf16.gmra.mrb[80].mxu1 %v23814_v3  ;;  %v9057_v60 = vor.u32 %v10506_v23, %v9045_v35  ;;  %v20475_v15 = vld [vmem:[%s26145_s7 + $0xa0] ss:$8 sps:$4 sm:$0xff]  }
 0x8d3   : > { %8868 = vst [vmem:[#allocation4 + $0x60] sm:$0xff] %v23793_v36  ;;  %v8703_v48 = vadd.f32 %v23520_v39, %v8595_v19  ;;  %v8597_v8 = vpop.f32.mrb[54].mxu1  ;;  %v9051_v37 = vshll.u32 %v23793_v36, 16  ;;  %9549 = vmatpush1.bf16.msra.mxu1 %v20463_v25  ;;  %10748 = vmatprep.subr.bf16.mxu0 %v20468_v26  ;;  %v9049_v35 = vor.u32 %v10498_v57, %v9037_v13  ;;  %v20480_v19 = vld [vmem:[%s26145_s7 + $0x4c4] ss:$8 sps:$4 sm:$0xff]  }
 0x8d4   : > { %8869 = vst [vmem:[#allocation4 + $0x68] sm:$0xff] %v23801_v46  ;;  %v8784_v11 = vmul.f32 %v23522_v27, %v8702_v40  ;;  %v8704_v14 = vadd.f32 %v23517_v10, %v8597_v8  ;;  %v8599_v17 = vpop.f32.mrb[55].mxu1  ;;  %10332 = vmatprep.mubr.bf16.mxu0 %v23801_v46  ;;  %vm8743_vm14 = vcmp.ge.f32.partialorder %v8702_v40, 0.0  ;;  %v9059_v24 = vshll.u32 %v23801_v46, 16  ;;  %9550 = vmatprep.subr.bf16.mxu1 %v20471_v62  ;;  %v20483_v26 = vld [vmem:[%s26145_s7 + $0xb4] ss:$8 sps:$4 sm:$0xff]  }
 0x8d5   : > { %v8785_v31 = vmul.f32 %v23522_v27, %v8703_v48  ;;  %v8705_v5 = vadd.f32 %v23520_v39, %v8599_v17  ;;  %10333 = vmatmul.mubr.bf16.gmra.mrb[48].mxu0 %v23793_v36  ;;  %vm8744_vm15 = vcmp.ge.f32.partialorder %v8703_v48, 0.0  ;;  %v23847_v9 = vrot.slane %v9051_v37, 1  ;;  %v20486_v17 = vld [vmem:[%s26145_s7 + $0x4d4] ss:$8 sps:$4 sm:$0xff]  }
 0x8d6   : > { %vm8745_vm1 = vcmp.ge.f32.partialorder %v8704_v14, 0.0  ;;  %v8786_v41 = vmul.f32 %v23522_v27, %v8704_v14  ;;  %10749 = vmatpush1.bf16.msra.mxu0 %v20466_v6  ;;  %v23842_v50 = vrot.slane %v9059_v24, 1  ;;  %v8824_v4 = vsel %vm8743_vm14, %v8702_v40, %v8784_v11  ;;  %v20478_v6 = vld [vmem:[%s26145_s7 + $0x4c0] ss:$8 sps:$4 sm:$0xff]   ;;  %v20484_v24 = vld [vmem:[%s26145_s7 + $0x4d0] ss:$8 sps:$4 sm:$0xff]  }
 0x8d7   : > { %vm8746_vm3 = vcmp.ge.f32.partialorder %v8705_v5, 0.0  ;;  %v8787_v51 = vmul.f32 %v23522_v27, %v8705_v5  ;;  %10750 = vmatprep.subr.bf16.mxu0 %v20474_v22  ;;  %v8825_v21 = vsel %vm8744_vm15, %v8703_v48, %v8785_v31  ;;  %9551 = vmatpush1.bf16.msra.mxu1 %v20469_v44  ;;  %v23874_v8 = vsel %vm597_vm0, %v9049_v35, %v23847_v9  ;;  %v20481_v22 = vld [vmem:[%s26145_s7 + $0xb0] ss:$8 sps:$4 sm:$0xff]   ;;  %v20487_v35 = vld [vmem:[%s26145_s7 + $0xc0] ss:$8 sps:$4 sm:$0xff]  }
 0x8d8   : > { %v8826_v16 = vsel %vm8745_vm1, %v8704_v14, %v8786_v41  ;;  %v23855_v29 = vsel %vm597_vm0, %v9057_v60, %v23842_v50  ;;  %9552 = vmatprep.subr.bf16.mxu1 %v20477_v7  ;;  %v20492_v7 = vld [vmem:[%s26145_s7 + $0x4e4] ss:$8 sps:$4 sm:$0xff]  }
 0x8d9   : > { %v23851_v54 = vpack.c.bf16 %v8826_v16, %v8824_v4  ;;  %v8827_v63 = vsel %vm8746_vm3, %v8705_v5, %v8787_v51  ;;  %v8603_v32 = vpop.f32.mrb[56].mxu1  ;;  %9343 = vmatprep.mubr.bf16.mxu1 %v23855_v29  ;;  %v20489_v5 = vld [vmem:[%s26145_s7 + $0xc4] ss:$8 sps:$4 sm:$0xff]  }
 0x8da   : > { %v23860_v25 = vpack.c.bf16 %v8827_v63, %v8825_v21  ;;  %v8706_v40 = vadd.f32 %v23517_v10, %v8603_v32  ;;  %v8605_v13 = vpop.f32.mrb[57].mxu1  ;;  %10751 = vmatpush1.bf16.msra.mxu0 %v20472_v33  ;;  %9344 = vmatmul.mubr.bf16.gmra.mrb[84].mxu1 %v23874_v8  ;;  %v20490_v21 = vld [vmem:[%s26145_s7 + $0x4e0] ss:$8 sps:$4 sm:$0xff]  }
 0x8db   : > { %8870 = vst [vmem:[#allocation4 + $0x70] sm:$0xff] %v23851_v54  ;;  %v8707_v62 = vadd.f32 %v23520_v39, %v8605_v13  ;;  %v8607_v48 = vpop.f32.mrb[58].mxu1  ;;  %9553 = vmatpush1.bf16.msra.mxu1 %v20475_v15  ;;  %10752 = vmatprep.subr.bf16.mxu0 %v20480_v19  ;;  %v20495_v13 = vld [vmem:[%s26145_s7 + $0xd4] ss:$8 sps:$4 sm:$0xff]   ;;  %v10522_v19 = vshrl.u32 %v23801_v46, 16 }
 0x8dc   : > { %8871 = vst [vmem:[#allocation4 + $0x78] sm:$0xff] %v23860_v25  ;;  %v8788_v37 = vmul.f32 %v23522_v27, %v8706_v40  ;;  %v8708_v11 = vadd.f32 %v23517_v10, %v8607_v48  ;;  %v8609_v14 = vpop.f32.mrb[59].mxu1  ;;  %10342 = vmatprep.mubr.bf16.mxu0 %v23860_v25  ;;  %vm8747_vm4 = vcmp.ge.f32.partialorder %v8706_v40, 0.0  ;;  %9554 = vmatprep.subr.bf16.mxu1 %v20483_v26  ;;  %v10514_v26 = vshrl.u32 %v23793_v36, 16 }
 0x8dd   : > { %v8789_v23 = vmul.f32 %v23522_v27, %v8707_v62  ;;  %v8709_v57 = vadd.f32 %v23520_v39, %v8609_v14  ;;  %10343 = vmatmul.mubr.bf16.gmra.mrb[52].mxu0 %v23851_v54  ;;  %vm8748_vm5 = vcmp.ge.f32.partialorder %v8707_v62, 0.0 }
 0x8de   : > { %vm8749_vm6 = vcmp.ge.f32.partialorder %v8708_v11, 0.0  ;;  %v8790_v31 = vmul.f32 %v23522_v27, %v8708_v11  ;;  %10753 = vmatpush1.bf16.msra.mxu0 %v20478_v6  ;;  %v8828_v41 = vsel %vm8747_vm4, %v8706_v40, %v8788_v37 }
 0x8df   : > { %vm8750_vm7 = vcmp.ge.f32.partialorder %v8709_v57, 0.0  ;;  %v8791_v44 = vmul.f32 %v23522_v27, %v8709_v57  ;;  %10754 = vmatprep.subr.bf16.mxu0 %v20486_v17  ;;  %v8829_v51 = vsel %vm8748_vm5, %v8707_v62, %v8789_v23  ;;  %9555 = vmatpush1.bf16.msra.mxu1 %v20481_v22 }
 0x8e0   : > { %v8830_v60 = vsel %vm8749_vm6, %v8708_v11, %v8790_v31  ;;  %9556 = vmatprep.subr.bf16.mxu1 %v20489_v5 }
 0x8e1   : > { %v8852_v33 = vpack.c.bf16 %v8830_v60, %v8828_v41  ;;  %v8831_v4 = vsel %vm8750_vm7, %v8709_v57, %v8791_v44  ;;  %v8613_v16 = vpop.f32.mrb[60].mxu1  ;;  %v20498_v57 = vld [vmem:[%s26145_s7 + $0x4f4] ss:$8 sps:$4 sm:$0xff]   ;;  %v20493_v44 = vld [vmem:[%s26145_s7 + $0xd0] ss:$8 sps:$4 sm:$0xff]  }
 0x8e2   : > { %v8853_v63 = vpack.c.bf16 %v8831_v4, %v8829_v51  ;;  %v8710_v32 = vadd.f32 %v23517_v10, %v8613_v16  ;;  %v8615_v15 = vpop.f32.mrb[61].mxu1  ;;  %v23912_v40 = vld [vmem:[#allocation4 + $0x70] sm:$0x1f]  ;;  %10755 = vmatpush1.bf16.msra.mxu0 %v20484_v24  ;;  %v23936_v24 = vor.u32 %v10522_v19, %v23842_v50  ;;  %v20501_v60 = vld [vmem:[%s26145_s7 + $0xe4] ss:$8 sps:$4 sm:$0xff]   ;;  %v23944_v51 = vor.u32 %v10514_v26, %v23847_v9 }
 0x8e3   : > { %8872 = vst [vmem:[#allocation4 + $0x80] sm:$0xff] %v8852_v33  ;;  %v8711_v62 = vadd.f32 %v23520_v39, %v8615_v15  ;;  %v8617_v48 = vpop.f32.mrb[62].mxu1  ;;  %v23920_v6 = vld [vmem:[#allocation4 + $0x78] sm:$0x1f]  ;;  %v9067_v37 = vshll.u32 %v23912_v40, 16  ;;  %10756 = vmatprep.subr.bf16.mxu0 %v20492_v7  ;;  %9557 = vmatpush1.bf16.msra.mxu1 %v20487_v35 }
 0x8e4   : > { %8873 = vst [vmem:[#allocation4 + $0x88] sm:$0xff] %v8853_v63  ;;  %vm8751_vm8 = vcmp.ge.f32.partialorder %v8710_v32, 0.0  ;;  %v8792_v11 = vmul.f32 %v23522_v27, %v8710_v32  ;;  %v8712_v14 = vadd.f32 %v23517_v10, %v8617_v48  ;;  %v8619_v17 = vpop.f32.mrb[63].mxu1  ;;  %v9075_v23 = vshll.u32 %v23920_v6, 16  ;;  %9558 = vmatprep.subr.bf16.mxu1 %v20495_v13  ;;  %v20496_v50 = vld [vmem:[%s26145_s7 + $0x4f0] ss:$8 sps:$4 sm:$0xff]  }
 0x8e5   : > { %vm8752_vm9 = vcmp.ge.f32.partialorder %v8711_v62, 0.0  ;;  %v8793_v22 = vmul.f32 %v23522_v27, %v8711_v62  ;;  %v8713_v31 = vadd.f32 %v23520_v39, %v8619_v17  ;;  %v9069_v5 = vrot.slane %v9067_v37, 1  ;;  %v20499_v9 = vld [vmem:[%s26145_s7 + $0xe0] ss:$8 sps:$4 sm:$0xff]   ;;  %v20504_v13 = vld [vmem:[%s26145_s7 + $0x504] ss:$8 sps:$4 sm:$0xff]  }
 0x8e6   : > { %vm8753_vm10 = vcmp.ge.f32.partialorder %v8712_v14, 0.0  ;;  %v8794_v10 = vmul.f32 %v23522_v27, %v8712_v14  ;;  %v9077_v41 = vrot.slane %v9075_v23, 1  ;;  %v8832_v39 = vsel %vm8751_vm8, %v8710_v32, %v8792_v11  ;;  %10757 = vmatpush1.bf16.msra.mxu0 %v20490_v21  ;;  %v20507_v19 = vld [vmem:[%s26145_s7 + $0xf4] ss:$8 sps:$4 sm:$0xff]   ;;  %v20505_v11 = vld [vmem:[%s26145_s7 + $0xf0] ss:$8 sps:$4 sm:$0xff]  }
 0x8e7   : > { %vm8754_vm11 = vcmp.ge.f32.partialorder %v8713_v31, 0.0  ;;  %v8795_v7 = vmul.f32 %v23522_v27, %v8713_v31  ;;  %v8833_v33 = vsel %vm8752_vm9, %v8711_v62, %v8793_v22  ;;  %v9082_v35 = vshrl.u32 %v23920_v6, 16  ;;  %10758 = vmatprep.subr.bf16.mxu0 %v20498_v57  ;;  %9559 = vmatpush1.bf16.msra.mxu1 %v20493_v44  ;;  %v20513_v23 = vld [vmem:[%s26145_s7 + $0x204] ss:$8 sps:$4 sm:$0xff]  }
 0x8e8   : > { %v8834_v4 = vsel %vm8753_vm10, %v8712_v14, %v8794_v10  ;;  %v9078_v16 = vsel %vm597_vm0, %v23936_v24, %v9077_v41  ;;  %v9070_v27 = vsel %vm597_vm0, %v23944_v51, %v9069_v5  ;;  %9560 = vmatprep.subr.bf16.mxu1 %v20501_v60  ;;  %v9079_v17 = vshrl.u32 %v23912_v40, 16  ;;  %v20508_v60 = vld [vmem:[%s26145_s7 + $0x510] ss:$8 sps:$4 sm:$0xff]  }
 0x8e9   : > { %v8854_v63 = vpack.c.bf16 %v8834_v4, %v8832_v39  ;;  %v8835_v32 = vsel %vm8754_vm11, %v8713_v31, %v8795_v7  ;;  %9353 = vmatprep.mubr.bf16.mxu1 %v9078_v16  ;;  %v9084_v15 = vor.u32 %v9082_v35, %v9077_v41  ;;  %v10944_v57 = vrot.slane %v23860_v25, 1  ;;  %v20510_v41 = vld [vmem:[%s26145_s7 + $0x514] ss:$8 sps:$4 sm:$0xff]   ;;  %v20511_v39 = vld [vmem:[%s26145_s7 + $0x200] ss:$8 sps:$4 sm:$0xff]  }
 0x8ea   : > { %v8855_v21 = vpack.c.bf16 %v8835_v32, %v8833_v33  ;;  %9354 = vmatmul.mubr.bf16.gmra.mrb[88].mxu1 %v9070_v27  ;;  %10759 = vmatpush1.bf16.msra.mxu0 %v20496_v50  ;;  %v23966_v48 = vld [vmem:[#allocation4 + $0x80] sm:$0x1f]  ;;  %v10942_v31 = vrot.slane %v23851_v54, 1  ;;  %v9081_v44 = vor.u32 %v9079_v17, %v9069_v5  ;;  %v20517_v7 = vld [vmem:[%s26145_s7 + $0x210] ss:$8 sps:$4 sm:$0xff]  }
 0x8eb   : > { %8874 = vst [vmem:[#allocation4 + $0x90] sm:$0x1f] %v8854_v63  ;;  %v10056_v26 = vld [vmem:[#allocation4 + $0x88] sm:$0xf]  ;;  %9363 = vmatprep.mubr.bf16.mxu1 %v9084_v15  ;;  %v10055_v37 = vld [vmem:[#allocation4 + $0x80] sm:$0xf]  ;;  %9561 = vmatpush1.bf16.msra.mxu1 %v20499_v9 }
 0x8ec   : > { %v23964_v62 = vld [vmem:[#allocation4 + $0x88] sm:$0x1f]  ;;  %8875 = vst [vmem:[#allocation4 + $0x98] sm:$0x1f] %v8855_v21  ;;  %10352 = vmatprep.mubr.bf16.mxu0 %v10056_v26  ;;  %11126 = vmatprep.subr.bf16.mxu0 %v20504_v13  ;;  %v10946_v22 = vrot.slane %v23966_v48, 1  ;;  %v10526_v21 = vshll.u32 %v23860_v25, 16 }
 0x8ed   : > { %10353 = vmatmul.mubr.bf16.gmra.mrb[56].mxu0 %v10055_v37  ;;  %v10948_v14 = vrot.slane %v23964_v62, 1  ;;  %9562 = vmatprep.subr.bf16.mxu1 %v20507_v19  ;;  %v20502_v5 = vld [vmem:[%s26145_s7 + $0x500] ss:$8 sps:$4 sm:$0xff]   ;;  %v20522_v50 = vld [vmem:[%s26145_s7 + $0x534] ss:$8 sps:$4 sm:$0xff]  }
 0x8ee   : > { %10760 = vmatprep.mubr.bf16.mxu0 %v23643_v47  ;;  %v23992_v10 = vsel %vm1135_vm2, %v10942_v31, %v10946_v22  ;;  %v20523_v33 = vld [vmem:[%s26145_s7 + $0x220] ss:$8 sps:$4 sm:$0xff]   ;;  %v20528_v4 = vld [vmem:[%s26145_s7 + $0x544] ss:$8 sps:$4 sm:$0xff]   ;;  %v20529_v16 = vld [vmem:[%s26145_s7 + $0x230] ss:$8 sps:$4 sm:$0xff]  }
 0x8ef   : > { %v23985_v47 = vsel %vm1135_vm2, %v10944_v57, %v10948_v14  ;;  %9563 = vmatpush1.bf16.msra.mxu1 %v20505_v11  ;;  %v20534_v35 = vld [vmem:[%s26145_s7 + $0x554] ss:$8 sps:$4 sm:$0xff]   ;;  %v20535_v63 = vld [vmem:[%s26145_s7 + $0x240] ss:$8 sps:$4 sm:$0xff]   ;;  %v20540_v32 = vld [vmem:[%s26145_s7 + $0x564] ss:$8 sps:$4 sm:$0xff]  }
 0x8f0   : > { %9900 = vmatprep.subr.bf16.mxu1 %v20513_v23  ;;  %v20541_v27 = vld [vmem:[%s26145_s7 + $0x250] ss:$8 sps:$4 sm:$0xff]   ;;  %v20546_v9 = vld [vmem:[%s26145_s7 + $0x574] ss:$8 sps:$4 sm:$0xff]   ;;  %v20547_v15 = vld [vmem:[%s26145_s7 + $0x260] ss:$8 sps:$4 sm:$0xff]  }
 0x8f1   : > { %v10528_v13 = vrot.slane %v10526_v21, 1  ;;  %v20550_v19 = vld [vmem:[%s26145_s7 + $0x580] ss:$8 sps:$4 sm:$0xff]   ;;  %v20553_v26 = vld [vmem:[%s26145_s7 + $0x270] ss:$8 sps:$4 sm:$0xff]   ;;  %v10518_v11 = vshll.u32 %v23851_v54, 16 }
 0x8f2   : > { %9364 = vmatmul.mubr.bf16.gmra.mrb[92].mxu1 %v9081_v44  ;;  %v20558_v37 = vld [vmem:[%s26145_s7 + $0x594] ss:$8 sps:$4 sm:$0xff]   ;;  %v10542_v23 = vshll.u32 %v23964_v62, 16  ;;  %v20556_v44 = vld [vmem:[%s26145_s7 + $0x590] ss:$8 sps:$4 sm:$0xff]  }
 0x8f3   : > { %9564 = vmatprep.mubr.bf16.mxu1 %v23534_v59  ;;  %v20516_v59 = vld [vmem:[%s26145_s7 + $0x524] ss:$8 sps:$4 sm:$0xff]   ;;  %v10529_v17 = vsel %vm597_vm0, %v23936_v24, %v10528_v13  ;;  %v20567_v24 = vld [vmem:[%s26145_s7 + $0x294] ss:$8 sps:$4 sm:$0xff]   ;;  %v20583_v21 = vld [vmem:[%s26145_s7 + $0x2c0] ss:$8 sps:$4 sm:$0xff]  }
 0x8f5   : > { %10761 = vmatmul.mubr.bf16.vlgmr.msra.gmra.mrb[28].mxu0 %v23655_v18  ;;  %v20519_v18 = vld [vmem:[%s26145_s7 + $0x214] ss:$8 sps:$4 sm:$0xff]  }
 0x8f6   : > { %10770 = vmatprep.mubr.bf16.mxu0 %v23688_v43  ;;  %11127 = vmatpush1.bf16.msra.mxu0 %v20502_v5  ;;  %v20514_v43 = vld [vmem:[%s26145_s7 + $0x520] ss:$8 sps:$4 sm:$0xff]  }
 0x8f7   : > { %11128 = vmatprep.subr.bf16.mxu0 %v20510_v41  ;;  %v20559_v5 = vld [vmem:[%s26145_s7 + $0x280] ss:$8 sps:$4 sm:$0xff]   ;;  %v10520_v41 = vrot.slane %v10518_v11, 1  ;;  %v20589_v11 = vld [vmem:[%s26145_s7 + $0x2d0] ss:$8 sps:$4 sm:$0xff]  }
 0x8fa   : > { %9565 = vmatmul.mubr.bf16.vlgmr.msra.gmra.mrb[64].mxu1 %v23532_v53  ;;  %11129 = vmatpush1.bf16.msra.mxu0 %v20508_v60  ;;  %v20525_v53 = vld [vmem:[%s26145_s7 + $0x224] ss:$8 sps:$4 sm:$0xff]   ;;  %v10538_v60 = vshrl.u32 %v23860_v25, 16  ;;  %v20636_v25 = vld [vmem:[%s26145_s7 + $0x6b4] ss:$8 sps:$4 sm:$0xff]  }
 0x8fb   : > { %9574 = vmatprep.mubr.bf16.mxu1 %v23550_v1  ;;  %9901 = vmatpush1.bf16.msra.mxu1 %v20511_v39  ;;  %v20520_v1 = vld [vmem:[%s26145_s7 + $0x530] ss:$8 sps:$4 sm:$0xff]   ;;  %v10544_v39 = vrot.slane %v10542_v23, 1  ;;  %v9644_v23 = vld [vmem:[#allocation4 + $0x8] sm:$0xfe] }
 0x8fc   : > { %11130 = vmatprep.subr.bf16.mxu0 %v20516_v59  ;;  %9902 = vmatprep.subr.bf16.mxu1 %v20519_v18  ;;  %v20562_v59 = vld [vmem:[%s26145_s7 + $0x5a0] ss:$8 sps:$4 sm:$0xff]   ;;  %v20565_v18 = vld [vmem:[%s26145_s7 + $0x290] ss:$8 sps:$4 sm:$0xff]  }
 0x8fd   : > { %10771 = vmatmul.mubr.bf16.gmra.mrb[32].mxu0 %v23706_v12  ;;  %v20531_v12 = vld [vmem:[%s26145_s7 + $0x234] ss:$8 sps:$4 sm:$0xff]  }
 0x8fe   : > { %10780 = vmatprep.mubr.bf16.mxu0 %v23742_v2  ;;  %11131 = vmatpush1.bf16.msra.mxu0 %v20514_v43  ;;  %v20526_v2 = vld [vmem:[%s26145_s7 + $0x540] ss:$8 sps:$4 sm:$0xff]   ;;  %v10540_v43 = vor.u32 %v10538_v60, %v10528_v13  ;;  %v21178_v60 = vld [vmem:[#allocation4 + $0x18] sm:$0xff] }
 0x8ff   : > { %9903 = vmatpush1.bf16.msra.mxu1 %v20517_v7  ;;  %11132 = vmatprep.subr.bf16.mxu0 %v20522_v50  ;;  %v20570_v7 = vld [vmem:[%s26145_s7 + $0x5b4] ss:$8 sps:$4 sm:$0xff]   ;;  %v20573_v50 = vld [vmem:[%s26145_s7 + $0x2a4] ss:$8 sps:$4 sm:$0xff]  }
 0x900   : > { %9904 = vmatprep.subr.bf16.mxu1 %v20525_v53  ;;  %v10534_v53 = vshll.u32 %v23966_v48, 16  ;;  %v21177_v13 = vld [vmem:[#allocation4 + $0x28] sm:$0xff] }
 0x902   : > { %9575 = vmatmul.mubr.bf16.gmra.mrb[68].mxu1 %v23548_v58  ;;  %11133 = vmatpush1.bf16.msra.mxu0 %v20520_v1  ;;  %v20537_v58 = vld [vmem:[%s26145_s7 + $0x244] ss:$8 sps:$4 sm:$0xff]   ;;  %v10545_v1 = vsel %vm597_vm0, %v10540_v43, %v10544_v39 }
 0x903   : > { %9584 = vmatprep.mubr.bf16.mxu1 %v23593_v49  ;;  %9905 = vmatpush1.bf16.msra.mxu1 %v20523_v33  ;;  %v20532_v49 = vld [vmem:[%s26145_s7 + $0x550] ss:$8 sps:$4 sm:$0xff]  }
 0x904   : > { %11134 = vmatprep.subr.bf16.mxu0 %v20528_v4  ;;  %9906 = vmatprep.subr.bf16.mxu1 %v20531_v12  ;;  %v20568_v33 = vld [vmem:[%s26145_s7 + $0x5b0] ss:$8 sps:$4 sm:$0xff]   ;;  %v10530_v4 = vshrl.u32 %v23851_v54, 16  ;;  %v10536_v12 = vrot.slane %v10534_v53, 1 }
 0x905   : > { %10781 = vmatmul.mubr.bf16.gmra.mrb[36].mxu0 %v23760_v38  ;;  %v20543_v38 = vld [vmem:[%s26145_s7 + $0x254] ss:$8 sps:$4 sm:$0xff]   ;;  %v8890_v53 = vld [vmem:[#allocation4 + $0x70] sm:$0xf] }
 0x906   : > { %10790 = vmatprep.mubr.bf16.mxu0 %v23796_v34  ;;  %11135 = vmatpush1.bf16.msra.mxu0 %v20526_v2  ;;  %v20538_v34 = vld [vmem:[%s26145_s7 + $0x560] ss:$8 sps:$4 sm:$0xff]   ;;  %v20576_v2 = vld [vmem:[%s26145_s7 + $0x5c4] ss:$8 sps:$4 sm:$0xff]  }
 0x907   : > { %9907 = vmatpush1.bf16.msra.mxu1 %v20529_v16  ;;  %11136 = vmatprep.subr.bf16.mxu0 %v20534_v35  ;;  %v20579_v16 = vld [vmem:[%s26145_s7 + $0x2b4] ss:$8 sps:$4 sm:$0xff]   ;;  %v10532_v35 = vor.u32 %v10530_v4, %v10520_v41  ;;  %v20598_v4 = vld [vmem:[%s26145_s7 + $0x600] ss:$8 sps:$4 sm:$0xff]  }
 0x908   : > { %9908 = vmatprep.subr.bf16.mxu1 %v20537_v58  ;;  %v20574_v58 = vld [vmem:[%s26145_s7 + $0x5c0] ss:$8 sps:$4 sm:$0xff]  }
 0x90a   : > { %9585 = vmatmul.mubr.bf16.gmra.mrb[72].mxu1 %v23587_v55  ;;  %11137 = vmatpush1.bf16.msra.mxu0 %v20532_v49  ;;  %v20549_v55 = vld [vmem:[%s26145_s7 + $0x264] ss:$8 sps:$4 sm:$0xff]   ;;  %v10549_v49 = vshrl.u32 %v23964_v62, 16  ;;  %v20648_v62 = vld [vmem:[%s26145_s7 + $0x6f4] ss:$8 sps:$4 sm:$0xff]  }
 0x90b   : > { %9594 = vmatprep.mubr.bf16.mxu1 %v23639_v28  ;;  %9909 = vmatpush1.bf16.msra.mxu1 %v20535_v63  ;;  %v20544_v28 = vld [vmem:[%s26145_s7 + $0x570] ss:$8 sps:$4 sm:$0xff]  }
 0x90c   : > { %11138 = vmatprep.subr.bf16.mxu0 %v20540_v32  ;;  %9910 = vmatprep.subr.bf16.mxu1 %v20543_v38  ;;  %v20577_v63 = vld [vmem:[%s26145_s7 + $0x2b0] ss:$8 sps:$4 sm:$0xff]   ;;  %v20582_v32 = vld [vmem:[%s26145_s7 + $0x5d4] ss:$8 sps:$4 sm:$0xff]   ;;  %v10537_v38 = vsel %vm597_vm0, %v10532_v35, %v10536_v12 }
 0x90d   : > { %10791 = vmatmul.mubr.bf16.gmra.mrb[40].mxu0 %v23814_v3  ;;  %v20552_v3 = vld [vmem:[%s26145_s7 + $0x584] ss:$8 sps:$4 sm:$0xff]  }
 0x90e   : > { %10800 = vmatprep.mubr.bf16.mxu0 %v23855_v29  ;;  %11139 = vmatpush1.bf16.msra.mxu0 %v20538_v34  ;;  %v20555_v29 = vld [vmem:[%s26145_s7 + $0x274] ss:$8 sps:$4 sm:$0xff]   ;;  %v10551_v34 = vor.u32 %v10549_v49, %v10544_v39  ;;  %v9698_v39 = vrot.slane %v21178_v60, 1  ;;  %v20619_v60 = vld [vmem:[%s26145_s7 + $0x660] ss:$8 sps:$4 sm:$0xff]  }
 0x90f   : > { %9911 = vmatpush1.bf16.msra.mxu1 %v20541_v27  ;;  %11140 = vmatprep.subr.bf16.mxu0 %v20546_v9  ;;  %v20585_v27 = vld [vmem:[%s26145_s7 + $0x2c4] ss:$8 sps:$4 sm:$0xff]   ;;  %v20580_v9 = vld [vmem:[%s26145_s7 + $0x5d0] ss:$8 sps:$4 sm:$0xff]  }
 0x910   : > { %9912 = vmatprep.subr.bf16.mxu1 %v20549_v55  ;;  %v10870_v55 = vld [vmem:[#allocation4 + $0x18] sm:$0xfe] }
 0x912   : > { %9595 = vmatmul.mubr.bf16.gmra.mrb[76].mxu1 %v23633_v30  ;;  %11141 = vmatpush1.bf16.msra.mxu0 %v20544_v28  ;;  %v20561_v30 = vld [vmem:[%s26145_s7 + $0x284] ss:$8 sps:$4 sm:$0xff]  }
 0x913   : > { %9604 = vmatprep.mubr.bf16.mxu1 %v23693_v56  ;;  %9913 = vmatpush1.bf16.msra.mxu1 %v20547_v15  ;;  %v20588_v28 = vld [vmem:[%s26145_s7 + $0x5e4] ss:$8 sps:$4 sm:$0xff]   ;;  %v20591_v15 = vld [vmem:[%s26145_s7 + $0x2d4] ss:$8 sps:$4 sm:$0xff]  }
 0x914   : > { %11142 = vmatprep.subr.bf16.mxu0 %v20552_v3  ;;  %9914 = vmatprep.subr.bf16.mxu1 %v20555_v29  ;;  %v10546_v3 = vshrl.u32 %v23966_v48, 16  ;;  %v10923_v29 = vrot.slane %v10870_v55, 1  ;;  %v20649_v48 = vld [vmem:[%s26145_s7 + $0x700] ss:$8 sps:$4 sm:$0xff]  }
 0x915   : > { %10801 = vmatmul.mubr.bf16.gmra.mrb[44].mxu0 %v23874_v8  ;;  %v20564_v8 = vld [vmem:[%s26145_s7 + $0x5a4] ss:$8 sps:$4 sm:$0xff]  }
 0x916   : > { %10810 = vmatprep.mubr.bf16.mxu0 %v10529_v17  ;;  %11143 = vmatpush1.bf16.msra.mxu0 %v20550_v19  ;;  %v24192_v19 = vrot.slane %v21177_v13, 1  ;;  %v20594_v17 = vld [vmem:[%s26145_s7 + $0x5f4] ss:$8 sps:$4 sm:$0xff]   ;;  %v20610_v13 = vld [vmem:[%s26145_s7 + $0x630] ss:$8 sps:$4 sm:$0xff]  }
 0x917   : > { %9915 = vmatpush1.bf16.msra.mxu1 %v20553_v26  ;;  %11144 = vmatprep.subr.bf16.mxu0 %v20558_v37  ;;  %v8891_v26 = vld [vmem:[#allocation4 + $0x78] sm:$0xf]  ;;  %v20586_v37 = vld [vmem:[%s26145_s7 + $0x5e0] ss:$8 sps:$4 sm:$0xff]  }
 0x918   : > { %9916 = vmatprep.subr.bf16.mxu1 %v20561_v30  ;;  %v10548_v30 = vor.u32 %v10546_v3, %v10536_v12  ;;  %v9643_v12 = vld [vmem:[#allocation4] sm:$0xfe]  ;;  %v20612_v3 = vld [vmem:[%s26145_s7 + $0x634] ss:$8 sps:$4 sm:$0xff]  }
 0x919   : > { %v9694_v49 = vrot.slane %v9643_v12, 1  ;;  %v20639_v12 = vld [vmem:[%s26145_s7 + $0x6c4] ss:$8 sps:$4 sm:$0xff]  }
 0x91a   : > { %9605 = vmatmul.mubr.bf16.gmra.mrb[80].mxu1 %v23685_v20  ;;  %11145 = vmatpush1.bf16.msra.mxu0 %v20556_v44  ;;  %v10521_v20 = vsel %vm597_vm0, %v23944_v51, %v10520_v41  ;;  %v20571_v51 = vld [vmem:[%s26145_s7 + $0x2a0] ss:$8 sps:$4 sm:$0xff]   ;;  %v20597_v44 = vld [vmem:[%s26145_s7 + $0x2e4] ss:$8 sps:$4 sm:$0xff]   ;;  %v10869_v41 = vld [vmem:[#allocation4 + $0x10] sm:$0xfe] }
 0x91b   : > { %9614 = vmatprep.mubr.bf16.mxu1 %v23747_v61  ;;  %9917 = vmatpush1.bf16.msra.mxu1 %v20559_v5  ;;  %v10925_v5 = vsel %vm1135_vm2, %v10923_v29, %v24192_v19 }
 0x91c   : > { %11146 = vmatprep.subr.bf16.mxu0 %v20564_v8  ;;  %9918 = vmatprep.subr.bf16.mxu1 %v20567_v24  ;;  %v20592_v8 = vld [vmem:[%s26145_s7 + $0x5f0] ss:$8 sps:$4 sm:$0xff]   ;;  %v9697_v24 = vrot.slane %v9644_v23, 1  ;;  %v20618_v23 = vld [vmem:[%s26145_s7 + $0x654] ss:$8 sps:$4 sm:$0xff]  }
 0x91d   : > { %10811 = vmatmul.mubr.bf16.gmra.mrb[48].mxu0 %v10521_v20  ;;  %v20600_v20 = vld [vmem:[%s26145_s7 + $0x604] ss:$8 sps:$4 sm:$0xff]  }
 0x91e   : > { %10820 = vmatprep.mubr.bf16.mxu0 %v10545_v1  ;;  %11147 = vmatpush1.bf16.msra.mxu0 %v20562_v59  ;;  %v20595_v59 = vld [vmem:[%s26145_s7 + $0x2e0] ss:$8 sps:$4 sm:$0xff]   ;;  %v21180_v1 = vld [vmem:[#allocation4 + $0x38] sm:$0xff] }
 0x91f   : > { %9919 = vmatpush1.bf16.msra.mxu1 %v20565_v18  ;;  %11148 = vmatprep.subr.bf16.mxu0 %v20570_v7  ;;  %v21179_v18 = vld [vmem:[#allocation4 + $0x20] sm:$0xff]  ;;  %v10920_v7 = vrot.slane %v10869_v41, 1 }
 0x920   : > { %9920 = vmatprep.subr.bf16.mxu1 %v20573_v50  ;;  %v10921_v43 = vrot.slane %v21179_v18, 1  ;;  %v20603_v50 = vld [vmem:[%s26145_s7 + $0x2f4] ss:$8 sps:$4 sm:$0xff]   ;;  %v20621_v41 = vld [vmem:[%s26145_s7 + $0x664] ss:$8 sps:$4 sm:$0xff]  }
 0x922   : > { %9615 = vmatmul.mubr.bf16.gmra.mrb[84].mxu1 %v23739_v45  ;;  %11149 = vmatpush1.bf16.msra.mxu0 %v20568_v33  ;;  %v10928_v33 = vrot.slane %v21180_v1, 1  ;;  %v10922_v35 = vsel %vm1135_vm2, %v10920_v7, %v10921_v43  ;;  %v20625_v7 = vld [vmem:[%s26145_s7 + $0x680] ss:$8 sps:$4 sm:$0xff]   ;;  %v20633_v1 = vld [vmem:[%s26145_s7 + $0x6a4] ss:$8 sps:$4 sm:$0xff]  }
 0x923   : > { %9624 = vmatprep.mubr.bf16.mxu1 %v23801_v46  ;;  %9921 = vmatpush1.bf16.msra.mxu1 %v20571_v51  ;;  %v9699_v51 = vsel %vm1135_vm2, %v9697_v24, %v9698_v39  ;;  %v10940_v24 = vrot.slane %v23801_v46, 1  ;;  %v20627_v46 = vld [vmem:[%s26145_s7 + $0x684] ss:$8 sps:$4 sm:$0xff]  }
 0x924   : > { %11150 = vmatprep.subr.bf16.mxu0 %v20576_v2  ;;  %9922 = vmatprep.subr.bf16.mxu1 %v20579_v16  ;;  %v20601_v2 = vld [vmem:[%s26145_s7 + $0x2f0] ss:$8 sps:$4 sm:$0xff]   ;;  %v20606_v16 = vld [vmem:[%s26145_s7 + $0x614] ss:$8 sps:$4 sm:$0xff]  }
 0x925   : > { %10821 = vmatmul.mubr.bf16.gmra.mrb[52].mxu0 %v10537_v38  ;;  %v20604_v38 = vld [vmem:[%s26145_s7 + $0x610] ss:$8 sps:$4 sm:$0xff]  }
 0x926   : > { %10830 = vmatprep.mubr.bf16.mxu0 %v10551_v34  ;;  %11151 = vmatpush1.bf16.msra.mxu0 %v20574_v58  ;;  %v10929_v58 = vsel %vm1135_vm2, %v24192_v19, %v10928_v33  ;;  %v20609_v34 = vld [vmem:[%s26145_s7 + $0x624] ss:$8 sps:$4 sm:$0xff]  }
 0x927   : > { %9923 = vmatpush1.bf16.msra.mxu1 %v20577_v63  ;;  %11152 = vmatprep.subr.bf16.mxu0 %v20582_v32  ;;  %v21181_v63 = vld [vmem:[#allocation4 + $0x10] sm:$0xff] }
 0x928   : > { %9924 = vmatprep.subr.bf16.mxu1 %v20585_v27  ;;  %v9695_v32 = vrot.slane %v21181_v63, 1  ;;  %v21182_v27 = vld [vmem:[#allocation4 + $0x30] sm:$0xff]  ;;  %v24368_v63 = vld [vmem:[#allocation4 + $0x38] sm:$0xff] }
 0x92a   : > { %9625 = vmatmul.mubr.bf16.gmra.mrb[88].mxu1 %v23793_v36  ;;  %11153 = vmatpush1.bf16.msra.mxu0 %v20580_v9  ;;  %v10926_v9 = vrot.slane %v21182_v27, 1  ;;  %v9696_v55 = vsel %vm1135_vm2, %v9694_v49, %v9695_v32  ;;  %v24365_v49 = vld [vmem:[#allocation4 + $0x20] sm:$0xff]  ;;  %v20660_v27 = vld [vmem:[%s26145_s7 + $0x734] ss:$8 sps:$4 sm:$0xff]  }
 0x92b   : > { %9634 = vmatprep.mubr.bf16.mxu1 %v8891_v26  ;;  %9925 = vmatpush1.bf16.msra.mxu1 %v20583_v21  ;;  %v10932_v21 = vrot.slane %v23693_v56, 1  ;;  %v21183_v26 = vld [vmem:[#allocation4 + $0x40] sm:$0xff] }
 0x92c   : > { %11154 = vmatprep.subr.bf16.mxu0 %v20588_v28  ;;  %9926 = vmatprep.subr.bf16.mxu1 %v20591_v15  ;;  %v9703_v28 = vsel %vm1135_vm2, %v9698_v39, %v24192_v19  ;;  %v20607_v15 = vld [vmem:[%s26145_s7 + $0x620] ss:$8 sps:$4 sm:$0xff]   ;;  %v10927_v29 = vsel %vm1135_vm2, %v10921_v43, %v10926_v9  ;;  %v20615_v19 = vld [vmem:[%s26145_s7 + $0x644] ss:$8 sps:$4 sm:$0xff]   ;;  %v20624_v39 = vld [vmem:[%s26145_s7 + $0x674] ss:$8 sps:$4 sm:$0xff]  }
 0x92d   : > { %10831 = vmatmul.mubr.bf16.gmra.mrb[60].mxu0 %v10548_v30  ;;  %v10933_v56 = vsel %vm1135_vm2, %v10928_v33, %v10932_v21  ;;  %v9701_v30 = vsel %vm1135_vm2, %v9695_v32, %v10921_v43  ;;  %v10938_v43 = vrot.slane %v23793_v36, 1  ;;  %v20628_v36 = vld [vmem:[%s26145_s7 + $0x690] ss:$8 sps:$4 sm:$0xff]   ;;  %v20631_v33 = vld [vmem:[%s26145_s7 + $0x6a0] ss:$8 sps:$4 sm:$0xff]  }
 0x92e   : > { %11155 = vmatpush1.bf16.msra.mxu0 %v20586_v37  ;;  %11158 = vmatprep.mubr.bf16.mxu0 %v10925_v5  ;;  %v10930_v37 = vrot.slane %v21183_v26, 1  ;;  %v20652_v32 = vld [vmem:[%s26145_s7 + $0x710] ss:$8 sps:$4 sm:$0xff]   ;;  %v20667_v26 = vld [vmem:[%s26145_s7 + $0x760] ss:$8 sps:$4 sm:$0xff]  }
 0x92f   : > { %9927 = vmatpush1.bf16.msra.mxu1 %v20589_v11  ;;  %11156 = vmatprep.subr.bf16.mxu0 %v20594_v17  ;;  %v10936_v11 = vrot.slane %v23747_v61, 1  ;;  %v20613_v17 = vld [vmem:[%s26145_s7 + $0x640] ss:$8 sps:$4 sm:$0xff]   ;;  %v20616_v61 = vld [vmem:[%s26145_s7 + $0x650] ss:$8 sps:$4 sm:$0xff]  }
 0x930   : > { %9928 = vmatprep.subr.bf16.mxu1 %v20597_v44  ;;  %v10931_v44 = vsel %vm1135_vm2, %v10926_v9, %v10930_v37  ;;  %v24383_v9 = vld [vmem:[#allocation4 + $0x30] sm:$0xff] }
 0x931   : > { %v10937_v5 = vsel %vm1135_vm2, %v10932_v21, %v10936_v11  ;;  %v10941_v18 = vsel %vm1135_vm2, %v10936_v11, %v10940_v24  ;;  %v20658_v21 = vld [vmem:[%s26145_s7 + $0x730] ss:$8 sps:$4 sm:$0xff]   ;;  %v24422_v11 = vld [vmem:[#allocation4 + $0x68] sm:$0xff] }
 0x932   : > { %9635 = vmatmul.mubr.bf16.gmra.mrb[96].mxu1 %v8890_v53  ;;  %11157 = vmatpush1.bf16.msra.mxu0 %v20592_v8  ;;  %v10934_v8 = vrot.slane %v23739_v45, 1  ;;  %v20622_v45 = vld [vmem:[%s26145_s7 + $0x670] ss:$8 sps:$4 sm:$0xff]   ;;  %v10945_v53 = vsel %vm1135_vm2, %v10940_v24, %v10944_v57  ;;  %v10943_v57 = vsel %vm1135_vm2, %v10938_v43, %v10942_v31  ;;  %v20637_v31 = vld [vmem:[%s26145_s7 + $0x6c0] ss:$8 sps:$4 sm:$0xff]  }
 0x933   : > { %9929 = vmatpush1.bf16.msra.mxu1 %v20595_v59  ;;  %9932 = vmatprep.mubr.bf16.mxu1 %v9699_v51  ;;  %v20634_v51 = vld [vmem:[%s26145_s7 + $0x6b0] ss:$8 sps:$4 sm:$0xff]  }
 0x934   : > { %11476 = vmatprep.subr.bf16.mxu0 %v20600_v20  ;;  %9930 = vmatprep.subr.bf16.mxu1 %v20603_v50  ;;  %v10935_v59 = vsel %vm1135_vm2, %v10930_v37, %v10934_v8  ;;  %v20630_v20 = vld [vmem:[%s26145_s7 + $0x694] ss:$8 sps:$4 sm:$0xff]   ;;  %v10939_v50 = vsel %vm1135_vm2, %v10934_v8, %v10938_v43  ;;  %v20676_v8 = vld [vmem:[%s26145_s7 + $0x790] ss:$8 sps:$4 sm:$0xff]  }
 0x935   : > { %11159 = vmatmul.mubr.bf16.vlgmr.msra.gmra.mrb[28].mxu0 %v10922_v35  ;;  %v20672_v37 = vld [vmem:[%s26145_s7 + $0x774] ss:$8 sps:$4 sm:$0xff]  }
 0x936   : > { %11168 = vmatprep.mubr.bf16.mxu0 %v10929_v58  ;;  %11477 = vmatpush1.bf16.msra.mxu0 %v20598_v4  ;;  %v9722_v4 = vrot.slane %v23920_v6, 1  ;;  %v9720_v6 = vrot.slane %v23912_v40, 1  ;;  %v20643_v40 = vld [vmem:[%s26145_s7 + $0x6e0] ss:$8 sps:$4 sm:$0xff]  }
 0x937   : > { %9931 = vmatpush1.bf16.msra.mxu1 %v20601_v2  ;;  %11478 = vmatprep.subr.bf16.mxu0 %v20606_v16  ;;  %v20640_v2 = vld [vmem:[%s26145_s7 + $0x6d0] ss:$8 sps:$4 sm:$0xff]   ;;  %v20645_v16 = vld [vmem:[%s26145_s7 + $0x6e4] ss:$8 sps:$4 sm:$0xff]  }
 0x938   : > { %v9723_v54 = vsel %vm1135_vm2, %v10940_v24, %v9722_v4  ;;  %v9721_v35 = vsel %vm1135_vm2, %v10938_v43, %v9720_v6  ;;  %v20681_v24 = vld [vmem:[%s26145_s7 + $0x7a4] ss:$8 sps:$4 sm:$0xff]   ;;  %v20685_v43 = vld [vmem:[%s26145_s7 + $0x7c0] ss:$8 sps:$4 sm:$0xff]  }
 0x93a   : > { %9933 = vmatmul.mubr.bf16.vlgmr.msra.gmra.mrb[64].mxu1 %v9696_v55  ;;  %11479 = vmatpush1.bf16.msra.mxu0 %v20604_v38  ;;  %v20657_v38 = vld [vmem:[%s26145_s7 + $0x724] ss:$8 sps:$4 sm:$0xff]  }
 0x93b   : > { %9942 = vmatprep.mubr.bf16.mxu1 %v9703_v28  ;;  %11480 = vmatprep.subr.bf16.mxu0 %v20609_v34  ;;  %v20655_v34 = vld [vmem:[%s26145_s7 + $0x720] ss:$8 sps:$4 sm:$0xff]   ;;  %v20663_v28 = vld [vmem:[%s26145_s7 + $0x744] ss:$8 sps:$4 sm:$0xff]  }
 0x93c   : > { %v24386_v55 = vld [vmem:[#allocation4 + $0x48] sm:$0xff] }
 0x93d   : > { %11169 = vmatmul.mubr.bf16.gmra.mrb[32].mxu0 %v10927_v29 }
 0x93e   : > { %11178 = vmatprep.mubr.bf16.mxu0 %v10933_v56  ;;  %11481 = vmatpush1.bf16.msra.mxu0 %v20607_v15  ;;  %v20661_v15 = vld [vmem:[%s26145_s7 + $0x740] ss:$8 sps:$4 sm:$0xff]  }
 0x93f   : > { %11482 = vmatprep.subr.bf16.mxu0 %v20612_v3  ;;  %v20666_v3 = vld [vmem:[%s26145_s7 + $0x754] ss:$8 sps:$4 sm:$0xff]  }
 0x942   : > { %9943 = vmatmul.mubr.bf16.gmra.mrb[68].mxu1 %v9701_v30  ;;  %11483 = vmatpush1.bf16.msra.mxu0 %v20610_v13  ;;  %v20664_v13 = vld [vmem:[%s26145_s7 + $0x750] ss:$8 sps:$4 sm:$0xff]  }
 0x943   : > { %9952 = vmatprep.mubr.bf16.mxu1 %v10929_v58  ;;  %11484 = vmatprep.subr.bf16.mxu0 %v20615_v19  ;;  %v20651_v58 = vld [vmem:[%s26145_s7 + $0x704] ss:$8 sps:$4 sm:$0xff]   ;;  %v24419_v30 = vld [vmem:[#allocation4 + $0x50] sm:$0xff] }
 0x944   : > { %v20669_v19 = vld [vmem:[%s26145_s7 + $0x764] ss:$8 sps:$4 sm:$0xff]  }
 0x945   : > { %11179 = vmatmul.mubr.bf16.gmra.mrb[36].mxu0 %v10931_v44 }
 0x946   : > { %11188 = vmatprep.mubr.bf16.mxu0 %v10937_v5  ;;  %11485 = vmatpush1.bf16.msra.mxu0 %v20613_v17  ;;  %v20670_v17 = vld [vmem:[%s26145_s7 + $0x770] ss:$8 sps:$4 sm:$0xff]  }
 0x947   : > { %11486 = vmatprep.subr.bf16.mxu0 %v20618_v23  ;;  %v20675_v23 = vld [vmem:[%s26145_s7 + $0x784] ss:$8 sps:$4 sm:$0xff]  }
 0x94a   : > { %9953 = vmatmul.mubr.bf16.gmra.mrb[72].mxu1 %v10927_v29  ;;  %11487 = vmatpush1.bf16.msra.mxu0 %v20616_v61  ;;  %v24401_v29 = vld [vmem:[#allocation4 + $0x40] sm:$0xff] }
 0x94b   : > { %9962 = vmatprep.mubr.bf16.mxu1 %v10933_v56  ;;  %11488 = vmatprep.subr.bf16.mxu0 %v20621_v41  ;;  %v24404_v56 = vld [vmem:[#allocation4 + $0x58] sm:$0xff]  ;;  %v24437_v61 = vld [vmem:[#allocation4 + $0x60] sm:$0xff] }
 0x94c   : > { %v24440_v41 = vld [vmem:[#allocation4 + $0x78] sm:$0xff] }
 0x94d   : > { %11189 = vmatmul.mubr.bf16.gmra.mrb[40].mxu0 %v10935_v59 }
 0x94e   : > { %11198 = vmatprep.mubr.bf16.mxu0 %v10941_v18  ;;  %11489 = vmatpush1.bf16.msra.mxu0 %v20619_v60  ;;  %v20679_v60 = vld [vmem:[%s26145_s7 + $0x7a0] ss:$8 sps:$4 sm:$0xff]  }
 0x94f   : > { %11490 = vmatprep.subr.bf16.mxu0 %v20624_v39  ;;  %v20684_v39 = vld [vmem:[%s26145_s7 + $0x7b4] ss:$8 sps:$4 sm:$0xff]  }
 0x952   : > { %9963 = vmatmul.mubr.bf16.gmra.mrb[76].mxu1 %v10931_v44  ;;  %11491 = vmatpush1.bf16.msra.mxu0 %v20622_v45  ;;  %v20673_v44 = vld [vmem:[%s26145_s7 + $0x780] ss:$8 sps:$4 sm:$0xff]   ;;  %v20682_v45 = vld [vmem:[%s26145_s7 + $0x7b0] ss:$8 sps:$4 sm:$0xff]  }
 0x953   : > { %9972 = vmatprep.mubr.bf16.mxu1 %v10937_v5  ;;  %11492 = vmatprep.subr.bf16.mxu0 %v20627_v46  ;;  %v20678_v5 = vld [vmem:[%s26145_s7 + $0x794] ss:$8 sps:$4 sm:$0xff]   ;;  %v20687_v46 = vld [vmem:[%s26145_s7 + $0x7c4] ss:$8 sps:$4 sm:$0xff]  }
 0x955   : > { %11199 = vmatmul.mubr.bf16.gmra.mrb[44].mxu0 %v10939_v50 }
 0x956   : > { %11208 = vmatprep.mubr.bf16.mxu0 %v10945_v53  ;;  %11493 = vmatpush1.bf16.msra.mxu0 %v20625_v7  ;;  %v11282_v53 = vld [vmem:[#allocation4 + $0x98] sm:$0xf] }
 0x957   : > { %11494 = vmatprep.subr.bf16.mxu0 %v20630_v20  ;;  %v20690_v20 = vld [vmem:[%s26145_s7 + $0x7d4] ss:$8 sps:$4 sm:$0xff]  }
 0x95a   : > { %9973 = vmatmul.mubr.bf16.gmra.mrb[80].mxu1 %v10935_v59  ;;  %11495 = vmatpush1.bf16.msra.mxu0 %v20628_v36  ;;  %v24455_v59 = vld [vmem:[#allocation4 + $0x70] sm:$0xff]  ;;  %v11672_v36 = vshll.u32 %v24368_v63, 16 }
 0x95b   : > { %9982 = vmatprep.mubr.bf16.mxu1 %v10941_v18  ;;  %11496 = vmatprep.subr.bf16.mxu0 %v20633_v1  ;;  %v24458_v18 = vld [vmem:[#allocation4 + $0x88] sm:$0xff]  ;;  %v20688_v1 = vld [vmem:[%s26145_s7 + $0x7d0] ss:$8 sps:$4 sm:$0xff]  }
 0x95d   : > { %11209 = vmatmul.mubr.bf16.gmra.mrb[48].mxu0 %v10943_v57 }
 0x95e   : > { %11218 = vmatprep.mubr.bf16.mxu0 %v23985_v47  ;;  %11497 = vmatpush1.bf16.msra.mxu0 %v20631_v33  ;;  %v20642_v47 = vld [vmem:[%s26145_s7 + $0x6d4] ss:$8 sps:$4 sm:$0xff]  }
 0x95f   : > { %11498 = vmatprep.subr.bf16.mxu0 %v20636_v25  ;;  %v20693_v25 = vld [vmem:[%s26145_s7 + $0x7e4] ss:$8 sps:$4 sm:$0xff]  }
 0x962   : > { %9983 = vmatmul.mubr.bf16.gmra.mrb[84].mxu1 %v10939_v50  ;;  %11499 = vmatpush1.bf16.msra.mxu0 %v20634_v51  ;;  %v24474_v50 = vld [vmem:[#allocation4 + $0x80] sm:$0xff]  ;;  %v11674_v51 = vrot.slane %v11672_v36, 1 }
 0x963   : > { %9992 = vmatprep.mubr.bf16.mxu1 %v9723_v54  ;;  %11500 = vmatprep.subr.bf16.mxu0 %v20639_v12  ;;  %v20691_v12 = vld [vmem:[%s26145_s7 + $0x7e0] ss:$8 sps:$4 sm:$0xff]  }
 0x965   : > { %11219 = vmatmul.mubr.bf16.gmra.mrb[52].mxu0 %v23992_v10  ;;  %v20646_v10 = vld [vmem:[%s26145_s7 + $0x6f0] ss:$8 sps:$4 sm:$0xff]  }
 0x966   : > { %11228 = vmatprep.mubr.bf16.mxu0 %v10948_v14  ;;  %11501 = vmatpush1.bf16.msra.mxu0 %v20637_v31  ;;  %v24350_v14 = vld [vmem:[#allocation4 + $0x28] sm:$0xff]  ;;  %v20696_v31 = vld [vmem:[%s26145_s7 + $0x7f4] ss:$8 sps:$4 sm:$0xff]  }
 0x967   : > { %11502 = vmatprep.subr.bf16.mxu0 %v20642_v47  ;;  %v11667_v7 = vshll.u32 %v24350_v14, 16  ;;  %v11665_v57 = vshrl.u32 %v24350_v14, 16  ;;  %v11660_v47 = vshll.u32 %v24383_v9, 16 }
 0x969   : > { %v11669_v33 = vrot.slane %v11667_v7, 1 }
 0x96a   : > { %9993 = vmatmul.mubr.bf16.gmra.mrb[88].mxu1 %v9721_v35  ;;  %11503 = vmatpush1.bf16.msra.mxu0 %v20640_v2 }
 0x96b   : > { %10002 = vmatprep.mubr.bf16.mxu1 %v9722_v4  ;;  %11504 = vmatprep.subr.bf16.mxu0 %v20645_v16  ;;  %v11655_v4 = vshll.u32 %v24365_v49, 16  ;;  %v11670_v54 = vor.u32 %v11669_v33, %v11665_v57  ;;  %v11688_v16 = vshll.u32 %v24386_v55, 16  ;;  %v20709_v57 = vld [vmem:[%s26145_s7 + $0x840] ss:$8 sps:$4 sm:$0xff]  }
 0x96d   : > { %11229 = vmatmul.mubr.bf16.gmra.mrb[64].mxu0 %v10946_v22  ;;  %v20654_v22 = vld [vmem:[%s26145_s7 + $0x714] ss:$8 sps:$4 sm:$0xff]   ;;  %v11675_v2 = vsel %vm597_vm0, %v11670_v54, %v11674_v51  ;;  %v11657_v35 = vrot.slane %v11655_v4, 1 }
 0x96e   : > { %11505 = vmatpush1.bf16.msra.mxu0 %v20643_v40  ;;  %11508 = vmatprep.mubr.bf16.mxu0 %v24350_v14  ;;  %v20694_v40 = vld [vmem:[%s26145_s7 + $0x7f0] ss:$8 sps:$4 sm:$0xff]   ;;  %v11653_v14 = vshrl.u32 %v24365_v49, 16 }
 0x96f   : > { %11506 = vmatprep.subr.bf16.mxu0 %v20648_v62  ;;  %v20699_v62 = vld [vmem:[%s26145_s7 + $0x804] ss:$8 sps:$4 sm:$0xff]  }
 0x972   : > { %10003 = vmatmul.mubr.bf16.gmra.mrb[100].mxu1 %v9720_v6  ;;  %11507 = vmatpush1.bf16.msra.mxu0 %v20646_v10  ;;  %v11281_v6 = vld [vmem:[#allocation4 + $0x90] sm:$0xf]  ;;  %v11662_v10 = vrot.slane %v11660_v47, 1 }
 0x973   : > { %11954 = vmatprep.subr.bf16.mxu0 %v20651_v58  ;;  %v11684_v58 = vshrl.u32 %v24368_v63, 16 }
 0x975   : > { %11509 = vmatmul.mubr.bf16.vlgmr.msra.gmra.mrb[28].mxu0 %v24365_v49  ;;  %v11680_v49 = vshll.u32 %v24401_v29, 16 }
 0x976   : > { %11518 = vmatprep.mubr.bf16.mxu0 %v24368_v63  ;;  %11955 = vmatpush1.bf16.msra.mxu0 %v20649_v48  ;;  %v11690_v48 = vrot.slane %v11688_v16, 1 }
 0x977   : > { %11956 = vmatprep.subr.bf16.mxu0 %v20654_v22  ;;  %v11658_v22 = vor.u32 %v11657_v35, %v11653_v14  ;;  %v20712_v35 = vld [vmem:[%s26145_s7 + $0x850] ss:$8 sps:$4 sm:$0xff]   ;;  %v11708_v14 = vshrl.u32 %v24419_v30, 16 }
 0x97a   : > { %11957 = vmatpush1.bf16.msra.mxu0 %v20652_v32  ;;  %v20697_v32 = vld [vmem:[%s26145_s7 + $0x800] ss:$8 sps:$4 sm:$0xff]  }
 0x97b   : > { %11958 = vmatprep.subr.bf16.mxu0 %v20657_v38  ;;  %v11686_v38 = vor.u32 %v11684_v58, %v11674_v51 }
 0x97d   : > { %11519 = vmatmul.mubr.bf16.gmra.mrb[32].mxu0 %v24383_v9 }
 0x97e   : > { %11528 = vmatprep.mubr.bf16.mxu0 %v24386_v55  ;;  %11959 = vmatpush1.bf16.msra.mxu0 %v20655_v34  ;;  %v20702_v34 = vld [vmem:[%s26145_s7 + $0x814] ss:$8 sps:$4 sm:$0xff]  }
 0x97f   : > { %11960 = vmatprep.subr.bf16.mxu0 %v20660_v27  ;;  %v11663_v27 = vsel %vm597_vm0, %v11658_v22, %v11662_v10 }
 0x982   : > { %11961 = vmatpush1.bf16.msra.mxu0 %v20658_v21  ;;  %v11691_v21 = vsel %vm597_vm0, %v11686_v38, %v11690_v48  ;;  %v20715_v38 = vld [vmem:[%s26145_s7 + $0x860] ss:$8 sps:$4 sm:$0xff]  }
 0x983   : > { %11962 = vmatprep.subr.bf16.mxu0 %v20663_v28  ;;  %v11704_v28 = vshll.u32 %v24404_v56, 16 }
 0x985   : > { %11529 = vmatmul.mubr.bf16.gmra.mrb[36].mxu0 %v24401_v29 }
 0x986   : > { %11538 = vmatprep.mubr.bf16.mxu0 %v24404_v56  ;;  %11963 = vmatpush1.bf16.msra.mxu0 %v20661_v15  ;;  %v20700_v15 = vld [vmem:[%s26145_s7 + $0x810] ss:$8 sps:$4 sm:$0xff]  }
 0x987   : > { %11964 = vmatprep.subr.bf16.mxu0 %v20666_v3  ;;  %v20705_v3 = vld [vmem:[%s26145_s7 + $0x824] ss:$8 sps:$4 sm:$0xff]  }
 0x98a   : > { %11965 = vmatpush1.bf16.msra.mxu0 %v20664_v13  ;;  %v11676_v13 = vshrl.u32 %v24383_v9, 16 }
 0x98b   : > { %11966 = vmatprep.subr.bf16.mxu0 %v20669_v19  ;;  %v11682_v19 = vrot.slane %v11680_v49, 1 }
 0x98d   : > { %11539 = vmatmul.mubr.bf16.gmra.mrb[40].mxu0 %v24419_v30 }
 0x98e   : > { %11548 = vmatprep.mubr.bf16.mxu0 %v24422_v11  ;;  %11967 = vmatpush1.bf16.msra.mxu0 %v20667_v26  ;;  %v11700_v26 = vshrl.u32 %v24386_v55, 16 }
 0x98f   : > { %11968 = vmatprep.subr.bf16.mxu0 %v20672_v37  ;;  %v11706_v37 = vrot.slane %v11704_v28, 1 }
 0x992   : > { %11969 = vmatpush1.bf16.msra.mxu0 %v20670_v17  ;;  %v11678_v17 = vor.u32 %v11676_v13, %v11662_v10  ;;  %v20723_v13 = vld [vmem:[%s26145_s7 + $0x884] ss:$8 sps:$4 sm:$0xff]  }
 0x993   : > { %11970 = vmatprep.subr.bf16.mxu0 %v20675_v23  ;;  %v20703_v23 = vld [vmem:[%s26145_s7 + $0x820] ss:$8 sps:$4 sm:$0xff]  }
 0x995   : > { %11549 = vmatmul.mubr.bf16.gmra.mrb[44].mxu0 %v24437_v61 }
 0x996   : > { %11558 = vmatprep.mubr.bf16.mxu0 %v24440_v41  ;;  %11971 = vmatpush1.bf16.msra.mxu0 %v20673_v44  ;;  %v11702_v44 = vor.u32 %v11700_v26, %v11690_v48  ;;  %v11732_v48 = vshrl.u32 %v24422_v11, 16 }
 0x997   : > { %11972 = vmatprep.subr.bf16.mxu0 %v20678_v5  ;;  %v20708_v5 = vld [vmem:[%s26145_s7 + $0x834] ss:$8 sps:$4 sm:$0xff]  }
 0x99a   : > { %11973 = vmatpush1.bf16.msra.mxu0 %v20676_v8  ;;  %v11683_v8 = vsel %vm597_vm0, %v11678_v17, %v11682_v19 }
 0x99b   : > { %11974 = vmatprep.subr.bf16.mxu0 %v20681_v24  ;;  %v11696_v24 = vshll.u32 %v24419_v30, 16 }
 0x99d   : > { %11559 = vmatmul.mubr.bf16.gmra.mrb[48].mxu0 %v24455_v59 }
 0x99e   : > { %11568 = vmatprep.mubr.bf16.mxu0 %v24458_v18  ;;  %11975 = vmatpush1.bf16.msra.mxu0 %v20679_v60  ;;  %v11707_v60 = vsel %vm597_vm0, %v11702_v44, %v11706_v37  ;;  %v20721_v44 = vld [vmem:[%s26145_s7 + $0x880] ss:$8 sps:$4 sm:$0xff]  }
 0x99f   : > { %11976 = vmatprep.subr.bf16.mxu0 %v20684_v39  ;;  %v11720_v39 = vshll.u32 %v24422_v11, 16 }
 0x9a2   : > { %11977 = vmatpush1.bf16.msra.mxu0 %v20682_v45  ;;  %v20706_v45 = vld [vmem:[%s26145_s7 + $0x830] ss:$8 sps:$4 sm:$0xff]  }
 0x9a3   : > { %11978 = vmatprep.subr.bf16.mxu0 %v20687_v46  ;;  %v20711_v46 = vld [vmem:[%s26145_s7 + $0x844] ss:$8 sps:$4 sm:$0xff]  }
 0x9a5   : > { %11569 = vmatmul.mubr.bf16.gmra.mrb[52].mxu0 %v24474_v50 }
 0x9a6   : > { %11578 = vmatprep.mubr.bf16.mxu0 %v11282_v53  ;;  %11979 = vmatpush1.bf16.msra.mxu0 %v20685_v43  ;;  %v11692_v43 = vshrl.u32 %v24401_v29, 16  ;;  %v11716_v53 = vshrl.u32 %v24404_v56, 16 }
 0x9a7   : > { %11980 = vmatprep.subr.bf16.mxu0 %v20690_v20  ;;  %v11698_v20 = vrot.slane %v11696_v24, 1  ;;  %v20726_v24 = vld [vmem:[%s26145_s7 + $0x894] ss:$8 sps:$4 sm:$0xff]  }
 0x9a8   : > { %v11718_v4 = vor.u32 %v11716_v53, %v11706_v37  ;;  %v11748_v37 = vshrl.u32 %v24440_v41, 16  ;;  %v11740_v53 = vshrl.u32 %v24455_v59, 16 }
 0x9aa   : > { %11981 = vmatpush1.bf16.msra.mxu0 %v20688_v1  ;;  %v11722_v1 = vrot.slane %v11720_v39, 1  ;;  %v11744_v39 = vshll.u32 %v24474_v50, 16 }
 0x9ab   : > { %11982 = vmatprep.subr.bf16.mxu0 %v20693_v25  ;;  %v11694_v25 = vor.u32 %v11692_v43, %v11682_v19  ;;  %v11724_v19 = vshrl.u32 %v24437_v61, 16  ;;  %v20724_v43 = vld [vmem:[%s26145_s7 + $0x890] ss:$8 sps:$4 sm:$0xff]  }
 0x9ad   : > { %11579 = vmatmul.mubr.bf16.gmra.mrb[68].mxu0 %v11281_v6  ;;  %v11699_v54 = vsel %vm597_vm0, %v11694_v25, %v11698_v20  ;;  %v11723_v6 = vsel %vm597_vm0, %v11718_v4, %v11722_v1  ;;  %v20727_v4 = vld [vmem:[%s26145_s7 + $0x8a0] ss:$8 sps:$4 sm:$0xff]  }
 0x9ae   : > { %11983 = vmatpush1.bf16.msra.mxu0 %v20691_v12  ;;  %11986 = vmatprep.mubr.bf16.mxu0 %v11675_v2  ;;  %v20714_v12 = vld [vmem:[%s26145_s7 + $0x854] ss:$8 sps:$4 sm:$0xff]   ;;  %v11736_v2 = vshll.u32 %v24440_v41, 16 }
 0x9af   : > { %11984 = vmatprep.subr.bf16.mxu0 %v20696_v31  ;;  %v11712_v31 = vshll.u32 %v24437_v61, 16 }
 0x9b0   : > { %v11738_v22 = vrot.slane %v11736_v2, 1 }
 0x9b1   : > { %v11714_v58 = vrot.slane %v11712_v31, 1 }
 0x9b2   : > { %11985 = vmatpush1.bf16.msra.mxu0 %v20694_v40 }
 0x9b3   : > { %12352 = vmatprep.subr.bf16.mxu0 %v20699_v62  ;;  %v20717_v62 = vld [vmem:[%s26145_s7 + $0x864] ss:$8 sps:$4 sm:$0xff]  }
 0x9b5   : > { %11987 = vmatmul.mubr.bf16.vlgmr.msra.gmra.mrb[28].mxu0 %v11663_v27  ;;  %v20720_v27 = vld [vmem:[%s26145_s7 + $0x874] ss:$8 sps:$4 sm:$0xff]  }
 0x9b6   : > { %11996 = vmatprep.mubr.bf16.mxu0 %v11691_v21  ;;  %12353 = vmatpush1.bf16.msra.mxu0 %v20697_v32  ;;  %v11710_v32 = vor.u32 %v11708_v14, %v11698_v20  ;;  %v11728_v21 = vshll.u32 %v24455_v59, 16  ;;  %v20729_v20 = vld [vmem:[%s26145_s7 + $0x8a4] ss:$8 sps:$4 sm:$0xff]  }
 0x9b7   : > { %12354 = vmatprep.subr.bf16.mxu0 %v20702_v34  ;;  %v11734_v34 = vor.u32 %v11732_v48, %v11722_v1  ;;  %v11746_v1 = vrot.slane %v11744_v39, 1  ;;  %v12158_v39 = vrot.slane %v24404_v56, 1  ;;  %v20747_v56 = vld [vmem:[%s26147_s9 + $0x4] ss:$8 sps:$4 sm:$0xff]  }
 0x9b8   : > { %v11715_v49 = vsel %vm597_vm0, %v11710_v32, %v11714_v58  ;;  %v11730_v26 = vrot.slane %v11728_v21, 1 }
 0x9b9   : > { %v11739_v28 = vsel %vm597_vm0, %v11734_v34, %v11738_v22  ;;  %v20736_v34 = vld [vmem:[%s26145_s7 + $0x8d0] ss:$8 sps:$4 sm:$0xff]  }
 0x9ba   : > { %12355 = vmatpush1.bf16.msra.mxu0 %v20700_v15  ;;  %v11752_v15 = vshll.u32 %v24458_v18, 16 }
 0x9bb   : > { %12356 = vmatprep.subr.bf16.mxu0 %v20705_v3  ;;  %v20718_v3 = vld [vmem:[%s26145_s7 + $0x870] ss:$8 sps:$4 sm:$0xff]  }
 0x9bc   : > { %v11754_v17 = vrot.slane %v11752_v15, 1  ;;  %v20739_v15 = vld [vmem:[%s26145_s7 + $0x8e0] ss:$8 sps:$4 sm:$0xff]  }
 0x9bd   : > { %11997 = vmatmul.mubr.bf16.gmra.mrb[32].mxu0 %v11683_v8  ;;  %v11750_v8 = vor.u32 %v11748_v37, %v11738_v22  ;;  %v20738_v22 = vld [vmem:[%s26145_s7 + $0x8d4] ss:$8 sps:$4 sm:$0xff]   ;;  %v12095_v37 = vld [vmem:[#allocation4 + $0x20] sm:$0xfe] }
 0x9be   : > { %12006 = vmatprep.mubr.bf16.mxu0 %v11707_v60  ;;  %12357 = vmatpush1.bf16.msra.mxu0 %v20703_v23  ;;  %v11726_v23 = vor.u32 %v11724_v19, %v11714_v58  ;;  %v20733_v58 = vld [vmem:[%s26145_s7 + $0x8c0] ss:$8 sps:$4 sm:$0xff]   ;;  %v20744_v19 = vld [vmem:[%s26145_s7 + $0x8f4] ss:$8 sps:$4 sm:$0xff]  }
 0x9bf   : > { %12358 = vmatprep.subr.bf16.mxu0 %v20708_v5  ;;  %v24586_v5 = vld [vmem:[#allocation4 + $0x98] sm:$0x1f] }
 0x9c0   : > { %v24538_v7 = vpop.f32.mrb[56].mxu0  ;;  %v11731_v60 = vsel %vm597_vm0, %v11726_v23, %v11730_v26  ;;  %v11775_v48 = vshrl.u32 %v24586_v5, 16  ;;  %v12154_v23 = vrot.slane %v24386_v55, 1  ;;  %v12156_v55 = vrot.slane %v24419_v30, 1  ;;  %v20750_v30 = vld [vmem:[%s26147_s9 + $0x14] ss:$8 sps:$4 sm:$0xff]  }
 0x9c1   : > { %v24541_v36 = vpop.f32.mrb[57].mxu0 }
 0x9c2   : > { %v10358_v33 = vpop.f32.mrb[58].mxu0  ;;  %12359 = vmatpush1.bf16.msra.mxu0 %v20706_v45  ;;  %v11755_v45 = vsel %vm597_vm0, %v11750_v8, %v11754_v17 }
 0x9c3   : > { %v10359_v51 = vpop.f32.mrb[59].mxu0  ;;  %12360 = vmatprep.subr.bf16.mxu0 %v20711_v46  ;;  %v11768_v46 = vshll.u32 %v24586_v5, 16  ;;  %v11764_v33 = vshrl.u32 %v24458_v18, 16 }
 0x9c4   : > { %v11742_v51 = vor.u32 %v11740_v53, %v11730_v26 }
 0x9c5   : > { %v24551_v47 = vpop.f32.mrb[92].mxu1  ;;  %12007 = vmatmul.mubr.bf16.gmra.mrb[36].mxu0 %v11699_v54  ;;  %v11770_v25 = vrot.slane %v11768_v46, 1  ;;  %v20732_v54 = vld [vmem:[%s26145_s7 + $0x8b4] ss:$8 sps:$4 sm:$0xff]   ;;  %v12159_v46 = vsel %vm1135_vm2, %v12154_v23, %v12158_v39 }
 0x9c6   : > { %v24555_v16 = vpop.f32.mrb[93].mxu1  ;;  %12016 = vmatprep.mubr.bf16.mxu0 %v11723_v6  ;;  %12361 = vmatpush1.bf16.msra.mxu0 %v20709_v57  ;;  %v24603_v57 = vld [vmem:[#allocation4 + $0x90] sm:$0x1f]  ;;  %v11747_v31 = vsel %vm597_vm0, %v11742_v51, %v11746_v1 }
 0x9c7   : > { %v9369_v40 = vpop.f32.mrb[94].mxu1  ;;  %12362 = vmatprep.subr.bf16.mxu0 %v20714_v12  ;;  %v11766_v12 = vor.u32 %v11764_v33, %v11754_v17  ;;  %v11760_v6 = vshll.u32 %v24603_v57, 16  ;;  %v11772_v21 = vshrl.u32 %v24603_v57, 16  ;;  %v12147_v17 = vrot.slane %v24383_v9, 1 }
 0x9c8   : > { %v9370_v10 = vpop.f32.mrb[95].mxu1  ;;  %v20735_v40 = vld [vmem:[%s26145_s7 + $0x8c4] ss:$8 sps:$4 sm:$0xff]  }
 0x9c9   : > { %v11771_v2 = vsel %vm597_vm0, %v11766_v12, %v11770_v25  ;;  %v11762_v14 = vrot.slane %v11760_v6, 1  ;;  %v20748_v12 = vld [vmem:[%s26147_s9 + $0x10] ss:$8 sps:$4 sm:$0xff]  }
 0x9ca   : > { %12363 = vmatpush1.bf16.msra.mxu0 %v20712_v35  ;;  %v20730_v35 = vld [vmem:[%s26145_s7 + $0x8b0] ss:$8 sps:$4 sm:$0xff]  }
 0x9cb   : > { %12364 = vmatprep.subr.bf16.mxu0 %v20717_v62  ;;  %v11756_v62 = vshrl.u32 %v24474_v50, 16 }
 0x9cd   : > { %12017 = vmatmul.mubr.bf16.gmra.mrb[40].mxu0 %v11715_v49  ;;  %v11758_v10 = vor.u32 %v11756_v62, %v11746_v1  ;;  %v12096_v49 = vld [vmem:[#allocation4 + $0x28] sm:$0xfe]  ;;  %v12166_v62 = vrot.slane %v24440_v41, 1 }
 0x9ce   : > { %12026 = vmatprep.mubr.bf16.mxu0 %v11739_v28  ;;  %12365 = vmatpush1.bf16.msra.mxu0 %v20715_v38  ;;  %v11777_v38 = vor.u32 %v11775_v48, %v11770_v25  ;;  %v12150_v28 = vrot.slane %v24368_v63, 1  ;;  %v20742_v63 = vld [vmem:[%s26145_s7 + $0x8f0] ss:$8 sps:$4 sm:$0xff]  }
 0x9cf   : > { %12366 = vmatprep.subr.bf16.mxu0 %v20720_v27  ;;  %v11763_v32 = vsel %vm597_vm0, %v11758_v10, %v11762_v14  ;;  %v20741_v27 = vld [vmem:[%s26145_s7 + $0x8e4] ss:$8 sps:$4 sm:$0xff]   ;;  %v20756_v10 = vld [vmem:[%s26147_s9 + $0x34] ss:$8 sps:$4 sm:$0xff]  }
 0x9d2   : > { %12367 = vmatpush1.bf16.msra.mxu0 %v20718_v3  ;;  %v11774_v3 = vor.u32 %v11772_v21, %v11762_v14  ;;  %v20751_v14 = vld [vmem:[%s26147_s9 + $0x20] ss:$8 sps:$4 sm:$0xff]  }
 0x9d3   : > { %12368 = vmatprep.subr.bf16.mxu0 %v20723_v13  ;;  %v12149_v13 = vrot.slane %v12096_v49, 1  ;;  %v20769_v49 = vld [vmem:[%s26147_s9 + $0x120] ss:$8 sps:$4 sm:$0xff]  }
 0x9d5   : > { %12027 = vmatmul.mubr.bf16.gmra.mrb[44].mxu0 %v11731_v60  ;;  %v12151_v26 = vsel %vm1135_vm2, %v12149_v13, %v12150_v28  ;;  %v12152_v60 = vrot.slane %v24401_v29, 1  ;;  %v20745_v29 = vld [vmem:[%s26147_s9] ss:$8 sps:$4 sm:$0xff]  }
 0x9d6   : > { %12036 = vmatprep.mubr.bf16.mxu0 %v11755_v45  ;;  %12369 = vmatpush1.bf16.msra.mxu0 %v20721_v44  ;;  %v12146_v44 = vrot.slane %v12095_v37, 1  ;;  %v20760_v13 = vld [vmem:[%s26147_s9 + $0x40] ss:$8 sps:$4 sm:$0xff]  }
 0x9d7   : > { %12370 = vmatprep.subr.bf16.mxu0 %v20726_v24  ;;  %v12155_v24 = vsel %vm1135_vm2, %v12150_v28, %v12154_v23  ;;  %v12153_v45 = vsel %vm1135_vm2, %v12147_v17, %v12152_v60  ;;  %v12157_v33 = vsel %vm1135_vm2, %v12152_v60, %v12156_v55  ;;  %v12164_v28 = vrot.slane %v24455_v59, 1  ;;  %v20775_v59 = vld [vmem:[%s26147_s9 + $0x130] ss:$8 sps:$4 sm:$0xff]  }
 0x9d8   : > { %v12148_v8 = vsel %vm1135_vm2, %v12146_v44, %v12147_v17  ;;  %v20766_v23 = vld [vmem:[%s26147_s9 + $0x50] ss:$8 sps:$4 sm:$0xff]  }
 0x9da   : > { %12371 = vmatpush1.bf16.msra.mxu0 %v20724_v43 }
 0x9db   : > { %12372 = vmatprep.subr.bf16.mxu0 %v20729_v20  ;;  %v12162_v20 = vrot.slane %v24422_v11, 1 }
 0x9dd   : > { %12037 = vmatmul.mubr.bf16.gmra.mrb[48].mxu0 %v11747_v31  ;;  %v12163_v11 = vsel %vm1135_vm2, %v12158_v39, %v12162_v20  ;;  %v12168_v39 = vrot.slane %v24474_v50, 1  ;;  %v20787_v50 = vld [vmem:[%s26147_s9 + $0x150] ss:$8 sps:$4 sm:$0xff]  }
 0x9de   : > { %12046 = vmatprep.mubr.bf16.mxu0 %v11771_v2  ;;  %12373 = vmatpush1.bf16.msra.mxu0 %v20727_v4  ;;  %v20759_v2 = vld [vmem:[%s26147_s9 + $0x104] ss:$8 sps:$4 sm:$0xff]  }
 0x9df   : > { %12374 = vmatprep.subr.bf16.mxu0 %v20732_v54  ;;  %v20757_v54 = vld [vmem:[%s26147_s9 + $0x100] ss:$8 sps:$4 sm:$0xff]   ;;  %12912 = vmatprep.subr.bf16.mxu1 %v20759_v2 }
 0x9e0   : > { %12913 = vmatpush1.bf16.msra.mxu1 %v20757_v54 }
 0x9e2   : > { %12375 = vmatpush1.bf16.msra.mxu0 %v20730_v35 }
 0x9e3   : > { %12376 = vmatprep.subr.bf16.mxu0 %v20735_v40  ;;  %v12160_v40 = vrot.slane %v24437_v61, 1  ;;  %v20763_v61 = vld [vmem:[%s26147_s9 + $0x110] ss:$8 sps:$4 sm:$0xff]  }
 0x9e5   : > { %12047 = vmatmul.mubr.bf16.gmra.mrb[52].mxu0 %v11763_v32  ;;  %v12161_v41 = vsel %vm1135_vm2, %v12156_v55, %v12160_v40  ;;  %v20772_v55 = vld [vmem:[%s26147_s9 + $0x60] ss:$8 sps:$4 sm:$0xff]  }
 0x9e6   : > { %12056 = vmatprep.mubr.bf16.mxu0 %v11777_v38  ;;  %12377 = vmatpush1.bf16.msra.mxu0 %v20733_v58  ;;  %v20771_v58 = vld [vmem:[%s26147_s9 + $0x124] ss:$8 sps:$4 sm:$0xff]   ;;  %v20754_v38 = vld [vmem:[%s26147_s9 + $0x30] ss:$8 sps:$4 sm:$0xff]  }
 0x9e7   : > { %12378 = vmatprep.subr.bf16.mxu0 %v20738_v22  ;;  %v12167_v22 = vsel %vm1135_vm2, %v12162_v20, %v12166_v62  ;;  %v20780_v20 = vld [vmem:[%s26147_s9 + $0x74] ss:$8 sps:$4 sm:$0xff]  }
 0x9ea   : > { %12379 = vmatpush1.bf16.msra.mxu0 %v20736_v34 }
 0x9eb   : > { %12380 = vmatprep.subr.bf16.mxu0 %v20741_v27  ;;  %v20762_v27 = vld [vmem:[%s26147_s9 + $0x44] ss:$8 sps:$4 sm:$0xff]  }
 0x9ed   : > { %12057 = vmatmul.mubr.bf16.gmra.mrb[72].mxu0 %v11774_v3  ;;  %v12170_v3 = vrot.slane %v24458_v18, 1  ;;  %v20783_v18 = vld [vmem:[%s26147_s9 + $0x144] ss:$8 sps:$4 sm:$0xff]  }
 0x9ee   : > { %12381 = vmatpush1.bf16.msra.mxu0 %v20739_v15  ;;  %12384 = vmatprep.mubr.bf16.mxu0 %v12151_v26  ;;  %v20777_v15 = vld [vmem:[%s26147_s9 + $0x134] ss:$8 sps:$4 sm:$0xff]   ;;  %v12165_v26 = vsel %vm1135_vm2, %v12160_v40, %v12164_v28 }
 0x9ef   : > { %12382 = vmatprep.subr.bf16.mxu0 %v20744_v19  ;;  %v20768_v19 = vld [vmem:[%s26147_s9 + $0x54] ss:$8 sps:$4 sm:$0xff]   ;;  %v12171_v37 = vsel %vm1135_vm2, %v12166_v62, %v12170_v3 }
 0x9f2   : > { %12383 = vmatpush1.bf16.msra.mxu0 %v20742_v63 }
 0x9f3   : > { %13163 = vmatprep.subr.bf16.mxu0 %v20747_v56  ;;  %v20778_v56 = vld [vmem:[%s26147_s9 + $0x70] ss:$8 sps:$4 sm:$0xff]  }
 0x9f5   : > { %12385 = vmatmul.mubr.bf16.vlgmr.msra.gmra.mrb[28].mxu0 %v12148_v8  ;;  %v20774_v8 = vld [vmem:[%s26147_s9 + $0x64] ss:$8 sps:$4 sm:$0xff]  }
 0x9f6   : > { %12394 = vmatprep.mubr.bf16.mxu0 %v12155_v24  ;;  %13164 = vmatpush1.bf16.msra.mxu0 %v20745_v29  ;;  %v20781_v24 = vld [vmem:[%s26147_s9 + $0x140] ss:$8 sps:$4 sm:$0xff]  }
 0x9f7   : > { %13165 = vmatprep.subr.bf16.mxu0 %v20750_v30  ;;  %v20786_v30 = vld [vmem:[%s26147_s9 + $0x84] ss:$8 sps:$4 sm:$0xff]  }
 0x9fa   : > { %13166 = vmatpush1.bf16.msra.mxu0 %v20748_v12  ;;  %v20792_v12 = vld [vmem:[%s26147_s9 + $0x94] ss:$8 sps:$4 sm:$0xff]  }
 0x9fd   : > { %12395 = vmatmul.mubr.bf16.gmra.mrb[32].mxu0 %v12153_v45  ;;  %v20789_v45 = vld [vmem:[%s26147_s9 + $0x154] ss:$8 sps:$4 sm:$0xff]  }
 0x9fe   : > { %12404 = vmatprep.mubr.bf16.mxu0 %v12159_v46  ;;  %v12174_v46 = vrot.slane %v24586_v5, 1 }
 0xa00   : > { %v24655_v9 = vpop.f32.mrb[60].mxu0  ;;  %v12175_v5 = vsel %vm1135_vm2, %v12170_v3, %v12174_v46  ;;  %v20793_v3 = vld [vmem:[%s26147_s9 + $0x160] ss:$8 sps:$4 sm:$0xff]  }
 0xa01   : > { %v24658_v43 = vpop.f32.mrb[61].mxu0 }
 0xa02   : > { %v10836_v53 = vpop.f32.mrb[62].mxu0 }
 0xa03   : > { %v10837_v1 = vpop.f32.mrb[63].mxu0  ;;  %v12169_v53 = vsel %vm1135_vm2, %v12164_v28, %v12168_v39 }
 0xa05   : > { %v9636_v25 = vpop.f32.mrb[96].mxu1  ;;  %12405 = vmatmul.mubr.bf16.gmra.mrb[36].mxu0 %v12157_v33 }
 0xa06   : > { %v24673_v51 = vadd.f32 %v9636_v25, %v24551_v47  ;;  %v9638_v4 = vpop.f32.mrb[97].mxu1  ;;  %12414 = vmatprep.mubr.bf16.mxu0 %v12163_v11  ;;  %v20753_v47 = vld [vmem:[%s26147_s9 + $0x24] ss:$8 sps:$4 sm:$0xff]   ;;  %v12172_v11 = vrot.slane %v24603_v57, 1  ;;  %v20790_v57 = vld [vmem:[%s26147_s9 + $0x90] ss:$8 sps:$4 sm:$0xff]  }
 0xa07   : > { %v24682_v31 = vadd.f32 %v9638_v4, %v24555_v16  ;;  %v9640_v6 = vpop.f32.mrb[98].mxu1  ;;  %v20765_v16 = vld [vmem:[%s26147_s9 + $0x114] ss:$8 sps:$4 sm:$0xff]   ;;  %13167 = vmatprep.subr.bf16.mxu0 %v20753_v47  ;;  %v20784_v4 = vld [vmem:[%s26147_s9 + $0x80] ss:$8 sps:$4 sm:$0xff]  }
 0xa08   : > { %v9641_v35 = vpop.f32.mrb[99].mxu1  ;;  %12914 = vmatprep.subr.bf16.mxu1 %v20765_v16  ;;  %13168 = vmatpush1.bf16.msra.mxu0 %v20751_v14  ;;  %v12173_v54 = vsel %vm1135_vm2, %v12168_v39, %v12172_v11  ;;  %v20802_v39 = vld [vmem:[%s26147_s9 + $0xb0] ss:$8 sps:$4 sm:$0xff]  }
 0xa09   : > { %13169 = vmatprep.subr.bf16.mxu0 %v20756_v10  ;;  %12915 = vmatpush1.bf16.msra.mxu1 %v20763_v61 }
 0xa0a   : > { %12916 = vmatprep.subr.bf16.mxu1 %v20771_v58 }
 0xa0c   : > { %13170 = vmatpush1.bf16.msra.mxu0 %v20754_v38 }
 0xa0d   : > { %v24708_v48 = vpop.f32.mrb[64].mxu1  ;;  %12415 = vmatmul.mubr.bf16.gmra.mrb[40].mxu0 %v12161_v41  ;;  %13171 = vmatprep.subr.bf16.mxu0 %v20762_v27 }
 0xa0e   : > { %v24711_v32 = vpop.f32.mrb[65].mxu1  ;;  %12424 = vmatprep.mubr.bf16.mxu0 %v12167_v22  ;;  %12917 = vmatpush1.bf16.msra.mxu1 %v20769_v49 }
 0xa0f   : > { %v24716_v34 = vpop.f32.mrb[66].mxu1  ;;  %12918 = vmatprep.subr.bf16.mxu1 %v20777_v15 }
 0xa10   : > { %v24724_v21 = vpop.f32.mrb[67].mxu1  ;;  %13172 = vmatpush1.bf16.msra.mxu0 %v20760_v13  ;;  %v20795_v13 = vld [vmem:[%s26147_s9 + $0x164] ss:$8 sps:$4 sm:$0xff]  }
 0xa11   : > { %13173 = vmatprep.subr.bf16.mxu0 %v20768_v19 }
 0xa12   : > { %12919 = vmatpush1.bf16.msra.mxu1 %v20775_v59  ;;  %v20796_v59 = vld [vmem:[%s26147_s9 + $0xa0] ss:$8 sps:$4 sm:$0xff]  }
 0xa13   : > { %12920 = vmatprep.subr.bf16.mxu1 %v20783_v18 }
 0xa14   : > { %13174 = vmatpush1.bf16.msra.mxu0 %v20766_v23  ;;  %v20799_v23 = vld [vmem:[%s26147_s9 + $0x170] ss:$8 sps:$4 sm:$0xff]  }
 0xa15   : > { %v24744_v63 = vpop.f32.mrb[68].mxu1  ;;  %12425 = vmatmul.mubr.bf16.gmra.mrb[44].mxu0 %v12165_v26  ;;  %13175 = vmatprep.subr.bf16.mxu0 %v20774_v8  ;;  %v20798_v26 = vld [vmem:[%s26147_s9 + $0xa4] ss:$8 sps:$4 sm:$0xff]   ;;  %v20804_v8 = vld [vmem:[%s26147_s9 + $0xb4] ss:$8 sps:$4 sm:$0xff]  }
 0xa16   : > { %v24747_v17 = vpop.f32.mrb[69].mxu1  ;;  %12434 = vmatprep.mubr.bf16.mxu0 %v12171_v37  ;;  %12921 = vmatpush1.bf16.msra.mxu1 %v20781_v24  ;;  %v20801_v37 = vld [vmem:[%s26147_s9 + $0x174] ss:$8 sps:$4 sm:$0xff]  }
 0xa17   : > { %v24752_v44 = vpop.f32.mrb[70].mxu1  ;;  %12922 = vmatprep.subr.bf16.mxu1 %v20789_v45 }
 0xa18   : > { %v24760_v60 = vpop.f32.mrb[71].mxu1  ;;  %13176 = vmatpush1.bf16.msra.mxu0 %v20772_v55 }
 0xa19   : > { %13177 = vmatprep.subr.bf16.mxu0 %v20780_v20 }
 0xa1a   : > { %12923 = vmatpush1.bf16.msra.mxu1 %v20787_v50 }
 0xa1b   : > { %12924 = vmatprep.subr.bf16.mxu1 %v20795_v13  ;;  %v20823_v13 = vld [vmem:[%s26147_s9 + $0x1b0] ss:$8 sps:$4 sm:$0xff]  }
 0xa1c   : > { %13178 = vmatpush1.bf16.msra.mxu0 %v20778_v56 }
 0xa1d   : > { %v24777_v1 = vpop.f32.mrb[72].mxu1  ;;  %12435 = vmatmul.mubr.bf16.gmra.mrb[48].mxu0 %v12169_v53  ;;  %13179 = vmatprep.subr.bf16.mxu0 %v20786_v30 }
 0xa1e   : > { %v24780_v29 = vpop.f32.mrb[73].mxu1  ;;  %12444 = vmatprep.mubr.bf16.mxu0 %v12175_v5  ;;  %12925 = vmatpush1.bf16.msra.mxu1 %v20793_v3  ;;  %v20822_v3 = vld [vmem:[%s26147_s9 + $0xe4] ss:$8 sps:$4 sm:$0xff]  }
 0xa1f   : > { %v24785_v33 = vpop.f32.mrb[74].mxu1  ;;  %12926 = vmatprep.subr.bf16.mxu1 %v20801_v37  ;;  %v20829_v37 = vld [vmem:[%s26147_s9 + $0x1c0] ss:$8 sps:$4 sm:$0xff]  }
 0xa20   : > { %v24790_v25 = vpop.f32.mrb[75].mxu1  ;;  %13180 = vmatpush1.bf16.msra.mxu0 %v20784_v4 }
 0xa21   : > { %13181 = vmatprep.subr.bf16.mxu0 %v20792_v12  ;;  %v20816_v12 = vld [vmem:[%s26147_s9 + $0xd4] ss:$8 sps:$4 sm:$0xff]  }
 0xa22   : > { %12927 = vmatpush1.bf16.msra.mxu1 %v20799_v23  ;;  %v20834_v23 = vld [vmem:[%s26147_s9 + $0x204] ss:$8 sps:$4 sm:$0xff]  }
 0xa24   : > { %13182 = vmatpush1.bf16.msra.mxu0 %v20790_v57  ;;  %v20814_v57 = vld [vmem:[%s26147_s9 + $0xd0] ss:$8 sps:$4 sm:$0xff]  }
 0xa25   : > { %v24800_v6 = vpop.f32.mrb[76].mxu1  ;;  %12445 = vmatmul.mubr.bf16.gmra.mrb[52].mxu0 %v12173_v54  ;;  %13183 = vmatprep.subr.bf16.mxu0 %v20798_v26  ;;  %v20819_v54 = vld [vmem:[%s26147_s9 + $0x1a4] ss:$8 sps:$4 sm:$0xff]  }
 0xa26   : > { %v24802_v47 = vpop.f32.mrb[77].mxu1  ;;  %12454 = vmatprep.mubr.bf16.mxu0 %v12174_v46  ;;  %v20831_v26 = vld [vmem:[%s26147_s9 + $0x1c4] ss:$8 sps:$4 sm:$0xff]  }
 0xa27   : > { %v24807_v2 = vpop.f32.mrb[78].mxu1 }
 0xa28   : > { %v24809_v35 = vpop.f32.mrb[79].mxu1  ;;  %13184 = vmatpush1.bf16.msra.mxu0 %v20796_v59  ;;  %v20828_v59 = vld [vmem:[%s26147_s9 + $0xf4] ss:$8 sps:$4 sm:$0xff]  }
 0xa29   : > { %13185 = vmatprep.subr.bf16.mxu0 %v20804_v8  ;;  %v20835_v8 = vld [vmem:[%s26147_s9 + $0x1d0] ss:$8 sps:$4 sm:$0xff]  }
 0xa2c   : > { %13186 = vmatpush1.bf16.msra.mxu0 %v20802_v39  ;;  %v20843_v39 = vld [vmem:[%s26147_s9 + $0x1e4] ss:$8 sps:$4 sm:$0xff]  }
 0xa2d   : > { %v24811_v40 = vpop.f32.mrb[80].mxu1  ;;  %12455 = vmatmul.mubr.bf16.gmra.mrb[76].mxu0 %v12172_v11 }
 0xa2e   : > { %v24813_v62 = vpop.f32.mrb[81].mxu1 }
 0xa2f   : > { %v24815_v16 = vpop.f32.mrb[82].mxu1 }
 0xa30   : > { %v24817_v14 = vpop.f32.mrb[83].mxu1 }
 0xa35   : > { %v24819_v10 = vpop.f32.mrb[84].mxu1 }
 0xa36   : > { %v24821_v61 = vpop.f32.mrb[85].mxu1 }
 0xa37   : > { %v24823_v41 = vpop.f32.mrb[86].mxu1 }
 0xa38   : > { %v24825_v58 = vpop.f32.mrb[87].mxu1 }
 0xa3d   : > { %v24827_v22 = vpop.f32.mrb[88].mxu1 }
 0xa3e   : > { %v24829_v38 = vpop.f32.mrb[89].mxu1 }
 0xa3f   : > { %v24831_v27 = vpop.f32.mrb[90].mxu1 }
 0xa40   : > { %v24833_v49 = vpop.f32.mrb[91].mxu1  ;;  %v11230_v28 = vpop.f32.mrb[64].mxu0 }
 0xa41   : > { %v11232_v15 = vpop.f32.mrb[65].mxu0 }
 0xa42   : > { %v11234_v19 = vpop.f32.mrb[66].mxu0 }
 0xa43   : > { %v11235_v18 = vpop.f32.mrb[67].mxu0  ;;  %v20825_v19 = vld [vmem:[%s26147_s9 + $0x1b4] ss:$8 sps:$4 sm:$0xff]  }
 0xa44   : > { %v20826_v18 = vld [vmem:[%s26147_s9 + $0xf0] ss:$8 sps:$4 sm:$0xff]  }
 0xa45   : > { %v10004_v24 = vpop.f32.mrb[100].mxu1 }
 0xa46   : > { %v10039_v45 = vadd.f32 %v10004_v24, %v24673_v51  ;;  %v10006_v46 = vpop.f32.mrb[101].mxu1  ;;  %v20805_v51 = vld [vmem:[%s26147_s9 + $0x180] ss:$8 sps:$4 sm:$0xff]   ;;  %v20837_v24 = vld [vmem:[%s26147_s9 + $0x1d4] ss:$8 sps:$4 sm:$0xff]  }
 0xa47   : > { %v10040_v55 = vadd.f32 %v10006_v46, %v24682_v31  ;;  %v10008_v20 = vpop.f32.mrb[102].mxu1  ;;  %v20807_v31 = vld [vmem:[%s26147_s9 + $0x184] ss:$8 sps:$4 sm:$0xff]   ;;  %v20847_v46 = vld [vmem:[%s26147_s9 + $0x1f0] ss:$8 sps:$4 sm:$0xff]  }
 0xa48   : > { %v10389_v50 = vadd.f32 %v24538_v7, %v10039_v45  ;;  %v10009_v53 = vpop.f32.mrb[103].mxu1  ;;  %12928 = vmatprep.subr.bf16.mxu1 %v20807_v31  ;;  %v20808_v7 = vld [vmem:[%s26147_s9 + $0xc0] ss:$8 sps:$4 sm:$0xff]  }
 0xa49   : > { %v10390_v5 = vadd.f32 %v24541_v36, %v10040_v55  ;;  %12929 = vmatpush1.bf16.msra.mxu1 %v20805_v51  ;;  %v20810_v36 = vld [vmem:[%s26147_s9 + $0xc4] ss:$8 sps:$4 sm:$0xff]   ;;  %v20841_v45 = vld [vmem:[%s26147_s9 + $0x1e0] ss:$8 sps:$4 sm:$0xff]   ;;  %v20849_v55 = vld [vmem:[%s26147_s9 + $0x1f4] ss:$8 sps:$4 sm:$0xff]  }
 0xa4a   : > { %v10867_v56 = vadd.f32 %v24655_v9, %v10389_v50  ;;  %v20811_v9 = vld [vmem:[%s26147_s9 + $0x190] ss:$8 sps:$4 sm:$0xff]   ;;  %13187 = vmatprep.subr.bf16.mxu0 %v20810_v36 }
 0xa4b   : > { %v10868_v30 = vadd.f32 %v24658_v43, %v10390_v5  ;;  %v20813_v43 = vld [vmem:[%s26147_s9 + $0x194] ss:$8 sps:$4 sm:$0xff]   ;;  %13188 = vmatpush1.bf16.msra.mxu0 %v20808_v7 }
 0xa4c   : > { %v11265_v11 = vadd.f32 %v11230_v28, %v10867_v56  ;;  %12930 = vmatprep.subr.bf16.mxu1 %v20813_v43  ;;  %13189 = vmatprep.subr.bf16.mxu0 %v20816_v12  ;;  %v20817_v28 = vld [vmem:[%s26147_s9 + $0x1a0] ss:$8 sps:$4 sm:$0xff]  }
 0xa4d   : > { %v11266_v4 = vadd.f32 %v11232_v15, %v10868_v30  ;;  %12931 = vmatpush1.bf16.msra.mxu1 %v20811_v9  ;;  %v20820_v15 = vld [vmem:[%s26147_s9 + $0xe0] ss:$8 sps:$4 sm:$0xff]  }
 0xa4e   : > { %12932 = vmatprep.subr.bf16.mxu1 %v20819_v54  ;;  %v12493_v12 = vld [vmem:[%s26146_s8] sm:$0x3] }
 0xa4f   : > { %13190 = vmatpush1.bf16.msra.mxu0 %v20814_v57 }
 0xa50   : > { %13191 = vmatprep.subr.bf16.mxu0 %v20822_v3 }
 0xa51   : > { %12933 = vmatpush1.bf16.msra.mxu1 %v20817_v28 }
 0xa52   : > { %12934 = vmatprep.subr.bf16.mxu1 %v20825_v19 }
 0xa53   : > { %13192 = vmatpush1.bf16.msra.mxu0 %v20820_v15  ;;  %v24953_v15 = vrot.slane %v12493_v12, %v23514_v0 }
 0xa54   : > { %13193 = vmatprep.subr.bf16.mxu0 %v20828_v59 }
 0xa55   : > { %12935 = vmatpush1.bf16.msra.mxu1 %v20823_v13 }
 0xa56   : > { %12936 = vmatprep.subr.bf16.mxu1 %v20831_v26 }
 0xa57   : > { %13194 = vmatpush1.bf16.msra.mxu0 %v20826_v18 }
 0xa58   : > { %13495 = vmatprep.subr.bf16.mxu0 %v20834_v23 }
 0xa59   : > { %12937 = vmatpush1.bf16.msra.mxu1 %v20829_v37 }
 0xa5a   : > { %12938 = vmatprep.subr.bf16.mxu1 %v20837_v24  ;;  %v20832_v24 = vld [vmem:[%s26147_s9 + $0x200] ss:$8 sps:$4 sm:$0xff]  }
 0xa5d   : > { %12939 = vmatpush1.bf16.msra.mxu1 %v20835_v8 }
 0xa5e   : > { %12940 = vmatprep.subr.bf16.mxu1 %v20843_v39 }
 0xa61   : > { %12941 = vmatpush1.bf16.msra.mxu1 %v20841_v45 }
 0xa62   : > { %12942 = vmatprep.subr.bf16.mxu1 %v20849_v55 }
 0xa65   : > { %12943 = vmatpush1.bf16.msra.mxu1 %v20847_v46 }
 0xa80   : > { %v11580_v20 = vpop.f32.mrb[68].mxu0 }
 0xa81   : > { %v11615_v50 = vadd.f32 %v11580_v20, %v11265_v11  ;;  %v11582_v53 = vpop.f32.mrb[69].mxu0  ;;  %v24949_v11 = vrot.slane %v12493_v12, %v23508_v42 }
 0xa82   : > { %v11616_v5 = vadd.f32 %v11582_v53, %v11266_v4  ;;  %v11584_v56 = vpop.f32.mrb[70].mxu0 }
 0xa83   : > { %v11585_v30 = vpop.f32.mrb[71].mxu0 }
 0xac0   : > { %v12058_v51 = vpop.f32.mrb[72].mxu0 }
 0xac1   : > { %v24940_v31 = vadd.f32 %v12058_v51, %v11615_v50  ;;  %v12060_v7 = vpop.f32.mrb[73].mxu0 }
 0xac2   : > { %v24942_v36 = vadd.f32 %v12060_v7, %v11616_v5  ;;  %v12062_v9 = vpop.f32.mrb[74].mxu0 }
 0xac3   : > { %v12063_v43 = vpop.f32.mrb[75].mxu0 }
 0xac8   : > { %v12386_v54 = vpop.f32.mrb[28].mxu0 }
 0xac9   : > { %v18835_v57 = vadd.f32 %v12386_v54, %v24708_v48  ;;  %v12388_v4 = vpop.f32.mrb[29].mxu0  ;;  %v20844_v54 = vld [vmem:[%s26147_s9 + $0x220] ss:$8 sps:$4 sm:$0xff]  }
 0xaca   : > { %v18836_v28 = vadd.f32 %v12388_v4, %v24711_v32  ;;  %v12390_v3 = vpop.f32.mrb[30].mxu0 }
 0xacb   : > { %v18837_v13 = vadd.f32 %v12390_v3, %v24716_v34  ;;  %v12392_v19 = vpop.f32.mrb[31].mxu0  ;;  %v12505_v26 = vadd.f32 %v18835_v57, %v24949_v11  ;;  %v20852_v3 = vld [vmem:[%s26147_s9 + $0x234] ss:$8 sps:$4 sm:$0xff]  }
 0xacc   : > { %v18838_v59 = vadd.f32 %v12392_v19, %v24724_v21  ;;  %v12506_v48 = vadd.f32 %v18836_v28, %v24953_v15  ;;  %v20840_v21 = vld [vmem:[%s26147_s9 + $0x214] ss:$8 sps:$4 sm:$0xff]  }
 0xacd   : > { %v12507_v18 = vadd.f32 %v18837_v13, %v24949_v11 }
 0xace   : > { %v12508_v37 = vadd.f32 %v18838_v59, %v24953_v15 }
 0xacf   : > { %v12535_v23 = vpack.c.bf16 %v12507_v18, %v12505_v26 }
 0xad0   : > { %v12536_v8 = vpack.c.bf16 %v12508_v37, %v12506_v48  ;;  %v12396_v32 = vpop.f32.mrb[32].mxu0 }
 0xad1   : > { %12551 = vst [vmem:[#allocation5] sm:$0xff] %v12535_v23  ;;  %v18839_v34 = vadd.f32 %v12396_v32, %v24744_v63  ;;  %v12398_v39 = vpop.f32.mrb[33].mxu0  ;;  %v12649_v5 = vshll.u32 %v12535_v23, 16  ;;  %v20838_v63 = vld [vmem:[%s26147_s9 + $0x210] ss:$8 sps:$4 sm:$0xff]   ;;  %v12647_v26 = vshrl.u32 %v12535_v23, 16 }
 0xad2   : > { %12552 = vst [vmem:[#allocation5 + $0x8] sm:$0xff] %v12536_v8  ;;  %v18840_v45 = vadd.f32 %v12398_v39, %v24747_v17  ;;  %v12400_v46 = vpop.f32.mrb[34].mxu0  ;;  %13195 = vmatprep.mubr.bf16.mxu0 %v12536_v8  ;;  %v12661_v53 = vshll.u32 %v12536_v8, 16  ;;  %v20846_v17 = vld [vmem:[%s26147_s9 + $0x224] ss:$8 sps:$4 sm:$0xff]   ;;  %v12659_v59 = vshrl.u32 %v12536_v8, 16 }
 0xad3   : > { %v18841_v55 = vadd.f32 %v12400_v46, %v24752_v44  ;;  %v12402_v20 = vpop.f32.mrb[35].mxu0  ;;  %13196 = vmatmul.mubr.bf16.vlgmr.msra.gmra.mrb[80].mxu0 %v12535_v23  ;;  %v12509_v56 = vadd.f32 %v18839_v34, %v24949_v11  ;;  %v12651_v12 = vrot.slane %v12649_v5, 1 }
 0xad4   : > { %v18842_v50 = vadd.f32 %v12402_v20, %v24760_v60  ;;  %13496 = vmatpush1.bf16.msra.mxu0 %v20832_v24  ;;  %v12510_v44 = vadd.f32 %v18840_v45, %v24953_v15  ;;  %v12663_v43 = vrot.slane %v12661_v53, 1 }
 0xad5   : > { %v12511_v30 = vadd.f32 %v18841_v55, %v24949_v11  ;;  %13497 = vmatprep.subr.bf16.mxu0 %v20840_v21  ;;  %v12652_v34 = vor.u32 %v12651_v12, %v12647_v26 }
 0xad6   : > { %v12512_v60 = vadd.f32 %v18842_v50, %v24953_v15  ;;  %v12664_v32 = vor.u32 %v12663_v43, %v12659_v59 }
 0xad7   : > { %v24981_v51 = vpack.c.bf16 %v12511_v30, %v12509_v56  ;;  %v20853_v30 = vld [vmem:[%s26147_s9 + $0x240] ss:$8 sps:$4 sm:$0xff]  }
 0xad8   : > { %v24983_v7 = vpack.c.bf16 %v12512_v60, %v12510_v44  ;;  %v12406_v9 = vpop.f32.mrb[36].mxu0  ;;  %13498 = vmatpush1.bf16.msra.mxu0 %v20838_v63  ;;  %v20858_v60 = vld [vmem:[%s26147_s9 + $0x254] ss:$8 sps:$4 sm:$0xff]  }
 0xad9   : > { %12553 = vst [vmem:[#allocation5 + $0x10] sm:$0xff] %v24981_v51  ;;  %v18843_v57 = vadd.f32 %v12406_v9, %v24777_v1  ;;  %v12408_v4 = vpop.f32.mrb[37].mxu0  ;;  %13499 = vmatprep.subr.bf16.mxu0 %v20846_v17  ;;  %v12654_v28 = vshll.u32 %v24981_v51, 16  ;;  %v12670_v21 = vshrl.u32 %v24981_v51, 16 }
 0xada   : > { %12554 = vst [vmem:[#allocation5 + $0x18] sm:$0xff] %v24983_v7  ;;  %v18844_v13 = vadd.f32 %v12408_v4, %v24780_v29  ;;  %v12410_v19 = vpop.f32.mrb[38].mxu0  ;;  %13205 = vmatprep.mubr.bf16.mxu0 %v24983_v7  ;;  %v12666_v18 = vshll.u32 %v24983_v7, 16  ;;  %v20850_v29 = vld [vmem:[%s26147_s9 + $0x230] ss:$8 sps:$4 sm:$0xff]  }
 0xadb   : > { %v18845_v1 = vadd.f32 %v12410_v19, %v24785_v33  ;;  %v12412_v48 = vpop.f32.mrb[39].mxu0  ;;  %v12656_v37 = vrot.slane %v12654_v28, 1  ;;  %13206 = vmatmul.mubr.bf16.gmra.mrb[84].mxu0 %v24981_v51  ;;  %v12513_v8 = vadd.f32 %v18843_v57, %v24949_v11  ;;  %v12678_v33 = vshrl.u32 %v24983_v7, 16 }
 0xadc   : > { %v18846_v24 = vadd.f32 %v12412_v48, %v24790_v25  ;;  %13500 = vmatpush1.bf16.msra.mxu0 %v20844_v54  ;;  %v12668_v23 = vrot.slane %v12666_v18, 1  ;;  %v20855_v25 = vld [vmem:[%s26147_s9 + $0x244] ss:$8 sps:$4 sm:$0xff]   ;;  %v12514_v45 = vadd.f32 %v18844_v13, %v24953_v15 }
 0xadd   : > { %v12515_v39 = vadd.f32 %v18845_v1, %v24949_v11  ;;  %13501 = vmatprep.subr.bf16.mxu0 %v20852_v3  ;;  %v12657_v50 = vsel %vm597_vm0, %v12652_v34, %v12656_v37  ;;  %v13967_v5 = vor.u32 %v12670_v21, %v12656_v37  ;;  %v20856_v3 = vld [vmem:[%s26147_s9 + $0x250] ss:$8 sps:$4 sm:$0xff]  }
 0xade   : > { %v12516_v46 = vadd.f32 %v18846_v24, %v24953_v15  ;;  %v12669_v55 = vsel %vm597_vm0, %v12664_v32, %v12668_v23  ;;  %v13979_v53 = vor.u32 %v12678_v33, %v12668_v23  ;;  %v20859_v32 = vld [vmem:[%s26147_s9 + $0x260] ss:$8 sps:$4 sm:$0xff]  }
 0xadf   : > { %v25014_v20 = vpack.c.bf16 %v12515_v39, %v12513_v8  ;;  %12944 = vmatprep.mubr.bf16.mxu1 %v12669_v55 }
 0xae0   : > { %v25017_v63 = vpack.c.bf16 %v12516_v46, %v12514_v45  ;;  %v12416_v56 = vpop.f32.mrb[40].mxu0  ;;  %13502 = vmatpush1.bf16.msra.mxu0 %v20850_v29  ;;  %12945 = vmatmul.mubr.bf16.vlgmr.msra.gmra.mrb[104].mxu1 %v12657_v50  ;;  %v20864_v29 = vld [vmem:[%s26147_s9 + $0x274] ss:$8 sps:$4 sm:$0xff]  }
 0xae1   : > { %12555 = vst [vmem:[#allocation5 + $0x20] sm:$0xff] %v25014_v20  ;;  %v18847_v17 = vadd.f32 %v12416_v56, %v24800_v6  ;;  %v12418_v44 = vpop.f32.mrb[41].mxu0  ;;  %13503 = vmatprep.subr.bf16.mxu0 %v20855_v25  ;;  %v12674_v9 = vshll.u32 %v25014_v20, 16  ;;  %v12686_v45 = vshrl.u32 %v25014_v20, 16 }
 0xae2   : > { %12556 = vst [vmem:[#allocation5 + $0x28] sm:$0xff] %v25017_v63  ;;  %v18848_v43 = vadd.f32 %v12418_v44, %v24802_v47  ;;  %v12420_v12 = vpop.f32.mrb[42].mxu0  ;;  %13215 = vmatprep.mubr.bf16.mxu0 %v25017_v63  ;;  %v12682_v54 = vshll.u32 %v25017_v63, 16  ;;  %v12694_v33 = vshrl.u32 %v25017_v63, 16 }
 0xae3   : > { %v18849_v57 = vadd.f32 %v12420_v12, %v24807_v2  ;;  %v12422_v6 = vpop.f32.mrb[43].mxu0  ;;  %13216 = vmatmul.mubr.bf16.gmra.mrb[88].mxu0 %v25014_v20  ;;  %v12676_v4 = vrot.slane %v12674_v9, 1  ;;  %v12517_v47 = vadd.f32 %v18847_v17, %v24949_v11  ;;  %v20861_v2 = vld [vmem:[%s26147_s9 + $0x264] ss:$8 sps:$4 sm:$0xff]  }
 0xae4   : > { %v18850_v28 = vadd.f32 %v12422_v6, %v24809_v35  ;;  %13504 = vmatpush1.bf16.msra.mxu0 %v20853_v30  ;;  %v12684_v13 = vrot.slane %v12682_v54, 1  ;;  %v12518_v35 = vadd.f32 %v18848_v43, %v24953_v15  ;;  %v20867_v30 = vld [vmem:[%s26147_s9 + $0x284] ss:$8 sps:$4 sm:$0xff]   ;;  %v20865_v54 = vld [vmem:[%s26147_s9 + $0x280] ss:$8 sps:$4 sm:$0xff]  }
 0xae5   : > { %v12519_v19 = vadd.f32 %v18849_v57, %v24949_v11  ;;  %13505 = vmatprep.subr.bf16.mxu0 %v20858_v60  ;;  %v25044_v59 = vsel %vm597_vm0, %v13967_v5, %v12676_v4 }
 0xae6   : > { %v12520_v26 = vadd.f32 %v18850_v28, %v24953_v15  ;;  %v25049_v18 = vsel %vm597_vm0, %v13979_v53, %v12684_v13  ;;  %v12696_v50 = vor.u32 %v12694_v33, %v12684_v13 }
 0xae7   : > { %v25051_v1 = vpack.c.bf16 %v12519_v19, %v12517_v47  ;;  %12954 = vmatprep.mubr.bf16.mxu1 %v25049_v18 }
 0xae8   : > { %v25054_v48 = vpack.c.bf16 %v12520_v26, %v12518_v35  ;;  %v12426_v37 = vpop.f32.mrb[44].mxu0  ;;  %13506 = vmatpush1.bf16.msra.mxu0 %v20856_v3  ;;  %12955 = vmatmul.mubr.bf16.gmra.mrb[108].mxu1 %v25044_v59 }
 0xae9   : > { %12557 = vst [vmem:[#allocation5 + $0x30] sm:$0xff] %v25051_v1  ;;  %v18851_v24 = vadd.f32 %v12426_v37, %v24811_v40  ;;  %v12428_v34 = vpop.f32.mrb[45].mxu0  ;;  %13507 = vmatprep.subr.bf16.mxu0 %v20861_v2  ;;  %v12690_v23 = vshll.u32 %v25051_v1, 16  ;;  %v12702_v35 = vshrl.u32 %v25051_v1, 16 }
 0xaea   : > { %12558 = vst [vmem:[#allocation5 + $0x38] sm:$0xff] %v25054_v48  ;;  %v18852_v8 = vadd.f32 %v12428_v34, %v24813_v62  ;;  %v12430_v39 = vpop.f32.mrb[46].mxu0  ;;  %13225 = vmatprep.mubr.bf16.mxu0 %v25054_v48  ;;  %v12698_v21 = vshll.u32 %v25054_v48, 16  ;;  %v20862_v62 = vld [vmem:[%s26147_s9 + $0x270] ss:$8 sps:$4 sm:$0xff]   ;;  %v12710_v47 = vshrl.u32 %v25054_v48, 16 }
 0xaeb   : > { %v18853_v40 = vadd.f32 %v12430_v39, %v24815_v16  ;;  %v12432_v25 = vpop.f32.mrb[47].mxu0  ;;  %13226 = vmatmul.mubr.bf16.gmra.mrb[92].mxu0 %v25051_v1  ;;  %v12692_v46 = vrot.slane %v12690_v23, 1  ;;  %v12521_v5 = vadd.f32 %v18851_v24, %v24949_v11  ;;  %v12688_v16 = vor.u32 %v12686_v45, %v12676_v4  ;;  %v20870_v4 = vld [vmem:[%s26147_s9 + $0x294] ss:$8 sps:$4 sm:$0xff]   ;;  %v20873_v23 = vld [vmem:[%s26147_s9 + $0x2a4] ss:$8 sps:$4 sm:$0xff]  }
 0xaec   : > { %v18854_v55 = vadd.f32 %v12432_v25, %v24817_v14  ;;  %13508 = vmatpush1.bf16.msra.mxu0 %v20859_v32  ;;  %v12700_v53 = vrot.slane %v12698_v21, 1  ;;  %v12522_v17 = vadd.f32 %v18852_v8, %v24953_v15  ;;  %v20871_v45 = vld [vmem:[%s26147_s9 + $0x2a0] ss:$8 sps:$4 sm:$0xff]  }
 0xaed   : > { %v12523_v56 = vadd.f32 %v18853_v40, %v24949_v11  ;;  %13509 = vmatprep.subr.bf16.mxu0 %v20864_v29  ;;  %v25092_v9 = vsel %vm597_vm0, %v12688_v16, %v12692_v46  ;;  %v12704_v29 = vor.u32 %v12702_v35, %v12692_v46 }
 0xaee   : > { %v12524_v14 = vadd.f32 %v18854_v55, %v24953_v15  ;;  %v25086_v44 = vsel %vm597_vm0, %v12696_v50, %v12700_v53  ;;  %v12712_v32 = vor.u32 %v12710_v47, %v12700_v53 }
 0xaef   : > { %v25088_v60 = vpack.c.bf16 %v12523_v56, %v12521_v5  ;;  %12964 = vmatprep.mubr.bf16.mxu1 %v25086_v44 }
 0xaf0   : > { %v25094_v43 = vpack.c.bf16 %v12524_v14, %v12522_v17  ;;  %v12436_v12 = vpop.f32.mrb[48].mxu0  ;;  %13510 = vmatpush1.bf16.msra.mxu0 %v20862_v62  ;;  %12965 = vmatmul.mubr.bf16.gmra.mrb[112].mxu1 %v25092_v9  ;;  %v20876_v62 = vld [vmem:[%s26147_s9 + $0x2b4] ss:$8 sps:$4 sm:$0xff]  }
 0xaf1   : > { %12559 = vst [vmem:[#allocation5 + $0x40] sm:$0xff] %v25088_v60  ;;  %v18855_v57 = vadd.f32 %v12436_v12, %v24819_v10  ;;  %v12438_v6 = vpop.f32.mrb[49].mxu0  ;;  %13511 = vmatprep.subr.bf16.mxu0 %v20867_v30  ;;  %v12706_v28 = vshll.u32 %v25088_v60, 16  ;;  %v13255_v30 = vld [vmem:[#allocation5 + $0x8] sm:$0xfe] }
 0xaf2   : > { %12560 = vst [vmem:[#allocation5 + $0x48] sm:$0xff] %v25094_v43  ;;  %v18856_v3 = vadd.f32 %v12438_v6, %v24821_v61  ;;  %v12440_v13 = vpop.f32.mrb[50].mxu0  ;;  %13235 = vmatprep.mubr.bf16.mxu0 %v25094_v43  ;;  %v12714_v19 = vshll.u32 %v25094_v43, 16  ;;  %v20868_v61 = vld [vmem:[%s26147_s9 + $0x290] ss:$8 sps:$4 sm:$0xff]  }
 0xaf3   : > { %v18857_v10 = vadd.f32 %v12440_v13, %v24823_v41  ;;  %v12442_v2 = vpop.f32.mrb[51].mxu0  ;;  %13236 = vmatmul.mubr.bf16.gmra.mrb[96].mxu0 %v25088_v60  ;;  %v25114_v26 = vrot.slane %v12706_v28, 1  ;;  %v12525_v34 = vadd.f32 %v18855_v57, %v24949_v11  ;;  %v13305_v57 = vrot.slane %v24983_v7, 1  ;;  %v20877_v6 = vld [vmem:[%s26147_s9 + $0x2c0] ss:$8 sps:$4 sm:$0xff]  }
 0xaf4   : > { %v18858_v37 = vadd.f32 %v12442_v2, %v24825_v58  ;;  %13512 = vmatpush1.bf16.msra.mxu0 %v20865_v54  ;;  %v25120_v24 = vrot.slane %v12714_v19, 1  ;;  %v12526_v58 = vadd.f32 %v18856_v3, %v24953_v15  ;;  %v13304_v54 = vrot.slane %v13255_v30, 1  ;;  %v20882_v13 = vld [vmem:[%s26147_s9 + $0x2d4] ss:$8 sps:$4 sm:$0xff]  }
 0xaf5   : > { %v12527_v41 = vadd.f32 %v18857_v10, %v24949_v11  ;;  %13513 = vmatprep.subr.bf16.mxu0 %v20870_v4  ;;  %v25138_v21 = vsel %vm597_vm0, %v12704_v29, %v25114_v26  ;;  %v12718_v29 = vshrl.u32 %v25088_v60, 16 }
 0xaf6   : > { %v12528_v8 = vadd.f32 %v18858_v37, %v24953_v15  ;;  %v25131_v39 = vsel %vm597_vm0, %v12712_v32, %v25120_v24  ;;  %v12726_v37 = vshrl.u32 %v25094_v43, 16 }
 0xaf7   : > { %v25133_v33 = vpack.c.bf16 %v12527_v41, %v12525_v34  ;;  %12974 = vmatprep.mubr.bf16.mxu1 %v25131_v39 }
 0xaf8   : > { %v25140_v40 = vpack.c.bf16 %v12528_v8, %v12526_v58  ;;  %v12446_v25 = vpop.f32.mrb[52].mxu0  ;;  %13514 = vmatpush1.bf16.msra.mxu0 %v20868_v61  ;;  %12975 = vmatmul.mubr.bf16.gmra.mrb[116].mxu1 %v25138_v21  ;;  %v13306_v58 = vsel %vm1135_vm2, %v13304_v54, %v13305_v57  ;;  %v20894_v54 = vld [vmem:[%s26147_s9 + $0x314] ss:$8 sps:$4 sm:$0xff]  }
 0xaf9   : > { %12561 = vst [vmem:[#allocation5 + $0x50] sm:$0xff] %v25133_v33  ;;  %v18859_v46 = vadd.f32 %v12446_v25, %v24827_v22  ;;  %v12448_v55 = vpop.f32.mrb[53].mxu0  ;;  %13515 = vmatprep.subr.bf16.mxu0 %v20873_v23  ;;  %v20874_v22 = vld [vmem:[%s26147_s9 + $0x2b0] ss:$8 sps:$4 sm:$0xff]  }
 0xafa   : > { %12562 = vst [vmem:[#allocation5 + $0x58] sm:$0xff] %v25140_v40  ;;  %v18860_v50 = vadd.f32 %v12448_v55, %v24829_v38  ;;  %v12450_v53 = vpop.f32.mrb[54].mxu0  ;;  %v20879_v38 = vld [vmem:[%s26147_s9 + $0x2c4] ss:$8 sps:$4 sm:$0xff]  }
 0xafb   : > { %v18861_v5 = vadd.f32 %v12450_v53, %v24831_v27  ;;  %v12452_v56 = vpop.f32.mrb[55].mxu0  ;;  %v12529_v17 = vadd.f32 %v18859_v46, %v24949_v11 }
 0xafc   : > { %v18862_v16 = vadd.f32 %v12452_v56, %v24833_v49  ;;  %13516 = vmatpush1.bf16.msra.mxu0 %v20871_v45  ;;  %v12530_v27 = vadd.f32 %v18860_v50, %v24953_v15  ;;  %v20888_v56 = vld [vmem:[%s26147_s9 + $0x2f4] ss:$8 sps:$4 sm:$0xff]  }
 0xafd   : > { %v12531_v14 = vadd.f32 %v18861_v5, %v24949_v11  ;;  %13517 = vmatprep.subr.bf16.mxu0 %v20876_v62  ;;  %v25195_v62 = vor.u32 %v12718_v29, %v25114_v26  ;;  %v20883_v26 = vld [vmem:[%s26147_s9 + $0x2e0] ss:$8 sps:$4 sm:$0xff]  }
 0xafe   : > { %v12532_v12 = vadd.f32 %v18862_v16, %v24953_v15  ;;  %v13254_v16 = vld [vmem:[#allocation5] sm:$0xfe] }
 0xaff   : > { %v12547_v49 = vpack.c.bf16 %v12531_v14, %v12529_v17  ;;  %v20891_v17 = vld [vmem:[%s26147_s9 + $0x304] ss:$8 sps:$4 sm:$0xff]   ;;  %v13302_v14 = vrot.slane %v24981_v51, 1  ;;  %v20901_v29 = vld [vmem:[%s26147_s9 + $0x340] ss:$8 sps:$4 sm:$0xff]  }
 0xb00   : > { %v12548_v4 = vpack.c.bf16 %v12532_v12, %v12530_v27  ;;  %v12456_v28 = vpop.f32.mrb[76].mxu0  ;;  %13518 = vmatpush1.bf16.msra.mxu0 %v20874_v22  ;;  %v25169_v3 = vld [vmem:[#allocation5 + $0x50] sm:$0xf]  ;;  %v13301_v27 = vrot.slane %v13254_v16, 1  ;;  %v25219_v12 = vrot.slane %v25017_v63, 1 }
 0xb01   : > { %12563 = vst [vmem:[#allocation5 + $0x60] sm:$0xff] %v12547_v49  ;;  %v12491_v47 = vadd.f32 %v12456_v28, %v24940_v31  ;;  %v12458_v19 = vpop.f32.mrb[77].mxu0  ;;  %v12578_v10 = vld [vmem:[#allocation5 + $0x58] sm:$0x7]  ;;  %v12722_v35 = vshll.u32 %v25169_v3, 16  ;;  %13519 = vmatprep.subr.bf16.mxu0 %v20879_v38  ;;  %v12734_v30 = vshrl.u32 %v25169_v3, 16 }
 0xb02   : > { %v25175_v2 = vld [vmem:[#allocation5 + $0x58] sm:$0xf]  ;;  %12564 = vst [vmem:[#allocation5 + $0x68] sm:$0xff] %v12548_v4  ;;  %v12492_v61 = vadd.f32 %v12458_v19, %v24942_v36  ;;  %v12460_v32 = vpop.f32.mrb[78].mxu0  ;;  %13245 = vmatprep.mubr.bf16.mxu0 %v12578_v10  ;;  %v12577_v34 = vld [vmem:[#allocation5 + $0x50] sm:$0x7]  ;;  %v25188_v36 = vor.u32 %v12726_v37, %v25120_v24  ;;  %v13310_v4 = vsel %vm1135_vm2, %v13305_v57, %v25219_v12 }
 0xb03   : > { %v12730_v41 = vshll.u32 %v25175_v2, 16  ;;  %v12533_v31 = vadd.f32 %v24949_v11, %v12491_v47  ;;  %v12461_v23 = vpop.f32.mrb[79].mxu0  ;;  %13246 = vmatmul.mubr.bf16.gmra.mrb[100].mxu0 %v12577_v34  ;;  %v12724_v8 = vrot.slane %v12722_v35, 1  ;;  %v12737_v46 = vshrl.u32 %v25175_v2, 16  ;;  %v20880_v11 = vld [vmem:[%s26147_s9 + $0x2d0] ss:$8 sps:$4 sm:$0xff]  }
 0xb04   : > { %v12534_v25 = vadd.f32 %v24953_v15, %v12492_v61  ;;  %13527 = vmatprep.mubr.bf16.mxu0 %v13306_v58  ;;  %13520 = vmatpush1.bf16.msra.mxu0 %v20877_v6  ;;  %v20885_v15 = vld [vmem:[%s26147_s9 + $0x2e4] ss:$8 sps:$4 sm:$0xff]   ;;  %v20886_v22 = vld [vmem:[%s26147_s9 + $0x2f0] ss:$8 sps:$4 sm:$0xff]   ;;  %v20889_v49 = vld [vmem:[%s26147_s9 + $0x300] ss:$8 sps:$4 sm:$0xff]   ;;  %v13303_v6 = vsel %vm1135_vm2, %v13301_v27, %v13302_v14 }
 0xb05   : > { %v12732_v45 = vrot.slane %v12730_v41, 1  ;;  %v12549_v55 = vpack.c.bf16 %v12533_v31, %v12533_v31  ;;  %13521 = vmatprep.subr.bf16.mxu0 %v20882_v13  ;;  %v12725_v5 = vsel %vm597_vm0, %v25195_v62, %v12724_v8  ;;  %v12736_v38 = vor.u32 %v12734_v30, %v12724_v8  ;;  %v20892_v28 = vld [vmem:[%s26147_s9 + $0x310] ss:$8 sps:$4 sm:$0xff]   ;;  %v20897_v13 = vld [vmem:[%s26147_s9 + $0x324] ss:$8 sps:$4 sm:$0xff]  }
 0xb06   : > { %v12550_v50 = vpack.c.bf16 %v12534_v25, %v12534_v25  ;;  %v25239_v47 = vrot.slane %v25014_v20, 1  ;;  %v13313_v19 = vrot.slane %v25054_v48, 1  ;;  %v20895_v57 = vld [vmem:[%s26147_s9 + $0x320] ss:$8 sps:$4 sm:$0xff]   ;;  %v20900_v10 = vld [vmem:[%s26147_s9 + $0x334] ss:$8 sps:$4 sm:$0xff]  }
 0xb07   : > { %v12733_v24 = vsel %vm597_vm0, %v25188_v36, %v12732_v45  ;;  %v12739_v53 = vor.u32 %v12737_v46, %v12732_v45  ;;  %12565 = vst [vmem:[#allocation5 + $0x70] sm:$0xf] %v12549_v55  ;;  %v20898_v61 = vld [vmem:[%s26147_s9 + $0x330] ss:$8 sps:$4 sm:$0xff]   ;;  %v20903_v32 = vld [vmem:[%s26147_s9 + $0x344] ss:$8 sps:$4 sm:$0xff]  }
 0xb08   : > { %12984 = vmatprep.mubr.bf16.mxu1 %v12733_v24  ;;  %12566 = vst [vmem:[#allocation5 + $0x78] sm:$0xf] %v12550_v50  ;;  %13522 = vmatpush1.bf16.msra.mxu0 %v20880_v11  ;;  %v13308_v35 = vsel %vm1135_vm2, %v13302_v14, %v25239_v47  ;;  %v25252_v37 = vsel %vm1135_vm2, %v25219_v12, %v13313_v19  ;;  %v13311_v34 = vrot.slane %v25051_v1, 1  ;;  %v25263_v41 = vrot.slane %v25094_v43, 1  ;;  %v20906_v31 = vld [vmem:[%s26147_s9 + $0x354] ss:$8 sps:$4 sm:$0xff]  }
 0xb09   : > { %12985 = vmatmul.mubr.bf16.gmra.mrb[120].mxu1 %v12725_v5  ;;  %13523 = vmatprep.subr.bf16.mxu0 %v20885_v15  ;;  %v20904_v8 = vld [vmem:[%s26147_s9 + $0x350] ss:$8 sps:$4 sm:$0xff]   ;;  %v20909_v25 = vld [vmem:[%s26147_s9 + $0x364] ss:$8 sps:$4 sm:$0xff]   ;;  %v25288_v45 = vrot.slane %v25088_v60, 1  ;;  %v13321_v46 = vrot.slane %v25175_v2, 1 }
 0xb0a   : > { %12994 = vmatprep.mubr.bf16.mxu1 %v12739_v53  ;;  %v25273_v23 = vsel %vm1135_vm2, %v25239_v47, %v13311_v34  ;;  %v25278_v58 = vsel %vm1135_vm2, %v13313_v19, %v25263_v41  ;;  %v20907_v11 = vld [vmem:[%s26147_s9 + $0x360] ss:$8 sps:$4 sm:$0xff]   ;;  %v20912_v55 = vld [vmem:[%s26147_s9 + $0x374] ss:$8 sps:$4 sm:$0xff]   ;;  %v20910_v2 = vld [vmem:[%s26147_s9 + $0x370] ss:$8 sps:$4 sm:$0xff]  }
 0xb0b   : > { %v25299_v15 = vsel %vm1135_vm2, %v13311_v34, %v25288_v45  ;;  %v13322_v50 = vsel %vm1135_vm2, %v25263_v41, %v13321_v46  ;;  %v20915_v24 = vld [vmem:[%s26147_s9 + $0x384] ss:$8 sps:$4 sm:$0xff]   ;;  %v13319_v53 = vrot.slane %v25169_v3, 1  ;;  %v20913_v5 = vld [vmem:[%s26147_s9 + $0x380] ss:$8 sps:$4 sm:$0xff]  }
 0xb0c   : > { %13524 = vmatpush1.bf16.msra.mxu0 %v20883_v26  ;;  %v20918_v26 = vld [vmem:[%s26147_s9 + $0x394] ss:$8 sps:$4 sm:$0xff]   ;;  %v20916_v3 = vld [vmem:[%s26147_s9 + $0x390] ss:$8 sps:$4 sm:$0xff]   ;;  %v20921_v16 = vld [vmem:[%s26147_s9 + $0x3a4] ss:$8 sps:$4 sm:$0xff]  }
 0xb0d   : > { %13525 = vmatprep.subr.bf16.mxu0 %v20888_v56  ;;  %v13320_v56 = vsel %vm1135_vm2, %v25288_v45, %v13319_v53  ;;  %v20919_v30 = vld [vmem:[%s26147_s9 + $0x3a0] ss:$8 sps:$4 sm:$0xff]   ;;  %v20927_v14 = vld [vmem:[%s26147_s9 + $0x3c4] ss:$8 sps:$4 sm:$0xff]   ;;  %v20930_v27 = vld [vmem:[%s26147_s9 + $0x3d4] ss:$8 sps:$4 sm:$0xff]  }
 0xb0e   : > { %v20942_v19 = vld [vmem:[%s26147_s9 + $0x414] ss:$8 sps:$4 sm:$0xff]   ;;  %v20957_v34 = vld [vmem:[%s26147_s9 + $0x464] ss:$8 sps:$4 sm:$0xff]  }
 0xb10   : > { %13526 = vmatpush1.bf16.msra.mxu0 %v20886_v22  ;;  %v20924_v22 = vld [vmem:[%s26147_s9 + $0x3b4] ss:$8 sps:$4 sm:$0xff]  }
 0xb11   : > { %12995 = vmatmul.mubr.bf16.gmra.mrb[124].mxu1 %v12736_v38  ;;  %13813 = vmatprep.subr.bf16.mxu0 %v20891_v17  ;;  %v20922_v17 = vld [vmem:[%s26147_s9 + $0x3b0] ss:$8 sps:$4 sm:$0xff]   ;;  %v20925_v38 = vld [vmem:[%s26147_s9 + $0x3c0] ss:$8 sps:$4 sm:$0xff]  }
 0xb13   : > { %13528 = vmatmul.mubr.bf16.vlgmr.msra.gmra.mrb[80].mxu0 %v13303_v6  ;;  %v20936_v6 = vld [vmem:[%s26147_s9 + $0x3f4] ss:$8 sps:$4 sm:$0xff]  }
 0xb14   : > { %13537 = vmatprep.mubr.bf16.mxu0 %v13310_v4  ;;  %13814 = vmatpush1.bf16.msra.mxu0 %v20889_v49  ;;  %v20933_v49 = vld [vmem:[%s26147_s9 + $0x3e4] ss:$8 sps:$4 sm:$0xff]   ;;  %v20934_v4 = vld [vmem:[%s26147_s9 + $0x3f0] ss:$8 sps:$4 sm:$0xff]  }
 0xb15   : > { %13815 = vmatprep.subr.bf16.mxu0 %v20894_v54  ;;  %v20931_v54 = vld [vmem:[%s26147_s9 + $0x3e0] ss:$8 sps:$4 sm:$0xff]  }
 0xb18   : > { %13816 = vmatpush1.bf16.msra.mxu0 %v20892_v28  ;;  %v20939_v28 = vld [vmem:[%s26147_s9 + $0x404] ss:$8 sps:$4 sm:$0xff]  }
 0xb19   : > { %13817 = vmatprep.subr.bf16.mxu0 %v20897_v13  ;;  %v20937_v13 = vld [vmem:[%s26147_s9 + $0x400] ss:$8 sps:$4 sm:$0xff]  }
 0xb1b   : > { %13538 = vmatmul.mubr.bf16.gmra.mrb[84].mxu0 %v13308_v35  ;;  %v20943_v35 = vld [vmem:[%s26147_s9 + $0x420] ss:$8 sps:$4 sm:$0xff]  }
 0xb1c   : > { %13547 = vmatprep.mubr.bf16.mxu0 %v25252_v37  ;;  %13818 = vmatpush1.bf16.msra.mxu0 %v20895_v57  ;;  %v20940_v57 = vld [vmem:[%s26147_s9 + $0x410] ss:$8 sps:$4 sm:$0xff]  }
 0xb1d   : > { %13819 = vmatprep.subr.bf16.mxu0 %v20900_v10  ;;  %v20945_v10 = vld [vmem:[%s26147_s9 + $0x424] ss:$8 sps:$4 sm:$0xff]  }
 0xb20   : > { %13820 = vmatpush1.bf16.msra.mxu0 %v20898_v61  ;;  %v20951_v61 = vld [vmem:[%s26147_s9 + $0x444] ss:$8 sps:$4 sm:$0xff]  }
 0xb21   : > { %13821 = vmatprep.subr.bf16.mxu0 %v20903_v32  ;;  %v20949_v32 = vld [vmem:[%s26147_s9 + $0x440] ss:$8 sps:$4 sm:$0xff]  }
 0xb23   : > { %13548 = vmatmul.mubr.bf16.gmra.mrb[88].mxu0 %v25273_v23 }
 0xb24   : > { %13557 = vmatprep.mubr.bf16.mxu0 %v25278_v58  ;;  %13822 = vmatpush1.bf16.msra.mxu0 %v20901_v29  ;;  %v20955_v29 = vld [vmem:[%s26147_s9 + $0x460] ss:$8 sps:$4 sm:$0xff]  }
 0xb25   : > { %13823 = vmatprep.subr.bf16.mxu0 %v20906_v31  ;;  %v20963_v31 = vld [vmem:[%s26147_s9 + $0x484] ss:$8 sps:$4 sm:$0xff]  }
 0xb28   : > { %13824 = vmatpush1.bf16.msra.mxu0 %v20904_v8  ;;  %v20961_v8 = vld [vmem:[%s26147_s9 + $0x480] ss:$8 sps:$4 sm:$0xff]  }
 0xb29   : > { %13825 = vmatprep.subr.bf16.mxu0 %v20909_v25  ;;  %v13619_v25 = vld [vmem:[#allocation5 + $0x68] sm:$0x7] }
 0xb2b   : > { %13558 = vmatmul.mubr.bf16.gmra.mrb[92].mxu0 %v25299_v15 }
 0xb2c   : > { %13567 = vmatprep.mubr.bf16.mxu0 %v13322_v50  ;;  %13826 = vmatpush1.bf16.msra.mxu0 %v20907_v11  ;;  %v20969_v11 = vld [vmem:[%s26147_s9 + $0x4a4] ss:$8 sps:$4 sm:$0xff]   ;;  %v20972_v50 = vld [vmem:[%s26147_s9 + $0x4b4] ss:$8 sps:$4 sm:$0xff]  }
 0xb2d   : > { %13827 = vmatprep.subr.bf16.mxu0 %v20912_v55  ;;  %v20967_v55 = vld [vmem:[%s26147_s9 + $0x4a0] ss:$8 sps:$4 sm:$0xff]  }
 0xb30   : > { %13828 = vmatpush1.bf16.msra.mxu0 %v20910_v2  ;;  %v13618_v2 = vld [vmem:[#allocation5 + $0x60] sm:$0x7] }
 0xb31   : > { %13829 = vmatprep.subr.bf16.mxu0 %v20915_v24  ;;  %v20970_v24 = vld [vmem:[%s26147_s9 + $0x4b0] ss:$8 sps:$4 sm:$0xff]  }
 0xb33   : > { %13568 = vmatmul.mubr.bf16.gmra.mrb[96].mxu0 %v13320_v56  ;;  %v20981_v56 = vld [vmem:[%s26147_s9 + $0x4e4] ss:$8 sps:$4 sm:$0xff]  }
 0xb34   : > { %13577 = vmatprep.mubr.bf16.mxu0 %v13321_v46  ;;  %13830 = vmatpush1.bf16.msra.mxu0 %v20913_v5  ;;  %v20964_v46 = vld [vmem:[%s26147_s9 + $0x490] ss:$8 sps:$4 sm:$0xff]   ;;  %v20973_v5 = vld [vmem:[%s26147_s9 + $0x4c0] ss:$8 sps:$4 sm:$0xff]  }
 0xb35   : > { %13831 = vmatprep.subr.bf16.mxu0 %v20918_v26  ;;  %v20978_v26 = vld [vmem:[%s26147_s9 + $0x4d4] ss:$8 sps:$4 sm:$0xff]  }
 0xb38   : > { %13832 = vmatpush1.bf16.msra.mxu0 %v20916_v3  ;;  %v20979_v3 = vld [vmem:[%s26147_s9 + $0x4e0] ss:$8 sps:$4 sm:$0xff]  }
 0xb39   : > { %13833 = vmatprep.subr.bf16.mxu0 %v20921_v16  ;;  %v20984_v16 = vld [vmem:[%s26147_s9 + $0x4f4] ss:$8 sps:$4 sm:$0xff]  }
 0xb3b   : > { %13578 = vmatmul.mubr.bf16.gmra.mrb[104].mxu0 %v13319_v53  ;;  %v20975_v53 = vld [vmem:[%s26147_s9 + $0x4c4] ss:$8 sps:$4 sm:$0xff]  }
 0xb3c   : > { %13834 = vmatpush1.bf16.msra.mxu0 %v20919_v30  ;;  %13845 = vmatprep.mubr.bf16.mxu0 %v24983_v7  ;;  %v20928_v7 = vld [vmem:[%s26147_s9 + $0x3d0] ss:$8 sps:$4 sm:$0xff]  }
 0xb3d   : > { %13835 = vmatprep.subr.bf16.mxu0 %v20924_v22  ;;  %v20982_v30 = vld [vmem:[%s26147_s9 + $0x4f0] ss:$8 sps:$4 sm:$0xff]   ;;  %v20987_v22 = vld [vmem:[%s26147_s9 + $0x504] ss:$8 sps:$4 sm:$0xff]  }
 0xb40   : > { %13836 = vmatpush1.bf16.msra.mxu0 %v20922_v17  ;;  %v20985_v17 = vld [vmem:[%s26147_s9 + $0x500] ss:$8 sps:$4 sm:$0xff]  }
 0xb41   : > { %13837 = vmatprep.subr.bf16.mxu0 %v20927_v14  ;;  %v20990_v14 = vld [vmem:[%s26147_s9 + $0x514] ss:$8 sps:$4 sm:$0xff]  }
 0xb44   : > { %13838 = vmatpush1.bf16.msra.mxu0 %v20925_v38  ;;  %v20988_v38 = vld [vmem:[%s26147_s9 + $0x510] ss:$8 sps:$4 sm:$0xff]  }
 0xb45   : > { %13839 = vmatprep.subr.bf16.mxu0 %v20930_v27  ;;  %v20993_v27 = vld [vmem:[%s26147_s9 + $0x524] ss:$8 sps:$4 sm:$0xff]  }
 0xb48   : > { %13840 = vmatpush1.bf16.msra.mxu0 %v20928_v7  ;;  %v20991_v7 = vld [vmem:[%s26147_s9 + $0x520] ss:$8 sps:$4 sm:$0xff]  }
 0xb49   : > { %13841 = vmatprep.subr.bf16.mxu0 %v20933_v49  ;;  %v20994_v49 = vld [vmem:[%s26147_s9 + $0x530] ss:$8 sps:$4 sm:$0xff]  }
 0xb4c   : > { %13842 = vmatpush1.bf16.msra.mxu0 %v20931_v54  ;;  %v20999_v54 = vld [vmem:[%s26147_s9 + $0x544] ss:$8 sps:$4 sm:$0xff]  }
 0xb4d   : > { %13843 = vmatprep.subr.bf16.mxu0 %v20936_v6 }
 0xb50   : > { %13844 = vmatpush1.bf16.msra.mxu0 %v20934_v4  ;;  %v25500_v4 = vld [vmem:[#allocation5 + $0x68] sm:$0xf] }
 0xb51   : > { %14227 = vmatprep.subr.bf16.mxu0 %v20939_v28  ;;  %v14021_v28 = vshll.u32 %v25133_v33, 16 }
 0xb53   : > { %13846 = vmatmul.mubr.bf16.vlgmr.msra.gmra.mrb[80].mxu0 %v24981_v51  ;;  %v20948_v51 = vld [vmem:[%s26147_s9 + $0x434] ss:$8 sps:$4 sm:$0xff]  }
 0xb54   : > { %13855 = vmatprep.mubr.bf16.mxu0 %v25017_v63  ;;  %14228 = vmatpush1.bf16.msra.mxu0 %v20937_v13  ;;  %v20946_v63 = vld [vmem:[%s26147_s9 + $0x430] ss:$8 sps:$4 sm:$0xff]  }
 0xb55   : > { %14229 = vmatprep.subr.bf16.mxu0 %v20942_v19  ;;  %v14045_v19 = vshll.u32 %v25500_v4, 16 }
 0xb58   : > { %14230 = vmatpush1.bf16.msra.mxu0 %v20940_v57  ;;  %v21000_v57 = vld [vmem:[%s26147_s9 + $0x550] ss:$8 sps:$4 sm:$0xff]  }
 0xb59   : > { %14231 = vmatprep.subr.bf16.mxu0 %v20945_v10  ;;  %v21005_v10 = vld [vmem:[%s26147_s9 + $0x564] ss:$8 sps:$4 sm:$0xff]  }
 0xb5b   : > { %13856 = vmatmul.mubr.bf16.gmra.mrb[84].mxu0 %v25014_v20  ;;  %v20954_v20 = vld [vmem:[%s26147_s9 + $0x454] ss:$8 sps:$4 sm:$0xff]  }
 0xb5c   : > { %13865 = vmatprep.mubr.bf16.mxu0 %v25054_v48  ;;  %14232 = vmatpush1.bf16.msra.mxu0 %v20943_v35  ;;  %v20952_v48 = vld [vmem:[%s26147_s9 + $0x450] ss:$8 sps:$4 sm:$0xff]   ;;  %v14023_v35 = vrot.slane %v14021_v28, 1 }
 0xb5d   : > { %14233 = vmatprep.subr.bf16.mxu0 %v20948_v51  ;;  %v14041_v51 = vshrl.u32 %v25140_v40, 16 }
 0xb60   : > { %14234 = vmatpush1.bf16.msra.mxu0 %v20946_v63  ;;  %v25517_v63 = vld [vmem:[#allocation5 + $0x60] sm:$0xf] }
 0xb61   : > { %14235 = vmatprep.subr.bf16.mxu0 %v20951_v61 }
 0xb63   : > { %13866 = vmatmul.mubr.bf16.gmra.mrb[88].mxu0 %v25051_v1  ;;  %v20960_v1 = vld [vmem:[%s26147_s9 + $0x474] ss:$8 sps:$4 sm:$0xff]  }
 0xb64   : > { %13875 = vmatprep.mubr.bf16.mxu0 %v25094_v43  ;;  %14236 = vmatpush1.bf16.msra.mxu0 %v20949_v32  ;;  %v20958_v43 = vld [vmem:[%s26147_s9 + $0x470] ss:$8 sps:$4 sm:$0xff]   ;;  %v21008_v32 = vld [vmem:[%s26147_s9 + $0x574] ss:$8 sps:$4 sm:$0xff]  }
 0xb65   : > { %14237 = vmatprep.subr.bf16.mxu0 %v20954_v20  ;;  %v14024_v20 = vsel %vm597_vm0, %v25195_v62, %v14023_v35 }
 0xb68   : > { %14238 = vmatpush1.bf16.msra.mxu0 %v20952_v48  ;;  %v14037_v48 = vshll.u32 %v25517_v63, 16 }
 0xb69   : > { %14239 = vmatprep.subr.bf16.mxu0 %v20957_v34 }
 0xb6b   : > { %13876 = vmatmul.mubr.bf16.gmra.mrb[92].mxu0 %v25088_v60  ;;  %v20966_v60 = vld [vmem:[%s26147_s9 + $0x494] ss:$8 sps:$4 sm:$0xff]  }
 0xb6c   : > { %13885 = vmatprep.mubr.bf16.mxu0 %v25140_v40  ;;  %14240 = vmatpush1.bf16.msra.mxu0 %v20955_v29  ;;  %v21006_v29 = vld [vmem:[%s26147_s9 + $0x570] ss:$8 sps:$4 sm:$0xff]  }
 0xb6d   : > { %14241 = vmatprep.subr.bf16.mxu0 %v20960_v1  ;;  %v21011_v1 = vld [vmem:[%s26147_s9 + $0x584] ss:$8 sps:$4 sm:$0xff]  }
 0xb70   : > { %14242 = vmatpush1.bf16.msra.mxu0 %v20958_v43  ;;  %v14033_v43 = vshrl.u32 %v25133_v33, 16 }
 0xb71   : > { %14243 = vmatprep.subr.bf16.mxu0 %v20963_v31  ;;  %v14039_v31 = vrot.slane %v14037_v48, 1  ;;  %v21038_v48 = vld [vmem:[%s26147_s9 + $0x614] ss:$8 sps:$4 sm:$0xff]  }
 0xb72   : > { %v14035_v62 = vor.u32 %v14033_v43, %v14023_v35 }
 0xb73   : > { %13886 = vmatmul.mubr.bf16.gmra.mrb[96].mxu0 %v25133_v33 }
 0xb74   : > { %13895 = vmatprep.mubr.bf16.mxu0 %v13619_v25  ;;  %14244 = vmatpush1.bf16.msra.mxu0 %v20961_v8  ;;  %v21009_v8 = vld [vmem:[%s26147_s9 + $0x580] ss:$8 sps:$4 sm:$0xff]   ;;  %v21014_v25 = vld [vmem:[%s26147_s9 + $0x594] ss:$8 sps:$4 sm:$0xff]  }
 0xb75   : > { %14245 = vmatprep.subr.bf16.mxu0 %v20966_v60  ;;  %v14052_v60 = vshrl.u32 %v25500_v4, 16 }
 0xb78   : > { %14246 = vmatpush1.bf16.msra.mxu0 %v20964_v46  ;;  %v14040_v46 = vsel %vm597_vm0, %v14035_v62, %v14039_v31 }
 0xb79   : > { %14247 = vmatprep.subr.bf16.mxu0 %v20969_v11 }
 0xb7b   : > { %13896 = vmatmul.mubr.bf16.gmra.mrb[108].mxu0 %v13618_v2  ;;  %v21012_v2 = vld [vmem:[%s26147_s9 + $0x590] ss:$8 sps:$4 sm:$0xff]  }
 0xb7c   : > { %14248 = vmatpush1.bf16.msra.mxu0 %v20967_v55  ;;  %14259 = vmatprep.mubr.bf16.mxu0 %v25049_v18  ;;  %v20976_v18 = vld [vmem:[%s26147_s9 + $0x4d0] ss:$8 sps:$4 sm:$0xff]  }
 0xb7d   : > { %14249 = vmatprep.subr.bf16.mxu0 %v20972_v50 }
 0xb80   : > { %14250 = vmatpush1.bf16.msra.mxu0 %v20970_v24  ;;  %v14341_v24 = vld [vmem:[#allocation5 + $0x18] sm:$0xfe] }
 0xb81   : > { %14251 = vmatprep.subr.bf16.mxu0 %v20975_v53 }
 0xb84   : > { %14252 = vmatpush1.bf16.msra.mxu0 %v20973_v5  ;;  %v21017_v5 = vld [vmem:[%s26147_s9 + $0x5a4] ss:$8 sps:$4 sm:$0xff]  }
 0xb85   : > { %14253 = vmatprep.subr.bf16.mxu0 %v20978_v26 }
 0xb88   : > { %14254 = vmatpush1.bf16.msra.mxu0 %v20976_v18  ;;  %v14049_v18 = vshrl.u32 %v25517_v63, 16 }
 0xb89   : > { %14255 = vmatprep.subr.bf16.mxu0 %v20981_v56  ;;  %v14390_v56 = vrot.slane %v14341_v24, 1 }
 0xb8c   : > { %14256 = vmatpush1.bf16.msra.mxu0 %v20979_v3  ;;  %v21015_v3 = vld [vmem:[%s26147_s9 + $0x5a0] ss:$8 sps:$4 sm:$0xff]  }
 0xb8d   : > { %14257 = vmatprep.subr.bf16.mxu0 %v20984_v16  ;;  %v14051_v16 = vor.u32 %v14049_v18, %v14039_v31 }
 0xb90   : > { %14258 = vmatpush1.bf16.msra.mxu0 %v20982_v30  ;;  %v21020_v30 = vld [vmem:[%s26147_s9 + $0x5b4] ss:$8 sps:$4 sm:$0xff]  }
 0xb91   : > { %14581 = vmatprep.subr.bf16.mxu0 %v20987_v22 }
 0xb93   : > { %14260 = vmatmul.mubr.bf16.vlgmr.msra.gmra.mrb[80].mxu0 %v25044_v59  ;;  %v20996_v59 = vld [vmem:[%s26147_s9 + $0x534] ss:$8 sps:$4 sm:$0xff]  }
 0xb94   : > { %14269 = vmatprep.mubr.bf16.mxu0 %v25086_v44  ;;  %14582 = vmatpush1.bf16.msra.mxu0 %v20985_v17  ;;  %v14029_v44 = vshll.u32 %v25140_v40, 16  ;;  %v14392_v17 = vsel %vm1135_vm2, %v14390_v56, %v25219_v12  ;;  %v21021_v12 = vld [vmem:[%s26147_s9 + $0x5c0] ss:$8 sps:$4 sm:$0xff]  }
 0xb95   : > { %14583 = vmatprep.subr.bf16.mxu0 %v20990_v14 }
 0xb96   : > { %v14031_v6 = vrot.slane %v14029_v44, 1  ;;  %v21026_v44 = vld [vmem:[%s26147_s9 + $0x5d4] ss:$8 sps:$4 sm:$0xff]  }
 0xb98   : > { %14584 = vmatpush1.bf16.msra.mxu0 %v20988_v38  ;;  %v14032_v13 = vsel %vm597_vm0, %v25188_v36, %v14031_v6  ;;  %v21003_v36 = vld [vmem:[%s26147_s9 + $0x560] ss:$8 sps:$4 sm:$0xff]   ;;  %v14043_v61 = vor.u32 %v14041_v51, %v14031_v6  ;;  %v21018_v38 = vld [vmem:[%s26147_s9 + $0x5b0] ss:$8 sps:$4 sm:$0xff]  }
 0xb99   : > { %14585 = vmatprep.subr.bf16.mxu0 %v20993_v27  ;;  %v21024_v6 = vld [vmem:[%s26147_s9 + $0x5d0] ss:$8 sps:$4 sm:$0xff]  }
 0xb9a   : > { %v21030_v51 = vld [vmem:[%s26147_s9 + $0x5f0] ss:$8 sps:$4 sm:$0xff]  }
 0xb9b   : > { %14270 = vmatmul.mubr.bf16.gmra.mrb[84].mxu0 %v25092_v9  ;;  %v20997_v9 = vld [vmem:[%s26147_s9 + $0x540] ss:$8 sps:$4 sm:$0xff]  }
 0xb9c   : > { %14279 = vmatprep.mubr.bf16.mxu0 %v25131_v39  ;;  %14586 = vmatpush1.bf16.msra.mxu0 %v20991_v7  ;;  %v21002_v39 = vld [vmem:[%s26147_s9 + $0x554] ss:$8 sps:$4 sm:$0xff]   ;;  %v21023_v7 = vld [vmem:[%s26147_s9 + $0x5c4] ss:$8 sps:$4 sm:$0xff]  }
 0xb9d   : > { %14587 = vmatprep.subr.bf16.mxu0 %v20996_v59 }
 0xba0   : > { %14588 = vmatpush1.bf16.msra.mxu0 %v20994_v49 }
 0xba1   : > { %14589 = vmatprep.subr.bf16.mxu0 %v20999_v54 }
 0xba3   : > { %14280 = vmatmul.mubr.bf16.gmra.mrb[88].mxu0 %v25138_v21  ;;  %v14047_v21 = vrot.slane %v14045_v19, 1  ;;  %v21032_v19 = vld [vmem:[%s26147_s9 + $0x5f4] ss:$8 sps:$4 sm:$0xff]  }
 0xba4   : > { %14289 = vmatprep.mubr.bf16.mxu0 %v14032_v13  ;;  %14590 = vmatpush1.bf16.msra.mxu0 %v20997_v9  ;;  %v21027_v13 = vld [vmem:[%s26147_s9 + $0x5e0] ss:$8 sps:$4 sm:$0xff]  }
 0xba5   : > { %14591 = vmatprep.subr.bf16.mxu0 %v21002_v39  ;;  %v14048_v34 = vsel %vm597_vm0, %v14043_v61, %v14047_v21  ;;  %v14054_v11 = vor.u32 %v14052_v60, %v14047_v21  ;;  %v21029_v39 = vld [vmem:[%s26147_s9 + $0x5e4] ss:$8 sps:$4 sm:$0xff]  }
 0xba8   : > { %14592 = vmatpush1.bf16.msra.mxu0 %v21000_v57 }
 0xba9   : > { %14593 = vmatprep.subr.bf16.mxu0 %v21005_v10  ;;  %v14340_v10 = vld [vmem:[#allocation5 + $0x10] sm:$0xfe] }
 0xbab   : > { %14290 = vmatmul.mubr.bf16.gmra.mrb[92].mxu0 %v14024_v20  ;;  %v21033_v20 = vld [vmem:[%s26147_s9 + $0x600] ss:$8 sps:$4 sm:$0xff]  }
 0xbac   : > { %14299 = vmatprep.mubr.bf16.mxu0 %v14048_v34  ;;  %14594 = vmatpush1.bf16.msra.mxu0 %v21003_v36  ;;  %v21035_v36 = vld [vmem:[%s26147_s9 + $0x604] ss:$8 sps:$4 sm:$0xff]  }
 0xbad   : > { %14595 = vmatprep.subr.bf16.mxu0 %v21008_v32  ;;  %v14387_v32 = vrot.slane %v14340_v10, 1 }
 0xbaf   : > { %v14389_v34 = vsel %vm1135_vm2, %v14387_v32, %v25239_v47  ;;  %v21039_v47 = vld [vmem:[%s26147_s9 + $0x620] ss:$8 sps:$4 sm:$0xff]   ;;  %v21068_v32 = vld [vmem:[%s26147_s9 + $0x6b4] ss:$8 sps:$4 sm:$0xff]  }
 0xbb0   : > { %14596 = vmatpush1.bf16.msra.mxu0 %v21006_v29  ;;  %v21036_v29 = vld [vmem:[%s26147_s9 + $0x610] ss:$8 sps:$4 sm:$0xff]  }
 0xbb1   : > { %14597 = vmatprep.subr.bf16.mxu0 %v21011_v1  ;;  %v21041_v1 = vld [vmem:[%s26147_s9 + $0x624] ss:$8 sps:$4 sm:$0xff]  }
 0xbb3   : > { %14300 = vmatmul.mubr.bf16.gmra.mrb[96].mxu0 %v14040_v46  ;;  %v25544_v55 = vpop.f32.mrb[104].mxu1  ;;  %v21042_v46 = vld [vmem:[%s26147_s9 + $0x630] ss:$8 sps:$4 sm:$0xff]  }
 0xbb4   : > { %14309 = vmatprep.mubr.bf16.mxu0 %v14054_v11  ;;  %14598 = vmatpush1.bf16.msra.mxu0 %v21009_v8  ;;  %v25546_v50 = vpop.f32.mrb[105].mxu1 }
 0xbb5   : > { %v25551_v53 = vpop.f32.mrb[106].mxu1  ;;  %14599 = vmatprep.subr.bf16.mxu0 %v21014_v25 }
 0xbb6   : > { %v25556_v26 = vpop.f32.mrb[107].mxu1 }
 0xbb8   : > { %14600 = vmatpush1.bf16.msra.mxu0 %v21012_v2  ;;  %v21047_v2 = vld [vmem:[%s26147_s9 + $0x644] ss:$8 sps:$4 sm:$0xff]  }
 0xbb9   : > { %14601 = vmatprep.subr.bf16.mxu0 %v21017_v5  ;;  %v21050_v5 = vld [vmem:[%s26147_s9 + $0x654] ss:$8 sps:$4 sm:$0xff]  }
 0xbbb   : > { %14310 = vmatmul.mubr.bf16.gmra.mrb[112].mxu0 %v14051_v16  ;;  %v25565_v22 = vpop.f32.mrb[108].mxu1 }
 0xbbc   : > { %14602 = vmatpush1.bf16.msra.mxu0 %v21015_v3  ;;  %14613 = vmatprep.mubr.bf16.mxu0 %v14392_v17  ;;  %v25569_v14 = vpop.f32.mrb[109].mxu1 }
 0xbbd   : > { %v25574_v27 = vpop.f32.mrb[110].mxu1  ;;  %14603 = vmatprep.subr.bf16.mxu0 %v21020_v30 }
 0xbbe   : > { %v25579_v59 = vpop.f32.mrb[111].mxu1 }
 0xbc0   : > { %14604 = vmatpush1.bf16.msra.mxu0 %v21018_v38  ;;  %v21053_v38 = vld [vmem:[%s26147_s9 + $0x664] ss:$8 sps:$4 sm:$0xff]  }
 0xbc1   : > { %14605 = vmatprep.subr.bf16.mxu0 %v21023_v7  ;;  %v14401_v7 = vrot.slane %v25133_v33, 1  ;;  %v21054_v33 = vld [vmem:[%s26147_s9 + $0x670] ss:$8 sps:$4 sm:$0xff]  }
 0xbc3   : > { %v25587_v49 = vpop.f32.mrb[112].mxu1 }
 0xbc4   : > { %14606 = vmatpush1.bf16.msra.mxu0 %v21021_v12  ;;  %v25589_v54 = vpop.f32.mrb[113].mxu1  ;;  %v21051_v12 = vld [vmem:[%s26147_s9 + $0x660] ss:$8 sps:$4 sm:$0xff]  }
 0xbc5   : > { %v25594_v9 = vpop.f32.mrb[114].mxu1  ;;  %14607 = vmatprep.subr.bf16.mxu0 %v21026_v44  ;;  %v21056_v44 = vld [vmem:[%s26147_s9 + $0x674] ss:$8 sps:$4 sm:$0xff]  }
 0xbc6   : > { %v25599_v28 = vpop.f32.mrb[115].mxu1 }
 0xbc8   : > { %14608 = vmatpush1.bf16.msra.mxu0 %v21024_v6  ;;  %v14402_v6 = vsel %vm1135_vm2, %v25288_v45, %v14401_v7  ;;  %v21057_v45 = vld [vmem:[%s26147_s9 + $0x680] ss:$8 sps:$4 sm:$0xff]  }
 0xbc9   : > { %14609 = vmatprep.subr.bf16.mxu0 %v21029_v39 }
 0xbcb   : > { %v25607_v57 = vpop.f32.mrb[116].mxu1 }
 0xbcc   : > { %14610 = vmatpush1.bf16.msra.mxu0 %v21027_v13  ;;  %v25609_v35 = vpop.f32.mrb[117].mxu1  ;;  %v14405_v13 = vrot.slane %v25517_v63, 1  ;;  %v21065_v63 = vld [vmem:[%s26147_s9 + $0x6a4] ss:$8 sps:$4 sm:$0xff]  }
 0xbcd   : > { %v25614_v21 = vpop.f32.mrb[118].mxu1  ;;  %14611 = vmatprep.subr.bf16.mxu0 %v21032_v19  ;;  %v21062_v19 = vld [vmem:[%s26147_s9 + $0x694] ss:$8 sps:$4 sm:$0xff]  }
 0xbce   : > { %v25619_v61 = vpop.f32.mrb[119].mxu1  ;;  %v14406_v10 = vsel %vm1135_vm2, %v14401_v7, %v14405_v13  ;;  %v25775_v7 = vld [vmem:[#allocation5 + $0x30] sm:$0xff] }
 0xbd0   : > { %14612 = vmatpush1.bf16.msra.mxu0 %v21030_v51  ;;  %v21060_v51 = vld [vmem:[%s26147_s9 + $0x690] ss:$8 sps:$4 sm:$0xff]  }
 0xbd1   : > { %14899 = vmatprep.subr.bf16.mxu0 %v21035_v36  ;;  %v21063_v36 = vld [vmem:[%s26147_s9 + $0x6a0] ss:$8 sps:$4 sm:$0xff]  }
 0xbd3   : > { %14614 = vmatmul.mubr.bf16.vlgmr.msra.gmra.mrb[80].mxu0 %v14389_v34  ;;  %v21071_v34 = vld [vmem:[%s26147_s9 + $0x6c4] ss:$8 sps:$4 sm:$0xff]  }
 0xbd4   : > { %14623 = vmatprep.mubr.bf16.mxu0 %v25252_v37  ;;  %14900 = vmatpush1.bf16.msra.mxu0 %v21033_v20  ;;  %v21044_v37 = vld [vmem:[%s26147_s9 + $0x634] ss:$8 sps:$4 sm:$0xff]   ;;  %v25713_v20 = vld [vmem:[#allocation5 + $0x28] sm:$0xff] }
 0xbd5   : > { %14901 = vmatprep.subr.bf16.mxu0 %v21038_v48  ;;  %v21066_v48 = vld [vmem:[%s26147_s9 + $0x6b0] ss:$8 sps:$4 sm:$0xff]  }
 0xbd6   : > { %v13247_v43 = vpop.f32.mrb[100].mxu0 }
 0xbd7   : > { %v13249_v31 = vpop.f32.mrb[101].mxu0 }
 0xbd8   : > { %v13251_v62 = vpop.f32.mrb[102].mxu0  ;;  %14902 = vmatpush1.bf16.msra.mxu0 %v21036_v29  ;;  %v21069_v29 = vld [vmem:[%s26147_s9 + $0x6c0] ss:$8 sps:$4 sm:$0xff]  }
 0xbd9   : > { %v13252_v8 = vpop.f32.mrb[103].mxu0  ;;  %14903 = vmatprep.subr.bf16.mxu0 %v21041_v1  ;;  %v21074_v1 = vld [vmem:[%s26147_s9 + $0x6d4] ss:$8 sps:$4 sm:$0xff]   ;;  %v21075_v62 = vld [vmem:[%s26147_s9 + $0x6e0] ss:$8 sps:$4 sm:$0xff]  }
 0xbda   : > { %v21078_v8 = vld [vmem:[%s26147_s9 + $0x6f0] ss:$8 sps:$4 sm:$0xff]  }
 0xbdb   : > { %14624 = vmatmul.mubr.bf16.gmra.mrb[84].mxu0 %v25273_v23  ;;  %v14403_v23 = vrot.slane %v25140_v40, 1  ;;  %v21048_v40 = vld [vmem:[%s26147_s9 + $0x650] ss:$8 sps:$4 sm:$0xff]  }
 0xbdc   : > { %v25642_v60 = vpop.f32.mrb[120].mxu1  ;;  %14633 = vmatprep.mubr.bf16.mxu0 %v25278_v58  ;;  %14904 = vmatpush1.bf16.msra.mxu0 %v21039_v47  ;;  %v21045_v58 = vld [vmem:[%s26147_s9 + $0x640] ss:$8 sps:$4 sm:$0xff]   ;;  %v21080_v47 = vld [vmem:[%s26147_s9 + $0x6f4] ss:$8 sps:$4 sm:$0xff]  }
 0xbdd   : > { %v25645_v25 = vpop.f32.mrb[121].mxu1  ;;  %14905 = vmatprep.subr.bf16.mxu0 %v21044_v37  ;;  %v14404_v56 = vsel %vm1135_vm2, %v25263_v41, %v14403_v23  ;;  %v14407_v41 = vrot.slane %v25500_v4, 1  ;;  %v21059_v4 = vld [vmem:[%s26147_s9 + $0x684] ss:$8 sps:$4 sm:$0xff]  }
 0xbde   : > { %v25651_v11 = vpop.f32.mrb[122].mxu1  ;;  %v21083_v37 = vld [vmem:[%s26147_s9 + $0x704] ss:$8 sps:$4 sm:$0xff]  }
 0xbdf   : > { %v25656_v24 = vpop.f32.mrb[123].mxu1  ;;  %v14408_v39 = vsel %vm1135_vm2, %v14403_v23, %v14407_v41 }
 0xbe0   : > { %14906 = vmatpush1.bf16.msra.mxu0 %v21042_v46 }
 0xbe1   : > { %14907 = vmatprep.subr.bf16.mxu0 %v21047_v2 }
 0xbe3   : > { %14634 = vmatmul.mubr.bf16.gmra.mrb[88].mxu0 %v25299_v15 }
 0xbe4   : > { %v12996_v18 = vpop.f32.mrb[124].mxu1  ;;  %14643 = vmatprep.mubr.bf16.mxu0 %v14404_v56  ;;  %14908 = vmatpush1.bf16.msra.mxu0 %v21045_v58 }
 0xbe5   : > { %v25668_v3 = vadd.f32 %v13247_v43, %v12996_v18  ;;  %v12998_v16 = vpop.f32.mrb[125].mxu1  ;;  %14909 = vmatprep.subr.bf16.mxu0 %v21050_v5  ;;  %v21072_v43 = vld [vmem:[%s26147_s9 + $0x6d0] ss:$8 sps:$4 sm:$0xff]   ;;  %v21081_v18 = vld [vmem:[%s26147_s9 + $0x700] ss:$8 sps:$4 sm:$0xff]  }
 0xbe6   : > { %v13250_v30 = vadd.f32 %v13249_v31, %v12998_v16  ;;  %v13000_v17 = vpop.f32.mrb[126].mxu1  ;;  %v21077_v31 = vld [vmem:[%s26147_s9 + $0x6e4] ss:$8 sps:$4 sm:$0xff]   ;;  %v21086_v16 = vld [vmem:[%s26147_s9 + $0x714] ss:$8 sps:$4 sm:$0xff]  }
 0xbe7   : > { %v13001_v15 = vpop.f32.mrb[127].mxu1  ;;  %v21089_v17 = vld [vmem:[%s26147_s9 + $0x724] ss:$8 sps:$4 sm:$0xff]  }
 0xbe8   : > { %14910 = vmatpush1.bf16.msra.mxu0 %v21048_v40  ;;  %v25757_v40 = vld [vmem:[#allocation5 + $0x20] sm:$0xff]  ;;  %v21092_v15 = vld [vmem:[%s26147_s9 + $0x734] ss:$8 sps:$4 sm:$0xff]  }
 0xbe9   : > { %14911 = vmatprep.subr.bf16.mxu0 %v21053_v38  ;;  %v21087_v38 = vld [vmem:[%s26147_s9 + $0x720] ss:$8 sps:$4 sm:$0xff]  }
 0xbeb   : > { %14644 = vmatmul.mubr.bf16.gmra.mrb[92].mxu0 %v14402_v6  ;;  %v21093_v6 = vld [vmem:[%s26147_s9 + $0x740] ss:$8 sps:$4 sm:$0xff]  }
 0xbec   : > { %14653 = vmatprep.mubr.bf16.mxu0 %v14408_v39  ;;  %14912 = vmatpush1.bf16.msra.mxu0 %v21051_v12  ;;  %v21090_v12 = vld [vmem:[%s26147_s9 + $0x730] ss:$8 sps:$4 sm:$0xff]   ;;  %v21098_v39 = vld [vmem:[%s26147_s9 + $0x754] ss:$8 sps:$4 sm:$0xff]  }
 0xbed   : > { %14913 = vmatprep.subr.bf16.mxu0 %v21056_v44  ;;  %v21095_v44 = vld [vmem:[%s26147_s9 + $0x744] ss:$8 sps:$4 sm:$0xff]  }
 0xbf0   : > { %14914 = vmatpush1.bf16.msra.mxu0 %v21054_v33  ;;  %v25793_v33 = vld [vmem:[#allocation5 + $0x40] sm:$0xff] }
 0xbf1   : > { %14915 = vmatprep.subr.bf16.mxu0 %v21059_v4  ;;  %v25796_v4 = vld [vmem:[#allocation5 + $0x58] sm:$0xff] }
 0xbf3   : > { %14654 = vmatmul.mubr.bf16.gmra.mrb[96].mxu0 %v14406_v10  ;;  %v21104_v10 = vld [vmem:[%s26147_s9 + $0x774] ss:$8 sps:$4 sm:$0xff]  }
 0xbf4   : > { %14663 = vmatprep.mubr.bf16.mxu0 %v14407_v41  ;;  %14916 = vmatpush1.bf16.msra.mxu0 %v21057_v45  ;;  %v25778_v41 = vld [vmem:[#allocation5 + $0x48] sm:$0xff] }
 0xbf5   : > { %14917 = vmatprep.subr.bf16.mxu0 %v21062_v19  ;;  %v21101_v45 = vld [vmem:[%s26147_s9 + $0x764] ss:$8 sps:$4 sm:$0xff]   ;;  %v21099_v19 = vld [vmem:[%s26147_s9 + $0x760] ss:$8 sps:$4 sm:$0xff]  }
 0xbf8   : > { %14918 = vmatpush1.bf16.msra.mxu0 %v21060_v51  ;;  %v25811_v51 = vld [vmem:[#allocation5 + $0x50] sm:$0xff] }
 0xbf9   : > { %14919 = vmatprep.subr.bf16.mxu0 %v21065_v63  ;;  %v25814_v63 = vld [vmem:[#allocation5 + $0x68] sm:$0xff] }
 0xbfb   : > { %14664 = vmatmul.mubr.bf16.gmra.mrb[116].mxu0 %v14405_v13  ;;  %v21096_v13 = vld [vmem:[%s26147_s9 + $0x750] ss:$8 sps:$4 sm:$0xff]  }
 0xbfc   : > { %14920 = vmatpush1.bf16.msra.mxu0 %v21063_v36  ;;  %14931 = vmatprep.mubr.bf16.mxu0 %v25713_v20  ;;  %v21102_v36 = vld [vmem:[%s26147_s9 + $0x770] ss:$8 sps:$4 sm:$0xff]  }
 0xbfd   : > { %14921 = vmatprep.subr.bf16.mxu0 %v21068_v32  ;;  %v21107_v32 = vld [vmem:[%s26147_s9 + $0x784] ss:$8 sps:$4 sm:$0xff]  }
 0xc00   : > { %14922 = vmatpush1.bf16.msra.mxu0 %v21066_v48  ;;  %v21105_v48 = vld [vmem:[%s26147_s9 + $0x780] ss:$8 sps:$4 sm:$0xff]  }
 0xc01   : > { %14923 = vmatprep.subr.bf16.mxu0 %v21071_v34  ;;  %v15062_v34 = vshll.u32 %v25713_v20, 16 }
 0xc04   : > { %14924 = vmatpush1.bf16.msra.mxu0 %v21069_v29  ;;  %v21110_v29 = vld [vmem:[%s26147_s9 + $0x794] ss:$8 sps:$4 sm:$0xff]  }
 0xc05   : > { %14925 = vmatprep.subr.bf16.mxu0 %v21074_v1  ;;  %v25830_v1 = vld [vmem:[#allocation5 + $0x60] sm:$0xff] }
 0xc08   : > { %14926 = vmatpush1.bf16.msra.mxu0 %v21072_v43  ;;  %v14705_v43 = vld [vmem:[#allocation5 + $0x78] sm:$0x7] }
 0xc09   : > { %14927 = vmatprep.subr.bf16.mxu0 %v21077_v31 }
 0xc0c   : > { %14928 = vmatpush1.bf16.msra.mxu0 %v21075_v62  ;;  %v21108_v62 = vld [vmem:[%s26147_s9 + $0x790] ss:$8 sps:$4 sm:$0xff]  }
 0xc0d   : > { %14929 = vmatprep.subr.bf16.mxu0 %v21080_v47  ;;  %v15064_v47 = vrot.slane %v15062_v34, 1 }
 0xc0e   : > { %v13579_v46 = vpop.f32.mrb[104].mxu0 }
 0xc0f   : > { %v25747_v2 = vadd.f32 %v13579_v46, %v25668_v3  ;;  %v13581_v23 = vpop.f32.mrb[105].mxu0  ;;  %v25760_v3 = vld [vmem:[#allocation5 + $0x38] sm:$0xff] }
 0xc10   : > { %v25749_v58 = vadd.f32 %v13581_v23, %v13250_v30  ;;  %v13583_v5 = vpop.f32.mrb[106].mxu0  ;;  %14930 = vmatpush1.bf16.msra.mxu0 %v21078_v8  ;;  %v21084_v30 = vld [vmem:[%s26147_s9 + $0x710] ss:$8 sps:$4 sm:$0xff]   ;;  %v15067_v31 = vshll.u32 %v25760_v3, 16  ;;  %v21113_v8 = vld [vmem:[%s26147_s9 + $0x7a4] ss:$8 sps:$4 sm:$0xff]  }
 0xc11   : > { %v13584_v56 = vpop.f32.mrb[107].mxu0  ;;  %15313 = vmatprep.subr.bf16.mxu0 %v21083_v37  ;;  %v15060_v37 = vshrl.u32 %v25713_v20, 16  ;;  %v21111_v23 = vld [vmem:[%s26147_s9 + $0x7a0] ss:$8 sps:$4 sm:$0xff]   ;;  %v21114_v20 = vld [vmem:[%s26147_s9 + $0x7b0] ss:$8 sps:$4 sm:$0xff]  }
 0xc12   : > { %v15069_v46 = vrot.slane %v15067_v31, 1  ;;  %v14704_v56 = vld [vmem:[#allocation5 + $0x70] sm:$0x7] }
 0xc13   : > { %14932 = vmatmul.mubr.bf16.vlgmr.msra.gmra.mrb[80].mxu0 %v25757_v40  ;;  %v15065_v5 = vor.u32 %v15064_v47, %v15060_v37 }
 0xc14   : > { %14941 = vmatprep.mubr.bf16.mxu0 %v25760_v3  ;;  %15314 = vmatpush1.bf16.msra.mxu0 %v21081_v18  ;;  %v21116_v18 = vld [vmem:[%s26147_s9 + $0x7b4] ss:$8 sps:$4 sm:$0xff]  }
 0xc15   : > { %15315 = vmatprep.subr.bf16.mxu0 %v21086_v16  ;;  %v15070_v16 = vsel %vm597_vm0, %v15065_v5, %v15069_v46 }
 0xc18   : > { %15316 = vmatpush1.bf16.msra.mxu0 %v21084_v30  ;;  %v21119_v30 = vld [vmem:[%s26147_s9 + $0x7c4] ss:$8 sps:$4 sm:$0xff]  }
 0xc19   : > { %15317 = vmatprep.subr.bf16.mxu0 %v21089_v17  ;;  %v21117_v17 = vld [vmem:[%s26147_s9 + $0x7c0] ss:$8 sps:$4 sm:$0xff]  }
 0xc1b   : > { %14942 = vmatmul.mubr.bf16.gmra.mrb[84].mxu0 %v25775_v7 }
 0xc1c   : > { %14951 = vmatprep.mubr.bf16.mxu0 %v25778_v41  ;;  %15318 = vmatpush1.bf16.msra.mxu0 %v21087_v38  ;;  %v21122_v38 = vld [vmem:[%s26147_s9 + $0x7d4] ss:$8 sps:$4 sm:$0xff]  }
 0xc1d   : > { %15319 = vmatprep.subr.bf16.mxu0 %v21092_v15  ;;  %v21120_v15 = vld [vmem:[%s26147_s9 + $0x7d0] ss:$8 sps:$4 sm:$0xff]  }
 0xc20   : > { %15320 = vmatpush1.bf16.msra.mxu0 %v21090_v12  ;;  %v21125_v12 = vld [vmem:[%s26147_s9 + $0x7e4] ss:$8 sps:$4 sm:$0xff]  }
 0xc21   : > { %15321 = vmatprep.subr.bf16.mxu0 %v21095_v44  ;;  %v15050_v44 = vshll.u32 %v25757_v40, 16 }
 0xc23   : > { %14952 = vmatmul.mubr.bf16.gmra.mrb[88].mxu0 %v25793_v33 }
 0xc24   : > { %14961 = vmatprep.mubr.bf16.mxu0 %v25796_v4  ;;  %15322 = vmatpush1.bf16.msra.mxu0 %v21093_v6  ;;  %v21123_v6 = vld [vmem:[%s26147_s9 + $0x7e0] ss:$8 sps:$4 sm:$0xff]  }
 0xc25   : > { %15323 = vmatprep.subr.bf16.mxu0 %v21098_v39  ;;  %v21128_v39 = vld [vmem:[%s26147_s9 + $0x7f4] ss:$8 sps:$4 sm:$0xff]  }
 0xc28   : > { %15324 = vmatpush1.bf16.msra.mxu0 %v21096_v13  ;;  %v15055_v13 = vshll.u32 %v25775_v7, 16 }
 0xc29   : > { %15325 = vmatprep.subr.bf16.mxu0 %v21101_v45  ;;  %v15083_v45 = vshll.u32 %v25778_v41, 16 }
 0xc2b   : > { %14962 = vmatmul.mubr.bf16.gmra.mrb[92].mxu0 %v25811_v51 }
 0xc2c   : > { %14971 = vmatprep.mubr.bf16.mxu0 %v25814_v63  ;;  %15326 = vmatpush1.bf16.msra.mxu0 %v21099_v19  ;;  %v15052_v19 = vrot.slane %v15050_v44, 1  ;;  %v21135_v44 = vld [vmem:[%s26147_s9 + $0x820] ss:$8 sps:$4 sm:$0xff]  }
 0xc2d   : > { %15327 = vmatprep.subr.bf16.mxu0 %v21104_v10  ;;  %v21126_v10 = vld [vmem:[%s26147_s9 + $0x7f0] ss:$8 sps:$4 sm:$0xff]  }
 0xc30   : > { %15328 = vmatpush1.bf16.msra.mxu0 %v21102_v36  ;;  %v21131_v36 = vld [vmem:[%s26147_s9 + $0x804] ss:$8 sps:$4 sm:$0xff]  }
 0xc31   : > { %15329 = vmatprep.subr.bf16.mxu0 %v21107_v32  ;;  %v15048_v32 = vshrl.u32 %v25757_v40, 16 }
 0xc33   : > { %14972 = vmatmul.mubr.bf16.gmra.mrb[96].mxu0 %v25830_v1  ;;  %v15053_v47 = vor.u32 %v15052_v19, %v15048_v32  ;;  %v21143_v32 = vld [vmem:[%s26147_s9 + $0x844] ss:$8 sps:$4 sm:$0xff]  }
 0xc34   : > { %14981 = vmatprep.mubr.bf16.mxu0 %v14705_v43  ;;  %15330 = vmatpush1.bf16.msra.mxu0 %v21105_v48  ;;  %v15057_v48 = vrot.slane %v15055_v13, 1 }
 0xc35   : > { %15331 = vmatprep.subr.bf16.mxu0 %v21110_v29  ;;  %v15079_v29 = vshrl.u32 %v25760_v3, 16 }
 0xc37   : > { %v15081_v5 = vor.u32 %v15079_v29, %v15069_v46  ;;  %v21137_v46 = vld [vmem:[%s26147_s9 + $0x824] ss:$8 sps:$4 sm:$0xff]   ;;  %v15111_v29 = vshrl.u32 %v25796_v4, 16 }
 0xc38   : > { %15332 = vmatpush1.bf16.msra.mxu0 %v21108_v62  ;;  %v15085_v62 = vrot.slane %v15083_v45, 1  ;;  %v15091_v45 = vshll.u32 %v25811_v51, 16 }
 0xc39   : > { %15333 = vmatprep.subr.bf16.mxu0 %v21113_v8 }
 0xc3b   : > { %14982 = vmatmul.mubr.bf16.gmra.mrb[120].mxu0 %v14704_v56  ;;  %v15075_v56 = vshll.u32 %v25793_v33, 16 }
 0xc3c   : > { %15334 = vmatpush1.bf16.msra.mxu0 %v21111_v23  ;;  %15345 = vmatprep.mubr.bf16.mxu0 %v15070_v16  ;;  %v21129_v23 = vld [vmem:[%s26147_s9 + $0x800] ss:$8 sps:$4 sm:$0xff]   ;;  %v15099_v16 = vshll.u32 %v25796_v4, 16 }
 0xc3d   : > { %15335 = vmatprep.subr.bf16.mxu0 %v21116_v18  ;;  %v15058_v18 = vsel %vm597_vm0, %v15053_v47, %v15057_v48  ;;  %v21141_v47 = vld [vmem:[%s26147_s9 + $0x840] ss:$8 sps:$4 sm:$0xff]  }
 0xc40   : > { %15336 = vmatpush1.bf16.msra.mxu0 %v21114_v20  ;;  %v21132_v20 = vld [vmem:[%s26147_s9 + $0x810] ss:$8 sps:$4 sm:$0xff]  }
 0xc41   : > { %15337 = vmatprep.subr.bf16.mxu0 %v21119_v30  ;;  %v15071_v30 = vshrl.u32 %v25775_v7, 16 }
 0xc44   : > { %15338 = vmatpush1.bf16.msra.mxu0 %v21117_v17  ;;  %v15077_v17 = vrot.slane %v15075_v56, 1 }
 0xc45   : > { %15339 = vmatprep.subr.bf16.mxu0 %v21122_v38  ;;  %v15095_v38 = vshrl.u32 %v25778_v41, 16 }
 0xc48   : > { %15340 = vmatpush1.bf16.msra.mxu0 %v21120_v15  ;;  %v15101_v15 = vrot.slane %v15099_v16, 1  ;;  %v21149_v16 = vld [vmem:[%s26147_s9 + $0x864] ss:$8 sps:$4 sm:$0xff]  }
 0xc49   : > { %15341 = vmatprep.subr.bf16.mxu0 %v21125_v12  ;;  %v15073_v12 = vor.u32 %v15071_v30, %v15057_v48  ;;  %v15087_v48 = vshrl.u32 %v25793_v33, 16  ;;  %v15127_v30 = vshrl.u32 %v25814_v63, 16 }
 0xc4b   : > { %v15078_v13 = vsel %vm597_vm0, %v15073_v12, %v15077_v17  ;;  %v21147_v12 = vld [vmem:[%s26147_s9 + $0x860] ss:$8 sps:$4 sm:$0xff]  }
 0xc4c   : > { %15342 = vmatpush1.bf16.msra.mxu0 %v21123_v6  ;;  %v15097_v6 = vor.u32 %v15095_v38, %v15085_v62  ;;  %v25945_v38 = vld [vmem:[#allocation5 + $0x70] sm:$0xf] }
 0xc4d   : > { %15343 = vmatprep.subr.bf16.mxu0 %v21128_v39  ;;  %v21140_v39 = vld [vmem:[%s26147_s9 + $0x834] ss:$8 sps:$4 sm:$0xff]  }
 0xc4e   : > { %v13897_v34 = vpop.f32.mrb[108].mxu0  ;;  %v15102_v19 = vsel %vm597_vm0, %v15097_v6, %v15101_v15  ;;  %v21152_v6 = vld [vmem:[%s26147_s9 + $0x874] ss:$8 sps:$4 sm:$0xff]  }
 0xc4f   : > { %v25884_v43 = vadd.f32 %v13897_v34, %v25747_v2  ;;  %v13899_v31 = vpop.f32.mrb[109].mxu0  ;;  %v21134_v2 = vld [vmem:[%s26147_s9 + $0x814] ss:$8 sps:$4 sm:$0xff]   ;;  %v15093_v34 = vrot.slane %v15091_v45, 1 }
 0xc50   : > { %v25887_v8 = vadd.f32 %v13899_v31, %v25749_v58  ;;  %v13901_v37 = vpop.f32.mrb[110].mxu0  ;;  %15344 = vmatpush1.bf16.msra.mxu0 %v21126_v10  ;;  %v15086_v58 = vsel %vm597_vm0, %v15081_v5, %v15085_v62  ;;  %v15115_v10 = vshll.u32 %v25814_v63, 16  ;;  %v15089_v62 = vor.u32 %v15087_v48, %v15077_v17 }
 0xc51   : > { %v13902_v40 = vpop.f32.mrb[111].mxu0  ;;  %15667 = vmatprep.subr.bf16.mxu0 %v21131_v36  ;;  %v21138_v36 = vld [vmem:[%s26147_s9 + $0x830] ss:$8 sps:$4 sm:$0xff]  }
 0xc52   : > { %v15117_v31 = vrot.slane %v15115_v10, 1  ;;  %v25928_v37 = vld [vmem:[#allocation5 + $0x78] sm:$0xf]  ;;  %v21146_v40 = vld [vmem:[%s26147_s9 + $0x854] ss:$8 sps:$4 sm:$0xff]   ;;  %v15094_v5 = vsel %vm597_vm0, %v15089_v62, %v15093_v34 }
 0xc53   : > { %15346 = vmatmul.mubr.bf16.vlgmr.msra.gmra.mrb[80].mxu0 %v15058_v18  ;;  %v15131_v56 = vshll.u32 %v25928_v37, 16  ;;  %v21155_v10 = vld [vmem:[%s26147_s9 + $0x884] ss:$8 sps:$4 sm:$0xff]  }
 0xc54   : > { %15355 = vmatprep.mubr.bf16.mxu0 %v15086_v58  ;;  %15668 = vmatpush1.bf16.msra.mxu0 %v21129_v23  ;;  %v15113_v23 = vor.u32 %v15111_v29, %v15101_v15  ;;  %v21144_v58 = vld [vmem:[%s26147_s9 + $0x850] ss:$8 sps:$4 sm:$0xff]   ;;  %v15138_v29 = vshrl.u32 %v25928_v37, 16 }
 0xc55   : > { %15669 = vmatprep.subr.bf16.mxu0 %v21134_v2  ;;  %v15107_v2 = vshll.u32 %v25830_v1, 16  ;;  %v15133_v17 = vrot.slane %v15131_v56, 1  ;;  %v21159_v56 = vld [vmem:[%s26147_s9 + $0x8a0] ss:$8 sps:$4 sm:$0xff]  }
 0xc56   : > { %v15118_v18 = vsel %vm597_vm0, %v15113_v23, %v15117_v31  ;;  %v21156_v23 = vld [vmem:[%s26147_s9 + $0x890] ss:$8 sps:$4 sm:$0xff]  }
 0xc58   : > { %15670 = vmatpush1.bf16.msra.mxu0 %v21132_v20  ;;  %v15103_v20 = vshrl.u32 %v25811_v51, 16 }
 0xc59   : > { %15671 = vmatprep.subr.bf16.mxu0 %v21137_v46  ;;  %v15109_v46 = vrot.slane %v15107_v2, 1  ;;  %v15135_v2 = vshrl.u32 %v25945_v38, 16 }
 0xc5a   : > { %v15105_v15 = vor.u32 %v15103_v20, %v15093_v34  ;;  %v21153_v34 = vld [vmem:[%s26147_s9 + $0x880] ss:$8 sps:$4 sm:$0xff]   ;;  %v21164_v20 = vld [vmem:[%s26147_s9 + $0x8b4] ss:$8 sps:$4 sm:$0xff]  }
 0xc5b   : > { %15356 = vmatmul.mubr.bf16.gmra.mrb[84].mxu0 %v15078_v13  ;;  %v15123_v13 = vshll.u32 %v25945_v38, 16 }
 0xc5c   : > { %15365 = vmatprep.mubr.bf16.mxu0 %v15102_v19  ;;  %15672 = vmatpush1.bf16.msra.mxu0 %v21135_v44  ;;  %v15129_v44 = vor.u32 %v15127_v30, %v15117_v31  ;;  %v21150_v19 = vld [vmem:[%s26147_s9 + $0x870] ss:$8 sps:$4 sm:$0xff]   ;;  %v21158_v31 = vld [vmem:[%s26147_s9 + $0x894] ss:$8 sps:$4 sm:$0xff]   ;;  %v21167_v30 = vld [vmem:[%s26147_s9 + $0x8c4] ss:$8 sps:$4 sm:$0xff]  }
 0xc5d   : > { %15673 = vmatprep.subr.bf16.mxu0 %v21140_v39  ;;  %v15110_v39 = vsel %vm597_vm0, %v15105_v15, %v15109_v46  ;;  %v21170_v15 = vld [vmem:[%s26147_s9 + $0x8d4] ss:$8 sps:$4 sm:$0xff]  }
 0xc5e   : > { %v15134_v45 = vsel %vm597_vm0, %v15129_v44, %v15133_v17  ;;  %v21173_v44 = vld [vmem:[%s26147_s9 + $0x8e4] ss:$8 sps:$4 sm:$0xff]  }
 0xc60   : > { %15674 = vmatpush1.bf16.msra.mxu0 %v21138_v36  ;;  %v15119_v36 = vshrl.u32 %v25830_v1, 16 }
 0xc61   : > { %15675 = vmatprep.subr.bf16.mxu0 %v21143_v32  ;;  %v15125_v32 = vrot.slane %v15123_v13, 1  ;;  %v21174_v13 = vld [vmem:[%s26147_s9 + $0x8f0] ss:$8 sps:$4 sm:$0xff]  }
 0xc62   : > { %v15121_v48 = vor.u32 %v15119_v36, %v15109_v46 }
 0xc63   : > { %15366 = vmatmul.mubr.bf16.gmra.mrb[88].mxu0 %v15094_v5  ;;  %v15427_v5 = vld [vmem:[#allocation5 + $0x28] sm:$0xfe] }
 0xc64   : > { %15375 = vmatprep.mubr.bf16.mxu0 %v15118_v18  ;;  %15676 = vmatpush1.bf16.msra.mxu0 %v21141_v47  ;;  %v15126_v62 = vsel %vm597_vm0, %v15121_v48, %v15125_v32  ;;  %v15140_v47 = vor.u32 %v15138_v29, %v15133_v17  ;;  %v15477_v18 = vrot.slane %v25760_v3, 1  ;;  %v21162_v3 = vld [vmem:[%s26147_s9 + $0x8b0] ss:$8 sps:$4 sm:$0xff]   ;;  %v21165_v17 = vld [vmem:[%s26147_s9 + $0x8c0] ss:$8 sps:$4 sm:$0xff]   ;;  %v15481_v48 = vrot.slane %v25778_v41, 1 }
 0xc65   : > { %15677 = vmatprep.subr.bf16.mxu0 %v21146_v40  ;;  %v21161_v40 = vld [vmem:[%s26147_s9 + $0x8a4] ss:$8 sps:$4 sm:$0xff]  }
 0xc68   : > { %15678 = vmatpush1.bf16.msra.mxu0 %v21144_v58  ;;  %v15137_v58 = vor.u32 %v15135_v2, %v15125_v32 }
 0xc69   : > { %15679 = vmatprep.subr.bf16.mxu0 %v21149_v16  ;;  %v15476_v16 = vrot.slane %v15427_v5, 1  ;;  %v15489_v5 = vrot.slane %v25814_v63, 1 }
 0xc6b   : > { %15376 = vmatmul.mubr.bf16.gmra.mrb[92].mxu0 %v15110_v39  ;;  %v15478_v46 = vsel %vm1135_vm2, %v15476_v16, %v15477_v18  ;;  %v21176_v39 = vld [vmem:[%s26147_s9 + $0x8f4] ss:$8 sps:$4 sm:$0xff]  }
 0xc6c   : > { %15385 = vmatprep.mubr.bf16.mxu0 %v15134_v45  ;;  %15680 = vmatpush1.bf16.msra.mxu0 %v21147_v12  ;;  %v21168_v12 = vld [vmem:[%s26147_s9 + $0x8d0] ss:$8 sps:$4 sm:$0xff]   ;;  %v15426_v45 = vld [vmem:[#allocation5 + $0x20] sm:$0xfe] }
 0xc6d   : > { %15681 = vmatprep.subr.bf16.mxu0 %v21152_v6  ;;  %v21171_v6 = vld [vmem:[%s26147_s9 + $0x8e0] ss:$8 sps:$4 sm:$0xff]  }
 0xc70   : > { %15682 = vmatpush1.bf16.msra.mxu0 %v21150_v19  ;;  %v15474_v19 = vrot.slane %v25775_v7, 1  ;;  %v15479_v7 = vrot.slane %v25793_v33, 1  ;;  %v15487_v33 = vrot.slane %v25830_v1, 1 }
 0xc71   : > { %15683 = vmatprep.subr.bf16.mxu0 %v21155_v10 }
 0xc73   : > { %15386 = vmatmul.mubr.bf16.gmra.mrb[96].mxu0 %v15126_v62 }
 0xc74   : > { %15395 = vmatprep.mubr.bf16.mxu0 %v15140_v47  ;;  %15684 = vmatpush1.bf16.msra.mxu0 %v21153_v34 }
 0xc75   : > { %15685 = vmatprep.subr.bf16.mxu0 %v21158_v31  ;;  %v15473_v31 = vrot.slane %v15426_v45, 1 }
 0xc77   : > { %v15475_v47 = vsel %vm1135_vm2, %v15473_v31, %v15474_v19 }
 0xc78   : > { %15686 = vmatpush1.bf16.msra.mxu0 %v21156_v23  ;;  %v15482_v23 = vsel %vm1135_vm2, %v15477_v18, %v15481_v48 }
 0xc79   : > { %15687 = vmatprep.subr.bf16.mxu0 %v21161_v40  ;;  %v15485_v40 = vrot.slane %v25796_v4, 1  ;;  %v15493_v4 = vrot.slane %v25928_v37, 1 }
 0xc7b   : > { %15396 = vmatmul.mubr.bf16.gmra.mrb[124].mxu0 %v15137_v58  ;;  %v15486_v41 = vsel %vm1135_vm2, %v15481_v48, %v15485_v40  ;;  %v15490_v18 = vsel %vm1135_vm2, %v15485_v40, %v15489_v5  ;;  %v15494_v58 = vsel %vm1135_vm2, %v15489_v5, %v15493_v4  ;;  %v15921_v48 = vld [vmem:[#allocation7] sm:$0x1]  ;;  %v26060_v5 = vstv %s17912_s21 }
 0xc7c   : > { %15688 = vmatpush1.bf16.msra.mxu0 %v21159_v56  ;;  %15699 = vmatprep.mubr.bf16.mxu0 %v15478_v46 }
 0xc7d   : > { %15689 = vmatprep.subr.bf16.mxu0 %v21164_v20  ;;  %15924 = vperm.xlu0 %19976, %v15921_v48  }
 0xc80   : > { %15690 = vmatpush1.bf16.msra.mxu0 %v21162_v3 }
 0xc81   : > { %15691 = vmatprep.subr.bf16.mxu0 %v21167_v30 }
 0xc84   : > { %15692 = vmatpush1.bf16.msra.mxu0 %v21165_v17 }
 0xc85   : > { %15693 = vmatprep.subr.bf16.mxu0 %v21170_v15 }
 0xc88   : > { %15694 = vmatpush1.bf16.msra.mxu0 %v21168_v12 }
 0xc89   : > { %15695 = vmatprep.subr.bf16.mxu0 %v21173_v44 }
 0xc8c   : > { %15696 = vmatpush1.bf16.msra.mxu0 %v21171_v6 }
 0xc8d   : > { %15697 = vmatprep.subr.bf16.mxu0 %v21176_v39  ;;  %v21213_v39 = vmov 1966171168  }
 0xc8e   : > { %v14311_v10 = vpop.f32.mrb[112].mxu0 }
 0xc8f   : > { %v14338_v36 = vadd.f32 %v14311_v10, %v25884_v43  ;;  %v14313_v32 = vpop.f32.mrb[113].mxu0  ;;  %v15480_v43 = vsel %vm1135_vm2, %v15474_v19, %v15479_v7 }
 0xc90   : > { %v14339_v34 = vadd.f32 %v14313_v32, %v25887_v8  ;;  %v14315_v29 = vpop.f32.mrb[114].mxu0  ;;  %15698 = vmatpush1.bf16.msra.mxu0 %v21174_v13  ;;  %v15483_v8 = vrot.slane %v25811_v51, 1  ;;  %v15491_v51 = vrot.slane %v25945_v38, 1  ;;  %v15941_v13 = vunpack.c.l.s4 %v21213_v39 }
 0xc91   : > { %v14316_v62 = vpop.f32.mrb[115].mxu0  ;;  %v26036_v38 = vld.sshfl [vmem:[%s26149_s11] sm:$0x11 pattern:$0x75316420] }
 0xc92   : > { %v15484_v2 = vsel %vm1135_vm2, %v15479_v7, %v15483_v8  ;;  %v15488_v56 = vsel %vm1135_vm2, %v15483_v8, %v15487_v33  ;;  %v15492_v63 = vsel %vm1135_vm2, %v15487_v33, %v15491_v51  ;;  %v15939_v45 = vcombine.high %v26036_v38, %v26036_v38 }
 0xc93   : > { %15700 = vmatmul.mubr.bf16.vlgmr.msra.gmra.mrb[80].mxu0 %v15475_v47  ;;  %v15942_v19 = vunpack.c.0.s8 %v15941_v13 }
 0xc94   : > { %15709 = vmatprep.mubr.bf16.mxu0 %v15482_v23 }
 0xc95   : > { %v26041_v10 = vsub.s32 %v15942_v19, %v23505_v52  ;;  %v15780_v52 = vld [vmem:[%s26148_s10] sm:$0x3] }
 0xc96   : > { %v26054_v7 = vrot.slane %v15780_v52, %v23508_v42 }
 0xc97   : > { %v15953_v32 = vrot.slane %v15939_v45, %v26041_v10 }
 0xc99   : > { %15988 = vmatprep.mubr.bf16.mxu1 %v15953_v32 }
 0xc9b   : > { %15710 = vmatmul.mubr.bf16.gmra.mrb[84].mxu0 %v15480_v43  ;;  %v26057_v43 = vrot.slane %v15780_v52, %v23514_v0 }
 0xc9c   : > { %15719 = vmatprep.mubr.bf16.mxu0 %v15486_v41 }
 0xca3   : > { %15720 = vmatmul.mubr.bf16.gmra.mrb[88].mxu0 %v15484_v2 }
 0xca4   : > { %15729 = vmatprep.mubr.bf16.mxu0 %v15490_v18 }
 0xcab   : > { %15730 = vmatmul.mubr.bf16.gmra.mrb[92].mxu0 %v15488_v56 }
 0xcac   : > { %15739 = vmatprep.mubr.bf16.mxu0 %v15494_v58 }
 0xcb3   : > { %15740 = vmatmul.mubr.bf16.gmra.mrb[96].mxu0 %v15492_v63 }
 0xcb4   : > { %15749 = vmatprep.mubr.bf16.mxu0 %v15493_v4 }
 0xcbb   : > { %15750 = vmatmul.mubr.bf16.gmra.mrb[128].mxu0 %v15491_v51 }
 0xcce   : > { %v14665_v16 = vpop.f32.mrb[116].mxu0 }
 0xccf   : > { %v14692_v20 = vadd.f32 %v14665_v16, %v14338_v36  ;;  %v14667_v46 = vpop.f32.mrb[117].mxu0  ;;  %v15946_v36 = vrot.slane %v26036_v38, %v26041_v10 }
 0xcd0   : > { %v14693_v3 = vadd.f32 %v14667_v46, %v14339_v34  ;;  %v14669_v1 = vpop.f32.mrb[118].mxu0 }
 0xcd1   : > { %v14670_v30 = vpop.f32.mrb[119].mxu0 }
 0xd0e   : > { %v14983_v37 = vpop.f32.mrb[120].mxu0 }
 0xd0f   : > { %v15010_v17 = vadd.f32 %v14983_v37, %v14692_v20  ;;  %v14985_v15 = vpop.f32.mrb[121].mxu0 }
 0xd10   : > { %v15011_v12 = vadd.f32 %v14985_v15, %v14693_v3  ;;  %v14987_v44 = vpop.f32.mrb[122].mxu0 }
 0xd11   : > { %v14988_v6 = vpop.f32.mrb[123].mxu0 }
 0xd4e   : > { %v15397_v34 = vpop.f32.mrb[124].mxu0 }
 0xd4f   : > { %v26046_v29 = vadd.f32 %v15397_v34, %v15010_v17  ;;  %v15399_v31 = vpop.f32.mrb[125].mxu0 }
 0xd50   : > { %v26048_v62 = vadd.f32 %v15399_v31, %v15011_v12  ;;  %v15401_v47 = vpop.f32.mrb[126].mxu0 }
 0xd51   : > { %v15402_v23 = vpop.f32.mrb[127].mxu0 }
 0xd66   : > { %v15701_v40 = vpop.f32.mrb[80].mxu0 }
 0xd67   : > { %v18863_v41 = vadd.f32 %v15701_v40, %v25544_v55  ;;  %v15703_v8 = vpop.f32.mrb[81].mxu0 }
 0xd68   : > { %v18864_v2 = vadd.f32 %v15703_v8, %v25546_v50  ;;  %v15705_v18 = vpop.f32.mrb[82].mxu0 }
 0xd69   : > { %v15792_v33 = vadd.f32 %v18863_v41, %v26054_v7  ;;  %v18865_v4 = vadd.f32 %v15705_v18, %v25551_v53  ;;  %v15707_v56 = vpop.f32.mrb[83].mxu0 }
 0xd6a   : > { %v15793_v58 = vadd.f32 %v18864_v2, %v26057_v43  ;;  %v18866_v51 = vadd.f32 %v15707_v56, %v25556_v26 }
 0xd6b   : > { %v15838_v0 = vmul.f32 %v26060_v5, %v15792_v33  ;;  %v15794_v63 = vadd.f32 %v18865_v4, %v26054_v7  ;;  %vm15815_vm0 = vcmp.ge.f32.partialorder %v15792_v33, 0.0 }
 0xd6c   : > { %v15839_v55 = vmul.f32 %v26060_v5, %v15793_v58  ;;  %v15795_v16 = vadd.f32 %v18866_v51, %v26057_v43  ;;  %vm15816_vm2 = vcmp.ge.f32.partialorder %v15793_v58, 0.0 }
 0xd6d   : > { %vm15817_vm12 = vcmp.ge.f32.partialorder %v15794_v63, 0.0  ;;  %v15840_v50 = vmul.f32 %v26060_v5, %v15794_v63  ;;  %v15860_v46 = vsel %vm15815_vm0, %v15792_v33, %v15838_v0 }
 0xd6e   : > { %vm15818_vm13 = vcmp.ge.f32.partialorder %v15795_v16, 0.0  ;;  %v15841_v53 = vmul.f32 %v26060_v5, %v15795_v16  ;;  %v15711_v20 = vpop.f32.mrb[84].mxu0  ;;  %v15861_v30 = vsel %vm15816_vm2, %v15793_v58, %v15839_v55 }
 0xd6f   : > { %v15862_v3 = vsel %vm15817_vm12, %v15794_v63, %v15840_v50  ;;  %v18867_v26 = vadd.f32 %v15711_v20, %v25565_v22  ;;  %v15713_v1 = vpop.f32.mrb[85].mxu0 }
 0xd70   : > { %v15882_v37 = vpack.c.bf16 %v15862_v3, %v15860_v46  ;;  %v15863_v17 = vsel %vm15818_vm13, %v15795_v16, %v15841_v53  ;;  %v18868_v15 = vadd.f32 %v15713_v1, %v25569_v14  ;;  %v15715_v12 = vpop.f32.mrb[86].mxu0 }
 0xd71   : > { %v15883_v44 = vpack.c.bf16 %v15863_v17, %v15861_v30  ;;  %v15796_v6 = vadd.f32 %v18867_v26, %v26054_v7  ;;  %v18869_v39 = vadd.f32 %v15715_v12, %v25574_v27  ;;  %v15717_v13 = vpop.f32.mrb[87].mxu0 }
 0xd72   : > { %v15797_v45 = vadd.f32 %v18868_v15, %v26057_v43  ;;  %v18870_v19 = vadd.f32 %v15717_v13, %v25579_v59 }
 0xd73   : > { %v15842_v32 = vmul.f32 %v26060_v5, %v15796_v6  ;;  %v15798_v22 = vadd.f32 %v18869_v39, %v26054_v7  ;;  %15956 = vmatprep.subr.bf16.mxu1 %v15883_v44  ;;  %vm15819_vm14 = vcmp.ge.f32.partialorder %v15796_v6, 0.0 }
 0xd74   : > { %v15843_v48 = vmul.f32 %v26060_v5, %v15797_v45  ;;  %v15799_v14 = vadd.f32 %v18870_v19, %v26057_v43  ;;  %15957 = vmatpush1.bf16.xpose.msra.mxu1 %v15882_v37  ;;  %vm15820_vm15 = vcmp.ge.f32.partialorder %v15797_v45, 0.0 }
 0xd75   : > { %vm15821_vm1 = vcmp.ge.f32.partialorder %v15798_v22, 0.0  ;;  %v15844_v27 = vmul.f32 %v26060_v5, %v15798_v22  ;;  %v15864_v59 = vsel %vm15819_vm14, %v15796_v6, %v15842_v32 }
 0xd76   : > { %vm15822_vm3 = vcmp.ge.f32.partialorder %v15799_v14, 0.0  ;;  %v15845_v34 = vmul.f32 %v26060_v5, %v15799_v14  ;;  %v15721_v31 = vpop.f32.mrb[88].mxu0  ;;  %v15865_v40 = vsel %vm15820_vm15, %v15797_v45, %v15843_v48 }
 0xd77   : > { %v15866_v47 = vsel %vm15821_vm1, %v15798_v22, %v15844_v27  ;;  %v18871_v23 = vadd.f32 %v15721_v31, %v25587_v49  ;;  %v15723_v52 = vpop.f32.mrb[89].mxu0  ;;  %vm15997_vm1 = vcmask 778240  }
 0xd78   : > { %v15884_v41 = vpack.c.bf16 %v15866_v47, %v15864_v59  ;;  %v15867_v8 = vsel %vm15822_vm3, %v15799_v14, %v15845_v34  ;;  %v18872_v2 = vadd.f32 %v15723_v52, %v25589_v54  ;;  %v15725_v18 = vpop.f32.mrb[90].mxu0 }
 0xd79   : > { %v15885_v33 = vpack.c.bf16 %v15867_v8, %v15865_v40  ;;  %v15800_v4 = vadd.f32 %v18871_v23, %v26054_v7  ;;  %v18873_v56 = vadd.f32 %v15725_v18, %v25594_v9  ;;  %v15727_v58 = vpop.f32.mrb[91].mxu0 }
 0xd7a   : > { %v15801_v51 = vadd.f32 %v18872_v2, %v26057_v43  ;;  %v18874_v0 = vadd.f32 %v15727_v58, %v25599_v28 }
 0xd7b   : > { %v15846_v63 = vmul.f32 %v26060_v5, %v15800_v4  ;;  %v15802_v49 = vadd.f32 %v18873_v56, %v26054_v7  ;;  %15958 = vmatprep.subr.bf16.mxu1 %v15885_v33  ;;  %vm15823_vm4 = vcmp.ge.f32.partialorder %v15800_v4, 0.0 }
 0xd7c   : > { %v15847_v55 = vmul.f32 %v26060_v5, %v15801_v51  ;;  %v15803_v54 = vadd.f32 %v18874_v0, %v26057_v43  ;;  %15959 = vmatpush1.bf16.xpose.msra.mxu1 %v15884_v41  ;;  %vm15824_vm5 = vcmp.ge.f32.partialorder %v15801_v51, 0.0 }
 0xd7d   : > { %vm15825_vm6 = vcmp.ge.f32.partialorder %v15802_v49, 0.0  ;;  %v15848_v9 = vmul.f32 %v26060_v5, %v15802_v49  ;;  %v15868_v28 = vsel %vm15823_vm4, %v15800_v4, %v15846_v63 }
 0xd7e   : > { %vm15826_vm7 = vcmp.ge.f32.partialorder %v15803_v54, 0.0  ;;  %v15849_v16 = vmul.f32 %v26060_v5, %v15803_v54  ;;  %v15731_v50 = vpop.f32.mrb[92].mxu0  ;;  %v15869_v3 = vsel %vm15824_vm5, %v15801_v51, %v15847_v55 }
 0xd7f   : > { %v15870_v53 = vsel %vm15825_vm6, %v15802_v49, %v15848_v9  ;;  %v18875_v20 = vadd.f32 %v15731_v50, %v25607_v57  ;;  %v15733_v46 = vpop.f32.mrb[93].mxu0 }
 0xd80   : > { %v15886_v26 = vpack.c.bf16 %v15870_v53, %v15868_v28  ;;  %v15871_v1 = vsel %vm15826_vm7, %v15803_v54, %v15849_v16  ;;  %v18876_v30 = vadd.f32 %v15733_v46, %v25609_v35  ;;  %v15735_v37 = vpop.f32.mrb[94].mxu0 }
 0xd81   : > { %v15887_v17 = vpack.c.bf16 %v15871_v1, %v15869_v3  ;;  %v15804_v15 = vadd.f32 %v18875_v20, %v26054_v7  ;;  %v18877_v12 = vadd.f32 %v15735_v37, %v25614_v21  ;;  %v15737_v44 = vpop.f32.mrb[95].mxu0 }
 0xd82   : > { %v15805_v6 = vadd.f32 %v18876_v30, %v26057_v43  ;;  %v18878_v39 = vadd.f32 %v15737_v44, %v25619_v61 }
 0xd83   : > { %v15850_v13 = vmul.f32 %v26060_v5, %v15804_v15  ;;  %v15806_v57 = vadd.f32 %v18877_v12, %v26054_v7  ;;  %15960 = vmatprep.subr.bf16.mxu1 %v15887_v17  ;;  %vm15827_vm8 = vcmp.ge.f32.partialorder %v15804_v15, 0.0 }
 0xd84   : > { %v15851_v45 = vmul.f32 %v26060_v5, %v15805_v6  ;;  %v15807_v35 = vadd.f32 %v18878_v39, %v26057_v43  ;;  %15961 = vmatpush1.bf16.xpose.msra.mxu1 %v15886_v26  ;;  %vm15828_vm9 = vcmp.ge.f32.partialorder %v15805_v6, 0.0 }
 0xd85   : > { %vm15829_vm10 = vcmp.ge.f32.partialorder %v15806_v57, 0.0  ;;  %v15852_v21 = vmul.f32 %v26060_v5, %v15806_v57  ;;  %v15872_v61 = vsel %vm15827_vm8, %v15804_v15, %v15850_v13 }
 0xd86   : > { %vm15830_vm11 = vcmp.ge.f32.partialorder %v15807_v35, 0.0  ;;  %v15853_v19 = vmul.f32 %v26060_v5, %v15807_v35  ;;  %v15741_v32 = vpop.f32.mrb[96].mxu0  ;;  %v15873_v27 = vsel %vm15828_vm9, %v15805_v6, %v15851_v45 }
 0xd87   : > { %v15874_v22 = vsel %vm15829_vm10, %v15806_v57, %v15852_v21  ;;  %v18879_v48 = vadd.f32 %v15741_v32, %v25642_v60  ;;  %v15743_v14 = vpop.f32.mrb[97].mxu0 }
 0xd88   : > { %v15888_v34 = vpack.c.bf16 %v15874_v22, %v15872_v61  ;;  %v15875_v31 = vsel %vm15830_vm11, %v15807_v35, %v15853_v19  ;;  %v18880_v59 = vadd.f32 %v15743_v14, %v25645_v25  ;;  %v15745_v47 = vpop.f32.mrb[98].mxu0 }
 0xd89   : > { %v15889_v23 = vpack.c.bf16 %v15875_v31, %v15873_v27  ;;  %v15808_v52 = vadd.f32 %v18879_v48, %v26054_v7  ;;  %v18881_v40 = vadd.f32 %v15745_v47, %v25651_v11  ;;  %v15747_v41 = vpop.f32.mrb[99].mxu0 }
 0xd8a   : > { %v15809_v8 = vadd.f32 %v18880_v59, %v26057_v43  ;;  %v18882_v2 = vadd.f32 %v15747_v41, %v25656_v24 }
 0xd8b   : > { %v15854_v18 = vmul.f32 %v26060_v5, %v15808_v52  ;;  %v15810_v60 = vadd.f32 %v18881_v40, %v26054_v7  ;;  %15962 = vmatprep.subr.bf16.mxu1 %v15889_v23  ;;  %vm15831_vm0 = vcmp.ge.f32.partialorder %v15808_v52, 0.0 }
 0xd8c   : > { %v15855_v33 = vmul.f32 %v26060_v5, %v15809_v8  ;;  %v15811_v25 = vadd.f32 %v18882_v2, %v26057_v43  ;;  %15963 = vmatpush1.bf16.xpose.msra.mxu1 %v15888_v34  ;;  %vm15832_vm2 = vcmp.ge.f32.partialorder %v15809_v8, 0.0 }
 0xd8d   : > { %vm15833_vm12 = vcmp.ge.f32.partialorder %v15810_v60, 0.0  ;;  %v15856_v11 = vmul.f32 %v26060_v5, %v15810_v60  ;;  %v15876_v24 = vsel %vm15831_vm0, %v15808_v52, %v15854_v18 }
 0xd8e   : > { %vm15834_vm13 = vcmp.ge.f32.partialorder %v15811_v25, 0.0  ;;  %v15857_v4 = vmul.f32 %v26060_v5, %v15811_v25  ;;  %v15751_v56 = vpop.f32.mrb[128].mxu0  ;;  %v15877_v63 = vsel %vm15832_vm2, %v15809_v8, %v15855_v33 }
 0xd8f   : > { %v15878_v58 = vsel %vm15833_vm12, %v15810_v60, %v15856_v11  ;;  %v15778_v51 = vadd.f32 %v15751_v56, %v26046_v29  ;;  %v15753_v0 = vpop.f32.mrb[129].mxu0 }
 0xd90   : > { %v15890_v49 = vpack.c.bf16 %v15878_v58, %v15876_v24  ;;  %v15879_v55 = vsel %vm15834_vm13, %v15811_v25, %v15857_v4  ;;  %v15779_v54 = vadd.f32 %v15753_v0, %v26048_v62  ;;  %v15755_v9 = vpop.f32.mrb[130].mxu0 }
 0xd91   : > { %v15891_v16 = vpack.c.bf16 %v15879_v55, %v15877_v63  ;;  %v15812_v50 = vadd.f32 %v26054_v7, %v15778_v51  ;;  %v15756_v28 = vpop.f32.mrb[131].mxu0 }
 0xd92   : > { %v15813_v53 = vadd.f32 %v26057_v43, %v15779_v54  ;;  %v15925_v43 = vpop.permute.xlu0 %15924 }
 0xd93   : > { %vm15835_vm14 = vcmp.ge.f32.partialorder %v15812_v50, 0.0  ;;  %v15858_v20 = vmul.f32 %v26060_v5, %v15812_v50  ;;  %15964 = vmatprep.subr.bf16.mxu1 %v15891_v16  ;;  %v15930_v30 = vrot.slane %v15925_v43, %v23508_v42 }
 0xd94   : > { %vm15836_vm15 = vcmp.ge.f32.partialorder %v15813_v53, 0.0  ;;  %v15859_v29 = vmul.f32 %v26060_v5, %v15813_v53  ;;  %15965 = vmatpush1.bf16.xpose.msra.mxu1 %v15890_v49 }
 0xd95   : > { %v15880_v46 = vsel %vm15835_vm14, %v15812_v50, %v15858_v20 }
 0xd96   : > { %v15892_v3 = vpack.c.bf16 %v15880_v46, %v15880_v46  ;;  %v15881_v26 = vsel %vm15836_vm15, %v15813_v53, %v15859_v29 }
 0xd97   : > { %v15893_v62 = vpack.c.bf16 %v15881_v26, %v15881_v26 }
 0xd98   : > { %15904 = vst [vmem:[#allocation6 + $0x50] sm:$0x7] %v15892_v3 }
 0xd99   : > { %15905 = vst [vmem:[#allocation6 + $0x58] sm:$0x7] %v15893_v62 }
 0xd9f   : > { %v15918_v7 = vld [vmem:[#allocation6 + $0x50] sm:$0xff] }
 0xda0   : > { %v15919_v1 = vld [vmem:[#allocation6 + $0x58] sm:$0xff] }
 0xda1   : > { %15966 = vmatprep.subr.bf16.mxu1 %v15919_v1 }
 0xda2   : > { %15967 = vmatpush1.bf16.xpose.msra.mxu1 %v15918_v7 }
 0xda9   : > { %15989 = vmatmul.mubr.bf16.vlgmr.msra.gmra.mrb[128].mxu1 %v15946_v36 }
 0xe7c   : > { %v15990_v5 = vpop.f32.mrb[128].mxu1 }
 0xe7d   : > { %v15991_v37 = vadd.f32 %v15990_v5, %v15930_v30  ;;  %v15992_v17 = vpop.f32.mrb[129].mxu1 }
 0xe7e   : > { %v15993_v15 = vpop.f32.mrb[130].mxu1 }
 0xe7f   : > { %v15996_v12 = vand.u32 2147483647, %v15991_v37  ;;  %v15994_v44 = vpop.f32.mrb[131].mxu1 }
 0xe81   : > { %15998 = vst.msk [vmem:[%s479_s26] sm:$0x1] %vm15997_vm1, %v15996_v12 }
 0xe82 PF: > { %s27_s15 = sadd.s32 1, %s21209_s15  }
 0xe83   : > { %p24_p1 = scmp.ge.s32.totalorder %s27_s15, 4  }
 0xe85   :  { %26 = sbr.rel (!%p24_p1) target bundleno = 4 (0x4), region = 151 }
 0xe8c   :  { %16016 = vsyncpa [#allocation9], 1 }
 0xe8d   :  { %16018 = vsyncpa [#allocation9 + $0x1], 1 }

</bundles_post_ra>
